<compile_context>
chip_gen: v7x
topology: tpu7x:2x2x1
jax: 0.10.0
libtpu: 0.0.40
codegen_flags: <defaults>
</compile_context>

<pallas_src>
import jax
import jax.numpy as jnp
from jax import lax
from jax.experimental import pallas as pl
from jax.experimental.pallas import tpu as pltpu

_VMEM_LIMIT = 32 * 1024 * 1024


# ------------------------- Pallas kernels -------------------------

def _mm_bias_relu_kernel(x_ref, w_ref, b_ref, o_ref):
    # Conv-as-matmul: (tm, K) @ (K, 128) + bias -> ReLU.  Tiny, f32 is free.
    y = jnp.dot(x_ref[...], w_ref[...], preferred_element_type=jnp.float32)
    o_ref[...] = jnp.maximum(y + b_ref[...], 0.0).astype(o_ref.dtype)


def conv_matmul_relu(patches, w, b, tm):
    M, K = patches.shape
    _, N = w.shape
    assert M % tm == 0
    return pl.pallas_call(
        _mm_bias_relu_kernel,
        out_shape=jax.ShapeDtypeStruct((M, N), jnp.float32),
        grid_spec=pltpu.PrefetchScalarGridSpec(
            num_scalar_prefetch=0,
            grid=(M // tm,),
            in_specs=[
                pl.BlockSpec((tm, K), lambda i: (i, 0)),
                pl.BlockSpec((K, N), lambda i: (0, 0)),
                pl.BlockSpec((1, N), lambda i: (0, 0)),
            ],
            out_specs=pl.BlockSpec((tm, N), lambda i: (i, 0)),
        ),
        compiler_params=pltpu.CompilerParams(
            dimension_semantics=("parallel",),
            vmem_limit_bytes=_VMEM_LIMIT),
    )(patches, w, b.reshape(1, N))


def _nv_partial_kernel(x_ref, w_ref, o_ref):
    # One K-half of the nv Linear: (B, tk) @ (tk, 32) in bf16, f32 accumulate.
    w = w_ref[...]
    x = x_ref[...].astype(w.dtype)
    o_ref[...] = jnp.dot(x, w, preferred_element_type=jnp.float32)


def nv_linear(flat, w, b, n_split=2):
    """flat:(B,16384) @ w:(16384,32)[bf16] + b, reduction split over a size-2
    "parallel" grid axis (each v7x TensorCore streams half the weight)."""
    M, K = flat.shape
    K2, N = w.shape
    assert K == K2 and K % n_split == 0
    tk = K // n_split
    partial = pl.pallas_call(
        _nv_partial_kernel,
        out_shape=jax.ShapeDtypeStruct((n_split, M, N), jnp.float32),
        grid_spec=pltpu.PrefetchScalarGridSpec(
            num_scalar_prefetch=0,
            grid=(n_split,),
            in_specs=[
                pl.BlockSpec((M, tk), lambda i: (0, i)),
                pl.BlockSpec((tk, N), lambda i: (i, 0)),
            ],
            out_specs=pl.BlockSpec((None, M, N), lambda i: (i, 0, 0)),
        ),
        compiler_params=pltpu.CompilerParams(
            dimension_semantics=("parallel",),
            vmem_limit_bytes=_VMEM_LIMIT),
    )(flat, w)
    return partial.sum(axis=0) + b   # tiny (2,B,32) epilogue add in XLA


def _fc_bn_relu_kernel(x_ref, w_ref, b_ref, g_ref, beta_ref, o_ref):
    # Linear + BatchNorm1d (training-mode batch statistics, eps=1e-5) + ReLU.
    # BN stats are over axis=0 only, so feature (N) tiling is exact as long as
    # the batch (M) stays untiled -- it does (block is (M, tn)).
    # TODO(synk): BatchNorm1d running_mean/var buffer updates are not modeled.
    w = w_ref[...].astype(jnp.float32)     # bf16 weight in HBM, f32 math pre-BN
    y = jnp.dot(x_ref[...], w, preferred_element_type=jnp.float32) + b_ref[...]
    mean = jnp.mean(y, axis=0, keepdims=True)
    var = jnp.mean(jnp.square(y - mean), axis=0, keepdims=True)   # biased var
    yn = (y - mean) * lax.rsqrt(var + 1e-5)
    o_ref[...] = jnp.maximum(yn * g_ref[...] + beta_ref[...], 0.0).astype(o_ref.dtype)


def fc_bn_relu(x, w, b, gamma, beta, tn=4096):
    M, K = x.shape
    K2, N = w.shape
    assert K == K2 and N % tn == 0
    return pl.pallas_call(
        _fc_bn_relu_kernel,
        out_shape=jax.ShapeDtypeStruct((M, N), jnp.float32),
        grid_spec=pltpu.PrefetchScalarGridSpec(
            num_scalar_prefetch=0,
            grid=(N // tn,),
            in_specs=[
                pl.BlockSpec((M, K), lambda j: (0, 0)),
                pl.BlockSpec((K, tn), lambda j: (0, j)),
                pl.BlockSpec((1, tn), lambda j: (0, j)),
                pl.BlockSpec((1, tn), lambda j: (0, j)),
                pl.BlockSpec((1, tn), lambda j: (0, j)),
            ],
            out_specs=pl.BlockSpec((M, tn), lambda j: (0, j)),
        ),
        compiler_params=pltpu.CompilerParams(
            dimension_semantics=("parallel",),
            vmem_limit_bytes=_VMEM_LIMIT),
    )(x, w, b.reshape(1, N), gamma.reshape(1, N), beta.reshape(1, N))


def _deconv_subpixel_kernel(x_ref, w_ref, b_ref, o_ref):
    # ConvTranspose2d(64,3,4,2,1)+Sigmoid for one batch element via 9 sub-pixel taps.
    #   x_ref: (3, 288, 64) bf16 -- for each ew, rows are (h*16 + w') with the
    #          window column already shifted by ew (built once in XLA, so every
    #          tap slice below is a contiguous, sublane-aligned (256,64) slab).
    #   w_ref: (9, 64, 128) bf16 phase-packed weights, tap t = eh*3 + ew.
    #   o_ref: (256, 128) f32, lane-dense: row j*16+i, col (ph*2+pw)*3+co.
    acc = jnp.zeros((256, 128), jnp.float32)
    for eh in range(3):
        for ew in range(3):
            xs = x_ref[ew, eh * 16:eh * 16 + 256, :]            # (256, 64) bf16
            acc = acc + jnp.dot(xs, w_ref[eh * 3 + ew],
                                preferred_element_type=jnp.float32)
    o_ref[...] = jax.nn.sigmoid(acc + b_ref[...]).astype(o_ref.dtype)


def deconv_subpixel_sigmoid(xcols, w9, b):
    B = xcols.shape[0]
    return pl.pallas_call(
        _deconv_subpixel_kernel,
        out_shape=jax.ShapeDtypeStruct((B, 256, 128), jnp.float32),
        grid_spec=pltpu.PrefetchScalarGridSpec(
            num_scalar_prefetch=0,
            grid=(B,),
            in_specs=[
                pl.BlockSpec((None, 3, 288, 64), lambda bi: (bi, 0, 0, 0)),
                pl.BlockSpec((9, 64, 128), lambda bi: (0, 0, 0)),
                pl.BlockSpec((1, 128), lambda bi: (0, 0)),
            ],
            out_specs=pl.BlockSpec((None, 256, 128), lambda bi: (bi, 0, 0)),
        ),
        compiler_params=pltpu.CompilerParams(
            dimension_semantics=("parallel",),
            vmem_limit_bytes=_VMEM_LIMIT),
    )(xcols, w9, b.reshape(1, 128))


# ------------------------- JAX glue (layout / patches) -------------------------

def im2col_nhwc(x, k, stride):
    """x: (B, H, W, C) already padded -> (B*oh*ow, k*k*C), cols ordered (kh, kw, ci)."""
    B, H, W, C = x.shape
    oh = (H - k) // stride + 1
    ow = (W - k) // stride + 1
    cols = [x[:, kh:kh + stride * oh:stride, kw:kw + stride * ow:stride, :]
            for kh in range(k) for kw in range(k)]
    p = jnp.stack(cols, axis=3)                  # (B, oh, ow, k*k, C)
    return p.reshape(B * oh * ow, k * k * C), oh, ow


def init_params(key):
    """Matches the PyTorch __init__: weights ~ N(0, 0.02), biases 0, BN=(1,0)."""
    ks = jax.random.split(key, 4)
    H = 64 * 16 * 16
    return dict(
        Wc=0.02 * jax.random.normal(ks[0], (64, 3, 4, 4), jnp.float32),  # Conv2d (O,I,kh,kw)
        bc=jnp.zeros((64,), jnp.float32),
        Wnv=0.02 * jax.random.normal(ks[1], (32, H), jnp.float32),       # Linear (out,in)
        bnv=jnp.zeros((32,), jnp.float32),
        Wfc=0.02 * jax.random.normal(ks[2], (H, 32), jnp.float32),       # Linear (out,in)
        bfc=jnp.zeros((H,), jnp.float32),
        gamma=jnp.ones((H,), jnp.float32),
        beta=jnp.zeros((H,), jnp.float32),
        Wd=0.02 * jax.random.normal(ks[3], (64, 3, 4, 4), jnp.float32),  # ConvT (I,O,kh,kw)
        bd=jnp.zeros((3,), jnp.float32),
    )


def prepare_params(p):
    """One-time layout prep: flips / transposes / permutations / bf16 casts hoisted
    out of the forward.  The two big Linear weights and the deconv weights are
    stored bf16 (the forward is HBM-weight-stream bound)."""
    # conv: im2col weight; two output pixels packed per row -> 128-lane-dense output.
    Wc_mat = p["Wc"].transpose(2, 3, 1, 0).reshape(48, 64)       # rows (kh,kw,ci), cols co
    Wc_pack = jnp.zeros((96, 128), jnp.float32)
    Wc_pack = Wc_pack.at[:48, :64].set(Wc_mat).at[48:, 64:].set(Wc_mat)
    bc_pack = jnp.tile(p["bc"], 2)                               # (128,)

    # nv: rows permuted to NHWC-flatten order so the conv output flattens for free.
    Wnv_perm = (p["Wnv"].reshape(32, 64, 16, 16).transpose(2, 3, 1, 0)
                .reshape(16 * 16 * 64, 32).astype(jnp.bfloat16))

    # fc: output columns permuted to NHWC-flatten order (free reshape into the deconv).
    WfcT_perm = (p["Wfc"].T.reshape(32, 64, 16, 16).transpose(0, 2, 3, 1)
                 .reshape(32, 16 * 16 * 64).astype(jnp.bfloat16))

    def perm_feat(v):
        return v.reshape(64, 16, 16).transpose(1, 2, 0).reshape(-1)

    # deconv: sub-pixel (4-phase) decomposition of ConvTranspose2d(64,3,4,2,1):
    #   y[b, 2j+ph, 2i+pw, co] = sum_{eh,ew,ci} xpad[b, j+eh, i+ew, ci] * Wd[ci,co,kh,kw]
    # with kh = 3+ph-2*eh, kw = 3+pw-2*ew (taps outside [0,4) contribute zero).
    # Packed tap-major as (9, 64, 128); output channels padded 12 -> 128 lanes.
    Wd = p["Wd"]
    Wbig = jnp.zeros((3, 3, 64, 128), jnp.float32)
    for eh in range(3):
        for ph in range(2):
            kh = 3 + ph - 2 * eh
            if not 0 <= kh <= 3:
                continue
            for ew in range(3):
                for pw in range(2):
                    kw = 3 + pw - 2 * ew
                    if not 0 <= kw <= 3:
                        continue
                    c0 = (ph * 2 + pw) * 3
                    Wbig = Wbig.at[eh, ew, :, c0:c0 + 3].set(Wd[:, :, kh, kw])
    Wd9 = Wbig.reshape(9, 64, 128).astype(jnp.bfloat16)
    bd_pad = jnp.zeros((128,), jnp.float32).at[:12].set(jnp.tile(p["bd"], 4))

    return dict(Wc_pack=Wc_pack, bc_pack=bc_pack,
                Wnv_perm=Wnv_perm, bnv=p["bnv"],
                WfcT_perm=WfcT_perm, bfc_perm=perm_feat(p["bfc"]),
                gamma_perm=perm_feat(p["gamma"]), beta_perm=perm_feat(p["beta"]),
                Wd9=Wd9, bd_pad=bd_pad)


def discriminator_forward(x, prep):
    """x: (B, 3, 32, 32) NCHW -> (reconstruction (B,3,32,32), code (B,32))."""
    B = x.shape[0]

    # --- conv: Conv2d(3,64,4,2,1) + ReLU (im2col matmul, NHWC, 2 pixels per row) ---
    x_nhwc = jnp.transpose(x, (0, 2, 3, 1))                     # (B,32,32,3), 24 KiB
    xp = jnp.pad(x_nhwc, ((0, 0), (1, 1), (1, 1), (0, 0)))
    patches, oh, ow = im2col_nhwc(xp, 4, 2)                     # (B*256, 48)
    patches = patches.reshape(B * (oh * ow // 2), 96)           # free: pack 2 pixels/row
    h = conv_matmul_relu(patches, prep["Wc_pack"], prep["bc_pack"],
                         tm=oh * ow // 2)                       # (B*128, 128) lane-dense

    # --- flatten (free: rows already NHWC-flat) + nv: Linear(16384 -> 32) ---
    flat = h.reshape(B, oh * ow * 64)                           # (B, 16384)
    out = nv_linear(flat, prep["Wnv_perm"], prep["bnv"], n_split=2)   # (B, 32)

    # --- fc: Linear(32 -> 16384) + BatchNorm1d (batch stats) + ReLU ---
    xfc = fc_bn_relu(out, prep["WfcT_perm"], prep["bfc_perm"],
                     prep["gamma_perm"], prep["beta_perm"], tn=4096)  # (B, 16384)

    # --- deconv: ConvTranspose2d(64,3,4,2,1) + Sigmoid, 9 sub-pixel taps in-kernel ---
    xfc4 = xfc.reshape(B, 16, 16, 64)                           # free reshape (NHWC)
    xdp = jnp.pad(xfc4, ((0, 0), (1, 1), (1, 1), (0, 0)))       # (B,18,18,64)
    # 3 shifted column-windows, rows flattened (h, w') -> every in-kernel tap slice
    # is a contiguous, sublane-aligned slab; cast to bf16 once here (~220 KiB total).
    xcols = jnp.stack([xdp[:, :, ew:ew + 16, :] for ew in range(3)], axis=1)
    xcols = xcols.reshape(B, 3, 18 * 16, 64).astype(jnp.bfloat16)     # (B,3,288,64)
    y = deconv_subpixel_sigmoid(xcols, prep["Wd9"], prep["bd_pad"])   # (B,256,128)
    y = y[:, :, :12].reshape(B, 16, 16, 2, 2, 3)                # (b, j, i, ph, pw, co)
    y = y.transpose(0, 5, 1, 3, 2, 4).reshape(B, 3, 32, 32)     # NCHW (tiny final transpose)
    return y, out


# ------------------------- pure-JAX reference -------------------------

def reference_forward(x, p):
    h = lax.conv_general_dilated(x, p["Wc"], (2, 2), ((1, 1), (1, 1)),
                                 dimension_numbers=("NCHW", "OIHW", "NCHW"))
    h = jnp.maximum(h + p["bc"][None, :, None, None], 0.0)
    flat = h.reshape(x.shape[0], -1)
    out = flat @ p["Wnv"].T + p["bnv"]
    y = out @ p["Wfc"].T + p["bfc"]
    mean = jnp.mean(y, axis=0, keepdims=True)
    var = jnp.mean((y - mean) ** 2, axis=0, keepdims=True)
    y = (y - mean) / jnp.sqrt(var + 1e-5) * p["gamma"] + p["beta"]
    y = jnp.maximum(y, 0.0).reshape(-1, 64, 16, 16)
    Wd_conv = jnp.flip(p["Wd"], axis=(2, 3)).transpose(1, 0, 2, 3)
    yd = lax.conv_general_dilated(y, Wd_conv, (1, 1), ((2, 2), (2, 2)),
                                  lhs_dilation=(2, 2),
                                  dimension_numbers=("NCHW", "OIHW", "NCHW"))
    yd = jax.nn.sigmoid(yd + p["bd"][None, :, None, None])
    return yd, out


if __name__ == "__main__":
    key = jax.random.PRNGKey(0)
    kx, kp = jax.random.split(key)
    # Module hard-codes 64*16*16, so spatial=32, channels=3; small batch=2.
    x = jax.random.normal(kx, (2, 3, 32, 32), jnp.float32)
    params = init_params(kp)
    prep = prepare_params(params)          # one-time weight layout / bf16 prep (hoisted)

    fwd = jax.jit(discriminator_forward)
    y, out = jax.block_until_ready(fwd(x, prep))
    y_ref, out_ref = reference_forward(x, params)

    assert y.shape == (2, 3, 32, 32) and out.shape == (2, 32)
    assert y.dtype == jnp.float32 and out.dtype == jnp.float32
    assert jnp.allclose(out, out_ref, atol=1e-2, rtol=1e-2)
    assert jnp.allclose(y, y_ref, atol=1e-2, rtol=1e-2)
    print("KERNEL_OK")
</pallas_src>

<mosaic_0001>
module attributes {stable_mosaic.version = 11 : i64} {
  func.func @_mm_bias_relu_kernel(%arg0: i32, %arg1: memref<128x96xf32, #tpu.memory_space<vmem>>, %arg2: memref<96x128xf32, #tpu.memory_space<vmem>>, %arg3: memref<1x128xf32, #tpu.memory_space<vmem>>, %arg4: memref<128x128xf32, #tpu.memory_space<vmem>>) attributes {dimension_semantics = [#tpu.dimension_semantics<parallel>], iteration_bounds = array<i64: 2>, scalar_prefetch = 0 : i64, scratch_operands = 0 : i64, tpu.core_type = #tpu.core_type<tc>, window_params = [{transform_indices = @transform_0, window_bounds = array<i64: 128, 96>}, {pipeline_mode = #tpu.pipeline_mode<synchronous>, transform_indices = @transform_1, window_bounds = array<i64: 96, 128>}, {pipeline_mode = #tpu.pipeline_mode<synchronous>, transform_indices = @transform_2, window_bounds = array<i64: 1, 128>}, {transform_indices = @transform_3, window_bounds = array<i64: 128, 128>}]} {
    %c0 = arith.constant 0 : index
    %c0_0 = arith.constant 0 : index
    %0 = vector.load %arg1[%c0, %c0_0] : memref<128x96xf32, #tpu.memory_space<vmem>>, vector<128x96xf32>
    %c0_1 = arith.constant 0 : index
    %c0_2 = arith.constant 0 : index
    %1 = vector.load %arg2[%c0_1, %c0_2] : memref<96x128xf32, #tpu.memory_space<vmem>>, vector<96x128xf32>
    %cst = arith.constant dense<0.000000e+00> : vector<128x128xf32>
    %2 = tpu.matmul %0, %1, %cst {dimension_numbers = #tpu.dot_dimension_numbers<[1], [0], [0], [1], [0, 0, 1, 1], [], []>} : vector<128x96xf32>, vector<96x128xf32>, vector<128x128xf32> -> vector<128x128xf32>
    %c0_3 = arith.constant 0 : index
    %c0_4 = arith.constant 0 : index
    %3 = vector.load %arg3[%c0_3, %c0_4] : memref<1x128xf32, #tpu.memory_space<vmem>>, vector<1x128xf32>
    %4 = vector.broadcast %3 : vector<1x128xf32> to vector<128x128xf32>
    %5 = arith.addf %2, %4 : vector<128x128xf32>
    %cst_5 = arith.constant 0.000000e+00 : f32
    %6 = vector.broadcast %cst_5 : f32 to vector<128x128xf32>
    %7 = arith.maximumf %5, %6 : vector<128x128xf32>
    %c0_6 = arith.constant 0 : index
    %c0_7 = arith.constant 0 : index
    %8 = vector.load %arg4[%c0_6, %c0_7] : memref<128x128xf32, #tpu.memory_space<vmem>>, vector<128x128xf32>
    tpu.vector_store %arg4[%c0_6, %c0_7], %7 {strides = array<i32>} : memref<128x128xf32, #tpu.memory_space<vmem>>, vector<128x128xf32>,
    return
  }
  func.func @transform_0(%arg0: i32) -> (i32, i32) {
    %c0_i32 = arith.constant 0 : i32
    %c0_i32_0 = arith.constant 0 : i32
    return %arg0, %c0_i32 : i32, i32
  }
  func.func @transform_1(%arg0: i32) -> (i32, i32) {
    %c0_i32 = arith.constant 0 : i32
    %c0_i32_0 = arith.constant 0 : i32
    %c0_i32_1 = arith.constant 0 : i32
    return %c0_i32, %c0_i32_0 : i32, i32
  }
  func.func @transform_2(%arg0: i32) -> (i32, i32) {
    %c0_i32 = arith.constant 0 : i32
    %c0_i32_0 = arith.constant 0 : i32
    %c0_i32_1 = arith.constant 0 : i32
    return %c0_i32, %c0_i32_0 : i32, i32
  }
  func.func @transform_3(%arg0: i32) -> (i32, i32) {
    %c0_i32 = arith.constant 0 : i32
    %c0_i32_0 = arith.constant 0 : i32
    return %arg0, %c0_i32 : i32, i32
  }
}

module attributes {stable_mosaic.version = 11 : i64} {
  func.func @_nv_partial_kernel(%arg0: i32, %arg1: memref<2x8192xf32, #tpu.memory_space<vmem>>, %arg2: memref<8192x32xbf16, #tpu.memory_space<vmem>>, %arg3: memref<1x2x32xf32, #tpu.memory_space<vmem>>) attributes {dimension_semantics = [#tpu.dimension_semantics<parallel>], iteration_bounds = array<i64: 2>, scalar_prefetch = 0 : i64, scratch_operands = 0 : i64, tpu.core_type = #tpu.core_type<tc>, window_params = [{transform_indices = @transform_0, window_bounds = array<i64: 2, 8192>}, {transform_indices = @transform_1, window_bounds = array<i64: 8192, 32>}, {transform_indices = @transform_2, window_bounds = array<i64: 1, 2, 32>}]} {
    %c0 = arith.constant 0 : index
    %c0_0 = arith.constant 0 : index
    %0 = vector.load %arg2[%c0, %c0_0] : memref<8192x32xbf16, #tpu.memory_space<vmem>>, vector<8192x32xbf16>
    %c0_1 = arith.constant 0 : index
    %c0_2 = arith.constant 0 : index
    %1 = vector.load %arg1[%c0_1, %c0_2] : memref<2x8192xf32, #tpu.memory_space<vmem>>, vector<2x8192xf32>
    %2 = arith.truncf %1 : vector<2x8192xf32> to vector<2x8192xbf16>
    %cst = arith.constant dense<0.000000e+00> : vector<2x32xf32>
    %3 = tpu.matmul %2, %0, %cst {dimension_numbers = #tpu.dot_dimension_numbers<[1], [0], [0], [1], [0, 0, 1, 1], [], []>} : vector<2x8192xbf16>, vector<8192x32xbf16>, vector<2x32xf32> -> vector<2x32xf32>
    %c0_3 = arith.constant 0 : index
    %c0_4 = arith.constant 0 : index
    %c0_5 = arith.constant 0 : index
    %4 = vector.load %arg3[%c0_3, %c0_4, %c0_5] : memref<1x2x32xf32, #tpu.memory_space<vmem>>, vector<1x2x32xf32>
    %5 = vector.shape_cast %4 : vector<1x2x32xf32> to vector<2x32xf32>
    %6 = vector.shape_cast %3 : vector<2x32xf32> to vector<1x2x32xf32>
    tpu.vector_store %arg3[%c0_3, %c0_4, %c0_5], %6 {strides = array<i32>} : memref<1x2x32xf32, #tpu.memory_space<vmem>>, vector<1x2x32xf32>,
    return
  }
  func.func @transform_0(%arg0: i32) -> (i32, i32) {
    %c0_i32 = arith.constant 0 : i32
    %c0_i32_0 = arith.constant 0 : i32
    return %c0_i32, %arg0 : i32, i32
  }
  func.func @transform_1(%arg0: i32) -> (i32, i32) {
    %c0_i32 = arith.constant 0 : i32
    %c0_i32_0 = arith.constant 0 : i32
    return %arg0, %c0_i32 : i32, i32
  }
  func.func @transform_2(%arg0: i32) -> (i32, i32, i32) {
    %c0_i32 = arith.constant 0 : i32
    %c0_i32_0 = arith.constant 0 : i32
    %c0_i32_1 = arith.constant 0 : i32
    return %arg0, %c0_i32, %c0_i32_0 : i32, i32, i32
  }
}

module attributes {stable_mosaic.version = 11 : i64} {
  func.func @_fc_bn_relu_kernel(%arg0: i32, %arg1: memref<2x32xf32, #tpu.memory_space<vmem>>, %arg2: memref<32x4096xbf16, #tpu.memory_space<vmem>>, %arg3: memref<1x4096xf32, #tpu.memory_space<vmem>>, %arg4: memref<1x4096xf32, #tpu.memory_space<vmem>>, %arg5: memref<1x4096xf32, #tpu.memory_space<vmem>>, %arg6: memref<2x4096xf32, #tpu.memory_space<vmem>>) attributes {dimension_semantics = [#tpu.dimension_semantics<parallel>], iteration_bounds = array<i64: 4>, scalar_prefetch = 0 : i64, scratch_operands = 0 : i64, tpu.core_type = #tpu.core_type<tc>, window_params = [{pipeline_mode = #tpu.pipeline_mode<synchronous>, transform_indices = @transform_0, window_bounds = array<i64: 2, 32>}, {transform_indices = @transform_1, window_bounds = array<i64: 32, 4096>}, {transform_indices = @transform_2, window_bounds = array<i64: 1, 4096>}, {transform_indices = @transform_3, window_bounds = array<i64: 1, 4096>}, {transform_indices = @transform_4, window_bounds = array<i64: 1, 4096>}, {transform_indices = @transform_5, window_bounds = array<i64: 2, 4096>}]} {
    %c0 = arith.constant 0 : index
    %c0_0 = arith.constant 0 : index
    %0 = vector.load %arg2[%c0, %c0_0] : memref<32x4096xbf16, #tpu.memory_space<vmem>>, vector<32x4096xbf16>
    %1 = arith.extf %0 : vector<32x4096xbf16> to vector<32x4096xf32>
    %c0_1 = arith.constant 0 : index
    %c0_2 = arith.constant 0 : index
    %2 = vector.load %arg1[%c0_1, %c0_2] : memref<2x32xf32, #tpu.memory_space<vmem>>, vector<2x32xf32>
    %cst = arith.constant dense<0.000000e+00> : vector<2x4096xf32>
    %3 = tpu.matmul %2, %1, %cst {dimension_numbers = #tpu.dot_dimension_numbers<[1], [0], [0], [1], [0, 0, 1, 1], [], []>} : vector<2x32xf32>, vector<32x4096xf32>, vector<2x4096xf32> -> vector<2x4096xf32>
    %c0_3 = arith.constant 0 : index
    %c0_4 = arith.constant 0 : index
    %4 = vector.load %arg3[%c0_3, %c0_4] : memref<1x4096xf32, #tpu.memory_space<vmem>>, vector<1x4096xf32>
    %5 = vector.broadcast %4 : vector<1x4096xf32> to vector<2x4096xf32>
    %6 = arith.addf %3, %5 : vector<2x4096xf32>
    %cst_5 = arith.constant dense<0.000000e+00> : vector<4096xf32>
    %7 = vector.multi_reduction <add>, %6, %cst_5 [0] : vector<2x4096xf32> to vector<4096xf32>
    %8 = vector.shape_cast %7 : vector<4096xf32> to vector<1x4096xf32>
    %cst_6 = arith.constant 2.000000e+00 : f32
    %9 = vector.broadcast %cst_6 : f32 to vector<1x4096xf32>
    %10 = arith.divf %8, %9 : vector<1x4096xf32>
    %11 = vector.broadcast %10 : vector<1x4096xf32> to vector<2x4096xf32>
    %12 = arith.subf %6, %11 : vector<2x4096xf32>
    %13 = arith.mulf %12, %12 : vector<2x4096xf32>
    %cst_7 = arith.constant dense<0.000000e+00> : vector<4096xf32>
    %14 = vector.multi_reduction <add>, %13, %cst_7 [0] : vector<2x4096xf32> to vector<4096xf32>
    %15 = vector.shape_cast %14 : vector<4096xf32> to vector<1x4096xf32>
    %cst_8 = arith.constant 2.000000e+00 : f32
    %16 = vector.broadcast %cst_8 : f32 to vector<1x4096xf32>
    %17 = arith.divf %15, %16 : vector<1x4096xf32>
    %18 = vector.broadcast %10 : vector<1x4096xf32> to vector<2x4096xf32>
    %19 = arith.subf %6, %18 : vector<2x4096xf32>
    %cst_9 = arith.constant 9.99999974E-6 : f32
    %20 = vector.broadcast %cst_9 : f32 to vector<1x4096xf32>
    %21 = arith.addf %17, %20 : vector<1x4096xf32>
    %22 = math.rsqrt %21 : vector<1x4096xf32>
    %23 = vector.broadcast %22 : vector<1x4096xf32> to vector<2x4096xf32>
    %24 = arith.mulf %19, %23 : vector<2x4096xf32>
    %c0_10 = arith.constant 0 : index
    %c0_11 = arith.constant 0 : index
    %25 = vector.load %arg4[%c0_10, %c0_11] : memref<1x4096xf32, #tpu.memory_space<vmem>>, vector<1x4096xf32>
    %26 = vector.broadcast %25 : vector<1x4096xf32> to vector<2x4096xf32>
    %27 = arith.mulf %24, %26 : vector<2x4096xf32>
    %c0_12 = arith.constant 0 : index
    %c0_13 = arith.constant 0 : index
    %28 = vector.load %arg5[%c0_12, %c0_13] : memref<1x4096xf32, #tpu.memory_space<vmem>>, vector<1x4096xf32>
    %29 = vector.broadcast %28 : vector<1x4096xf32> to vector<2x4096xf32>
    %30 = arith.addf %27, %29 : vector<2x4096xf32>
    %cst_14 = arith.constant 0.000000e+00 : f32
    %31 = vector.broadcast %cst_14 : f32 to vector<2x4096xf32>
    %32 = arith.maximumf %30, %31 : vector<2x4096xf32>
    %c0_15 = arith.constant 0 : index
    %c0_16 = arith.constant 0 : index
    %33 = vector.load %arg6[%c0_15, %c0_16] : memref<2x4096xf32, #tpu.memory_space<vmem>>, vector<2x4096xf32>
    tpu.vector_store %arg6[%c0_15, %c0_16], %32 {strides = array<i32>} : memref<2x4096xf32, #tpu.memory_space<vmem>>, vector<2x4096xf32>,
    return
  }
  func.func @transform_0(%arg0: i32) -> (i32, i32) {
    %c0_i32 = arith.constant 0 : i32
    %c0_i32_0 = arith.constant 0 : i32
    %c0_i32_1 = arith.constant 0 : i32
    return %c0_i32, %c0_i32_0 : i32, i32
  }
  func.func @transform_1(%arg0: i32) -> (i32, i32) {
    %c0_i32 = arith.constant 0 : i32
    %c0_i32_0 = arith.constant 0 : i32
    return %c0_i32, %arg0 : i32, i32
  }
  func.func @transform_2(%arg0: i32) -> (i32, i32) {
    %c0_i32 = arith.constant 0 : i32
    %c0_i32_0 = arith.constant 0 : i32
    return %c0_i32, %arg0 : i32, i32
  }
  func.func @transform_3(%arg0: i32) -> (i32, i32) {
    %c0_i32 = arith.constant 0 : i32
    %c0_i32_0 = arith.constant 0 : i32
    return %c0_i32, %arg0 : i32, i32
  }
  func.func @transform_4(%arg0: i32) -> (i32, i32) {
    %c0_i32 = arith.constant 0 : i32
    %c0_i32_0 = arith.constant 0 : i32
    return %c0_i32, %arg0 : i32, i32
  }
  func.func @transform_5(%arg0: i32) -> (i32, i32) {
    %c0_i32 = arith.constant 0 : i32
    %c0_i32_0 = arith.constant 0 : i32
    return %c0_i32, %arg0 : i32, i32
  }
}

module attributes {stable_mosaic.version = 11 : i64} {
  func.func @_deconv_subpixel_kernel(%arg0: i32, %arg1: memref<1x3x288x64xbf16, #tpu.memory_space<vmem>>, %arg2: memref<9x64x128xbf16, #tpu.memory_space<vmem>>, %arg3: memref<1x128xf32, #tpu.memory_space<vmem>>, %arg4: memref<1x256x128xf32, #tpu.memory_space<vmem>>) attributes {dimension_semantics = [#tpu.dimension_semantics<parallel>], iteration_bounds = array<i64: 2>, scalar_prefetch = 0 : i64, scratch_operands = 0 : i64, tpu.core_type = #tpu.core_type<tc>, window_params = [{transform_indices = @transform_0, window_bounds = array<i64: 1, 3, 288, 64>}, {pipeline_mode = #tpu.pipeline_mode<synchronous>, transform_indices = @transform_1, window_bounds = array<i64: 9, 64, 128>}, {pipeline_mode = #tpu.pipeline_mode<synchronous>, transform_indices = @transform_2, window_bounds = array<i64: 1, 128>}, {transform_indices = @transform_3, window_bounds = array<i64: 1, 256, 128>}]} {
    %cst = arith.constant 0.000000e+00 : f32
    %0 = vector.broadcast %cst : f32 to vector<256x128xf32>
    %c0 = arith.constant 0 : index
    %c0_0 = arith.constant 0 : index
    %c0_1 = arith.constant 0 : index
    %c0_2 = arith.constant 0 : index
    %1 = vector.load %arg1[%c0, %c0_0, %c0_1, %c0_2] : memref<1x3x288x64xbf16, #tpu.memory_space<vmem>>, vector<1x1x256x64xbf16>
    %2 = vector.shape_cast %1 : vector<1x1x256x64xbf16> to vector<256x64xbf16>
    %c0_3 = arith.constant 0 : index
    %c0_4 = arith.constant 0 : index
    %c0_5 = arith.constant 0 : index
    %3 = vector.load %arg2[%c0_3, %c0_4, %c0_5] : memref<9x64x128xbf16, #tpu.memory_space<vmem>>, vector<1x64x128xbf16>
    %4 = vector.shape_cast %3 : vector<1x64x128xbf16> to vector<64x128xbf16>
    %cst_6 = arith.constant dense<0.000000e+00> : vector<256x128xf32>
    %5 = tpu.matmul %2, %4, %cst_6 {dimension_numbers = #tpu.dot_dimension_numbers<[1], [0], [0], [1], [0, 0, 1, 1], [], []>} : vector<256x64xbf16>, vector<64x128xbf16>, vector<256x128xf32> -> vector<256x128xf32>
    %6 = arith.addf %0, %5 : vector<256x128xf32>
    %c0_7 = arith.constant 0 : index
    %c1 = arith.constant 1 : index
    %c0_8 = arith.constant 0 : index
    %c0_9 = arith.constant 0 : index
    %7 = vector.load %arg1[%c0_7, %c1, %c0_8, %c0_9] : memref<1x3x288x64xbf16, #tpu.memory_space<vmem>>, vector<1x1x256x64xbf16>
    %8 = vector.shape_cast %7 : vector<1x1x256x64xbf16> to vector<256x64xbf16>
    %c1_10 = arith.constant 1 : index
    %c0_11 = arith.constant 0 : index
    %c0_12 = arith.constant 0 : index
    %9 = vector.load %arg2[%c1_10, %c0_11, %c0_12] : memref<9x64x128xbf16, #tpu.memory_space<vmem>>, vector<1x64x128xbf16>
    %10 = vector.shape_cast %9 : vector<1x64x128xbf16> to vector<64x128xbf16>
    %cst_13 = arith.constant dense<0.000000e+00> : vector<256x128xf32>
    %11 = tpu.matmul %8, %10, %cst_13 {dimension_numbers = #tpu.dot_dimension_numbers<[1], [0], [0], [1], [0, 0, 1, 1], [], []>} : vector<256x64xbf16>, vector<64x128xbf16>, vector<256x128xf32> -> vector<256x128xf32>
    %12 = arith.addf %6, %11 : vector<256x128xf32>
    %c0_14 = arith.constant 0 : index
    %c2 = arith.constant 2 : index
    %c0_15 = arith.constant 0 : index
    %c0_16 = arith.constant 0 : index
    %13 = vector.load %arg1[%c0_14, %c2, %c0_15, %c0_16] : memref<1x3x288x64xbf16, #tpu.memory_space<vmem>>, vector<1x1x256x64xbf16>
    %14 = vector.shape_cast %13 : vector<1x1x256x64xbf16> to vector<256x64xbf16>
    %c2_17 = arith.constant 2 : index
    %c0_18 = arith.constant 0 : index
    %c0_19 = arith.constant 0 : index
    %15 = vector.load %arg2[%c2_17, %c0_18, %c0_19] : memref<9x64x128xbf16, #tpu.memory_space<vmem>>, vector<1x64x128xbf16>
    %16 = vector.shape_cast %15 : vector<1x64x128xbf16> to vector<64x128xbf16>
    %cst_20 = arith.constant dense<0.000000e+00> : vector<256x128xf32>
    %17 = tpu.matmul %14, %16, %cst_20 {dimension_numbers = #tpu.dot_dimension_numbers<[1], [0], [0], [1], [0, 0, 1, 1], [], []>} : vector<256x64xbf16>, vector<64x128xbf16>, vector<256x128xf32> -> vector<256x128xf32>
    %18 = arith.addf %12, %17 : vector<256x128xf32>
    %c0_21 = arith.constant 0 : index
    %c0_22 = arith.constant 0 : index
    %c16 = arith.constant 16 : index
    %c0_23 = arith.constant 0 : index
    %19 = vector.load %arg1[%c0_21, %c0_22, %c16, %c0_23] : memref<1x3x288x64xbf16, #tpu.memory_space<vmem>>, vector<1x1x256x64xbf16>
    %20 = vector.shape_cast %19 : vector<1x1x256x64xbf16> to vector<256x64xbf16>
    %c3 = arith.constant 3 : index
    %c0_24 = arith.constant 0 : index
    %c0_25 = arith.constant 0 : index
    %21 = vector.load %arg2[%c3, %c0_24, %c0_25] : memref<9x64x128xbf16, #tpu.memory_space<vmem>>, vector<1x64x128xbf16>
    %22 = vector.shape_cast %21 : vector<1x64x128xbf16> to vector<64x128xbf16>
    %cst_26 = arith.constant dense<0.000000e+00> : vector<256x128xf32>
    %23 = tpu.matmul %20, %22, %cst_26 {dimension_numbers = #tpu.dot_dimension_numbers<[1], [0], [0], [1], [0, 0, 1, 1], [], []>} : vector<256x64xbf16>, vector<64x128xbf16>, vector<256x128xf32> -> vector<256x128xf32>
    %24 = arith.addf %18, %23 : vector<256x128xf32>
    %c0_27 = arith.constant 0 : index
    %c1_28 = arith.constant 1 : index
    %c16_29 = arith.constant 16 : index
    %c0_30 = arith.constant 0 : index
    %25 = vector.load %arg1[%c0_27, %c1_28, %c16_29, %c0_30] : memref<1x3x288x64xbf16, #tpu.memory_space<vmem>>, vector<1x1x256x64xbf16>
    %26 = vector.shape_cast %25 : vector<1x1x256x64xbf16> to vector<256x64xbf16>
    %c4 = arith.constant 4 : index
    %c0_31 = arith.constant 0 : index
    %c0_32 = arith.constant 0 : index
    %27 = vector.load %arg2[%c4, %c0_31, %c0_32] : memref<9x64x128xbf16, #tpu.memory_space<vmem>>, vector<1x64x128xbf16>
    %28 = vector.shape_cast %27 : vector<1x64x128xbf16> to vector<64x128xbf16>
    %cst_33 = arith.constant dense<0.000000e+00> : vector<256x128xf32>
    %29 = tpu.matmul %26, %28, %cst_33 {dimension_numbers = #tpu.dot_dimension_numbers<[1], [0], [0], [1], [0, 0, 1, 1], [], []>} : vector<256x64xbf16>, vector<64x128xbf16>, vector<256x128xf32> -> vector<256x128xf32>
    %30 = arith.addf %24, %29 : vector<256x128xf32>
    %c0_34 = arith.constant 0 : index
    %c2_35 = arith.constant 2 : index
    %c16_36 = arith.constant 16 : index
    %c0_37 = arith.constant 0 : index
    %31 = vector.load %arg1[%c0_34, %c2_35, %c16_36, %c0_37] : memref<1x3x288x64xbf16, #tpu.memory_space<vmem>>, vector<1x1x256x64xbf16>
    %32 = vector.shape_cast %31 : vector<1x1x256x64xbf16> to vector<256x64xbf16>
    %c5 = arith.constant 5 : index
    %c0_38 = arith.constant 0 : index
    %c0_39 = arith.constant 0 : index
    %33 = vector.load %arg2[%c5, %c0_38, %c0_39] : memref<9x64x128xbf16, #tpu.memory_space<vmem>>, vector<1x64x128xbf16>
    %34 = vector.shape_cast %33 : vector<1x64x128xbf16> to vector<64x128xbf16>
    %cst_40 = arith.constant dense<0.000000e+00> : vector<256x128xf32>
    %35 = tpu.matmul %32, %34, %cst_40 {dimension_numbers = #tpu.dot_dimension_numbers<[1], [0], [0], [1], [0, 0, 1, 1], [], []>} : vector<256x64xbf16>, vector<64x128xbf16>, vector<256x128xf32> -> vector<256x128xf32>
    %36 = arith.addf %30, %35 : vector<256x128xf32>
    %c0_41 = arith.constant 0 : index
    %c0_42 = arith.constant 0 : index
    %c32 = arith.constant 32 : index
    %c0_43 = arith.constant 0 : index
    %37 = vector.load %arg1[%c0_41, %c0_42, %c32, %c0_43] : memref<1x3x288x64xbf16, #tpu.memory_space<vmem>>, vector<1x1x256x64xbf16>
    %38 = vector.shape_cast %37 : vector<1x1x256x64xbf16> to vector<256x64xbf16>
    %c6 = arith.constant 6 : index
    %c0_44 = arith.constant 0 : index
    %c0_45 = arith.constant 0 : index
    %39 = vector.load %arg2[%c6, %c0_44, %c0_45] : memref<9x64x128xbf16, #tpu.memory_space<vmem>>, vector<1x64x128xbf16>
    %40 = vector.shape_cast %39 : vector<1x64x128xbf16> to vector<64x128xbf16>
    %cst_46 = arith.constant dense<0.000000e+00> : vector<256x128xf32>
    %41 = tpu.matmul %38, %40, %cst_46 {dimension_numbers = #tpu.dot_dimension_numbers<[1], [0], [0], [1], [0, 0, 1, 1], [], []>} : vector<256x64xbf16>, vector<64x128xbf16>, vector<256x128xf32> -> vector<256x128xf32>
    %42 = arith.addf %36, %41 : vector<256x128xf32>
    %c0_47 = arith.constant 0 : index
    %c1_48 = arith.constant 1 : index
    %c32_49 = arith.constant 32 : index
    %c0_50 = arith.constant 0 : index
    %43 = vector.load %arg1[%c0_47, %c1_48, %c32_49, %c0_50] : memref<1x3x288x64xbf16, #tpu.memory_space<vmem>>, vector<1x1x256x64xbf16>
    %44 = vector.shape_cast %43 : vector<1x1x256x64xbf16> to vector<256x64xbf16>
    %c7 = arith.constant 7 : index
    %c0_51 = arith.constant 0 : index
    %c0_52 = arith.constant 0 : index
    %45 = vector.load %arg2[%c7, %c0_51, %c0_52] : memref<9x64x128xbf16, #tpu.memory_space<vmem>>, vector<1x64x128xbf16>
    %46 = vector.shape_cast %45 : vector<1x64x128xbf16> to vector<64x128xbf16>
    %cst_53 = arith.constant dense<0.000000e+00> : vector<256x128xf32>
    %47 = tpu.matmul %44, %46, %cst_53 {dimension_numbers = #tpu.dot_dimension_numbers<[1], [0], [0], [1], [0, 0, 1, 1], [], []>} : vector<256x64xbf16>, vector<64x128xbf16>, vector<256x128xf32> -> vector<256x128xf32>
    %48 = arith.addf %42, %47 : vector<256x128xf32>
    %c0_54 = arith.constant 0 : index
    %c2_55 = arith.constant 2 : index
    %c32_56 = arith.constant 32 : index
    %c0_57 = arith.constant 0 : index
    %49 = vector.load %arg1[%c0_54, %c2_55, %c32_56, %c0_57] : memref<1x3x288x64xbf16, #tpu.memory_space<vmem>>, vector<1x1x256x64xbf16>
    %50 = vector.shape_cast %49 : vector<1x1x256x64xbf16> to vector<256x64xbf16>
    %c8 = arith.constant 8 : index
    %c0_58 = arith.constant 0 : index
    %c0_59 = arith.constant 0 : index
    %51 = vector.load %arg2[%c8, %c0_58, %c0_59] : memref<9x64x128xbf16, #tpu.memory_space<vmem>>, vector<1x64x128xbf16>
    %52 = vector.shape_cast %51 : vector<1x64x128xbf16> to vector<64x128xbf16>
    %cst_60 = arith.constant dense<0.000000e+00> : vector<256x128xf32>
    %53 = tpu.matmul %50, %52, %cst_60 {dimension_numbers = #tpu.dot_dimension_numbers<[1], [0], [0], [1], [0, 0, 1, 1], [], []>} : vector<256x64xbf16>, vector<64x128xbf16>, vector<256x128xf32> -> vector<256x128xf32>
    %54 = arith.addf %48, %53 : vector<256x128xf32>
    %c0_61 = arith.constant 0 : index
    %c0_62 = arith.constant 0 : index
    %55 = vector.load %arg3[%c0_61, %c0_62] : memref<1x128xf32, #tpu.memory_space<vmem>>, vector<1x128xf32>
    %56 = vector.broadcast %55 : vector<1x128xf32> to vector<256x128xf32>
    %57 = arith.addf %54, %56 : vector<256x128xf32>
    %58 = arith.negf %57 : vector<256x128xf32>
    %59 = math.exp %58 : vector<256x128xf32>
    %cst_63 = arith.constant 1.000000e+00 : f32
    %60 = vector.broadcast %cst_63 : f32 to vector<256x128xf32>
    %61 = arith.addf %60, %59 : vector<256x128xf32>
    %62 = arith.divf %60, %61 : vector<256x128xf32>
    %c0_64 = arith.constant 0 : index
    %c0_65 = arith.constant 0 : index
    %c0_66 = arith.constant 0 : index
    %63 = vector.load %arg4[%c0_64, %c0_65, %c0_66] : memref<1x256x128xf32, #tpu.memory_space<vmem>>, vector<1x256x128xf32>
    %64 = vector.shape_cast %63 : vector<1x256x128xf32> to vector<256x128xf32>
    %65 = vector.shape_cast %62 : vector<256x128xf32> to vector<1x256x128xf32>
    tpu.vector_store %arg4[%c0_64, %c0_65, %c0_66], %65 {strides = array<i32>} : memref<1x256x128xf32, #tpu.memory_space<vmem>>, vector<1x256x128xf32>,
    return
  }
  func.func @transform_0(%arg0: i32) -> (i32, i32, i32, i32) {
    %c0_i32 = arith.constant 0 : i32
    %c0_i32_0 = arith.constant 0 : i32
    %c0_i32_1 = arith.constant 0 : i32
    %c0_i32_2 = arith.constant 0 : i32
    return %arg0, %c0_i32, %c0_i32_0, %c0_i32_1 : i32, i32, i32, i32
  }
  func.func @transform_1(%arg0: i32) -> (i32, i32, i32) {
    %c0_i32 = arith.constant 0 : i32
    %c0_i32_0 = arith.constant 0 : i32
    %c0_i32_1 = arith.constant 0 : i32
    %c0_i32_2 = arith.constant 0 : i32
    return %c0_i32, %c0_i32_0, %c0_i32_1 : i32, i32, i32
  }
  func.func @transform_2(%arg0: i32) -> (i32, i32) {
    %c0_i32 = arith.constant 0 : i32
    %c0_i32_0 = arith.constant 0 : i32
    %c0_i32_1 = arith.constant 0 : i32
    return %c0_i32, %c0_i32_0 : i32, i32
  }
  func.func @transform_3(%arg0: i32) -> (i32, i32, i32) {
    %c0_i32 = arith.constant 0 : i32
    %c0_i32_0 = arith.constant 0 : i32
    %c0_i32_1 = arith.constant 0 : i32
    return %arg0, %c0_i32, %c0_i32_0 : i32, i32, i32
  }
}

</mosaic_0001>

<bundles_post_ra>
// kernel: discriminator_forward.4
= control target key start
LH: loop header
LB: loop body
LE: loop exit
PB: predicated region body
PF: predicated region fallthrough
CT: control target
= control target key end

     0   :  { %s667_s12 = smov 0   ;;  %s782_s0 = inlined_call_operand.vmem [shape: f32[256,96], index: 0, kind: input, shape index: {}]   ;;  %s783_s1 = inlined_call_operand.vmem [shape: f32[96,128], index: 1, kind: input, shape index: {}]   ;;  %s784_s2 = inlined_call_operand.vmem [shape: f32[1,128], index: 2, kind: input, shape index: {}]   ;;  %s785_s3 = inlined_call_operand.vmem [shape: f32[256,128], index: 3, kind: output, shape index: {}]  }
   0x1 LB: > { %s491_s13 = sadd.s32 4294967295, %s645_s12   ;;  %p495_p0 = scmp.ge.s32.totalorder %s645_s12, 1  ;;  %s645_s12 = sphi %s667_s12, %s13_s12  }
   0x2   : > { %p138_p1 = scmp.lt.s32.totalorder %s645_s12, 3 }
   0x4   : > { %p139_p2 = pnand %p495_p0, %p138_p1 }
   0x5   : > { %v190_v0 = vld [vmem:[%s783_s1] sm:$0xff] (!%p139_p2)  ;;  %v191_v1 = vld [vmem:[%s783_s1 + $0x8] sm:$0xff] (!%p139_p2)  ;;  %v192_v2 = vld [vmem:[%s783_s1 + $0x10] sm:$0xff] (!%p139_p2)  ;;  %s496_s20 = sshll.u32 (!%p139_p2), %s491_s13, 4  ;;  %vm209_vm0 = vcmask (!%p139_p2), 785408  }
   0x6   : > { %142 = sbr.rel (%p139_p2) target bundleno = 263 (0x107), region = 32  ;;  %v595_v3 = vpack.c.bf16 (!%p139_p2), %v191_v1, %v190_v0  ;;  %v193_v4 = vld [vmem:[%s783_s1 + $0x18] sm:$0xff] (!%p139_p2)  ;;  %p163_p3 = scmp.lt.s32.totalorder (!%p139_p2), %s496_s20, 31  ;;  %v194_v6 = vld [vmem:[%s783_s1 + $0x20] sm:$0xff] (!%p139_p2)  ;;  %v195_v7 = vld [vmem:[%s783_s1 + $0x28] sm:$0xff] (!%p139_p2) }
   0x7   : > { %v599_v5 = vpack.c.bf16 (!%p139_p2), %v193_v4, %v192_v2  ;;  %v603_v8 = vpack.c.bf16 (!%p139_p2), %v195_v7, %v194_v6  ;;  %v196_v9 = vld [vmem:[%s783_s1 + $0x30] sm:$0xff] (!%p139_p2)  ;;  %v197_v10 = vld [vmem:[%s783_s1 + $0x38] sm:$0xff] (!%p139_p2)  ;;  %v198_v14 = vld [vmem:[%s783_s1 + $0x40] sm:$0xff] (!%p139_p2) }
   0x8   : > { %596 = vmatprep.subr.bf16.mxu0 (!%p139_p2), %v595_v3  ;;  %619 = vmatprep.subr.bf16.mxu1 (!%p139_p2), %v595_v3  ;;  %v607_v13 = vpack.c.bf16 (!%p139_p2), %v197_v10, %v196_v9  ;;  %v199_v15 = vld [vmem:[%s783_s1 + $0x48] sm:$0xff] (!%p139_p2)  ;;  %v200_v17 = vld [vmem:[%s783_s1 + $0x50] sm:$0xff] (!%p139_p2)  ;;  %v201_v18 = vld [vmem:[%s783_s1 + $0x58] sm:$0xff] (!%p139_p2) }
   0x9   : > { %598 = vmatpush3.bf16.msra.mxu0 (!%p139_p2), %v595_v3  ;;  %625 = vmatpush3.bf16.msra.mxu1 (!%p139_p2), %v595_v3  ;;  %v611_v16 = vpack.c.bf16 (!%p139_p2), %v199_v15, %v198_v14  ;;  %v615_v19 = vpack.c.bf16 (!%p139_p2), %v201_v18, %v200_v17  ;;  %v500_v34 = vld [vmem:[%s784_s2] ss:$0 sm:$0xff] (!%p139_p2) }
   0xa   : > { %600 = vmatprep.subr.bf16.mxu0 (!%p139_p2), %v599_v5  ;;  %620 = vmatprep.subr.bf16.mxu1 (!%p139_p2), %v599_v5 }
   0xd   : > { %s787_s20 = smov (!%p163_p3, %s496_s20), 31  ;;  %602 = vmatpush3.bf16.msra.mxu0 %v599_v5  ;;  %626 = vmatpush3.bf16.msra.mxu1 %v599_v5 }
   0xe   : > { %s497_s27 = sshll.u32 %s787_s20, 3  ;;  %604 = vmatprep.subr.bf16.mxu0 %v603_v8  ;;  %621 = vmatprep.subr.bf16.mxu1 %v603_v8 }
   0xf   : > { %s707_s7 = scalar_lea.vmem %s782_s0, %s497_s27  ;;  %s761_s22 = scalar_lea.vmem %s785_s3, %s497_s27 }
  0x10   : > { %v174_v11 = vld [vmem:[%s707_s7] sm:$0xff]  ;;  %v175_v20 = vld [vmem:[%s707_s7 + $0x8] sm:$0xff]  ;;  %v176_v22 = vld [vmem:[%s707_s7 + $0x10] sm:$0xff] }
  0x11   : > { %v182_v12 = vld [vmem:[%s707_s7 + $0x40] sm:$0xff]  ;;  %571 = vmatprep.mubr.msk.f32.mxu0 %vm209_vm0, %v174_v11  ;;  %606 = vmatpush3.bf16.msra.mxu0 %v603_v8  ;;  %v183_v21 = vld [vmem:[%s707_s7 + $0x48] sm:$0xff]  ;;  %v184_v23 = vld [vmem:[%s707_s7 + $0x50] sm:$0xff] }
  0x12   : > { %583 = vmatprep.mubr.msk.f32.mxu1 %vm209_vm0, %v182_v12  ;;  %627 = vmatpush3.bf16.msra.mxu1 %v603_v8  ;;  %v177_v24 = vld [vmem:[%s707_s7 + $0x18] sm:$0xff]  ;;  %v178_v26 = vld [vmem:[%s707_s7 + $0x20] sm:$0xff]  ;;  %v179_v28 = vld [vmem:[%s707_s7 + $0x28] sm:$0xff] }
  0x13   : > { %608 = vmatprep.subr.bf16.mxu0 %v607_v13  ;;  %622 = vmatprep.subr.bf16.mxu1 %v607_v13  ;;  %v185_v25 = vld [vmem:[%s707_s7 + $0x58] sm:$0xff]  ;;  %v186_v27 = vld [vmem:[%s707_s7 + $0x60] sm:$0xff]  ;;  %v187_v29 = vld [vmem:[%s707_s7 + $0x68] sm:$0xff] }
  0x14   : > { %v180_v30 = vld [vmem:[%s707_s7 + $0x30] sm:$0xff]  ;;  %v181_v32 = vld [vmem:[%s707_s7 + $0x38] sm:$0xff] }
  0x15   : > { %610 = vmatpush3.bf16.msra.mxu0 %v607_v13  ;;  %v188_v31 = vld [vmem:[%s707_s7 + $0x70] sm:$0xff]  ;;  %v189_v33 = vld [vmem:[%s707_s7 + $0x78] sm:$0xff] }
  0x16   : > { %628 = vmatpush3.bf16.msra.mxu1 %v607_v13  ;;  %612 = vmatprep.subr.bf16.mxu0 %v611_v16 }
  0x17   : > { %623 = vmatprep.subr.bf16.mxu1 %v611_v16 }
  0x19   : > { %614 = vmatpush3.bf16.msra.mxu0 %v611_v16 }
  0x1a   : > { %629 = vmatpush3.bf16.msra.mxu1 %v611_v16  ;;  %616 = vmatprep.subr.bf16.mxu0 %v615_v19 }
  0x1b   : > { %624 = vmatprep.subr.bf16.mxu1 %v615_v19 }
  0x1d   : > { %618 = vmatpush3.bf16.msra.mxu0 %v615_v19 }
  0x1e   : > { %630 = vmatpush3.bf16.msra.mxu1 %v615_v19 }
  0x20   : > { %572 = vmatmul.mubr.msk.f32.vlgmr.msra.gmra.mrb[0].mxu0 %vm209_vm0, %v175_v20 }
  0x21   : > { %584 = vmatmul.mubr.msk.f32.vlgmr.msra.gmra.mrb[0].mxu1 %vm209_vm0, %v183_v21  ;;  %574 = vmatprep.mubr.msk.f32.mxu0 %vm209_vm0, %v176_v22 }
  0x22   : > { %586 = vmatprep.mubr.msk.f32.mxu1 %vm209_vm0, %v184_v23 }
  0x24   : > { %575 = vmatmul.mubr.msk.f32.gmra.mrb[2].mxu0 %vm209_vm0, %v177_v24 }
  0x25   : > { %587 = vmatmul.mubr.msk.f32.gmra.mrb[2].mxu1 %vm209_vm0, %v185_v25  ;;  %577 = vmatprep.mubr.msk.f32.mxu0 %vm209_vm0, %v178_v26 }
  0x26   : > { %589 = vmatprep.mubr.msk.f32.mxu1 %vm209_vm0, %v186_v27 }
  0x28   : > { %578 = vmatmul.mubr.msk.f32.gmra.mrb[4].mxu0 %vm209_vm0, %v179_v28 }
  0x29   : > { %590 = vmatmul.mubr.msk.f32.gmra.mrb[4].mxu1 %vm209_vm0, %v187_v29  ;;  %580 = vmatprep.mubr.msk.f32.mxu0 %vm209_vm0, %v180_v30 }
  0x2a   : > { %592 = vmatprep.mubr.msk.f32.mxu1 %vm209_vm0, %v188_v31 }
  0x2c   : > { %581 = vmatmul.mubr.msk.f32.gmra.mrb[6].mxu0 %vm209_vm0, %v181_v32 }
  0x2d   : > { %593 = vmatmul.mubr.msk.f32.gmra.mrb[6].mxu1 %vm209_vm0, %v189_v33 }
  0xf3   : > { %v573_v35 = vpop.f32.mrb[0].mxu0 }
  0xf4   : > { %v585_v36 = vpop.f32.mrb[0].mxu1  ;;  %v330_v37 = vadd.f32 %v573_v35, %v500_v34  ;;  %v324_v39 = vpop.f32.mrb[1].mxu0 }
  0xf5   : > { %v370_v38 = vadd.f32 %v585_v36, %v500_v34  ;;  %v364_v40 = vpop.f32.mrb[1].mxu1  ;;  %v325_v41 = vadd.f32 %v500_v34, %v324_v39 }
  0xf6   : > { %v365_v42 = vadd.f32 %v500_v34, %v364_v40  ;;  %v404_v43 = vmax.f32 %v330_v37, 0.0 }
  0xf7   : > { %v412_v44 = vmax.f32 %v370_v38, 0.0  ;;  %v403_v45 = vmax.f32 %v325_v41, 0.0  ;;  %v576_v47 = vpop.f32.mrb[2].mxu0 }
  0xf8   : > { %v411_v46 = vmax.f32 %v365_v42, 0.0  ;;  %v588_v48 = vpop.f32.mrb[2].mxu1  ;;  %420 = vst [vmem:[%s761_s22 + $0x8] sm:$0xff] %v404_v43  ;;  %v340_v49 = vadd.f32 %v576_v47, %v500_v34  ;;  %v334_v51 = vpop.f32.mrb[3].mxu0 }
  0xf9   : > { %428 = vst [vmem:[%s761_s22 + $0x48] sm:$0xff] %v412_v44  ;;  %v380_v50 = vadd.f32 %v588_v48, %v500_v34  ;;  %v374_v52 = vpop.f32.mrb[3].mxu1  ;;  %419 = vst [vmem:[%s761_s22] sm:$0xff] %v403_v45  ;;  %v335_v53 = vadd.f32 %v500_v34, %v334_v51 }
  0xfa   : > { %427 = vst [vmem:[%s761_s22 + $0x40] sm:$0xff] %v411_v46  ;;  %v375_v54 = vadd.f32 %v500_v34, %v374_v52  ;;  %v406_v55 = vmax.f32 %v340_v49, 0.0 }
  0xfb   : > { %v414_v56 = vmax.f32 %v380_v50, 0.0  ;;  %v405_v57 = vmax.f32 %v335_v53, 0.0  ;;  %v579_v59 = vpop.f32.mrb[4].mxu0 }
  0xfc   : > { %v413_v58 = vmax.f32 %v375_v54, 0.0  ;;  %v591_v60 = vpop.f32.mrb[4].mxu1  ;;  %422 = vst [vmem:[%s761_s22 + $0x18] sm:$0xff] %v406_v55  ;;  %v350_v61 = vadd.f32 %v579_v59, %v500_v34  ;;  %v344_v63 = vpop.f32.mrb[5].mxu0 }
  0xfd   : > { %430 = vst [vmem:[%s761_s22 + $0x58] sm:$0xff] %v414_v56  ;;  %v390_v62 = vadd.f32 %v591_v60, %v500_v34  ;;  %v384_v0 = vpop.f32.mrb[5].mxu1  ;;  %421 = vst [vmem:[%s761_s22 + $0x10] sm:$0xff] %v405_v57  ;;  %v345_v1 = vadd.f32 %v500_v34, %v344_v63 }
  0xfe   : > { %429 = vst [vmem:[%s761_s22 + $0x50] sm:$0xff] %v413_v58  ;;  %v385_v2 = vadd.f32 %v500_v34, %v384_v0  ;;  %v408_v3 = vmax.f32 %v350_v61, 0.0 }
  0xff   : > { %v416_v4 = vmax.f32 %v390_v62, 0.0  ;;  %v407_v5 = vmax.f32 %v345_v1, 0.0  ;;  %v582_v7 = vpop.f32.mrb[6].mxu0 }
 0x100   : > { %v415_v6 = vmax.f32 %v385_v2, 0.0  ;;  %v594_v8 = vpop.f32.mrb[6].mxu1  ;;  %424 = vst [vmem:[%s761_s22 + $0x28] sm:$0xff] %v408_v3  ;;  %v360_v9 = vadd.f32 %v582_v7, %v500_v34  ;;  %v354_v11 = vpop.f32.mrb[7].mxu0 }
 0x101   : > { %432 = vst [vmem:[%s761_s22 + $0x68] sm:$0xff] %v416_v4  ;;  %v400_v10 = vadd.f32 %v594_v8, %v500_v34  ;;  %v394_v12 = vpop.f32.mrb[7].mxu1  ;;  %423 = vst [vmem:[%s761_s22 + $0x20] sm:$0xff] %v407_v5  ;;  %v355_v13 = vadd.f32 %v500_v34, %v354_v11 }
 0x102   : > { %431 = vst [vmem:[%s761_s22 + $0x60] sm:$0xff] %v415_v6  ;;  %v395_v14 = vadd.f32 %v500_v34, %v394_v12  ;;  %v410_v15 = vmax.f32 %v360_v9, 0.0 }
 0x103   : > { %v418_v16 = vmax.f32 %v400_v10, 0.0  ;;  %v409_v17 = vmax.f32 %v355_v13, 0.0 }
 0x104   : > { %v417_v18 = vmax.f32 %v395_v14, 0.0  ;;  %426 = vst [vmem:[%s761_s22 + $0x38] sm:$0xff] %v410_v15 }
 0x105   : > { %434 = vst [vmem:[%s761_s22 + $0x78] sm:$0xff] %v418_v16  ;;  %425 = vst [vmem:[%s761_s22 + $0x30] sm:$0xff] %v409_v17 }
 0x106   : > { %433 = vst [vmem:[%s761_s22 + $0x70] sm:$0xff] %v417_v18 }
 0x107 PF: > { %s13_s12 = sadd.s32 1, %s645_s12  }
 0x108   : > { %p10_p4 = scmp.ge.s32.totalorder %s13_s12, 4  }
 0x10a   :  { %12 = sbr.rel (!%p10_p4) target bundleno = 1 (0x1), region = 62 }

// kernel: discriminator_forward.6
= control target key start
LH: loop header
LB: loop body
LE: loop exit
PB: predicated region body
PF: predicated region fallthrough
CT: control target
= control target key end

     0   :  { %s3684_s18 = smov 0   ;;  %s3686_s19 = smov 0   ;;  %s4863_s0 = inlined_call_operand.vmem [shape: f32[2,32], index: 0, kind: input, shape index: {}]   ;;  %s4864_s1 = inlined_call_operand.vmem [shape: bf16[32,16384], index: 1, kind: input, shape index: {}]   ;;  %s4865_s2 = inlined_call_operand.vmem [shape: f32[1,16384], index: 2, kind: input, shape index: {}]   ;;  %s4866_s3 = inlined_call_operand.vmem [shape: f32[1,16384], index: 3, kind: input, shape index: {}]   ;;  %s4867_s4 = inlined_call_operand.vmem [shape: f32[1,16384], index: 4, kind: input, shape index: {}]   ;;  %s4868_s5 = inlined_call_operand.vmem [shape: f32[2,16384], index: 5, kind: output, shape index: {}]  }
   0x1   :  { %s3688_s20 = smov 0  }
   0x2 LB: > { %s3310_s21 = sadd.s32 4294967295, %s3650_s20   ;;  %s3701_s22 = sadd.s32 1, %s3650_s20   ;;  %s3650_s20 = sphi %s3688_s20, %s4910_s20   ;;  %s3646_s19 = sphi %s3686_s19, %s4909_s19   ;;  %s3642_s18 = sphi %s3684_s18, %s4908_s18  }
   0x3   : > { %s40_s23 = ssub.s32 %s3650_s20, %s3701_s22  ;;  %s43_s24 = sadd.s32 1, %s3646_s19 }
   0x4   : > { %p41_p0 = scmp.eq.s32.totalorder %s40_s23, 0  ;;  %p50_p1 = scmp.ne.s32.totalorder %s3646_s19, %s3642_s18 }
   0x5   : > { %p51_p2 = scmp.eq.s32.totalorder %s3650_s20, 0  ;;  %p3313_p4 = scmp.ge.s32.totalorder %s3650_s20, 4 }
   0x6   : > { %s3710_s25 = scalar_select %p41_p0, %s3646_s19, %s43_s24  }
   0x7   : > { %p52_p3 = por %p51_p2, %p50_p1  ;;  %183 = sbr.rel (%p3313_p4) target bundleno = 50 (0x32), region = 20 }
   0xe   : > { %186 = sbr.rel (!%p52_p3) target bundleno = 50 (0x32), region = 24  ;;  %s188_s26 = sand.u32 (%p52_p3), 1, %s3646_s19  }
   0xf   : > { %s3342_s27 = sshll.u32 (%p52_p3), %s3650_s20, 7  ;;  %s3314_s28 = sshll.u32 (%p52_p3), %s188_s26, 9 }
  0x10   : > { %s3718_s6 = scalar_lea.vmem (%p52_p3), %s4864_s1, %s3342_s27  ;;  %s3723_s7 = scalar_lea.vmem (%p52_p3), [#allocation2], %s3314_s28 }
  0x11   : > { %v206_v0 = vld [vmem:[%s3718_s6] sm:$0xff] (%p52_p3)  ;;  %v208_v1 = vld [vmem:[%s3718_s6 + $0x8] sm:$0xff] (%p52_p3)  ;;  %v210_v2 = vld [vmem:[%s3718_s6 + $0x10] sm:$0xff] (%p52_p3) }
  0x12   : > { %207 = vst [vmem:[%s3723_s7] sm:$0xff] (%p52_p3), %v206_v0  ;;  %209 = vst [vmem:[%s3723_s7 + $0x8] sm:$0xff] (%p52_p3), %v208_v1  ;;  %v212_v3 = vld [vmem:[%s3718_s6 + $0x18] sm:$0xff] (%p52_p3)  ;;  %v214_v4 = vld [vmem:[%s3718_s6 + $0x20] sm:$0xff] (%p52_p3) }
  0x13   : > { %211 = vst [vmem:[%s3723_s7 + $0x10] sm:$0xff] (%p52_p3), %v210_v2  ;;  %v216_v5 = vld [vmem:[%s3718_s6 + $0x28] sm:$0xff] (%p52_p3)  ;;  %213 = vst [vmem:[%s3723_s7 + $0x18] sm:$0xff] (%p52_p3), %v212_v3  ;;  %v218_v6 = vld [vmem:[%s3718_s6 + $0x30] sm:$0xff] (%p52_p3) }
  0x14   : > { %215 = vst [vmem:[%s3723_s7 + $0x20] sm:$0xff] (%p52_p3), %v214_v4  ;;  %217 = vst [vmem:[%s3723_s7 + $0x28] sm:$0xff] (%p52_p3), %v216_v5  ;;  %v220_v7 = vld [vmem:[%s3718_s6 + $0x38] sm:$0xff] (%p52_p3)  ;;  %v222_v8 = vld [vmem:[%s3718_s6 + $0x40] sm:$0xff] (%p52_p3) }
  0x15   : > { %219 = vst [vmem:[%s3723_s7 + $0x30] sm:$0xff] %v218_v6  ;;  %221 = vst [vmem:[%s3723_s7 + $0x38] sm:$0xff] %v220_v7  ;;  %v224_v9 = vld [vmem:[%s3718_s6 + $0x48] sm:$0xff]  ;;  %v226_v10 = vld [vmem:[%s3718_s6 + $0x50] sm:$0xff] }
  0x16   : > { %223 = vst [vmem:[%s3723_s7 + $0x40] sm:$0xff] %v222_v8  ;;  %v228_v11 = vld [vmem:[%s3718_s6 + $0x58] sm:$0xff]  ;;  %225 = vst [vmem:[%s3723_s7 + $0x48] sm:$0xff] %v224_v9  ;;  %v230_v12 = vld [vmem:[%s3718_s6 + $0x60] sm:$0xff] }
  0x17   : > { %227 = vst [vmem:[%s3723_s7 + $0x50] sm:$0xff] %v226_v10  ;;  %229 = vst [vmem:[%s3723_s7 + $0x58] sm:$0xff] %v228_v11  ;;  %v232_v13 = vld [vmem:[%s3718_s6 + $0x68] sm:$0xff]  ;;  %v234_v14 = vld [vmem:[%s3718_s6 + $0x70] sm:$0xff] }
  0x18   : > { %231 = vst [vmem:[%s3723_s7 + $0x60] sm:$0xff] %v230_v12  ;;  %233 = vst [vmem:[%s3723_s7 + $0x68] sm:$0xff] %v232_v13  ;;  %v236_v15 = vld [vmem:[%s3718_s6 + $0x78] sm:$0xff]  ;;  %v238_v16 = vld [vmem:[%s3718_s6 + $0x200] sm:$0xff] }
  0x19   : > { %235 = vst [vmem:[%s3723_s7 + $0x70] sm:$0xff] %v234_v14  ;;  %v240_v17 = vld [vmem:[%s3718_s6 + $0x208] sm:$0xff]  ;;  %237 = vst [vmem:[%s3723_s7 + $0x78] sm:$0xff] %v236_v15  ;;  %v242_v18 = vld [vmem:[%s3718_s6 + $0x210] sm:$0xff] }
  0x1a   : > { %239 = vst [vmem:[%s3723_s7 + $0x80] sm:$0xff] %v238_v16  ;;  %241 = vst [vmem:[%s3723_s7 + $0x88] sm:$0xff] %v240_v17  ;;  %v244_v19 = vld [vmem:[%s3718_s6 + $0x218] sm:$0xff]  ;;  %v246_v20 = vld [vmem:[%s3718_s6 + $0x220] sm:$0xff] }
  0x1b   : > { %243 = vst [vmem:[%s3723_s7 + $0x90] sm:$0xff] %v242_v18  ;;  %245 = vst [vmem:[%s3723_s7 + $0x98] sm:$0xff] %v244_v19  ;;  %v248_v21 = vld [vmem:[%s3718_s6 + $0x228] sm:$0xff]  ;;  %v250_v22 = vld [vmem:[%s3718_s6 + $0x230] sm:$0xff] }
  0x1c   : > { %247 = vst [vmem:[%s3723_s7 + $0xa0] sm:$0xff] %v246_v20  ;;  %v252_v23 = vld [vmem:[%s3718_s6 + $0x238] sm:$0xff]  ;;  %249 = vst [vmem:[%s3723_s7 + $0xa8] sm:$0xff] %v248_v21  ;;  %v254_v24 = vld [vmem:[%s3718_s6 + $0x240] sm:$0xff] }
  0x1d   : > { %251 = vst [vmem:[%s3723_s7 + $0xb0] sm:$0xff] %v250_v22  ;;  %253 = vst [vmem:[%s3723_s7 + $0xb8] sm:$0xff] %v252_v23  ;;  %v256_v25 = vld [vmem:[%s3718_s6 + $0x248] sm:$0xff]  ;;  %v258_v26 = vld [vmem:[%s3718_s6 + $0x250] sm:$0xff] }
  0x1e   : > { %255 = vst [vmem:[%s3723_s7 + $0xc0] sm:$0xff] %v254_v24  ;;  %257 = vst [vmem:[%s3723_s7 + $0xc8] sm:$0xff] %v256_v25  ;;  %v260_v27 = vld [vmem:[%s3718_s6 + $0x258] sm:$0xff]  ;;  %v262_v28 = vld [vmem:[%s3718_s6 + $0x260] sm:$0xff] }
  0x1f   : > { %259 = vst [vmem:[%s3723_s7 + $0xd0] sm:$0xff] %v258_v26  ;;  %v264_v29 = vld [vmem:[%s3718_s6 + $0x268] sm:$0xff]  ;;  %261 = vst [vmem:[%s3723_s7 + $0xd8] sm:$0xff] %v260_v27  ;;  %v266_v30 = vld [vmem:[%s3718_s6 + $0x270] sm:$0xff] }
  0x20   : > { %263 = vst [vmem:[%s3723_s7 + $0xe0] sm:$0xff] %v262_v28  ;;  %265 = vst [vmem:[%s3723_s7 + $0xe8] sm:$0xff] %v264_v29  ;;  %v268_v31 = vld [vmem:[%s3718_s6 + $0x278] sm:$0xff]  ;;  %v270_v32 = vld [vmem:[%s3718_s6 + $0x400] sm:$0xff] }
  0x21   : > { %267 = vst [vmem:[%s3723_s7 + $0xf0] sm:$0xff] %v266_v30  ;;  %269 = vst [vmem:[%s3723_s7 + $0xf8] sm:$0xff] %v268_v31  ;;  %v272_v33 = vld [vmem:[%s3718_s6 + $0x408] sm:$0xff]  ;;  %v274_v34 = vld [vmem:[%s3718_s6 + $0x410] sm:$0xff] }
  0x22   : > { %271 = vst [vmem:[%s3723_s7 + $0x100] sm:$0xff] %v270_v32  ;;  %v276_v35 = vld [vmem:[%s3718_s6 + $0x418] sm:$0xff]  ;;  %273 = vst [vmem:[%s3723_s7 + $0x108] sm:$0xff] %v272_v33  ;;  %v278_v36 = vld [vmem:[%s3718_s6 + $0x420] sm:$0xff] }
  0x23   : > { %275 = vst [vmem:[%s3723_s7 + $0x110] sm:$0xff] %v274_v34  ;;  %277 = vst [vmem:[%s3723_s7 + $0x118] sm:$0xff] %v276_v35  ;;  %v280_v37 = vld [vmem:[%s3718_s6 + $0x428] sm:$0xff]  ;;  %v282_v38 = vld [vmem:[%s3718_s6 + $0x430] sm:$0xff] }
  0x24   : > { %279 = vst [vmem:[%s3723_s7 + $0x120] sm:$0xff] %v278_v36  ;;  %281 = vst [vmem:[%s3723_s7 + $0x128] sm:$0xff] %v280_v37  ;;  %v284_v39 = vld [vmem:[%s3718_s6 + $0x438] sm:$0xff]  ;;  %v286_v40 = vld [vmem:[%s3718_s6 + $0x440] sm:$0xff] }
  0x25   : > { %283 = vst [vmem:[%s3723_s7 + $0x130] sm:$0xff] %v282_v38  ;;  %v288_v41 = vld [vmem:[%s3718_s6 + $0x448] sm:$0xff]  ;;  %285 = vst [vmem:[%s3723_s7 + $0x138] sm:$0xff] %v284_v39  ;;  %v290_v42 = vld [vmem:[%s3718_s6 + $0x450] sm:$0xff] }
  0x26   : > { %287 = vst [vmem:[%s3723_s7 + $0x140] sm:$0xff] %v286_v40  ;;  %289 = vst [vmem:[%s3723_s7 + $0x148] sm:$0xff] %v288_v41  ;;  %v292_v43 = vld [vmem:[%s3718_s6 + $0x458] sm:$0xff]  ;;  %v294_v44 = vld [vmem:[%s3718_s6 + $0x460] sm:$0xff] }
  0x27   : > { %291 = vst [vmem:[%s3723_s7 + $0x150] sm:$0xff] %v290_v42  ;;  %293 = vst [vmem:[%s3723_s7 + $0x158] sm:$0xff] %v292_v43  ;;  %v296_v45 = vld [vmem:[%s3718_s6 + $0x468] sm:$0xff]  ;;  %v298_v46 = vld [vmem:[%s3718_s6 + $0x470] sm:$0xff] }
  0x28   : > { %295 = vst [vmem:[%s3723_s7 + $0x160] sm:$0xff] %v294_v44  ;;  %v300_v47 = vld [vmem:[%s3718_s6 + $0x478] sm:$0xff]  ;;  %297 = vst [vmem:[%s3723_s7 + $0x168] sm:$0xff] %v296_v45  ;;  %v302_v48 = vld [vmem:[%s3718_s6 + $0x600] sm:$0xff] }
  0x29   : > { %299 = vst [vmem:[%s3723_s7 + $0x170] sm:$0xff] %v298_v46  ;;  %301 = vst [vmem:[%s3723_s7 + $0x178] sm:$0xff] %v300_v47  ;;  %v304_v49 = vld [vmem:[%s3718_s6 + $0x608] sm:$0xff]  ;;  %v306_v50 = vld [vmem:[%s3718_s6 + $0x610] sm:$0xff] }
  0x2a   : > { %303 = vst [vmem:[%s3723_s7 + $0x180] sm:$0xff] %v302_v48  ;;  %305 = vst [vmem:[%s3723_s7 + $0x188] sm:$0xff] %v304_v49  ;;  %v308_v51 = vld [vmem:[%s3718_s6 + $0x618] sm:$0xff]  ;;  %v310_v52 = vld [vmem:[%s3718_s6 + $0x620] sm:$0xff] }
  0x2b   : > { %307 = vst [vmem:[%s3723_s7 + $0x190] sm:$0xff] %v306_v50  ;;  %v312_v53 = vld [vmem:[%s3718_s6 + $0x628] sm:$0xff]  ;;  %309 = vst [vmem:[%s3723_s7 + $0x198] sm:$0xff] %v308_v51  ;;  %v314_v54 = vld [vmem:[%s3718_s6 + $0x630] sm:$0xff] }
  0x2c   : > { %311 = vst [vmem:[%s3723_s7 + $0x1a0] sm:$0xff] %v310_v52  ;;  %313 = vst [vmem:[%s3723_s7 + $0x1a8] sm:$0xff] %v312_v53  ;;  %v316_v55 = vld [vmem:[%s3718_s6 + $0x638] sm:$0xff]  ;;  %v318_v56 = vld [vmem:[%s3718_s6 + $0x640] sm:$0xff] }
  0x2d   : > { %315 = vst [vmem:[%s3723_s7 + $0x1b0] sm:$0xff] %v314_v54  ;;  %317 = vst [vmem:[%s3723_s7 + $0x1b8] sm:$0xff] %v316_v55  ;;  %v320_v57 = vld [vmem:[%s3718_s6 + $0x648] sm:$0xff]  ;;  %v322_v58 = vld [vmem:[%s3718_s6 + $0x650] sm:$0xff] }
  0x2e   : > { %319 = vst [vmem:[%s3723_s7 + $0x1c0] sm:$0xff] %v318_v56  ;;  %v324_v59 = vld [vmem:[%s3718_s6 + $0x658] sm:$0xff]  ;;  %321 = vst [vmem:[%s3723_s7 + $0x1c8] sm:$0xff] %v320_v57  ;;  %v326_v60 = vld [vmem:[%s3718_s6 + $0x660] sm:$0xff] }
  0x2f   : > { %323 = vst [vmem:[%s3723_s7 + $0x1d0] sm:$0xff] %v322_v58  ;;  %325 = vst [vmem:[%s3723_s7 + $0x1d8] sm:$0xff] %v324_v59  ;;  %v328_v61 = vld [vmem:[%s3718_s6 + $0x668] sm:$0xff]  ;;  %v330_v62 = vld [vmem:[%s3718_s6 + $0x670] sm:$0xff] }
  0x30   : > { %327 = vst [vmem:[%s3723_s7 + $0x1e0] sm:$0xff] %v326_v60  ;;  %329 = vst [vmem:[%s3723_s7 + $0x1e8] sm:$0xff] %v328_v61  ;;  %v332_v63 = vld [vmem:[%s3718_s6 + $0x678] sm:$0xff] }
  0x31   : > { %331 = vst [vmem:[%s3723_s7 + $0x1f0] sm:$0xff] %v330_v62  ;;  %333 = vst [vmem:[%s3723_s7 + $0x1f8] sm:$0xff] %v332_v63 }
  0x32 PF: > { %p3317_p5 = scmp.ge.s32.totalorder %s3650_s20, 1  ;;  %p362_p6 = scmp.lt.s32.totalorder %s3650_s20, 5 }
  0x34   : > { %p363_p7 = pnand %p3317_p5, %p362_p6 }
  0x36   : > { %366 = sbr.rel (%p363_p7) target bundleno = 554 (0x22a), region = 59 }
  0x3d   : > { %s369_s8 = sand.u32 1, %s3642_s18   ;;  %v3652_v0 = vmov 0.0   ;;  %v3876_v27 = vld [vmem:[%s4863_s0] sm:$0x3]  ;;  %vm791_vm0 = vcmask 261120   ;;  %s3319_s13 = sshll.u32 %s3310_s21, 5 }
  0x3e   : > { %s3318_s9 = sshll.u32 %s369_s8, 9  ;;  %859 = vmatprep.mubr.f32.mxu0 %v3652_v0  ;;  %930 = vmatprep.mubr.f32.mxu1 %v3652_v0  ;;  %p410_p8 = scmp.lt.s32.totalorder %s3319_s13, 127  ;;  %vm1931_vm1 = vcmask 1041408  }
  0x3f   : > { %s3855_s10 = scalar_lea.vmem [#allocation2], %s3318_s9 }
  0x40   : > { %v430_v1 = vld [vmem:[%s3855_s10] sm:$0xff]  ;;  %v431_v3 = vld [vmem:[%s3855_s10 + $0x8] sm:$0xff]  ;;  %v432_v14 = vld [vmem:[%s3855_s10 + $0x10] sm:$0xff]  ;;  %s4912_s13 = smov (!%p410_p8, %s3319_s13), 127 }
  0x41   : > { %v446_v2 = vld [vmem:[%s3855_s10 + $0x80] sm:$0xff]  ;;  %v447_v5 = vld [vmem:[%s3855_s10 + $0x88] sm:$0xff]  ;;  %v448_v16 = vld [vmem:[%s3855_s10 + $0x90] sm:$0xff]  ;;  %s3980_s16 = scalar_lea.vmem %s4865_s2, %s4912_s13  ;;  %s3999_s20 = scalar_lea.vmem %s4866_s3, %s4912_s13 }
  0x42   : > { %v3471_v4 = vcombine.high %v430_v1, %v446_v2  ;;  %v3472_v6 = vcombine.low %v430_v1, %v446_v2  ;;  %v462_v7 = vld [vmem:[%s3855_s10 + $0x100] sm:$0xff]  ;;  %v3475_v9 = vcombine.high %v431_v3, %v447_v5  ;;  %v3476_v10 = vcombine.low %v431_v3, %v447_v5  ;;  %v463_v12 = vld [vmem:[%s3855_s10 + $0x108] sm:$0xff]  ;;  %v433_v17 = vld [vmem:[%s3855_s10 + $0x18] sm:$0xff]  ;;  %s4005_s24 = scalar_lea.vmem %s4867_s4, %s4912_s13  ;;  %s3323_s26 = sshll.u32 %s4912_s13, 1 }
  0x43   : > { %v478_v8 = vld [vmem:[%s3855_s10 + $0x180] sm:$0xff]  ;;  %v479_v13 = vld [vmem:[%s3855_s10 + $0x188] sm:$0xff]  ;;  %v449_v18 = vld [vmem:[%s3855_s10 + $0x98] sm:$0xff]  ;;  %v3479_v21 = vcombine.high %v432_v14, %v448_v16  ;;  %v3480_v28 = vcombine.low %v432_v14, %v448_v16  ;;  %s4358_s29 = scalar_lea.vmem %s4868_s5, %s3323_s26 }
  0x44   : > { %v3473_v11 = vcombine.high %v462_v7, %v478_v8  ;;  %3344 = vmatprep.subr.bf16.mxu0 %v3471_v4  ;;  %v3477_v15 = vcombine.high %v463_v12, %v479_v13  ;;  %3352 = vmatprep.subr.bf16.mxu1 %v3475_v9  ;;  %v3474_v19 = vcombine.low %v462_v7, %v478_v8  ;;  %v464_v23 = vld [vmem:[%s3855_s10 + $0x110] sm:$0xff]  ;;  %v465_v25 = vld [vmem:[%s3855_s10 + $0x118] sm:$0xff]  ;;  %v434_v32 = vld [vmem:[%s3855_s10 + $0x20] sm:$0xff] }
  0x45   : > { %3346 = vmatpush1.bf16.msra.mxu0 %v3472_v6  ;;  %3354 = vmatpush1.bf16.msra.mxu1 %v3476_v10  ;;  %v3478_v20 = vcombine.low %v463_v12, %v479_v13  ;;  %v3483_v22 = vcombine.high %v433_v17, %v449_v18  ;;  %v480_v24 = vld [vmem:[%s3855_s10 + $0x190] sm:$0xff]  ;;  %v481_v26 = vld [vmem:[%s3855_s10 + $0x198] sm:$0xff]  ;;  %v3484_v29 = vcombine.low %v433_v17, %v449_v18  ;;  %v450_v33 = vld [vmem:[%s3855_s10 + $0xa0] sm:$0xff] }
  0x46   : > { %3348 = vmatprep.subr.bf16.mxu0 %v3473_v11  ;;  %3356 = vmatprep.subr.bf16.mxu1 %v3477_v15  ;;  %v3481_v30 = vcombine.high %v464_v23, %v480_v24  ;;  %v3485_v31 = vcombine.high %v465_v25, %v481_v26  ;;  %v435_v34 = vld [vmem:[%s3855_s10 + $0x28] sm:$0xff]  ;;  %v3482_v36 = vcombine.low %v464_v23, %v480_v24  ;;  %v466_v40 = vld [vmem:[%s3855_s10 + $0x120] sm:$0xff]  ;;  %v436_v48 = vld [vmem:[%s3855_s10 + $0x30] sm:$0xff] }
  0x47   : > { %v451_v35 = vld [vmem:[%s3855_s10 + $0xa8] sm:$0xff]  ;;  %v3486_v37 = vcombine.low %v465_v25, %v481_v26  ;;  %v3487_v38 = vcombine.high %v434_v32, %v450_v33  ;;  %v482_v41 = vld [vmem:[%s3855_s10 + $0x1a0] sm:$0xff]  ;;  %v3488_v44 = vcombine.low %v434_v32, %v450_v33  ;;  %v452_v49 = vld [vmem:[%s3855_s10 + $0xb0] sm:$0xff] }
  0x48   : > { %v3491_v39 = vcombine.high %v435_v34, %v451_v35  ;;  %v467_v42 = vld [vmem:[%s3855_s10 + $0x128] sm:$0xff]  ;;  %v3492_v45 = vcombine.low %v435_v34, %v451_v35  ;;  %v3489_v46 = vcombine.high %v466_v40, %v482_v41  ;;  %v437_v50 = vld [vmem:[%s3855_s10 + $0x38] sm:$0xff]  ;;  %v3490_v52 = vcombine.low %v466_v40, %v482_v41  ;;  %v468_v56 = vld [vmem:[%s3855_s10 + $0x130] sm:$0xff] }
  0x49   : > { %3350 = vmatpush1.bf16.msra.mxu0 %v3474_v19  ;;  %3358 = vmatpush1.bf16.msra.mxu1 %v3478_v20  ;;  %v483_v43 = vld [vmem:[%s3855_s10 + $0x1a8] sm:$0xff]  ;;  %v453_v51 = vld [vmem:[%s3855_s10 + $0xb8] sm:$0xff]  ;;  %v3495_v54 = vcombine.high %v436_v48, %v452_v49  ;;  %v484_v57 = vld [vmem:[%s3855_s10 + $0x1b0] sm:$0xff]  ;;  %v3496_v60 = vcombine.low %v436_v48, %v452_v49 }
  0x4a   : > { %3360 = vmatprep.subr.bf16.mxu0 %v3479_v21  ;;  %3368 = vmatprep.subr.bf16.mxu1 %v3483_v22  ;;  %v3493_v47 = vcombine.high %v467_v42, %v483_v43  ;;  %v3494_v53 = vcombine.low %v467_v42, %v483_v43  ;;  %v3499_v55 = vcombine.high %v437_v50, %v453_v51  ;;  %v469_v58 = vld [vmem:[%s3855_s10 + $0x138] sm:$0xff]  ;;  %v438_v1 = vld [vmem:[%s3855_s10 + $0x40] sm:$0xff]  ;;  %v439_v3 = vld [vmem:[%s3855_s10 + $0x48] sm:$0xff] }
  0x4b   : > { %v485_v59 = vld [vmem:[%s3855_s10 + $0x1b8] sm:$0xff]  ;;  %v3500_v61 = vcombine.low %v437_v50, %v453_v51  ;;  %v3497_v62 = vcombine.high %v468_v56, %v484_v57  ;;  %v454_v2 = vld [vmem:[%s3855_s10 + $0xc0] sm:$0xff]  ;;  %v455_v4 = vld [vmem:[%s3855_s10 + $0xc8] sm:$0xff]  ;;  %v3498_v5 = vcombine.low %v468_v56, %v484_v57 }
  0x4c   : > { %3324 = vmatmul.mubr.msk.f32.vlgmr.msra.gmra.mrb[0].mxu0 %vm791_vm0, %v3876_v27  ;;  %3325 = vmatmul.mubr.msk.f32.vlgmr.msra.gmra.mrb[0].mxu1 %vm791_vm0, %v3876_v27  ;;  %v3501_v63 = vcombine.high %v469_v58, %v485_v59  ;;  %v3502_v6 = vcombine.low %v469_v58, %v485_v59  ;;  %v3503_v7 = vcombine.high %v438_v1, %v454_v2  ;;  %v470_v9 = vld [vmem:[%s3855_s10 + $0x140] sm:$0xff]  ;;  %v471_v11 = vld [vmem:[%s3855_s10 + $0x148] sm:$0xff]  ;;  %v440_v17 = vld [vmem:[%s3855_s10 + $0x50] sm:$0xff] }
  0x4d   : > { %3362 = vmatpush1.bf16.msra.mxu0 %v3480_v28  ;;  %3370 = vmatpush1.bf16.msra.mxu1 %v3484_v29  ;;  %v3507_v8 = vcombine.high %v439_v3, %v455_v4  ;;  %v486_v10 = vld [vmem:[%s3855_s10 + $0x1c0] sm:$0xff]  ;;  %v487_v12 = vld [vmem:[%s3855_s10 + $0x1c8] sm:$0xff]  ;;  %v3504_v13 = vcombine.low %v438_v1, %v454_v2  ;;  %v3508_v14 = vcombine.low %v439_v3, %v455_v4  ;;  %v456_v18 = vld [vmem:[%s3855_s10 + $0xd0] sm:$0xff] }
  0x4e   : > { %3364 = vmatprep.subr.bf16.mxu0 %v3481_v30  ;;  %3372 = vmatprep.subr.bf16.mxu1 %v3485_v31  ;;  %v3505_v15 = vcombine.high %v470_v9, %v486_v10  ;;  %v3509_v16 = vcombine.high %v471_v11, %v487_v12  ;;  %v441_v19 = vld [vmem:[%s3855_s10 + $0x58] sm:$0xff]  ;;  %v3506_v21 = vcombine.low %v470_v9, %v486_v10  ;;  %v472_v25 = vld [vmem:[%s3855_s10 + $0x150] sm:$0xff]  ;;  %v442_v34 = vld [vmem:[%s3855_s10 + $0x60] sm:$0xff] }
  0x4f   : > { %1001 = vmatprep.mubr.f32.mxu0 %v3652_v0  ;;  %1072 = vmatprep.mubr.f32.mxu1 %v3652_v0  ;;  %v457_v20 = vld [vmem:[%s3855_s10 + $0xd8] sm:$0xff]  ;;  %v3510_v22 = vcombine.low %v471_v11, %v487_v12  ;;  %v3511_v23 = vcombine.high %v440_v17, %v456_v18  ;;  %v488_v26 = vld [vmem:[%s3855_s10 + $0x1d0] sm:$0xff]  ;;  %v3512_v30 = vcombine.low %v440_v17, %v456_v18  ;;  %v458_v35 = vld [vmem:[%s3855_s10 + $0xe0] sm:$0xff]  ;;  %v3653_v11 = vmov 1983009808  }
  0x50   : > { %v3515_v24 = vcombine.high %v441_v19, %v457_v20  ;;  %v473_v28 = vld [vmem:[%s3855_s10 + $0x158] sm:$0xff]  ;;  %v3516_v31 = vcombine.low %v441_v19, %v457_v20  ;;  %v3513_v32 = vcombine.high %v472_v25, %v488_v26  ;;  %v3519_v40 = vcombine.high %v442_v34, %v458_v35  ;;  %v474_v42 = vld [vmem:[%s3855_s10 + $0x160] sm:$0xff]  ;;  %v444_v50 = vld [vmem:[%s3855_s10 + $0x70] sm:$0xff] }
  0x51   : > { %3366 = vmatpush1.bf16.msra.mxu0 %v3482_v36  ;;  %3374 = vmatpush1.bf16.msra.mxu1 %v3486_v37  ;;  %v489_v29 = vld [vmem:[%s3855_s10 + $0x1d8] sm:$0xff]  ;;  %v443_v36 = vld [vmem:[%s3855_s10 + $0x68] sm:$0xff]  ;;  %v490_v43 = vld [vmem:[%s3855_s10 + $0x1e0] sm:$0xff]  ;;  %v3072_v12 = vunpack.c.l.s4 %v3653_v11 }
  0x52   : > { %3376 = vmatprep.subr.bf16.mxu0 %v3487_v38  ;;  %3384 = vmatprep.subr.bf16.mxu1 %v3491_v39  ;;  %v3517_v33 = vcombine.high %v473_v28, %v489_v29  ;;  %v459_v37 = vld [vmem:[%s3855_s10 + $0xe8] sm:$0xff]  ;;  %v3514_v38 = vcombine.low %v472_v25, %v488_v26  ;;  %v3518_v39 = vcombine.low %v473_v28, %v489_v29  ;;  %v460_v51 = vld [vmem:[%s3855_s10 + $0xf0] sm:$0xff]  ;;  %v4021_v19 = vld [vmem:[%s3999_s20] sm:$0xff] }
  0x53   : > { %v3523_v41 = vcombine.high %v443_v36, %v459_v37  ;;  %v3521_v48 = vcombine.high %v474_v42, %v490_v43  ;;  %v3527_v56 = vcombine.high %v444_v50, %v460_v51  ;;  %v476_v58 = vld [vmem:[%s3855_s10 + $0x170] sm:$0xff]  ;;  %v4018_v18 = vld [vmem:[%s3980_s16 + $0x8] sm:$0xff]  ;;  %v4024_v20 = vld [vmem:[%s4005_s24] sm:$0xff] }
  0x54   : > { %3326 = vmatmul.mubr.msk.f32.vlgmr.msra.gmra.mrb[2].mxu0 %vm791_vm0, %v3876_v27  ;;  %3327 = vmatmul.mubr.msk.f32.vlgmr.msra.gmra.mrb[2].mxu1 %vm791_vm0, %v3876_v27  ;;  %v492_v59 = vld [vmem:[%s3855_s10 + $0x1f0] sm:$0xff] }
  0x55   : > { %3378 = vmatpush1.bf16.msra.mxu0 %v3488_v44  ;;  %3386 = vmatpush1.bf16.msra.mxu1 %v3492_v45  ;;  %v475_v44 = vld [vmem:[%s3855_s10 + $0x168] sm:$0xff]  ;;  %v3529_v1 = vcombine.high %v476_v58, %v492_v59  ;;  %v3530_v3 = vcombine.low %v476_v58, %v492_v59 }
  0x56   : > { %3380 = vmatprep.subr.bf16.mxu0 %v3489_v46  ;;  %3388 = vmatprep.subr.bf16.mxu1 %v3493_v47  ;;  %v491_v45 = vld [vmem:[%s3855_s10 + $0x1e8] sm:$0xff]  ;;  %v3520_v46 = vcombine.low %v442_v34, %v458_v35  ;;  %v3524_v47 = vcombine.low %v443_v36, %v459_v37 }
  0x57   : > { %1143 = vmatprep.mubr.f32.mxu0 %v3652_v0  ;;  %1214 = vmatprep.mubr.f32.mxu1 %v3652_v0  ;;  %v3525_v49 = vcombine.high %v475_v44, %v491_v45 }
  0x59   : > { %3382 = vmatpush1.bf16.msra.mxu0 %v3490_v52  ;;  %3390 = vmatpush1.bf16.msra.mxu1 %v3494_v53  ;;  %v445_v52 = vld [vmem:[%s3855_s10 + $0x78] sm:$0xff] }
  0x5a   : > { %3392 = vmatprep.subr.bf16.mxu0 %v3495_v54  ;;  %3400 = vmatprep.subr.bf16.mxu1 %v3499_v55  ;;  %v461_v53 = vld [vmem:[%s3855_s10 + $0xf8] sm:$0xff]  ;;  %v3522_v54 = vcombine.low %v474_v42, %v490_v43  ;;  %v3526_v55 = vcombine.low %v475_v44, %v491_v45 }
  0x5b   : > { %v3531_v57 = vcombine.high %v445_v52, %v461_v53 }
  0x5c   : > { %3328 = vmatmul.mubr.msk.f32.vlgmr.msra.gmra.mrb[4].mxu0 %vm791_vm0, %v3876_v27  ;;  %3329 = vmatmul.mubr.msk.f32.vlgmr.msra.gmra.mrb[4].mxu1 %vm791_vm0, %v3876_v27 }
  0x5d   : > { %3394 = vmatpush1.bf16.msra.mxu0 %v3496_v60  ;;  %3402 = vmatpush1.bf16.msra.mxu1 %v3500_v61  ;;  %v477_v60 = vld [vmem:[%s3855_s10 + $0x178] sm:$0xff] }
  0x5e   : > { %3396 = vmatprep.subr.bf16.mxu0 %v3497_v62  ;;  %3404 = vmatprep.subr.bf16.mxu1 %v3501_v63  ;;  %v493_v61 = vld [vmem:[%s3855_s10 + $0x1f8] sm:$0xff]  ;;  %v3528_v62 = vcombine.low %v444_v50, %v460_v51  ;;  %v3532_v63 = vcombine.low %v445_v52, %v461_v53  ;;  %v4079_v50 = vld [vmem:[%s3980_s16 + $0x10] sm:$0xff] }
  0x5f   : > { %1285 = vmatprep.mubr.f32.mxu0 %v3652_v0  ;;  %1356 = vmatprep.mubr.f32.mxu1 %v3652_v0  ;;  %v3533_v2 = vcombine.high %v477_v60, %v493_v61  ;;  %v3534_v4 = vcombine.low %v477_v60, %v493_v61 }
  0x61   : > { %3398 = vmatpush1.bf16.msra.mxu0 %v3498_v5  ;;  %3406 = vmatpush1.bf16.msra.mxu1 %v3502_v6  ;;  %v631_v5 = vlaneseq }
  0x62   : > { %3408 = vmatprep.subr.bf16.mxu0 %v3503_v7  ;;  %3416 = vmatprep.subr.bf16.mxu1 %v3507_v8  ;;  %v3987_v7 = vld [vmem:[%s3980_s16] sm:$0xff] }
  0x63   : > { %v632_v6 = vshrl.u32 %v631_v5, 7 }
  0x64   : > { %3330 = vmatmul.mubr.msk.f32.vlgmr.msra.gmra.mrb[6].mxu0 %vm791_vm0, %v3876_v27  ;;  %3331 = vmatmul.mubr.msk.f32.vlgmr.msra.gmra.mrb[6].mxu1 %vm791_vm0, %v3876_v27 }
  0x65   : > { %3410 = vmatpush1.bf16.msra.mxu0 %v3504_v13  ;;  %3418 = vmatpush1.bf16.msra.mxu1 %v3508_v14  ;;  %v3989_v8 = vsub.s32 1, %v632_v6  ;;  %v3991_v9 = vsub.s32 3, %v632_v6  ;;  %v3993_v10 = vsub.s32 4, %v632_v6  ;;  %v4007_v13 = vsub.s32 6, %v632_v6 }
  0x66   : > { %3412 = vmatprep.subr.bf16.mxu0 %v3505_v15  ;;  %3420 = vmatprep.subr.bf16.mxu1 %v3509_v16  ;;  %v4009_v14 = vsub.s32 5, %v632_v6  ;;  %v4011_v15 = vsub.s32 7, %v632_v6 }
  0x67   : > { %1427 = vmatprep.mubr.f32.mxu0 %v3652_v0  ;;  %1498 = vmatprep.mubr.f32.mxu1 %v3652_v0  ;;  %v658_v25 = vrot.slane %v3987_v7, %v4007_v13 }
  0x68   : > { %v654_v26 = vrot.slane %v3987_v7, %v4009_v14  ;;  %v662_v28 = vrot.slane %v3987_v7, %v4011_v15 }
  0x69   : > { %3414 = vmatpush1.bf16.msra.mxu0 %v3506_v21  ;;  %3422 = vmatpush1.bf16.msra.mxu1 %v3510_v22  ;;  %v638_v21 = vrot.slane %v3987_v7, %v3989_v8  ;;  %v646_v22 = vrot.slane %v3987_v7, %v3991_v9 }
  0x6a   : > { %3424 = vmatprep.subr.bf16.mxu0 %v3511_v23  ;;  %3432 = vmatprep.subr.bf16.mxu1 %v3515_v24  ;;  %v650_v23 = vrot.slane %v3987_v7, %v3993_v10  ;;  %v3073_v24 = vunpack.c.0.s8 %v3072_v12 }
  0x6c   : > { %3332 = vmatmul.mubr.msk.f32.vlgmr.msra.gmra.mrb[8].mxu0 %vm791_vm0, %v3876_v27  ;;  %3333 = vmatmul.mubr.msk.f32.vlgmr.msra.gmra.mrb[8].mxu1 %vm791_vm0, %v3876_v27 }
  0x6d   : > { %3426 = vmatpush1.bf16.msra.mxu0 %v3512_v30  ;;  %3434 = vmatpush1.bf16.msra.mxu1 %v3516_v31 }
  0x6e   : > { %3428 = vmatprep.subr.bf16.mxu0 %v3513_v32  ;;  %3436 = vmatprep.subr.bf16.mxu1 %v3517_v33 }
  0x6f   : > { %1569 = vmatprep.mubr.f32.mxu0 %v3652_v0  ;;  %1640 = vmatprep.mubr.f32.mxu1 %v3652_v0 }
  0x71   : > { %3430 = vmatpush1.bf16.msra.mxu0 %v3514_v38  ;;  %3438 = vmatpush1.bf16.msra.mxu1 %v3518_v39 }
  0x72   : > { %3440 = vmatprep.subr.bf16.mxu0 %v3519_v40  ;;  %3448 = vmatprep.subr.bf16.mxu1 %v3523_v41  ;;  %v4062_v41 = vsub.s32 %v3073_v24, %v632_v6 }
  0x74   : > { %3334 = vmatmul.mubr.msk.f32.vlgmr.msra.gmra.mrb[10].mxu0 %vm791_vm0, %v3876_v27  ;;  %3335 = vmatmul.mubr.msk.f32.vlgmr.msra.gmra.mrb[10].mxu1 %vm791_vm0, %v3876_v27 }
  0x75   : > { %3442 = vmatpush1.bf16.msra.mxu0 %v3520_v46  ;;  %3450 = vmatpush1.bf16.msra.mxu1 %v3524_v47 }
  0x76   : > { %3444 = vmatprep.subr.bf16.mxu0 %v3521_v48  ;;  %3452 = vmatprep.subr.bf16.mxu1 %v3525_v49 }
  0x77   : > { %1711 = vmatprep.mubr.f32.mxu0 %v3652_v0  ;;  %1782 = vmatprep.mubr.f32.mxu1 %v3652_v0 }
  0x79   : > { %3446 = vmatpush1.bf16.msra.mxu0 %v3522_v54  ;;  %3454 = vmatpush1.bf16.msra.mxu1 %v3526_v55  ;;  %v4086_v55 = vld [vmem:[%s3999_s20 + $0x8] sm:$0xff] }
  0x7a   : > { %3456 = vmatprep.subr.bf16.mxu0 %v3527_v56  ;;  %3464 = vmatprep.subr.bf16.mxu1 %v3531_v57 }
  0x7c   : > { %3336 = vmatmul.mubr.msk.f32.vlgmr.msra.gmra.mrb[12].mxu0 %vm791_vm0, %v3876_v27  ;;  %3337 = vmatmul.mubr.msk.f32.vlgmr.msra.gmra.mrb[12].mxu1 %vm791_vm0, %v3876_v27 }
  0x7d   : > { %3458 = vmatpush1.bf16.msra.mxu0 %v3528_v62  ;;  %3466 = vmatpush1.bf16.msra.mxu1 %v3532_v63 }
  0x7e   : > { %3460 = vmatprep.subr.bf16.mxu0 %v3529_v1  ;;  %3468 = vmatprep.subr.bf16.mxu1 %v3533_v2  ;;  %v4105_v2 = vld [vmem:[%s4005_s24 + $0x8] sm:$0xff] }
  0x7f   : > { %1853 = vmatprep.mubr.f32.mxu0 %v3652_v0  ;;  %1924 = vmatprep.mubr.f32.mxu1 %v3652_v0  ;;  %v3982_v0 = vsub.s32 0, %v632_v6 }
  0x81   : > { %3462 = vmatpush1.bf16.msra.mxu0 %v3530_v3  ;;  %3470 = vmatpush1.bf16.msra.mxu1 %v3534_v4  ;;  %v634_v16 = vrot.slane %v3987_v7, %v3982_v0  ;;  %v666_v29 = vrot.slane %v4018_v18, %v3982_v0 }
  0x84   : > { %3338 = vmatmul.mubr.msk.f32.vlgmr.msra.gmra.mrb[14].mxu0 %vm791_vm0, %v3876_v27  ;;  %3339 = vmatmul.mubr.msk.f32.vlgmr.msra.gmra.mrb[14].mxu1 %vm791_vm0, %v3876_v27  ;;  %v3984_v27 = vsub.s32 2, %v632_v6 }
  0x86   : > { %v642_v17 = vrot.slane %v3987_v7, %v3984_v27  ;;  %v674_v30 = vrot.slane %v4018_v18, %v3984_v27 }
 0x11f   : > { %v861_v45 = vpop.f32.mrb[0].mxu0  ;;  %v932_v52 = vpop.f32.mrb[0].mxu1 }
 0x120   : > { %v4081_v51 = vadd.f32 %v861_v45, %v634_v16  ;;  %v863_v53 = vpop.f32.mrb[1].mxu0  ;;  %v4092_v58 = vadd.f32 %v932_v52, %v642_v17  ;;  %v934_v60 = vpop.f32.mrb[1].mxu1 }
 0x121   : > { %v4094_v59 = vadd.f32 %v863_v53, %v638_v21  ;;  %v4102_v1 = vadd.f32 %v934_v60, %v646_v22 }
 0x122   : > { %v1932_v63 = vsel %vm1931_vm1, %v4081_v51, 0.0  ;;  %v1946_v6 = vsel %vm1931_vm1, %v4092_v58, 0.0 }
 0x123   : > { %v1933_v5 = vrot.slane %v1932_v63, 4  ;;  %v1939_v11 = vsel %vm1931_vm1, %v4094_v59, 0.0  ;;  %v1947_v16 = vrot.slane %v1946_v6, 4  ;;  %v1953_v21 = vsel %vm1931_vm1, %v4102_v1, 0.0 }
 0x124   : > { %v1940_v17 = vrot.slane %v1939_v11, 4  ;;  %v1954_v45 = vrot.slane %v1953_v21, 4 }
 0x125   : > { %v1934_v24 = vadd.f32 %v1933_v5, %v1932_v63  ;;  %v1948_v60 = vadd.f32 %v1947_v16, %v1946_v6 }
 0x126   : > { %v1941_v4 = vadd.f32 %v1940_v17, %v1939_v11  ;;  %v1955_v61 = vadd.f32 %v1954_v45, %v1953_v21 }
 0x127   : > { %v1935_v62 = vrot.slane %v1934_v24, 2  ;;  %v1003_v54 = vpop.f32.mrb[2].mxu0  ;;  %v1949_v22 = vrot.slane %v1948_v60, 2  ;;  %v1074_v11 = vpop.f32.mrb[2].mxu1 }
 0x128   : > { %v1942_v52 = vrot.slane %v1941_v4, 2  ;;  %v4136_v6 = vadd.f32 %v1003_v54, %v650_v23  ;;  %v1005_v16 = vpop.f32.mrb[3].mxu0  ;;  %v1956_v45 = vrot.slane %v1955_v61, 2  ;;  %v4143_v12 = vadd.f32 %v1074_v11, %v658_v25  ;;  %v1076_v63 = vpop.f32.mrb[3].mxu1 }
 0x129   : > { %v1936_v21 = vadd.f32 %v1935_v62, %v1934_v24  ;;  %v4148_v5 = vadd.f32 %v1005_v16, %v654_v26  ;;  %v1950_v23 = vadd.f32 %v1949_v22, %v1948_v60  ;;  %v4155_v62 = vadd.f32 %v1076_v63, %v662_v28 }
 0x12a   : > { %v1943_v54 = vadd.f32 %v1942_v52, %v1941_v4  ;;  %v1960_v3 = vsel %vm1931_vm1, %v4136_v6, 0.0  ;;  %v1957_v17 = vadd.f32 %v1956_v45, %v1955_v61  ;;  %v1974_v11 = vsel %vm1931_vm1, %v4143_v12, 0.0 }
 0x12b   : > { %v1937_v24 = vrot.slane %v1936_v21, 1  ;;  %v1961_v25 = vrot.slane %v1960_v3, 4  ;;  %v1951_v53 = vrot.slane %v1950_v23, 1  ;;  %v1975_v16 = vrot.slane %v1974_v11, 4 }
 0x12c   : > { %v1944_v26 = vrot.slane %v1943_v54, 1  ;;  %v1967_v4 = vsel %vm1931_vm1, %v4148_v5, 0.0  ;;  %v1958_v52 = vrot.slane %v1957_v17, 1  ;;  %v1981_v61 = vsel %vm1931_vm1, %v4155_v62, 0.0 }
 0x12d   : > { %v1938_v22 = vadd.f32 %v1937_v24, %v1936_v21  ;;  %v1962_v60 = vadd.f32 %v1961_v25, %v1960_v3  ;;  %v1968_v57 = vrot.slane %v1967_v4, 4  ;;  %v1952_v56 = vadd.f32 %v1951_v53, %v1950_v23 }
 0x12e   : > { %v1945_v7 = vadd.f32 %v1944_v26, %v1943_v54  ;;  %v1976_v28 = vadd.f32 %v1975_v16, %v1974_v11  ;;  %v1959_v45 = vadd.f32 %v1958_v52, %v1957_v17  ;;  %v1982_v40 = vrot.slane %v1981_v61, 4 }
 0x12f   : > { %v2157_v63 = vmul.f32 0.5, %v1938_v22  ;;  %v1963_v49 = vrot.slane %v1962_v60, 2  ;;  %v1969_v48 = vadd.f32 %v1968_v57, %v1967_v4  ;;  %v4163_v47 = vpop.f32.mrb[4].mxu0  ;;  %v2159_v46 = vmul.f32 0.5, %v1952_v56  ;;  %v4165_v21 = vpop.f32.mrb[4].mxu1 }
 0x130   : > { %v2158_v43 = vmul.f32 0.5, %v1945_v7  ;;  %v1977_v42 = vrot.slane %v1976_v28, 2  ;;  %v4167_v3 = vpop.f32.mrb[5].mxu0  ;;  %v2160_v23 = vmul.f32 0.5, %v1959_v45  ;;  %v4172_v25 = vpop.f32.mrb[5].mxu1  ;;  %v1983_v11 = vadd.f32 %v1982_v40, %v1981_v61 }
 0x131   : > { %v4170_v53 = vsub.f32 %v4081_v51, %v2157_v63  ;;  %v1964_v54 = vadd.f32 %v1963_v49, %v1962_v60  ;;  %v1970_v24 = vrot.slane %v1969_v48, 2  ;;  %v4175_v57 = vsub.f32 %v4092_v58, %v2159_v46 }
 0x132   : > { %v4178_v56 = vsub.f32 %v4094_v59, %v2158_v43  ;;  %v1978_v17 = vadd.f32 %v1977_v42, %v1976_v28  ;;  %v4183_v16 = vsub.f32 %v4102_v1, %v2160_v23  ;;  %v1984_v22 = vrot.slane %v1983_v11, 2 }
 0x133   : > { %v2221_v26 = vmul.f32 %v4170_v53, %v4170_v53  ;;  %v1965_v51 = vrot.slane %v1964_v54, 1  ;;  %v1971_v4 = vadd.f32 %v1970_v24, %v1969_v48  ;;  %v2223_v49 = vmul.f32 %v4175_v57, %v4175_v57 }
 0x134   : > { %v2222_v46 = vmul.f32 %v4178_v56, %v4178_v56  ;;  %v1979_v58 = vrot.slane %v1978_v17, 1  ;;  %v2224_v40 = vmul.f32 %v4183_v16, %v4183_v16 }
 0x135   : > { %v2253_v43 = vsel %vm1931_vm1, %v2221_v26, 0.0  ;;  %v1966_v42 = vadd.f32 %v1965_v51, %v1964_v54  ;;  %v1972_v59 = vrot.slane %v1971_v4, 1  ;;  %v2267_v1 = vsel %vm1931_vm1, %v2223_v49, 0.0 }
 0x136   : > { %v2254_v52 = vrot.slane %v2253_v43, 4  ;;  %v2260_v48 = vsel %vm1931_vm1, %v2222_v46, 0.0  ;;  %v1980_v60 = vadd.f32 %v1979_v58, %v1978_v17  ;;  %v2268_v7 = vrot.slane %v2267_v1, 4 }
 0x137   : > { %v2261_v28 = vrot.slane %v2260_v48, 4  ;;  %v2274_v61 = vsel %vm1931_vm1, %v2224_v40, 0.0  ;;  %v2161_v63 = vmul.f32 0.5, %v1966_v42  ;;  %v4195_v45 = vpop.f32.mrb[6].mxu0  ;;  %v1973_v38 = vadd.f32 %v1972_v59, %v1971_v4  ;;  %v4197_v39 = vpop.f32.mrb[6].mxu1 }
 0x138   : > { %v2255_v23 = vadd.f32 %v2254_v52, %v2253_v43  ;;  %v2275_v24 = vrot.slane %v2274_v61, 4  ;;  %v2163_v26 = vmul.f32 0.5, %v1980_v60  ;;  %v4199_v54 = vpop.f32.mrb[7].mxu0  ;;  %v2269_v51 = vadd.f32 %v2268_v7, %v2267_v1  ;;  %v4204_v58 = vpop.f32.mrb[7].mxu1 }
 0x139   : > { %v2262_v49 = vadd.f32 %v2261_v28, %v2260_v48  ;;  %v4202_v46 = vsub.f32 %v4136_v6, %v2161_v63  ;;  %v1985_v17 = vadd.f32 %v1984_v22, %v1983_v11  ;;  %v2162_v43 = vmul.f32 0.5, %v1973_v38 }
 0x13a   : > { %v2256_v40 = vrot.slane %v2255_v23, 2  ;;  %v2276_v42 = vadd.f32 %v2275_v24, %v2274_v61  ;;  %v4207_v37 = vsub.f32 %v4143_v12, %v2163_v26  ;;  %v2270_v52 = vrot.slane %v2269_v51, 2 }
 0x13b   : > { %v2263_v4 = vrot.slane %v2262_v49, 2  ;;  %v2225_v59 = vmul.f32 %v4202_v46, %v4202_v46  ;;  %v1986_v60 = vrot.slane %v1985_v17, 1  ;;  %v4214_v11 = vsub.f32 %v4148_v5, %v2162_v43 }
 0x13c   : > { %v2257_v1 = vadd.f32 %v2256_v40, %v2255_v23  ;;  %v2277_v48 = vrot.slane %v2276_v42, 2  ;;  %v2227_v6 = vmul.f32 %v4207_v37, %v4207_v37  ;;  %v2271_v22 = vadd.f32 %v2270_v52, %v2269_v51 }
 0x13d   : > { %v2264_v7 = vadd.f32 %v2263_v4, %v2262_v49  ;;  %v2281_v12 = vsel %vm1931_vm1, %v2225_v59, 0.0  ;;  %v1987_v28 = vadd.f32 %v1986_v60, %v1985_v17  ;;  %v2226_v40 = vmul.f32 %v4214_v11, %v4214_v11 }
 0x13e   : > { %v2258_v38 = vrot.slane %v2257_v1, 1  ;;  %v2278_v61 = vadd.f32 %v2277_v48, %v2276_v42  ;;  %v2282_v63 = vrot.slane %v2281_v12, 4  ;;  %v2295_v24 = vsel %vm1931_vm1, %v2227_v6, 0.0 }
 0x13f   : > { %v2272_v26 = vrot.slane %v2271_v22, 1  ;;  %v2265_v36 = vrot.slane %v2264_v7, 1  ;;  %v2296_v23 = vrot.slane %v2295_v24, 4  ;;  %v4220_v34 = vpop.f32.mrb[8].mxu0  ;;  %v2164_v49 = vmul.f32 0.5, %v1987_v28  ;;  %v4222_v52 = vpop.f32.mrb[8].mxu1 }
 0x140   : > { %v2259_v5 = vadd.f32 %v2258_v38, %v2257_v1  ;;  %v2279_v43 = vrot.slane %v2278_v61, 1  ;;  %v2283_v51 = vadd.f32 %v2282_v63, %v2281_v12  ;;  %v4224_v17 = vpop.f32.mrb[9].mxu0  ;;  %v2288_v60 = vsel %vm1931_vm1, %v2226_v40, 0.0  ;;  %v4227_v48 = vpop.f32.mrb[9].mxu1 }
 0x141   : > { %v2273_v42 = vadd.f32 %v2272_v26, %v2271_v22  ;;  %v2266_v4 = vadd.f32 %v2265_v36, %v2264_v7  ;;  %v2297_v59 = vadd.f32 %v2296_v23, %v2295_v24  ;;  %v2289_v44 = vrot.slane %v2288_v60, 4 }
 0x142   : > { %v2477_v6 = vmul.f32 0.5, %v2259_v5  ;;  %v2280_v35 = vadd.f32 %v2279_v43, %v2278_v61  ;;  %v2284_v33 = vrot.slane %v2283_v51, 2  ;;  %v4230_v12 = vsub.f32 %v4155_v62, %v2164_v49 }
 0x143   : > { %v2479_v32 = vmul.f32 0.5, %v2273_v42  ;;  %v2478_v1 = vmul.f32 0.5, %v2266_v4  ;;  %v2298_v38 = vrot.slane %v2297_v59, 2  ;;  %v2290_v22 = vadd.f32 %v2289_v44, %v2288_v60 }
 0x144   : > { %v2509_v28 = vadd.f32 1e-05, %v2477_v6  ;;  %v2480_v63 = vmul.f32 0.5, %v2280_v35  ;;  %v2285_v31 = vadd.f32 %v2284_v33, %v2283_v51  ;;  %v2228_v26 = vmul.f32 %v4230_v12, %v4230_v12 }
 0x145   : > { %v2511_v36 = vadd.f32 1e-05, %v2479_v32  ;;  %v2510_v7 = vadd.f32 1e-05, %v2478_v1  ;;  %v2299_v24 = vadd.f32 %v2298_v38, %v2297_v59  ;;  %v2291_v40 = vrot.slane %v2290_v22, 2 }
 0x146   : > { %3561 = vrsqrt.f32 %v2509_v28  ;;  %v2512_v61 = vadd.f32 1e-05, %v2480_v63  ;;  %v2286_v23 = vrot.slane %v2285_v31, 1  ;;  %v2302_v43 = vsel %vm1931_vm1, %v2228_v26, 0.0 }
 0x147   : > { %3563 = vrsqrt.f32 %v2511_v36  ;;  %v2300_v5 = vrot.slane %v2299_v24, 1  ;;  %v4239_v33 = vadd.f32 %v4163_v47, %v666_v29  ;;  %v4241_v32 = vpop.f32.mrb[10].mxu0  ;;  %v2292_v44 = vadd.f32 %v2291_v40, %v2290_v22  ;;  %v4243_v51 = vpop.f32.mrb[10].mxu1 }
 0x148   : > { %3565 = vrsqrt.f32 %v2510_v7  ;;  %v2287_v35 = vadd.f32 %v2286_v23, %v2285_v31  ;;  %v2303_v62 = vrot.slane %v2302_v43, 4  ;;  %v4245_v49 = vpop.f32.mrb[11].mxu0  ;;  %v4253_v29 = vadd.f32 %v4165_v21, %v674_v30  ;;  %v4255_v47 = vpop.f32.mrb[11].mxu1 }
 0x149   : > { %3567 = vrsqrt.f32 %v2512_v61  ;;  %v2301_v42 = vadd.f32 %v2300_v5, %v2299_v24  ;;  %v1988_v4 = vsel %vm1931_vm1, %v4239_v33, 0.0  ;;  %v2293_v59 = vrot.slane %v2292_v44, 1 }
 0x14a   : > { %v2481_v31 = vmul.f32 0.5, %v2287_v35  ;;  %v2304_v60 = vadd.f32 %v2303_v62, %v2302_v43  ;;  %v1989_v6 = vrot.slane %v1988_v4, 4  ;;  %v2002_v38 = vsel %vm1931_vm1, %v4253_v29, 0.0 }
 0x14b   : > { %v2483_v1 = vmul.f32 0.5, %v2301_v42  ;;  %v4869_v28 = vrot.slane %v4018_v18, %v3989_v8  ;;  %v4870_v30 = vrot.slane %v4018_v18, %v3991_v9  ;;  %v2294_v36 = vadd.f32 %v2293_v59, %v2292_v44 }
 0x14c   : > { %v2513_v22 = vadd.f32 1e-05, %v2481_v31  ;;  %v2305_v7 = vrot.slane %v2304_v60, 2  ;;  %v1990_v24 = vadd.f32 %v1989_v6, %v1988_v4  ;;  %v2003_v61 = vrot.slane %v2002_v38, 4 }
 0x14d   : > { %v4263_v63 = vadd.f32 %v4167_v3, %v4869_v28  ;;  %v4269_v21 = vadd.f32 %v4172_v25, %v4870_v30  ;;  %v2515_v26 = vadd.f32 1e-05, %v2483_v1  ;;  %v2482_v3 = vmul.f32 0.5, %v2294_v36 }
 0x14e   : > { %3569 = vrsqrt.f32 %v2513_v22  ;;  %v2306_v5 = vadd.f32 %v2305_v7, %v2304_v60  ;;  %v1991_v43 = vrot.slane %v1990_v24, 2  ;;  %v2004_v35 = vadd.f32 %v2003_v61, %v2002_v38 }
 0x14f   : > { %v1995_v23 = vsel %vm1931_vm1, %v4263_v63, 0.0  ;;  %v2009_v40 = vsel %vm1931_vm1, %v4269_v21, 0.0  ;;  %3571 = vrsqrt.f32 %v2515_v26  ;;  %v4275_v42 = vpop.f32.mrb[12].mxu0  ;;  %v2514_v4 = vadd.f32 1e-05, %v2482_v3  ;;  %v4283_v28 = vpop.f32.mrb[12].mxu1 }
 0x150   : > { %v1996_v25 = vrot.slane %v1995_v23, 4  ;;  %v2010_v62 = vrot.slane %v2009_v40, 4  ;;  %4871 = vst [vmem:[#allocation3_spill] sm:$0xff] %v4275_v42  ;;  %v3562_v44 = vpop.eup %3561  ;;  %v2307_v31 = vrot.slane %v2306_v5, 1  ;;  %v1992_v59 = vadd.f32 %v1991_v43, %v1990_v24  ;;  %4873 = vst [vmem:[#allocation4_spill] sm:$0xff] %v4283_v28  ;;  %v4285_v60 = vpop.f32.mrb[13].mxu0 }
 0x151   : > { %v4872_v6 = vrot.slane %v4018_v18, %v3993_v10  ;;  %4874 = vst [vmem:[#allocation5_spill] sm:$0xff] %v4285_v60  ;;  %v3564_v30 = vpop.eup %3563  ;;  %v2573_v38 = vmul.f32 %v3562_v44, %v4170_v53  ;;  %v2005_v22 = vrot.slane %v2004_v35, 2  ;;  %v4288_v26 = vpop.f32.mrb[13].mxu1  ;;  %3573 = vrsqrt.f32 %v2514_v4 }
 0x152   : > { %v1997_v36 = vadd.f32 %v1996_v25, %v1995_v23  ;;  %v2011_v7 = vadd.f32 %v2010_v62, %v2009_v40  ;;  %v3566_v61 = vpop.eup %3565  ;;  %v2575_v24 = vmul.f32 %v3564_v30, %v4175_v57  ;;  %v2308_v3 = vadd.f32 %v2307_v31, %v2306_v5 }
 0x153   : > { %v4281_v1 = vadd.f32 %v4195_v45, %v4872_v6  ;;  %v1993_v43 = vrot.slane %v1992_v59, 1  ;;  %v3568_v45 = vpop.eup %3567  ;;  %v4875_v6 = vrot.slane %v4021_v19, %v3982_v0  ;;  %v2574_v60 = vmul.f32 %v3566_v61, %v4178_v56 }
 0x154   : > { %v2006_v42 = vadd.f32 %v2005_v22, %v2004_v35  ;;  %v1998_v53 = vrot.slane %v1997_v36, 2  ;;  %v4876_v23 = vrot.slane %v4021_v19, %v3984_v27  ;;  %v2576_v25 = vmul.f32 %v3568_v45, %v4183_v16 }
 0x155   : > { %v2773_v28 = vmul.f32 %v4875_v6, %v2573_v38  ;;  %v2484_v62 = vmul.f32 0.5, %v2308_v3  ;;  %v1994_v57 = vadd.f32 %v1993_v43, %v1992_v59  ;;  %v4877_v5 = vrot.slane %v4024_v20, %v3982_v0 }
 0x156   : > { %v2775_v40 = vmul.f32 %v4876_v23, %v2575_v24  ;;  %v4878_v4 = vrot.slane %v4021_v19, %v3989_v8  ;;  %v2007_v30 = vrot.slane %v2006_v42, 1  ;;  %v1999_v56 = vadd.f32 %v1998_v53, %v1997_v36 }
 0x157   : > { %v2973_v44 = vadd.f32 %v4877_v5, %v2773_v28  ;;  %v4879_v35 = vrot.slane %v4024_v20, %v3984_v27  ;;  %v4880_v22 = vrot.slane %v4021_v19, %v3991_v9  ;;  %v2516_v61 = vadd.f32 1e-05, %v2484_v62 }
 0x158   : > { %v2774_v31 = vmul.f32 %v4878_v4, %v2574_v60  ;;  %v2165_v59 = vmul.f32 0.5, %v1994_v57  ;;  %v4881_v28 = vrot.slane %v4024_v20, %v3989_v8  ;;  %v2008_v43 = vadd.f32 %v2007_v30, %v2006_v42  ;;  %v4314_v60 = vpop.f32.mrb[14].mxu0  ;;  %v3570_v36 = vpop.eup %3569 }
 0x159   : > { %v2975_v38 = vadd.f32 %v4879_v35, %v2775_v40  ;;  %v2776_v16 = vmul.f32 %v4880_v22, %v2576_v25  ;;  %v3005_v24 = vmax.f32 %v2973_v44, 0.0  ;;  %v2000_v45 = vrot.slane %v1999_v56, 1  ;;  %v4322_v25 = vpop.f32.mrb[14].mxu1  ;;  %v3572_v62 = vpop.eup %3571 }
 0x15a   : > { %v2974_v3 = vadd.f32 %v4881_v28, %v2774_v31  ;;  %v4882_v53 = vrot.slane %v4024_v20, %v3991_v9  ;;  %3575 = vrsqrt.f32 %v2516_v61  ;;  %v4320_v40 = vsub.f32 %v4239_v33, %v2165_v59 }
 0x15b   : > { %v3007_v6 = vmax.f32 %v2975_v38, 0.0  ;;  %v2577_v42 = vmul.f32 %v3570_v36, %v4202_v46  ;;  %v2167_v5 = vmul.f32 0.5, %v2008_v43  ;;  %v2001_v44 = vadd.f32 %v2000_v45, %v1999_v56  ;;  %v3574_v59 = vpop.eup %3573 }
 0x15c   : > { %v2976_v23 = vadd.f32 %v4882_v53, %v2776_v16  ;;  %v3006_v57 = vmax.f32 %v2974_v3, 0.0  ;;  %v2579_v31 = vmul.f32 %v3572_v62, %v4207_v37  ;;  %v2229_v30 = vmul.f32 %v4320_v40, %v4320_v40 }
 0x15d   : > { %v2012_v35 = vrot.slane %v2011_v7, 2  ;;  %v4883_v33 = vrot.slane %v4021_v19, %v3993_v10  ;;  %v4332_v16 = vsub.f32 %v4253_v29, %v2167_v5  ;;  %v2166_v61 = vmul.f32 0.5, %v2001_v44 }
 0x15e   : > { %v3008_v4 = vmax.f32 %v2976_v23, 0.0  ;;  %v3069_v38 = vcombine.low %v3005_v24, %v3006_v57  ;;  %v4884_v56 = vrot.slane %v4021_v19, %v4007_v13  ;;  %v2309_v28 = vsel %vm1931_vm1, %v2229_v30, 0.0  ;;  %v4353_v57 = vpop.f32.mrb[15].mxu0 }
 0x15f   : > { %v2777_v22 = vmul.f32 %v4883_v33, %v2577_v42  ;;  %v2013_v3 = vadd.f32 %v2012_v35, %v2011_v7  ;;  %v4885_v43 = vrot.slane %v4024_v20, %v3993_v10  ;;  %v2578_v29 = vmul.f32 %v3574_v59, %v4214_v11 }
 0x160   : > { %v3070_v46 = vcombine.low %v3007_v6, %v3008_v4  ;;  %v2779_v37 = vmul.f32 %v4884_v56, %v2579_v31  ;;  %v3077_v24 = vrot.slane %v3069_v38, %v4062_v41  ;;  %v2310_v36 = vrot.slane %v2309_v28, 4 }
 0x161   : > { %v2977_v45 = vadd.f32 %v4885_v43, %v2777_v22  ;;  %v4886_v6 = vrot.slane %v4024_v20, %v4007_v13  ;;  %v2231_v62 = vmul.f32 %v4332_v16, %v4332_v16  ;;  %v4351_v7 = vsub.f32 %v4263_v63, %v2166_v61 }
 0x162   : > { %v3084_v53 = vrot.slane %v3070_v46, %v4062_v41  ;;  %v4887_v42 = vrot.slane %v4021_v19, %v4009_v14  ;;  %v2311_v44 = vadd.f32 %v2310_v36, %v2309_v28  ;;  %v2014_v4 = vrot.slane %v2013_v3, 1 }
 0x163   : > { %v2979_v23 = vadd.f32 %v4886_v6, %v2779_v37  ;;  %v3009_v11 = vmax.f32 %v2977_v45, 0.0  ;;  %v2323_v63 = vsel %vm1931_vm1, %v2231_v62, 0.0  ;;  %v2230_v35 = vmul.f32 %v4351_v7, %v4351_v7  ;;  %v4386_v6 = vpop.f32.mrb[15].mxu1 }
 0x164   : > { %v2778_v5 = vmul.f32 %v4887_v42, %v2578_v29  ;;  %v3085_v31 = vcombine.low %v3077_v24, %v3084_v53  ;;  %v4888_v38 = vrot.slane %v4024_v20, %v4009_v14  ;;  %v2312_v22 = vrot.slane %v2311_v44, 2  ;;  %v3576_v46 = vpop.eup %3575 }
 0x165   : > { %v3011_v30 = vmax.f32 %v2979_v23, 0.0  ;;  %v2324_v61 = vrot.slane %v2323_v63, 4  ;;  %v2015_v59 = vadd.f32 %v2014_v4, %v2013_v3  ;;  %v2316_v56 = vsel %vm1931_vm1, %v2230_v35, 0.0 }
 0x166   : > { %v2978_v33 = vadd.f32 %v4888_v38, %v2778_v5  ;;  %3213 = vst [vmem:[%s4358_s29] sm:$0xff] %v3085_v31  ;;  %v2016_v37 = vsel %vm1931_vm1, %v4281_v1, 0.0  ;;  %v4889_v28 = vrot.slane %v4018_v18, %v4007_v13  ;;  %v4890_v43 = vrot.slane %v4018_v18, %v4009_v14 }
 0x167   : > { %v2580_v29 = vmul.f32 %v3576_v46, %v4230_v12  ;;  %v2313_v36 = vadd.f32 %v2312_v22, %v2311_v44  ;;  %v2325_v53 = vadd.f32 %v2324_v61, %v2323_v63  ;;  %v2317_v23 = vrot.slane %v2316_v56, 4 }
 0x168   : > { %v4377_v24 = vadd.f32 %v4197_v39, %v4889_v28  ;;  %v4383_v45 = vadd.f32 %v4199_v54, %v4890_v43  ;;  %v3010_v3 = vmax.f32 %v2978_v33, 0.0  ;;  %v2168_v62 = vmul.f32 0.5, %v2015_v59 }
 0x169   : > { %v2017_v42 = vrot.slane %v2016_v37, 4  ;;  %v4891_v4 = vrot.slane %v4021_v19, %v4011_v15  ;;  %v2314_v54 = vrot.slane %v2313_v36, 1  ;;  %v2326_v35 = vrot.slane %v2325_v53, 2 }
 0x16a   : > { %v2030_v39 = vsel %vm1931_vm1, %v4377_v24, 0.0  ;;  %v3086_v5 = vcombine.low %v3009_v11, %v3010_v3  ;;  %v2318_v38 = vadd.f32 %v2317_v23, %v2316_v56  ;;  %v4394_v12 = vsub.f32 %v4269_v21, %v2168_v62 }
 0x16b   : > { %v2780_v31 = vmul.f32 %v4891_v4, %v2580_v29  ;;  %v2018_v44 = vadd.f32 %v2017_v42, %v2016_v37  ;;  %v2031_v63 = vrot.slane %v2030_v39, 4  ;;  %v4892_v22 = vrot.slane %v4024_v20, %v4011_v15 }
 0x16c   : > { %v3094_v33 = vrot.slane %v3086_v5, %v4062_v41  ;;  %v2315_v59 = vadd.f32 %v2314_v54, %v2313_v36  ;;  %v2327_v11 = vadd.f32 %v2326_v35, %v2325_v53  ;;  %v2319_v46 = vrot.slane %v2318_v38, 2 }
 0x16d   : > { %v2980_v61 = vadd.f32 %v4892_v22, %v2780_v31  ;;  %v2232_v19 = vmul.f32 %v4394_v12, %v4394_v12  ;;  %v2019_v28 = vrot.slane %v2018_v44, 2  ;;  %v2032_v43 = vadd.f32 %v2031_v63, %v2030_v39 }
 0x16e   : > { %v2485_v3 = vmul.f32 0.5, %v2315_v59  ;;  %v2328_v21 = vrot.slane %v2327_v11, 1  ;;  %v2023_v37 = vsel %vm1931_vm1, %v4383_v45, 0.0  ;;  %v2320_v29 = vadd.f32 %v2319_v46, %v2318_v38 }
 0x16f   : > { %v3012_v56 = vmax.f32 %v2980_v61, 0.0  ;;  %v2330_v23 = vsel %vm1931_vm1, %v2232_v19, 0.0  ;;  %v2020_v62 = vadd.f32 %v2019_v28, %v2018_v44  ;;  %v2033_v20 = vrot.slane %v2032_v43, 2 }
 0x170   : > { %v2517_v36 = vadd.f32 1e-05, %v2485_v3  ;;  %v2329_v53 = vadd.f32 %v2328_v21, %v2327_v11  ;;  %v2331_v5 = vrot.slane %v2330_v23, 4  ;;  %v2321_v4 = vrot.slane %v2320_v29, 1 }
 0x171   : > { %v3087_v42 = vcombine.low %v3011_v30, %v3012_v56  ;;  %v2021_v31 = vrot.slane %v2020_v62, 1  ;;  %v2034_v54 = vadd.f32 %v2033_v20, %v2032_v43  ;;  %v2024_v35 = vrot.slane %v2023_v37, 4 }
 0x172   : > { %3577 = vrsqrt.f32 %v2517_v36  ;;  %v2487_v63 = vmul.f32 0.5, %v2329_v53  ;;  %v2332_v22 = vadd.f32 %v2331_v5, %v2330_v23  ;;  %v2322_v61 = vadd.f32 %v2321_v4, %v2320_v29 }
 0x173   : > { %v3101_v39 = vrot.slane %v3087_v42, %v4062_v41  ;;  %v2022_v38 = vadd.f32 %v2021_v31, %v2020_v62  ;;  %v2035_v59 = vrot.slane %v2034_v54, 1  ;;  %v2025_v46 = vadd.f32 %v2024_v35, %v2023_v37 }
 0x174   : > { %v2519_v19 = vadd.f32 1e-05, %v2487_v63  ;;  %v2333_v30 = vrot.slane %v2332_v22, 2  ;;  %v4893_v11 = vrot.slane %v4018_v18, %v4011_v15  ;;  %v2486_v43 = vmul.f32 0.5, %v2322_v61 }
 0x175   : > { %v3102_v44 = vcombine.low %v3094_v33, %v3101_v39  ;;  %v2169_v56 = vmul.f32 0.5, %v2022_v38  ;;  %v2036_v3 = vadd.f32 %v2035_v59, %v2034_v54  ;;  %v2026_v21 = vrot.slane %v2025_v46, 2 }
 0x176   : > { %v4410_v28 = vadd.f32 %v4204_v58, %v4893_v11  ;;  %3579 = vrsqrt.f32 %v2519_v19  ;;  %v2334_v23 = vadd.f32 %v2333_v30, %v2332_v22  ;;  %v4894_v33 = vrot.slane %v4079_v50, %v3982_v0 }
 0x177   : > { %3214 = vst [vmem:[%s4358_s29 + $0x8] sm:$0xff] %v3102_v44  ;;  %v2518_v18 = vadd.f32 1e-05, %v2486_v43  ;;  %v4422_v58 = vsub.f32 %v4281_v1, %v2169_v56  ;;  %v2171_v62 = vmul.f32 0.5, %v2036_v3  ;;  %v2027_v20 = vadd.f32 %v2026_v21, %v2025_v46 }
 0x178   : > { %v2037_v29 = vsel %vm1931_vm1, %v4410_v28, 0.0  ;;  %v4419_v37 = vadd.f32 %v4220_v34, %v4894_v33  ;;  %v2335_v42 = vrot.slane %v2334_v23, 1  ;;  %v710_v5 = vrot.slane %v4079_v50, %v3991_v9 }
 0x179   : > { %v2038_v36 = vrot.slane %v2037_v29, 4  ;;  %3581 = vrsqrt.f32 %v2518_v18  ;;  %v2233_v4 = vmul.f32 %v4422_v58, %v4422_v58  ;;  %v4431_v34 = vsub.f32 %v4377_v24, %v2171_v62 }
 0x17a   : > { %v2044_v53 = vsel %vm1931_vm1, %v4419_v37, 0.0  ;;  %v2028_v31 = vrot.slane %v2027_v20, 1  ;;  %v2336_v1 = vadd.f32 %v2335_v42, %v2334_v23  ;;  %v2664_v54 = vrot.slane %v4086_v55, %v3993_v10 }
 0x17b   : > { %v2039_v35 = vadd.f32 %v2038_v36, %v2037_v29  ;;  %v2045_v39 = vrot.slane %v2044_v53, 4  ;;  %v2337_v63 = vsel %vm1931_vm1, %v2233_v4, 0.0  ;;  %v2235_v22 = vmul.f32 %v4431_v34, %v4431_v34 }
 0x17c   : > { %v2029_v61 = vadd.f32 %v2028_v31, %v2027_v20  ;;  %v4895_v38 = vrot.slane %v4079_v50, %v3984_v27  ;;  %v3578_v24 = vpop.eup %3577  ;;  %v2488_v46 = vmul.f32 0.5, %v2336_v1  ;;  %v2338_v44 = vrot.slane %v2337_v63, 4 }
 0x17d   : > { %v2040_v19 = vrot.slane %v2039_v35, 2  ;;  %v2046_v30 = vadd.f32 %v2045_v39, %v2044_v53  ;;  %v2581_v11 = vmul.f32 %v3578_v24, %v4320_v40  ;;  %v2351_v43 = vsel %vm1931_vm1, %v2235_v22, 0.0 }
 0x17e   : > { %v4442_v59 = vadd.f32 %v4222_v52, %v4895_v38  ;;  %v2170_v56 = vmul.f32 0.5, %v2029_v61  ;;  %v2520_v21 = vadd.f32 1e-05, %v2488_v46  ;;  %v2339_v23 = vadd.f32 %v2338_v44, %v2337_v63 }
 0x17f   : > { %v2352_v29 = vrot.slane %v2351_v43, 4  ;;  %v2041_v33 = vadd.f32 %v2040_v19, %v2039_v35  ;;  %v4896_v52 = vrot.slane %v4086_v55, %v3982_v0  ;;  %v2047_v20 = vrot.slane %v2046_v30, 2 }
 0x180   : > { %v2058_v3 = vsel %vm1931_vm1, %v4442_v59, 0.0  ;;  %v4452_v62 = vsub.f32 %v4383_v45, %v2170_v56  ;;  %v3580_v40 = vpop.eup %3579  ;;  %3583 = vrsqrt.f32 %v2520_v21  ;;  %v2340_v36 = vrot.slane %v2339_v23, 2 }
 0x181   : > { %v2781_v18 = vmul.f32 %v4896_v52, %v2581_v11  ;;  %v2059_v42 = vrot.slane %v2058_v3, 4  ;;  %v2353_v53 = vadd.f32 %v2352_v29, %v2351_v43  ;;  %v2042_v4 = vrot.slane %v2041_v33, 1 }
 0x182   : > { %v2583_v31 = vmul.f32 %v3580_v40, %v4332_v16  ;;  %v2234_v1 = vmul.f32 %v4452_v62, %v4452_v62  ;;  %v2048_v35 = vadd.f32 %v2047_v20, %v2046_v30  ;;  %v714_v39 = vrot.slane %v4079_v50, %v3993_v10 }
 0x183   : > { %v2341_v63 = vadd.f32 %v2340_v36, %v2339_v23  ;;  %v2354_v22 = vrot.slane %v2353_v53, 2  ;;  %v2043_v45 = vadd.f32 %v2042_v4, %v2041_v33  ;;  %v2060_v61 = vadd.f32 %v2059_v42, %v2058_v3  ;;  %v3582_v38 = vpop.eup %3581 }
 0x184   : > { %v4897_v24 = vrot.slane %v4105_v2, %v3982_v0  ;;  %v2344_v44 = vsel %vm1931_vm1, %v2234_v1, 0.0  ;;  %v2049_v19 = vrot.slane %v2048_v35, 1  ;;  %v722_v16 = vrot.slane %v4079_v50, %v4007_v13 }
 0x185   : > { %v2582_v30 = vmul.f32 %v3582_v38, %v4351_v7  ;;  %v2342_v11 = vrot.slane %v2341_v63, 1  ;;  %v2355_v43 = vadd.f32 %v2354_v22, %v2353_v53  ;;  %v2345_v56 = vrot.slane %v2344_v44, 4 }
 0x186   : > { %v2981_v46 = vadd.f32 %v4897_v24, %v2781_v18  ;;  %v4898_v21 = vrot.slane %v4086_v55, %v3984_v27  ;;  %v2172_v23 = vmul.f32 0.5, %v2043_v45  ;;  %v2050_v29 = vadd.f32 %v2049_v19, %v2048_v35 }
 0x187   : > { %v2061_v33 = vrot.slane %v2060_v61, 2  ;;  %v4899_v52 = vrot.slane %v4086_v55, %v3989_v8  ;;  %v2343_v20 = vadd.f32 %v2342_v11, %v2341_v63  ;;  %v2356_v42 = vrot.slane %v2355_v43, 1 }
 0x188   : > { %v2783_v3 = vmul.f32 %v4898_v21, %v2583_v31  ;;  %v2346_v40 = vadd.f32 %v2345_v56, %v2344_v44  ;;  %v3013_v36 = vmax.f32 %v2981_v46, 0.0  ;;  %v4473_v7 = vsub.f32 %v4410_v28, %v2172_v23 }
 0x189   : > { %v2782_v18 = vmul.f32 %v4899_v52, %v2582_v30  ;;  %v2173_v53 = vmul.f32 0.5, %v2050_v29  ;;  %v2062_v4 = vadd.f32 %v2061_v33, %v2060_v61  ;;  %v4900_v1 = vrot.slane %v4105_v2, %v3989_v8 }
 0x18a   : > { %v2489_v22 = vmul.f32 0.5, %v2343_v20  ;;  %v2357_v35 = vadd.f32 %v2356_v42, %v2355_v43  ;;  %v2347_v45 = vrot.slane %v2346_v40, 2  ;;  %v4901_v38 = vrot.slane %v4105_v2, %v3984_v27  ;;  %v3584_v44 = vpop.eup %3583 }
 0x18b   : > { %v2982_v31 = vadd.f32 %v4900_v1, %v2782_v18  ;;  %v2236_v63 = vmul.f32 %v4473_v7, %v4473_v7  ;;  %v4484_v46 = vsub.f32 %v4419_v37, %v2173_v53  ;;  %v2063_v28 = vrot.slane %v2062_v4, 1 }
 0x18c   : > { %v2983_v24 = vadd.f32 %v4901_v38, %v2783_v3  ;;  %v2521_v19 = vadd.f32 1e-05, %v2489_v22  ;;  %v2491_v30 = vmul.f32 0.5, %v2357_v35  ;;  %v2348_v11 = vadd.f32 %v2347_v45, %v2346_v40 }
 0x18d   : > { %v3014_v61 = vmax.f32 %v2982_v31, 0.0  ;;  %v2584_v56 = vmul.f32 %v3584_v44, %v4394_v12  ;;  %v2358_v43 = vsel %vm1931_vm1, %v2236_v63, 0.0  ;;  %v2237_v21 = vmul.f32 %v4484_v46, %v4484_v46 }
 0x18e   : > { %v2064_v3 = vadd.f32 %v2063_v28, %v2062_v4  ;;  %3585 = vrsqrt.f32 %v2521_v19  ;;  %v2523_v29 = vadd.f32 1e-05, %v2491_v30  ;;  %v2349_v33 = vrot.slane %v2348_v11, 1 }
 0x18f   : > { %v3103_v23 = vcombine.low %v3013_v36, %v3014_v61  ;;  %v4902_v37 = vrot.slane %v4086_v55, %v3991_v9  ;;  %v2359_v18 = vrot.slane %v2358_v43, 4  ;;  %v2365_v20 = vsel %vm1931_vm1, %v2237_v21, 0.0 }
 0x190   : > { %v2175_v42 = vmul.f32 0.5, %v2064_v3  ;;  %v3015_v40 = vmax.f32 %v2983_v24, 0.0  ;;  %v2864_v12 = vrot.slane %v4105_v2, %v3993_v10  ;;  %v2350_v53 = vadd.f32 %v2349_v33, %v2348_v11 }
 0x191   : > { %v2784_v52 = vmul.f32 %v4902_v37, %v2584_v56  ;;  %v2366_v1 = vrot.slane %v2365_v20, 4  ;;  %v4903_v36 = vrot.slane %v4105_v2, %v3991_v9  ;;  %3587 = vrsqrt.f32 %v2523_v29 }
 0x192   : > { %v2360_v31 = vadd.f32 %v2359_v18, %v2358_v43  ;;  %v4500_v22 = vsub.f32 %v4442_v59, %v2175_v42  ;;  %v2672_v35 = vrot.slane %v4086_v55, %v4007_v13  ;;  %v2490_v45 = vmul.f32 0.5, %v2350_v53 }
 0x193   : > { %v2984_v4 = vadd.f32 %v4903_v36, %v2784_v52  ;;  %v2367_v38 = vadd.f32 %v2366_v1, %v2365_v20  ;;  %v4904_v24 = vrot.slane %v4079_v50, %v3989_v8  ;;  %v3111_v28 = vrot.slane %v3103_v23, %v4062_v41 }
 0x194   : > { %v2361_v61 = vrot.slane %v2360_v31, 2  ;;  %v2239_v19 = vmul.f32 %v4500_v22, %v4500_v22  ;;  %v2522_v59 = vadd.f32 1e-05, %v2490_v45  ;;  %v4519_v56 = vadd.f32 %v4227_v48, %v710_v5 }
 0x195   : > { %v4508_v63 = vadd.f32 %v4224_v17, %v4904_v24  ;;  %v3016_v44 = vmax.f32 %v2984_v4, 0.0  ;;  %v2368_v30 = vrot.slane %v2367_v38, 2  ;;  %v2872_v48 = vrot.slane %v4105_v2, %v4007_v13 }
 0x196   : > { %v2362_v43 = vadd.f32 %v2361_v61, %v2360_v31  ;;  %v2379_v21 = vsel %vm1931_vm1, %v2239_v19, 0.0  ;;  %3589 = vrsqrt.f32 %v2522_v59  ;;  %v2065_v33 = vsel %vm1931_vm1, %v4519_v56, 0.0 }
 0x197   : > { %v2051_v11 = vsel %vm1931_vm1, %v4508_v63, 0.0  ;;  %v3104_v17 = vcombine.low %v3015_v40, %v3016_v44  ;;  %v2369_v23 = vadd.f32 %v2368_v30, %v2367_v38  ;;  %v2380_v29 = vrot.slane %v2379_v21, 4 }
 0x198   : > { %v2052_v3 = vrot.slane %v2051_v11, 4  ;;  %v2363_v52 = vrot.slane %v2362_v43, 1  ;;  %v2066_v20 = vrot.slane %v2065_v33, 4  ;;  %v3586_v42 = vpop.eup %3585  ;;  %v2668_v5 = vrot.slane %v4086_v55, %v4009_v14 }
 0x199   : > { %v3118_v37 = vrot.slane %v3104_v17, %v4062_v41  ;;  %v2370_v40 = vrot.slane %v2369_v23, 1  ;;  %v2381_v53 = vadd.f32 %v2380_v29, %v2379_v21  ;;  %v2585_v36 = vmul.f32 %v3586_v42, %v4422_v58  ;;  %v3625_v21 = vld [vmem:[%s3980_s16 + $0x10] sm:$0xff] }
 0x19a   : > { %v2053_v18 = vadd.f32 %v2052_v3, %v2051_v11  ;;  %v2364_v4 = vadd.f32 %v2363_v52, %v2362_v43  ;;  %v2067_v24 = vadd.f32 %v2066_v20, %v2065_v33  ;;  %v4534_v44 = vadd.f32 %v4241_v32, %v714_v39  ;;  %v4549_v29 = vld [vmem:[%s3999_s20 + $0x10] sm:$0xff]  ;;  %v3626_v20 = vld [vmem:[%s3999_s20 + $0x8] sm:$0xff] }
 0x19b   : > { %v3119_v1 = vcombine.low %v3111_v28, %v3118_v37  ;;  %v2371_v45 = vadd.f32 %v2370_v40, %v2369_v23  ;;  %v2382_v38 = vrot.slane %v2381_v53, 2  ;;  %v3588_v61 = vpop.eup %3587  ;;  %v2785_v28 = vmul.f32 %v2664_v54, %v2585_v36 }
 0x19c   : > { %v2054_v31 = vrot.slane %v2053_v18, 2  ;;  %v2868_v58 = vrot.slane %v4105_v2, %v4009_v14  ;;  %v2492_v19 = vmul.f32 0.5, %v2364_v4  ;;  %v2068_v17 = vrot.slane %v2067_v24, 2 }
 0x19d   : > { %3215 = vst [vmem:[%s4358_s29 + $0x10] sm:$0xff] %v3119_v1  ;;  %v2493_v30 = vmul.f32 0.5, %v2371_v45  ;;  %v2383_v11 = vadd.f32 %v2382_v38, %v2381_v53  ;;  %v2072_v32 = vsel %vm1931_vm1, %v4534_v44, 0.0  ;;  %v718_v3 = vrot.slane %v3625_v21, %v4009_v14  ;;  %v3627_v45 = vld [vmem:[%s4005_s24 + $0x8] sm:$0xff] }
 0x19e   : > { %v2055_v59 = vadd.f32 %v2054_v31, %v2053_v18  ;;  %v2524_v39 = vadd.f32 1e-05, %v2492_v19  ;;  %v726_v23 = vrot.slane %v3625_v21, %v4011_v15  ;;  %v2587_v54 = vmul.f32 %v3588_v61, %v4431_v34 }
 0x19f   : > { %v2384_v33 = vrot.slane %v2383_v11, 1  ;;  %v2069_v37 = vadd.f32 %v2068_v17, %v2067_v24  ;;  %v2073_v52 = vrot.slane %v2072_v32, 4  ;;  %v2985_v18 = vadd.f32 %v2864_v12, %v2785_v28 }
 0x1a0   : > { %v2056_v43 = vrot.slane %v2055_v59, 1  ;;  %3591 = vrsqrt.f32 %v2524_v39  ;;  %v2676_v42 = vrot.slane %v3626_v20, %v4011_v15  ;;  %v3590_v53 = vpop.eup %3589  ;;  %v2525_v1 = vadd.f32 1e-05, %v2493_v30 }
 0x1a1   : > { %v2385_v36 = vadd.f32 %v2384_v33, %v2383_v11  ;;  %v2070_v4 = vrot.slane %v2069_v37, 1  ;;  %v2074_v34 = vadd.f32 %v2073_v52, %v2072_v32  ;;  %v2586_v31 = vmul.f32 %v3590_v53, %v4452_v62  ;;  %v4574_v32 = vld [vmem:[%s4005_s24 + $0x10] sm:$0xff] }
 0x1a2   : > { %v2057_v40 = vadd.f32 %v2056_v43, %v2055_v59  ;;  %v2876_v38 = vrot.slane %v3627_v45, %v4011_v15  ;;  %v2680_v24 = vrot.slane %v4549_v29, %v3982_v0  ;;  %v2787_v61 = vmul.f32 %v2672_v35, %v2587_v54 }
 0x1a3   : > { %v2495_v28 = vmul.f32 0.5, %v2385_v36  ;;  %v2071_v19 = vadd.f32 %v2070_v4, %v2069_v37  ;;  %v2075_v59 = vrot.slane %v2074_v34, 2  ;;  %v3017_v30 = vmax.f32 %v2985_v18, 0.0 }
 0x1a4   : > { %v2174_v12 = vmul.f32 0.5, %v2057_v40  ;;  %v2786_v11 = vmul.f32 %v2668_v5, %v2586_v31  ;;  %v4571_v62 = vadd.f32 %v4243_v51, %v722_v16  ;;  %3593 = vrsqrt.f32 %v2525_v1 }
 0x1a5   : > { %v2527_v39 = vadd.f32 1e-05, %v2495_v28  ;;  %v2176_v55 = vmul.f32 0.5, %v2071_v19  ;;  %v2076_v35 = vadd.f32 %v2075_v59, %v2074_v34  ;;  %v4581_v5 = vadd.f32 %v4245_v49, %v718_v3 }
 0x1a6   : > { %v4565_v17 = vsub.f32 %v4508_v63, %v2174_v12  ;;  %v2986_v43 = vadd.f32 %v2868_v58, %v2786_v11  ;;  %v2086_v63 = vsel %vm1931_vm1, %v4571_v62, 0.0  ;;  %v2880_v33 = vrot.slane %v4574_v32, %v3982_v0 }
 0x1a7   : > { %3595 = vrsqrt.f32 %v2527_v39  ;;  %v4584_v50 = vsub.f32 %v4519_v56, %v2176_v55  ;;  %v2077_v51 = vrot.slane %v2076_v35, 1  ;;  %v2087_v16 = vrot.slane %v2086_v63, 4 }
 0x1a8   : > { %v2238_v21 = vmul.f32 %v4565_v17, %v4565_v17  ;;  %v3018_v54 = vmax.f32 %v2986_v43, 0.0  ;;  %v2079_v37 = vsel %vm1931_vm1, %v4581_v5, 0.0  ;;  %v2987_v56 = vadd.f32 %v2872_v48, %v2787_v61 }
 0x1a9   : > { %v2240_v49 = vmul.f32 %v4584_v50, %v4584_v50  ;;  %v2078_v3 = vadd.f32 %v2077_v51, %v2076_v35  ;;  %v2088_v18 = vadd.f32 %v2087_v16, %v2086_v63  ;;  %v2080_v53 = vrot.slane %v2079_v37, 4 }
 0x1aa   : > { %v2372_v58 = vsel %vm1931_vm1, %v2238_v21, 0.0  ;;  %v3592_v20 = vpop.eup %3591  ;;  %v3120_v40 = vcombine.low %v3017_v30, %v3018_v54  ;;  %v4597_v1 = vadd.f32 %v4255_v47, %v726_v23  ;;  %v2688_v45 = vrot.slane %v4549_v29, %v3984_v27 }
 0x1ab   : > { %v2373_v52 = vrot.slane %v2372_v58, 4  ;;  %v2588_v36 = vmul.f32 %v3592_v20, %v4473_v7  ;;  %v2386_v34 = vsel %vm1931_vm1, %v2240_v49, 0.0  ;;  %v2177_v31 = vmul.f32 0.5, %v2078_v3 }
 0x1ac   : > { %v2888_v12 = vrot.slane %v4574_v32, %v3984_v27  ;;  %v2387_v28 = vrot.slane %v2386_v34, 4  ;;  %v2089_v2 = vrot.slane %v2088_v18, 2  ;;  %v2081_v47 = vadd.f32 %v2080_v53, %v2079_v37 }
 0x1ad   : > { %v2374_v4 = vadd.f32 %v2373_v52, %v2372_v58  ;;  %v2788_v48 = vmul.f32 %v2676_v42, %v2588_v36  ;;  %v4606_v19 = vsub.f32 %v4534_v44, %v2177_v31  ;;  %v3019_v23 = vmax.f32 %v2987_v56, 0.0 }
 0x1ae   : > { %v2388_v7 = vadd.f32 %v2387_v28, %v2386_v34  ;;  %v2090_v59 = vadd.f32 %v2089_v2, %v2088_v18  ;;  %v2093_v30 = vsel %vm1931_vm1, %v4597_v1, 0.0  ;;  %v3594_v11 = vpop.eup %3593  ;;  %v2082_v43 = vrot.slane %v2081_v47, 2 }
 0x1af   : > { %v2375_v61 = vrot.slane %v2374_v4, 2  ;;  %v2988_v39 = vadd.f32 %v2876_v38, %v2788_v48  ;;  %v2241_v35 = vmul.f32 %v4606_v19, %v4606_v19  ;;  %v2684_v42 = vrot.slane %v4549_v29, %v3989_v8 }
 0x1b0   : > { %v2389_v21 = vrot.slane %v2388_v7, 2  ;;  %v2091_v44 = vrot.slane %v2090_v59, 1  ;;  %v2094_v63 = vrot.slane %v2093_v30, 4  ;;  %v2083_v37 = vadd.f32 %v2082_v43, %v2081_v47  ;;  %v4628_v43 = vld [vmem:[%s3980_s16 + $0x18] sm:$0xff] }
 0x1b1   : > { %v2376_v55 = vadd.f32 %v2375_v61, %v2374_v4  ;;  %v3596_v51 = vpop.eup %3595  ;;  %v3020_v16 = vmax.f32 %v2988_v39, 0.0  ;;  %v2393_v58 = vsel %vm1931_vm1, %v2241_v35, 0.0  ;;  %v3128_v52 = vrot.slane %v3120_v40, %v4062_v41 }
 0x1b2   : > { %v2589_v38 = vmul.f32 %v3594_v11, %v4484_v46  ;;  %v2390_v49 = vadd.f32 %v2389_v21, %v2388_v7  ;;  %v2394_v3 = vrot.slane %v2393_v58, 4  ;;  %v2092_v56 = vadd.f32 %v2091_v44, %v2090_v59 }
 0x1b3   : > { %v2377_v54 = vrot.slane %v2376_v55, 1  ;;  %v3121_v18 = vcombine.low %v3019_v23, %v3020_v16  ;;  %v2084_v53 = vrot.slane %v2083_v37, 1  ;;  %v2591_v36 = vmul.f32 %v3596_v51, %v4500_v22 }
 0x1b4   : > { %v2391_v4 = vrot.slane %v2390_v49, 1  ;;  %v2395_v34 = vadd.f32 %v2394_v3, %v2393_v58  ;;  %v2095_v31 = vadd.f32 %v2094_v63, %v2093_v30  ;;  %v2179_v48 = vmul.f32 0.5, %v2092_v56  ;;  %v4905_v3 = vld [vmem:[#allocation3_spill] sm:$0xff] }
 0x1b5   : > { %v2378_v20 = vadd.f32 %v2377_v54, %v2376_v55  ;;  %v3135_v28 = vrot.slane %v3121_v18, %v4062_v41  ;;  %v2085_v40 = vadd.f32 %v2084_v53, %v2083_v37  ;;  %v2789_v46 = vmul.f32 %v2680_v24, %v2589_v38 }
 0x1b6   : > { %v2392_v61 = vadd.f32 %v2391_v4, %v2390_v49  ;;  %v2396_v47 = vrot.slane %v2395_v34, 2  ;;  %v2096_v23 = vrot.slane %v2095_v31, 2  ;;  %v4623_v22 = vsub.f32 %v4571_v62, %v2179_v48 }
 0x1b7   : > { %v2494_v2 = vmul.f32 0.5, %v2378_v20  ;;  %v3136_v7 = vcombine.low %v3128_v52, %v3135_v28  ;;  %v2178_v30 = vmul.f32 0.5, %v2085_v40  ;;  %v2884_v11 = vrot.slane %v4574_v32, %v3989_v8  ;;  %v4906_v28 = vld [vmem:[#allocation4_spill] sm:$0xff] }
 0x1b8   : > { %v2496_v39 = vmul.f32 0.5, %v2392_v61  ;;  %v2397_v55 = vadd.f32 %v2396_v47, %v2395_v34  ;;  %v2097_v35 = vadd.f32 %v2096_v23, %v2095_v31  ;;  %v2791_v21 = vmul.f32 %v2688_v45, %v2591_v36 }
 0x1b9   : > { %v2526_v59 = vadd.f32 1e-05, %v2494_v2  ;;  %3216 = vst [vmem:[%s4358_s29 + $0x18] sm:$0xff] %v3136_v7  ;;  %v2243_v24 = vmul.f32 %v4623_v22, %v4623_v22  ;;  %v4634_v44 = vsub.f32 %v4581_v5, %v2178_v30  ;;  %v2692_v63 = vrot.slane %v4549_v29, %v3991_v9 }
 0x1ba   : > { %v2528_v62 = vadd.f32 1e-05, %v2496_v39  ;;  %v2398_v51 = vrot.slane %v2397_v55, 1  ;;  %v2098_v16 = vrot.slane %v2097_v35, 1  ;;  %v4641_v54 = vadd.f32 %v2880_v33, %v2789_v46 }
 0x1bb   : > { %3597 = vrsqrt.f32 %v2526_v59  ;;  %v2407_v45 = vsel %vm1931_vm1, %v2243_v24, 0.0  ;;  %v2242_v58 = vmul.f32 %v4634_v44, %v4634_v44  ;;  %v730_v5 = vrot.slane %v4628_v43, %v3982_v0 }
 0x1bc   : > { %3599 = vrsqrt.f32 %v2528_v62  ;;  %v2399_v37 = vadd.f32 %v2398_v51, %v2397_v55  ;;  %v2408_v52 = vrot.slane %v2407_v45, 4  ;;  %v2099_v38 = vadd.f32 %v2098_v16, %v2097_v35  ;;  %v4907_v62 = vld [vmem:[#allocation5_spill] sm:$0xff] }
 0x1bd   : > { %v4651_v49 = vadd.f32 %v2888_v12, %v2791_v21  ;;  %v2400_v33 = vsel %vm1931_vm1, %v2242_v58, 0.0  ;;  %v4655_v18 = vadd.f32 %v4905_v3, %v730_v5  ;;  %v738_v20 = vrot.slane %v4628_v43, %v3984_v27 }
 0x1be   : > { %v2497_v56 = vmul.f32 0.5, %v2399_v37  ;;  %v2409_v53 = vadd.f32 %v2408_v52, %v2407_v45  ;;  %v2401_v36 = vrot.slane %v2400_v33, 4  ;;  %v2180_v4 = vmul.f32 0.5, %v2099_v38 }
 0x1bf   : > { %v2892_v34 = vrot.slane %v4574_v32, %v3991_v9  ;;  %v2696_v31 = vrot.slane %v4549_v29, %v3993_v10  ;;  %v2100_v12 = vsel %vm1931_vm1, %v4655_v18, 0.0  ;;  %v4666_v2 = vadd.f32 %v4906_v28, %v738_v20 }
 0x1c0   : > { %v2529_v48 = vadd.f32 1e-05, %v2497_v56  ;;  %v2410_v40 = vrot.slane %v2409_v53, 2  ;;  %v2402_v46 = vadd.f32 %v2401_v36, %v2400_v33  ;;  %v4669_v61 = vsub.f32 %v4597_v1, %v2180_v4 }
 0x1c1   : > { %v3021_v47 = vmax.f32 %v4641_v54, 0.0  ;;  %v2101_v23 = vrot.slane %v2100_v12, 4  ;;  %v2114_v7 = vsel %vm1931_vm1, %v4666_v2, 0.0  ;;  %v734_v59 = vrot.slane %v4628_v43, %v3989_v8 }
 0x1c2   : > { %v3023_v30 = vmax.f32 %v4651_v49, 0.0  ;;  %v2411_v39 = vadd.f32 %v2410_v40, %v2409_v53  ;;  %v2403_v55 = vrot.slane %v2402_v46, 2  ;;  %v2244_v35 = vmul.f32 %v4669_v61, %v4669_v61 }
 0x1c3   : > { %3601 = vrsqrt.f32 %v2529_v48  ;;  %v2102_v1 = vadd.f32 %v2101_v23, %v2100_v12  ;;  %v2115_v24 = vrot.slane %v2114_v7, 4  ;;  %v4680_v51 = vadd.f32 %v4907_v62, %v734_v59 }
 0x1c4   : > { %v2412_v54 = vrot.slane %v2411_v39, 1  ;;  %v2404_v45 = vadd.f32 %v2403_v55, %v2402_v46  ;;  %v2414_v58 = vsel %vm1931_vm1, %v2244_v35, 0.0 }
 0x1c5   : > { %v3598_v21 = vpop.eup %3597  ;;  %v2415_v5 = vrot.slane %v2414_v58, 4  ;;  %v2103_v37 = vrot.slane %v2102_v1, 2  ;;  %v2116_v52 = vadd.f32 %v2115_v24, %v2114_v7  ;;  %v2107_v38 = vsel %vm1931_vm1, %v4680_v51, 0.0 }
 0x1c6   : > { %v2590_v16 = vmul.f32 %v3598_v21, %v4565_v17  ;;  %v3600_v49 = vpop.eup %3599  ;;  %v2413_v3 = vadd.f32 %v2412_v54, %v2411_v39  ;;  %v2405_v20 = vrot.slane %v2404_v45, 1  ;;  %v2108_v56 = vrot.slane %v2107_v38, 4 }
 0x1c7   : > { %v2592_v17 = vmul.f32 %v3600_v49, %v4584_v50  ;;  %v2416_v53 = vadd.f32 %v2415_v5, %v2414_v58  ;;  %v2104_v36 = vadd.f32 %v2103_v37, %v2102_v1  ;;  %v2117_v4 = vrot.slane %v2116_v52, 2 }
 0x1c8   : > { %v2790_v33 = vmul.f32 %v2684_v42, %v2590_v16  ;;  %v2499_v28 = vmul.f32 0.5, %v2413_v3  ;;  %v2406_v48 = vadd.f32 %v2405_v20, %v2404_v45  ;;  %v2109_v40 = vadd.f32 %v2108_v56, %v2107_v38 }
 0x1c9   : > { %v2792_v46 = vmul.f32 %v2692_v63, %v2592_v17  ;;  %v2417_v23 = vrot.slane %v2416_v53, 2  ;;  %v2105_v7 = vrot.slane %v2104_v36, 1  ;;  %v2118_v59 = vadd.f32 %v2117_v4, %v2116_v52 }
 0x1ca   : > { %v2990_v12 = vadd.f32 %v2884_v11, %v2790_v33  ;;  %v2531_v39 = vadd.f32 1e-05, %v2499_v28  ;;  %v2498_v55 = vmul.f32 0.5, %v2406_v48  ;;  %v2110_v35 = vrot.slane %v2109_v40, 2 }
 0x1cb   : > { %v2992_v21 = vadd.f32 %v2892_v34, %v2792_v46  ;;  %v2418_v50 = vadd.f32 %v2417_v23, %v2416_v53  ;;  %v2106_v24 = vadd.f32 %v2105_v7, %v2104_v36  ;;  %v2119_v1 = vrot.slane %v2118_v59, 1 }
 0x1cc   : > { %v3022_v42 = vmax.f32 %v2990_v12, 0.0  ;;  %3603 = vrsqrt.f32 %v2531_v39  ;;  %v2530_v16 = vadd.f32 1e-05, %v2498_v55  ;;  %v2111_v54 = vadd.f32 %v2110_v35, %v2109_v40 }
 0x1cd   : > { %v3602_v11 = vpop.eup %3601  ;;  %v3024_v58 = vmax.f32 %v2992_v21, 0.0  ;;  %v2896_v63 = vrot.slane %v4574_v32, %v3993_v10  ;;  %v2419_v45 = vrot.slane %v2418_v50, 1  ;;  %v2181_v5 = vmul.f32 0.5, %v2106_v24 }
 0x1ce   : > { %v3137_v62 = vcombine.low %v3021_v47, %v3022_v42  ;;  %v2704_v37 = vrot.slane %v4549_v29, %v4007_v13  ;;  %3605 = vrsqrt.f32 %v2530_v16  ;;  %v2120_v52 = vadd.f32 %v2119_v1, %v2118_v59 }
 0x1cf   : > { %v2112_v34 = vrot.slane %v2111_v54, 1  ;;  %v3138_v49 = vcombine.low %v3023_v30, %v3024_v58  ;;  %v2420_v47 = vadd.f32 %v2419_v45, %v2418_v50  ;;  %v4699_v33 = vsub.f32 %v4655_v18, %v2181_v5 }
 0x1d0   : > { %v3145_v38 = vrot.slane %v3137_v62, %v4062_v41  ;;  %v2904_v3 = vrot.slane %v4574_v32, %v4007_v13  ;;  %v2183_v20 = vmul.f32 0.5, %v2120_v52  ;;  %v742_v17 = vrot.slane %v4628_v43, %v3991_v9 }
 0x1d1   : > { %v2113_v56 = vadd.f32 %v2112_v34, %v2111_v54  ;;  %v3152_v53 = vrot.slane %v3138_v49, %v4062_v41  ;;  %v2593_v36 = vmul.f32 %v3602_v11, %v4606_v19  ;;  %v2500_v4 = vmul.f32 0.5, %v2420_v47 }
 0x1d2   : > { %v2245_v30 = vmul.f32 %v4699_v33, %v4699_v33  ;;  %v2700_v18 = vrot.slane %v4549_v29, %v4009_v14  ;;  %v4712_v12 = vsub.f32 %v4666_v2, %v2183_v20  ;;  %v4715_v48 = vadd.f32 %v4288_v26, %v742_v17 }
 0x1d3   : > { %v2182_v28 = vmul.f32 0.5, %v2113_v56  ;;  %v3153_v40 = vcombine.low %v3145_v38, %v3152_v53  ;;  %v2900_v46 = vrot.slane %v4574_v32, %v4009_v14  ;;  %v2532_v23 = vadd.f32 1e-05, %v2500_v4 }
 0x1d4   : > { %v2421_v19 = vsel %vm1931_vm1, %v2245_v30, 0.0  ;;  %v2247_v59 = vmul.f32 %v4712_v12, %v4712_v12  ;;  %v2121_v2 = vsel %vm1931_vm1, %v4715_v48, 0.0  ;;  %v2793_v26 = vmul.f32 %v2696_v31, %v2593_v36 }
 0x1d5   : > { %v2422_v7 = vrot.slane %v2421_v19, 4  ;;  %v4723_v42 = vsub.f32 %v4680_v51, %v2182_v28  ;;  %3217 = vst [vmem:[%s4358_s29 + $0x20] sm:$0xff] %v3153_v40  ;;  %3607 = vrsqrt.f32 %v2532_v23  ;;  %v2122_v39 = vrot.slane %v2121_v2, 4 }
 0x1d6   : > { %v746_v55 = vrot.slane %v4628_v43, %v3993_v10  ;;  %v3604_v35 = vpop.eup %3603  ;;  %v2708_v21 = vrot.slane %v4549_v29, %v4011_v15  ;;  %v2435_v51 = vsel %vm1931_vm1, %v2247_v59, 0.0  ;;  %v2908_v11 = vrot.slane %v4574_v32, %v4011_v15 }
 0x1d7   : > { %v2423_v50 = vadd.f32 %v2422_v7, %v2421_v19  ;;  %v2246_v24 = vmul.f32 %v4723_v42, %v4723_v42  ;;  %v2595_v1 = vmul.f32 %v3604_v35, %v4623_v22  ;;  %v2436_v62 = vrot.slane %v2435_v51, 4 }
 0x1d8   : > { %v2123_v16 = vadd.f32 %v2122_v39, %v2121_v2  ;;  %v4740_v31 = vadd.f32 %v4314_v60, %v746_v55  ;;  %v3606_v54 = vpop.eup %3605  ;;  %v754_v45 = vrot.slane %v4628_v43, %v4007_v13  ;;  %v2993_v5 = vadd.f32 %v2896_v63, %v2793_v26 }
 0x1d9   : > { %v2424_v58 = vrot.slane %v2423_v50, 2  ;;  %v2428_v29 = vsel %vm1931_vm1, %v2246_v24, 0.0  ;;  %v2594_v52 = vmul.f32 %v3606_v54, %v4634_v44  ;;  %v2437_v34 = vadd.f32 %v2436_v62, %v2435_v51 }
 0x1da   : > { %v2429_v22 = vrot.slane %v2428_v29, 4  ;;  %v2124_v49 = vrot.slane %v2123_v16, 2  ;;  %v2128_v60 = vsel %vm1931_vm1, %v4740_v31, 0.0  ;;  %v4751_v47 = vadd.f32 %v4322_v25, %v754_v45 }
 0x1db   : > { %v2425_v38 = vadd.f32 %v2424_v58, %v2423_v50  ;;  %v2795_v20 = vmul.f32 %v2704_v37, %v2595_v1  ;;  %v2794_v56 = vmul.f32 %v2700_v18, %v2594_v52  ;;  %v2438_v17 = vrot.slane %v2437_v34, 2 }
 0x1dc   : > { %v2430_v53 = vadd.f32 %v2429_v22, %v2428_v29  ;;  %v2125_v4 = vadd.f32 %v2124_v49, %v2123_v16  ;;  %v2129_v30 = vrot.slane %v2128_v60, 4  ;;  %v2142_v44 = vsel %vm1931_vm1, %v4751_v47, 0.0 }
 0x1dd   : > { %v2426_v36 = vrot.slane %v2425_v38, 1  ;;  %v3025_v63 = vmax.f32 %v2993_v5, 0.0  ;;  %v2994_v28 = vadd.f32 %v2900_v46, %v2794_v56  ;;  %v2439_v40 = vadd.f32 %v2438_v17, %v2437_v34 }
 0x1de   : > { %v2431_v23 = vrot.slane %v2430_v53, 2  ;;  %v2126_v7 = vrot.slane %v2125_v4, 1  ;;  %v2130_v59 = vadd.f32 %v2129_v30, %v2128_v60  ;;  %v2143_v2 = vrot.slane %v2142_v44, 4 }
 0x1df   : > { %v2427_v19 = vadd.f32 %v2426_v36, %v2425_v38  ;;  %v3608_v25 = vpop.eup %3607  ;;  %v2995_v37 = vadd.f32 %v2904_v3, %v2795_v20  ;;  %v3026_v18 = vmax.f32 %v2994_v28, 0.0  ;;  %v2440_v26 = vrot.slane %v2439_v40, 1 }
 0x1e0   : > { %v2432_v39 = vadd.f32 %v2431_v23, %v2430_v53  ;;  %v2596_v55 = vmul.f32 %v3608_v25, %v4669_v61  ;;  %v2127_v50 = vadd.f32 %v2126_v7, %v2125_v4  ;;  %v2131_v51 = vrot.slane %v2130_v59, 2  ;;  %v4775_v23 = vld [vmem:[%s3999_s20 + $0x18] sm:$0xff] }
 0x1e1   : > { %v2501_v35 = vmul.f32 0.5, %v2427_v19  ;;  %v3154_v46 = vcombine.low %v3025_v63, %v3026_v18  ;;  %v2441_v24 = vadd.f32 %v2440_v26, %v2439_v40  ;;  %v2144_v62 = vadd.f32 %v2143_v2, %v2142_v44 }
 0x1e2   : > { %v2433_v1 = vrot.slane %v2432_v39, 1  ;;  %v2796_v16 = vmul.f32 %v2708_v21, %v2596_v55  ;;  %v2184_v58 = vmul.f32 0.5, %v2127_v50  ;;  %v2132_v29 = vadd.f32 %v2131_v51, %v2130_v59  ;;  %v4790_v55 = vld [vmem:[%s4005_s24 + $0x18] sm:$0xff] }
 0x1e3   : > { %v2533_v54 = vadd.f32 1e-05, %v2501_v35  ;;  %v3027_v45 = vmax.f32 %v2995_v37, 0.0  ;;  %v2503_v5 = vmul.f32 0.5, %v2441_v24  ;;  %v2145_v3 = vrot.slane %v2144_v62, 2 }
 0x1e4   : > { %v2434_v32 = vadd.f32 %v2433_v1, %v2432_v39  ;;  %v2996_v52 = vadd.f32 %v2908_v11, %v2796_v16  ;;  %v4760_v34 = vsub.f32 %v4715_v48, %v2184_v58  ;;  %v2133_v61 = vrot.slane %v2132_v29, 1 }
 0x1e5   : > { %3609 = vrsqrt.f32 %v2533_v54  ;;  %v2146_v38 = vadd.f32 %v2145_v3, %v2144_v62  ;;  %v750_v49 = vrot.slane %v4628_v43, %v4009_v14  ;;  %v3162_v56 = vrot.slane %v3154_v46, %v4062_v41 }
 0x1e6   : > { %v2502_v22 = vmul.f32 0.5, %v2434_v32  ;;  %v3028_v60 = vmax.f32 %v2996_v52, 0.0  ;;  %v2248_v21 = vmul.f32 %v4760_v34, %v4760_v34  ;;  %v2134_v20 = vadd.f32 %v2133_v61, %v2132_v29 }
 0x1e7   : > { %v2147_v11 = vrot.slane %v2146_v38, 1  ;;  %v4768_v53 = vadd.f32 %v4353_v57, %v750_v49  ;;  %v2535_v36 = vadd.f32 1e-05, %v2503_v5  ;;  %v758_v7 = vrot.slane %v4628_v43, %v4011_v15 }
 0x1e8   : > { %v2534_v17 = vadd.f32 1e-05, %v2502_v22  ;;  %v3155_v48 = vcombine.low %v3027_v45, %v3028_v60  ;;  %v2442_v4 = vsel %vm1931_vm1, %v2248_v21, 0.0  ;;  %v2185_v30 = vmul.f32 0.5, %v2134_v20 }
 0x1e9   : > { %v2443_v44 = vrot.slane %v2442_v4, 4  ;;  %v2148_v63 = vadd.f32 %v2147_v11, %v2146_v38  ;;  %v2135_v28 = vsel %vm1931_vm1, %v4768_v53, 0.0  ;;  %v4785_v26 = vadd.f32 %v4386_v6, %v758_v7 }
 0x1ea   : > { %3611 = vrsqrt.f32 %v2534_v17  ;;  %v3169_v40 = vrot.slane %v3155_v48, %v4062_v41  ;;  %v4778_v57 = vsub.f32 %v4740_v31, %v2185_v30  ;;  %v2136_v19 = vrot.slane %v2135_v28, 4 }
 0x1eb   : > { %v2444_v59 = vadd.f32 %v2443_v44, %v2442_v4  ;;  %v2187_v2 = vmul.f32 0.5, %v2148_v63  ;;  %v2712_v39 = vrot.slane %v4775_v23, %v3982_v0  ;;  %3613 = vrsqrt.f32 %v2535_v36 }
 0x1ec   : > { %v3170_v25 = vcombine.low %v3162_v56, %v3169_v40  ;;  %v2249_v37 = vmul.f32 %v4778_v57, %v4778_v57  ;;  %v2137_v18 = vadd.f32 %v2136_v19, %v2135_v28  ;;  %v2149_v46 = vsel %vm1931_vm1, %v4785_v26, 0.0 }
 0x1ed   : > { %v2445_v31 = vrot.slane %v2444_v59, 2  ;;  %v4793_v35 = vsub.f32 %v4751_v47, %v2187_v2  ;;  %v2912_v47 = vrot.slane %v4790_v55, %v3982_v0  ;;  %v2150_v54 = vrot.slane %v2149_v46, 4 }
 0x1ee   : > { %3218 = vst [vmem:[%s4358_s29 + $0x28] sm:$0xff] %v3170_v25  ;;  %v2449_v50 = vsel %vm1931_vm1, %v2249_v37, 0.0  ;;  %v2138_v51 = vrot.slane %v2137_v18, 2  ;;  %v2716_v32 = vrot.slane %v4775_v23, %v3989_v8  ;;  %v2916_v22 = vrot.slane %v4790_v55, %v3989_v8 }
 0x1ef   : > { %v3610_v43 = vpop.eup %3609  ;;  %v2446_v24 = vadd.f32 %v2445_v31, %v2444_v59  ;;  %v2450_v1 = vrot.slane %v2449_v50, 4  ;;  %v2251_v62 = vmul.f32 %v4793_v35, %v4793_v35  ;;  %v2151_v52 = vadd.f32 %v2150_v54, %v2149_v46 }
 0x1f0   : > { %v2597_v6 = vmul.f32 %v3610_v43, %v4699_v33  ;;  %v2139_v16 = vadd.f32 %v2138_v51, %v2137_v18  ;;  %v2720_v43 = vrot.slane %v4775_v23, %v3984_v27 }
 0x1f1   : > { %v2447_v29 = vrot.slane %v2446_v24, 1  ;;  %v2451_v45 = vadd.f32 %v2450_v1, %v2449_v50  ;;  %v2463_v5 = vsel %vm1931_vm1, %v2251_v62, 0.0  ;;  %v2152_v11 = vrot.slane %v2151_v52, 2 }
 0x1f2   : > { %v2797_v58 = vmul.f32 %v2712_v39, %v2597_v6  ;;  %v2464_v3 = vrot.slane %v2463_v5, 4  ;;  %v2140_v33 = vrot.slane %v2139_v16, 1 }
 0x1f3   : > { %v2448_v38 = vadd.f32 %v2447_v29, %v2446_v24  ;;  %v2452_v49 = vrot.slane %v2451_v45, 2  ;;  %v2153_v63 = vadd.f32 %v2152_v11, %v2151_v52 }
 0x1f4   : > { %v3612_v61 = vpop.eup %3611  ;;  %v2997_v0 = vadd.f32 %v2912_v47, %v2797_v58  ;;  %v2465_v21 = vadd.f32 %v2464_v3, %v2463_v5  ;;  %v2141_v20 = vadd.f32 %v2140_v33, %v2139_v16  ;;  %v2920_v16 = vrot.slane %v4790_v55, %v3984_v27 }
 0x1f5   : > { %v2598_v60 = vmul.f32 %v3612_v61, %v4723_v42  ;;  %v2504_v56 = vmul.f32 0.5, %v2448_v38  ;;  %v2453_v17 = vadd.f32 %v2452_v49, %v2451_v45  ;;  %v3614_v28 = vpop.eup %3613  ;;  %v2154_v59 = vrot.slane %v2153_v63, 1 }
 0x1f6   : > { %v2466_v36 = vrot.slane %v2465_v21, 2  ;;  %v2186_v4 = vmul.f32 0.5, %v2141_v20  ;;  %v3029_v40 = vmax.f32 %v2997_v0, 0.0  ;;  %v2599_v31 = vmul.f32 %v3614_v28, %v4712_v12 }
 0x1f7   : > { %v2798_v48 = vmul.f32 %v2716_v32, %v2598_v60  ;;  %v2536_v30 = vadd.f32 1e-05, %v2504_v56  ;;  %v2454_v44 = vrot.slane %v2453_v17, 1  ;;  %v2155_v39 = vadd.f32 %v2154_v59, %v2153_v63 }
 0x1f8   : > { %v2467_v8 = vadd.f32 %v2466_v36, %v2465_v21  ;;  %v4811_v7 = vsub.f32 %v4768_v53, %v2186_v4  ;;  %v2799_v47 = vmul.f32 %v2720_v43, %v2599_v31  ;;  %v2724_v12 = vrot.slane %v4775_v23, %v3991_v9 }
 0x1f9   : > { %v2998_v19 = vadd.f32 %v2916_v22, %v2798_v48  ;;  %3615 = vrsqrt.f32 %v2536_v30  ;;  %v2455_v42 = vadd.f32 %v2454_v44, %v2453_v17  ;;  %v2188_v46 = vmul.f32 0.5, %v2155_v39 }
 0x1fa   : > { %v2468_v25 = vrot.slane %v2467_v8, 1  ;;  %v2250_v37 = vmul.f32 %v4811_v7, %v4811_v7  ;;  %v2999_v3 = vadd.f32 %v2920_v16, %v2799_v47  ;;  %v2728_v28 = vrot.slane %v4775_v23, %v3993_v10 }
 0x1fb   : > { %v3030_v2 = vmax.f32 %v2998_v19, 0.0  ;;  %v2505_v18 = vmul.f32 0.5, %v2455_v42  ;;  %v2220_v62 = vsub.f32 %v4785_v26, %v2188_v46  ;;  %v2924_v26 = vrot.slane %v4790_v55, %v3991_v9 }
 0x1fc   : > { %v2456_v51 = vsel %vm1931_vm1, %v2250_v37, 0.0  ;;  %v2469_v6 = vadd.f32 %v2468_v25, %v2467_v8  ;;  %v3031_v0 = vmax.f32 %v2999_v3, 0.0  ;;  %v2928_v59 = vrot.slane %v4790_v55, %v3993_v10 }
 0x1fd   : > { %v3171_v50 = vcombine.low %v3029_v40, %v3030_v2  ;;  %v2457_v53 = vrot.slane %v2456_v51, 4  ;;  %v2537_v24 = vadd.f32 1e-05, %v2505_v18  ;;  %v2252_v58 = vmul.f32 %v2220_v62, %v2220_v62 }
 0x1fe   : > { %v2507_v29 = vmul.f32 0.5, %v2469_v6  ;;  %v2732_v2 = vrot.slane %v4775_v23, %v4009_v14  ;;  %v2932_v31 = vrot.slane %v4790_v55, %v4009_v14  ;;  %v2936_v10 = vrot.slane %v4790_v55, %v4007_v13 }
 0x1ff   : > { %v2458_v1 = vadd.f32 %v2457_v53, %v2456_v51  ;;  %3617 = vrsqrt.f32 %v2537_v24  ;;  %v2470_v32 = vsel %vm1931_vm1, %v2252_v58, 0.0 }
 0x200   : > { %v2471_v52 = vrot.slane %v2470_v32, 4  ;;  %v2539_v22 = vadd.f32 1e-05, %v2507_v29 }
 0x201   : > { %v2459_v54 = vrot.slane %v2458_v1, 2 }
 0x202   : > { %v2472_v38 = vadd.f32 %v2471_v52, %v2470_v32  ;;  %3619 = vrsqrt.f32 %v2539_v22 }
 0x203   : > { %v3616_v45 = vpop.eup %3615  ;;  %v2460_v5 = vadd.f32 %v2459_v54, %v2458_v1 }
 0x204   : > { %v2600_v33 = vmul.f32 %v3616_v45, %v4760_v34  ;;  %v2473_v21 = vrot.slane %v2472_v38, 2  ;;  %v3179_v34 = vrot.slane %v3171_v50, %v4062_v41 }
 0x205   : > { %v2461_v61 = vrot.slane %v2460_v5, 1 }
 0x206   : > { %v2800_v27 = vmul.f32 %v2724_v12, %v2600_v33  ;;  %v2474_v17 = vadd.f32 %v2473_v21, %v2472_v38 }
 0x207   : > { %v2462_v49 = vadd.f32 %v2461_v61, %v2460_v5 }
 0x208   : > { %v3000_v60 = vadd.f32 %v2924_v26, %v2800_v27  ;;  %v2475_v36 = vrot.slane %v2474_v17, 1 }
 0x209   : > { %v2506_v20 = vmul.f32 0.5, %v2462_v49  ;;  %v3618_v9 = vpop.eup %3617 }
 0x20a   : > { %v3032_v56 = vmax.f32 %v3000_v60, 0.0  ;;  %v2476_v30 = vadd.f32 %v2475_v36, %v2474_v17  ;;  %v2601_v63 = vmul.f32 %v3618_v9, %v4778_v57  ;;  %v2736_v57 = vrot.slane %v4775_v23, %v4007_v13 }
 0x20b   : > { %v2538_v11 = vadd.f32 1e-05, %v2506_v20 }
 0x20c   : > { %v3172_v48 = vcombine.low %v3031_v0, %v3032_v56  ;;  %v2508_v40 = vmul.f32 0.5, %v2476_v30  ;;  %v3620_v8 = vpop.eup %3619  ;;  %v2801_v42 = vmul.f32 %v2728_v28, %v2601_v63 }
 0x20d   : > { %3621 = vrsqrt.f32 %v2538_v11  ;;  %v2603_v37 = vmul.f32 %v3620_v8, %v4793_v35  ;;  %v2740_v35 = vrot.slane %v4775_v23, %v4011_v15 }
 0x20e   : > { %v3186_v4 = vrot.slane %v3172_v48, %v4062_v41  ;;  %v2540_v19 = vadd.f32 1e-05, %v2508_v40  ;;  %v3001_v18 = vadd.f32 %v2928_v59, %v2801_v42 }
 0x20f   : > { %v2803_v50 = vmul.f32 %v2736_v57, %v2603_v37 }
 0x210   : > { %v3187_v44 = vcombine.low %v3179_v34, %v3186_v4  ;;  %3623 = vrsqrt.f32 %v2540_v19  ;;  %v3033_v51 = vmax.f32 %v3001_v18, 0.0 }
 0x211   : > { %v3003_v24 = vadd.f32 %v2936_v10, %v2803_v50 }
 0x212   : > { %3219 = vst [vmem:[%s4358_s29 + $0x30] sm:$0xff] %v3187_v44 }
 0x213   : > { %v3035_v16 = vmax.f32 %v3003_v24, 0.0 }
 0x217   : > { %v3622_v25 = vpop.eup %3621 }
 0x218   : > { %v2602_v39 = vmul.f32 %v3622_v25, %v4811_v7  ;;  %v2940_v7 = vrot.slane %v4790_v55, %v4011_v15 }
 0x21a   : > { %v2802_v43 = vmul.f32 %v2732_v2, %v2602_v39  ;;  %v3624_v46 = vpop.eup %3623 }
 0x21b   : > { %v2604_v1 = vmul.f32 %v3624_v46, %v2220_v62 }
 0x21c   : > { %v3002_v53 = vadd.f32 %v2932_v31, %v2802_v43 }
 0x21d   : > { %v2804_v14 = vmul.f32 %v2740_v35, %v2604_v1 }
 0x21e   : > { %v3034_v6 = vmax.f32 %v3002_v53, 0.0 }
 0x21f   : > { %v3004_v54 = vadd.f32 %v2940_v7, %v2804_v14 }
 0x220   : > { %v3188_v47 = vcombine.low %v3033_v51, %v3034_v6 }
 0x221   : > { %v3036_v58 = vmax.f32 %v3004_v54, 0.0 }
 0x222   : > { %v3196_v13 = vrot.slane %v3188_v47, %v4062_v41 }
 0x223   : > { %v3189_v12 = vcombine.low %v3035_v16, %v3036_v58 }
 0x225   : > { %v3203_v29 = vrot.slane %v3189_v12, %v4062_v41 }
 0x227   : > { %v3204_v45 = vcombine.low %v3196_v13, %v3203_v29 }
 0x229   : > { %3220 = vst [vmem:[%s4358_s29 + $0x38] sm:$0xff] %v3204_v45 }
 0x22a PF: > { %p12_p9 = scmp.ge.s32.totalorder %s3701_s22, 6   ;;  %s4908_s18 = smov %s3646_s19 }
 0x22b   : > { %s4909_s19 = smov %s3710_s25  ;;  %s4910_s20 = smov %s3701_s22 }
 0x22c   :  { %14 = sbr.rel (!%p12_p9) target bundleno = 2 (0x2), region = 107 }

// kernel: discriminator_forward.5
= control target key start
LH: loop header
LB: loop body
LE: loop exit
PB: predicated region body
PF: predicated region fallthrough
CT: control target
= control target key end

     0   :  { %s7831_s9 = smov 0   ;;  %s8447_s0 = inlined_call_operand.vmem [shape: f32[2,16384], index: 0, kind: input, shape index: {}]   ;;  %s8448_s1 = inlined_call_operand.vmem [shape: bf16[16384,32], index: 1, kind: input, shape index: {}]   ;;  %s8449_s2 = inlined_call_operand.vmem [shape: f32[2,2,32], index: 2, kind: output, shape index: {}]  }
   0x1 LB: > { %s7837_s10 = sadd.s32 4294967295, %s7813_s9   ;;  %p6046_p0 = scmp.ge.s32.totalorder %s7813_s9, 1  ;;  %s7813_s9 = sphi %s7831_s9, %s12_s9  }
   0x2   : > { %p124_p1 = scmp.lt.s32.totalorder %s7813_s9, 3 }
   0x4   : > { %p125_p2 = pnand %p6046_p0, %p124_p1 }
   0x5   : > { %s6049_s11 = sshll.u32 (!%p125_p2), %s7837_s10, 10  ;;  %s6047_s16 = sshll.u32 (!%p125_p2), %s7837_s10, 6  ;;  %v7815_v22 = vmov (!%p125_p2), 1983009808   ;;  %v1227_v24 = vlaneseq (!%p125_p2)  ;;  %vm5975_vm0 = vcmask (!%p125_p2), 254976  }
   0x6   : > { %128 = sbr.rel (%p125_p2) target bundleno = 750 (0x2ee), region = 28  ;;  %p157_p3 = scmp.lt.s32.totalorder (!%p125_p2), %s6049_s11, 2047  ;;  %v1225_v23 = vunpack.c.l.s4 (!%p125_p2), %v7815_v22 }
   0x7   : > { %p151_p4 = scmp.lt.s32.totalorder (!%p125_p2), %s6047_s16, 127  ;;  %v1228_v30 = vshrl.u32 (!%p125_p2), %v1227_v24, 7  ;;  %p162_p5 = scmp.lt.s32.totalorder (!%p125_p2), %s7837_s10, 1 }
   0x8   : > { %v1226_v29 = vunpack.c.0.s8 (!%p125_p2), %v1225_v23 }
   0xa   : > { %v7883_v35 = vsub.s32 (!%p125_p2), %v1226_v29, %v1228_v30 }
   0xd   : > { %s8451_s11 = smov (!%p157_p3, %s6049_s11), 2047  ;;  %s8453_s16 = smov (!%p151_p4, %s6047_s16), 127 }
   0xe   : > { %s6050_s12 = sshll.u32 %s8451_s11, 2  ;;  %s6048_s17 = sshll.u32 %s8453_s16, 1 }
   0xf   : > { %s7845_s15 = scalar_lea.vmem %s8448_s1, %s6050_s12  ;;  %s7881_s20 = scalar_lea.vmem %s8447_s0, %s6048_s17 }
  0x10   : > { %v7279_v0 = vld [vmem:[%s7845_s15 + $0x40] sm:$0xff]   ;;  %v7283_v4 = vld [vmem:[%s7845_s15 + $0x48] sm:$0xff]   ;;  %v7287_v8 = vld [vmem:[%s7845_s15 + $0x50] sm:$0xff]   ;;  %s8455_s10 = smov (!%p162_p5, %s7837_s10), 1 }
  0x11   : > { %v7280_v1 = vld [vmem:[%s7845_s15 + $0xc0] sm:$0xff]   ;;  %6566 = vmatprep.subr.bf16.mxu0 %v7279_v0  ;;  %v7284_v5 = vld [vmem:[%s7845_s15 + $0xc8] sm:$0xff]   ;;  %v7288_v9 = vld [vmem:[%s7845_s15 + $0xd0] sm:$0xff]   ;;  %s6051_s21 = sshll.u32 %s8455_s10, 1 }
  0x12   : > { %v7281_v2 = vld [vmem:[%s7845_s15] sm:$0xff]   ;;  %6588 = vmatprep.subr.bf16.mxu1 %v7280_v1  ;;  %v7285_v6 = vld [vmem:[%s7845_s15 + $0x8] sm:$0xff]   ;;  %v7289_v10 = vld [vmem:[%s7845_s15 + $0x10] sm:$0xff]   ;;  %s165_s24 = scalar_lea.vmem %s8449_s2, %s6051_s21 }
  0x13   : > { %v7282_v3 = vld [vmem:[%s7845_s15 + $0x80] sm:$0xff]   ;;  %6567 = vmatpush3.bf16.msra.mxu0 %v7281_v2  ;;  %v7286_v7 = vld [vmem:[%s7845_s15 + $0x88] sm:$0xff]   ;;  %v7290_v11 = vld [vmem:[%s7845_s15 + $0x90] sm:$0xff]  }
  0x14   : > { %6589 = vmatpush3.bf16.msra.mxu1 %v7282_v3  ;;  %6568 = vmatprep.subr.bf16.mxu0 %v7283_v4  ;;  %v7291_v12 = vld [vmem:[%s7845_s15 + $0x58] sm:$0xff]   ;;  %v7295_v16 = vld [vmem:[%s7845_s15 + $0x60] sm:$0xff]   ;;  %v7299_v20 = vld [vmem:[%s7845_s15 + $0x68] sm:$0xff]  }
  0x15   : > { %6590 = vmatprep.subr.bf16.mxu1 %v7284_v5  ;;  %v7292_v13 = vld [vmem:[%s7845_s15 + $0xd8] sm:$0xff]   ;;  %v7296_v17 = vld [vmem:[%s7845_s15 + $0xe0] sm:$0xff]   ;;  %v7300_v21 = vld [vmem:[%s7845_s15 + $0xe8] sm:$0xff]  }
  0x16   : > { %v7293_v14 = vld [vmem:[%s7845_s15 + $0x18] sm:$0xff]   ;;  %v7297_v18 = vld [vmem:[%s7845_s15 + $0x20] sm:$0xff]   ;;  %v7301_v25 = vld [vmem:[%s7845_s15 + $0x28] sm:$0xff]  }
  0x17   : > { %6569 = vmatpush3.bf16.msra.mxu0 %v7285_v6  ;;  %v7294_v15 = vld [vmem:[%s7845_s15 + $0x98] sm:$0xff]   ;;  %v7298_v19 = vld [vmem:[%s7845_s15 + $0xa0] sm:$0xff]   ;;  %v7302_v26 = vld [vmem:[%s7845_s15 + $0xa8] sm:$0xff]  }
  0x18   : > { %6591 = vmatpush3.bf16.msra.mxu1 %v7286_v7  ;;  %6570 = vmatprep.subr.bf16.mxu0 %v7287_v8  ;;  %v7303_v27 = vld [vmem:[%s7845_s15 + $0x70] sm:$0xff]   ;;  %v7307_v33 = vld [vmem:[%s7845_s15 + $0x78] sm:$0xff]   ;;  %v1191_v38 = vld [vmem:[%s7881_s20] sm:$0xff] }
  0x19   : > { %6592 = vmatprep.subr.bf16.mxu1 %v7288_v9  ;;  %v7304_v28 = vld [vmem:[%s7845_s15 + $0xf0] sm:$0xff]   ;;  %v7308_v34 = vld [vmem:[%s7845_s15 + $0xf8] sm:$0xff]   ;;  %v1230_v39 = vrot.slane %v1191_v38, %v7883_v35  ;;  %v1223_v40 = vcombine.high %v1191_v38, %v1191_v38  ;;  %v7312_v41 = vld [vmem:[%s7845_s15 + $0x140] sm:$0xff]  }
  0x1a   : > { %v7305_v31 = vld [vmem:[%s7845_s15 + $0x30] sm:$0xff]   ;;  %v7309_v36 = vld [vmem:[%s7845_s15 + $0x38] sm:$0xff]   ;;  %v7313_v42 = vld [vmem:[%s7845_s15 + $0x1c0] sm:$0xff]  }
  0x1b   : > { %6571 = vmatpush3.bf16.msra.mxu0 %v7289_v10  ;;  %v7306_v32 = vld [vmem:[%s7845_s15 + $0xb0] sm:$0xff]   ;;  %v7310_v37 = vld [vmem:[%s7845_s15 + $0xb8] sm:$0xff]   ;;  %v1238_v43 = vcombine.high %v1230_v39, %v1230_v39  ;;  %v1237_v44 = vrot.slane %v1223_v40, %v7883_v35  ;;  %v1559_v45 = vpack.c.bf16 %v1230_v39, %v1230_v39  ;;  %v7314_v46 = vld [vmem:[%s7845_s15 + $0x100] sm:$0xff]  }
  0x1c   : > { %6593 = vmatpush3.bf16.msra.mxu1 %v7290_v11  ;;  %6572 = vmatprep.subr.bf16.mxu0 %v7291_v12  ;;  %v7315_v49 = vld [vmem:[%s7845_s15 + $0x180] sm:$0xff]   ;;  %v7316_v51 = vld [vmem:[%s7845_s15 + $0x148] sm:$0xff]   ;;  %v7320_v56 = vld [vmem:[%s7845_s15 + $0x150] sm:$0xff]  }
  0x1d   : > { %6594 = vmatprep.subr.bf16.mxu1 %v7292_v13  ;;  %v1560_v47 = vpack.c.bf16 %v1238_v43, %v1238_v43  ;;  %v1239_v48 = vcombine.high %v1237_v44, %v1237_v44  ;;  %v1561_v50 = vpack.c.bf16 %v1237_v44, %v1237_v44  ;;  %v7317_v53 = vld [vmem:[%s7845_s15 + $0x1c8] sm:$0xff]   ;;  %v7321_v57 = vld [vmem:[%s7845_s15 + $0x1d0] sm:$0xff]   ;;  %v7324_v60 = vld [vmem:[%s7845_s15 + $0x158] sm:$0xff]  }
  0x1e   : > { %v7318_v54 = vld [vmem:[%s7845_s15 + $0x108] sm:$0xff]   ;;  %v7322_v58 = vld [vmem:[%s7845_s15 + $0x110] sm:$0xff]   ;;  %v7325_v61 = vld [vmem:[%s7845_s15 + $0x1d8] sm:$0xff]  }
  0x1f   : > { %6573 = vmatpush3.bf16.msra.mxu0 %v7293_v14  ;;  %4727 = vmatprep.mubr.bf16.mxu0 %v1560_v47  ;;  %v1562_v52 = vpack.c.bf16 %v1239_v48, %v1239_v48  ;;  %v7319_v55 = vld [vmem:[%s7845_s15 + $0x188] sm:$0xff]   ;;  %v7323_v59 = vld [vmem:[%s7845_s15 + $0x190] sm:$0xff]   ;;  %v7326_v62 = vld [vmem:[%s7845_s15 + $0x118] sm:$0xff]  }
  0x20   : > { %6595 = vmatpush3.bf16.msra.mxu1 %v7294_v15  ;;  %6574 = vmatprep.subr.bf16.mxu0 %v7295_v16  ;;  %v7327_v63 = vld [vmem:[%s7845_s15 + $0x198] sm:$0xff]   ;;  %v7328_v0 = vld [vmem:[%s7845_s15 + $0x160] sm:$0xff]   ;;  %v7332_v4 = vld [vmem:[%s7845_s15 + $0x168] sm:$0xff]  }
  0x21   : > { %6596 = vmatprep.subr.bf16.mxu1 %v7296_v17  ;;  %4767 = vmatprep.mubr.bf16.mxu1 %v1562_v52  ;;  %v7329_v1 = vld [vmem:[%s7845_s15 + $0x1e0] sm:$0xff]   ;;  %v7333_v5 = vld [vmem:[%s7845_s15 + $0x1e8] sm:$0xff]   ;;  %v7336_v8 = vld [vmem:[%s7845_s15 + $0x170] sm:$0xff]  }
  0x22   : > { %v7330_v2 = vld [vmem:[%s7845_s15 + $0x120] sm:$0xff]   ;;  %v7334_v6 = vld [vmem:[%s7845_s15 + $0x128] sm:$0xff]   ;;  %v7337_v9 = vld [vmem:[%s7845_s15 + $0x1f0] sm:$0xff]  }
  0x23   : > { %6575 = vmatpush3.bf16.msra.mxu0 %v7297_v18  ;;  %v7331_v3 = vld [vmem:[%s7845_s15 + $0x1a0] sm:$0xff]   ;;  %v7335_v7 = vld [vmem:[%s7845_s15 + $0x1a8] sm:$0xff]   ;;  %v7338_v10 = vld [vmem:[%s7845_s15 + $0x130] sm:$0xff]  }
  0x24   : > { %6597 = vmatpush3.bf16.msra.mxu1 %v7298_v19  ;;  %6576 = vmatprep.subr.bf16.mxu0 %v7299_v20  ;;  %v7339_v11 = vld [vmem:[%s7845_s15 + $0x1b0] sm:$0xff]   ;;  %v7340_v12 = vld [vmem:[%s7845_s15 + $0x178] sm:$0xff]   ;;  %v1192_v15 = vld [vmem:[%s7881_s20 + $0x8] sm:$0xff] }
  0x25   : > { %6598 = vmatprep.subr.bf16.mxu1 %v7300_v21  ;;  %v7341_v13 = vld [vmem:[%s7845_s15 + $0x1f8] sm:$0xff]   ;;  %v1247_v17 = vrot.slane %v1192_v15, %v7883_v35  ;;  %v1240_v18 = vcombine.high %v1192_v15, %v1192_v15  ;;  %v7345_v19 = vld [vmem:[%s7845_s15 + $0x240] sm:$0xff]   ;;  %v7349_v29 = vld [vmem:[%s7845_s15 + $0x248] sm:$0xff]  }
  0x26   : > { %v7342_v14 = vld [vmem:[%s7845_s15 + $0x138] sm:$0xff]   ;;  %v7346_v22 = vld [vmem:[%s7845_s15 + $0x2c0] sm:$0xff]   ;;  %v7356_v38 = vld [vmem:[%s7845_s15 + $0x290] sm:$0xff]  }
  0x27   : > { %6577 = vmatpush3.bf16.msra.mxu0 %v7301_v25  ;;  %v7343_v16 = vld [vmem:[%s7845_s15 + $0x1b8] sm:$0xff]   ;;  %v1255_v20 = vcombine.high %v1247_v17, %v1247_v17  ;;  %v1254_v21 = vrot.slane %v1240_v18, %v7883_v35  ;;  %v1563_v23 = vpack.c.bf16 %v1247_v17, %v1247_v17  ;;  %v7347_v24 = vld [vmem:[%s7845_s15 + $0x200] sm:$0xff]   ;;  %v7365_v47 = vld [vmem:[%s7845_s15 + $0x268] sm:$0xff]  }
  0x28   : > { %6599 = vmatpush3.bf16.msra.mxu1 %v7302_v26  ;;  %6578 = vmatprep.subr.bf16.mxu0 %v7303_v27  ;;  %v7348_v27 = vld [vmem:[%s7845_s15 + $0x280] sm:$0xff]   ;;  %v7357_v39 = vld [vmem:[%s7845_s15 + $0x258] sm:$0xff]   ;;  %v7366_v48 = vld [vmem:[%s7845_s15 + $0x2e8] sm:$0xff]  }
  0x29   : > { %6600 = vmatprep.subr.bf16.mxu1 %v7304_v28  ;;  %v1564_v25 = vpack.c.bf16 %v1255_v20, %v1255_v20  ;;  %v1256_v26 = vcombine.high %v1254_v21, %v1254_v21  ;;  %v1565_v28 = vpack.c.bf16 %v1254_v21, %v1254_v21  ;;  %v7358_v40 = vld [vmem:[%s7845_s15 + $0x2d8] sm:$0xff]   ;;  %v7361_v43 = vld [vmem:[%s7845_s15 + $0x260] sm:$0xff]   ;;  %v7370_v52 = vld [vmem:[%s7845_s15 + $0x2f0] sm:$0xff]  }
  0x2a   : > { %v7362_v44 = vld [vmem:[%s7845_s15 + $0x2e0] sm:$0xff]   ;;  %v7388_v15 = vld [vmem:[%s7845_s15 + $0x310] sm:$0xff]   ;;  %v7390_v17 = vld [vmem:[%s7845_s15 + $0x358] sm:$0xff]  }
  0x2b   : > { %6579 = vmatpush3.bf16.msra.mxu0 %v7305_v31  ;;  %v1566_v30 = vpack.c.bf16 %v1256_v26, %v1256_v26  ;;  %v7350_v31 = vld [vmem:[%s7845_s15 + $0x2c8] sm:$0xff]   ;;  %v7391_v18 = vld [vmem:[%s7845_s15 + $0x3d8] sm:$0xff]   ;;  %v7394_v21 = vld [vmem:[%s7845_s15 + $0x360] sm:$0xff]  }
  0x2c   : > { %6601 = vmatpush3.bf16.msra.mxu1 %v7306_v32  ;;  %6580 = vmatprep.subr.bf16.mxu0 %v7307_v33  ;;  %v7351_v32 = vld [vmem:[%s7845_s15 + $0x208] sm:$0xff]   ;;  %v7393_v20 = vld [vmem:[%s7845_s15 + $0x398] sm:$0xff]  }
  0x2d   : > { %6602 = vmatprep.subr.bf16.mxu1 %v7308_v34  ;;  %v7352_v33 = vld [vmem:[%s7845_s15 + $0x288] sm:$0xff]   ;;  %v7353_v34 = vld [vmem:[%s7845_s15 + $0x250] sm:$0xff]  }
  0x2e   : > { %v7399_v26 = vld [vmem:[%s7845_s15 + $0x3e8] sm:$0xff]  }
  0x2f   : > { %6581 = vmatpush3.bf16.msra.mxu0 %v7309_v36  ;;  %v7354_v36 = vld [vmem:[%s7845_s15 + $0x2d0] sm:$0xff]  }
  0x30   : > { %6603 = vmatpush3.bf16.msra.mxu1 %v7310_v37  ;;  %6610 = vmatprep.subr.bf16.mxu0 %v7312_v41  ;;  %v7355_v37 = vld [vmem:[%s7845_s15 + $0x210] sm:$0xff]   ;;  %v7359_v41 = vld [vmem:[%s7845_s15 + $0x218] sm:$0xff]  }
  0x31   : > { %6632 = vmatprep.subr.bf16.mxu1 %v7313_v42  ;;  %v7360_v42 = vld [vmem:[%s7845_s15 + $0x298] sm:$0xff]  }
  0x32   : > { %4728 = vmatmul.mubr.bf16.vlgmr.msra.gmra.mrb[0].mxu0 %v1559_v45  ;;  %v7363_v45 = vld [vmem:[%s7845_s15 + $0x220] sm:$0xff]  }
  0x33   : > { %6611 = vmatpush3.bf16.msra.mxu0 %v7314_v46  ;;  %4768 = vmatmul.mubr.bf16.vlgmr.msra.gmra.mrb[0].mxu1 %v1561_v50  ;;  %v7364_v46 = vld [vmem:[%s7845_s15 + $0x2a0] sm:$0xff]   ;;  %v7368_v50 = vld [vmem:[%s7845_s15 + $0x2a8] sm:$0xff]  }
  0x34   : > { %6612 = vmatprep.subr.bf16.mxu0 %v7316_v51  ;;  %6633 = vmatpush3.bf16.msra.mxu1 %v7315_v49  ;;  %v7367_v49 = vld [vmem:[%s7845_s15 + $0x228] sm:$0xff]   ;;  %v7369_v51 = vld [vmem:[%s7845_s15 + $0x270] sm:$0xff]  }
  0x35   : > { %6634 = vmatprep.subr.bf16.mxu1 %v7317_v53  ;;  %4807 = vmatprep.mubr.bf16.mxu0 %v1564_v25  ;;  %v7371_v53 = vld [vmem:[%s7845_s15 + $0x230] sm:$0xff]   ;;  %v7398_v25 = vld [vmem:[%s7845_s15 + $0x368] sm:$0xff]  }
  0x36   : > { %4847 = vmatprep.mubr.bf16.mxu1 %v1566_v30  ;;  %v7403_v30 = vld [vmem:[%s7845_s15 + $0x3f0] sm:$0xff]  }
  0x37   : > { %6613 = vmatpush3.bf16.msra.mxu0 %v7318_v54  ;;  %v7372_v54 = vld [vmem:[%s7845_s15 + $0x2b0] sm:$0xff]  }
  0x38   : > { %6614 = vmatprep.subr.bf16.mxu0 %v7320_v56  ;;  %6635 = vmatpush3.bf16.msra.mxu1 %v7319_v55  ;;  %v7373_v55 = vld [vmem:[%s7845_s15 + $0x278] sm:$0xff]  }
  0x39   : > { %6636 = vmatprep.subr.bf16.mxu1 %v7321_v57  ;;  %v7374_v56 = vld [vmem:[%s7845_s15 + $0x2f8] sm:$0xff]  }
  0x3a   : > { %v7375_v57 = vld [vmem:[%s7845_s15 + $0x238] sm:$0xff]  }
  0x3b   : > { %6615 = vmatpush3.bf16.msra.mxu0 %v7322_v58  ;;  %v1193_v58 = vld [vmem:[%s7881_s20 + $0x10] sm:$0xff] }
  0x3c   : > { %6616 = vmatprep.subr.bf16.mxu0 %v7324_v60  ;;  %6637 = vmatpush3.bf16.msra.mxu1 %v7323_v59  ;;  %v7376_v59 = vld [vmem:[%s7845_s15 + $0x2b8] sm:$0xff]   ;;  %v1264_v60 = vrot.slane %v1193_v58, %v7883_v35 }
  0x3d   : > { %6638 = vmatprep.subr.bf16.mxu1 %v7325_v61  ;;  %v1257_v61 = vcombine.high %v1193_v58, %v1193_v58  ;;  %v7421_v58 = vld [vmem:[%s7845_s15 + $0x410] sm:$0xff]  }
  0x3f   : > { %6617 = vmatpush3.bf16.msra.mxu0 %v7326_v62  ;;  %v7378_v62 = vld [vmem:[%s7845_s15 + $0x340] sm:$0xff]  }
  0x40   : > { %6618 = vmatprep.subr.bf16.mxu0 %v7328_v0  ;;  %6639 = vmatpush3.bf16.msra.mxu1 %v7327_v63  ;;  %v1272_v63 = vcombine.high %v1264_v60, %v1264_v60  ;;  %v1271_v0 = vrot.slane %v1257_v61, %v7883_v35  ;;  %v7424_v61 = vld [vmem:[%s7845_s15 + $0x4d8] sm:$0xff]  }
  0x41   : > { %6640 = vmatprep.subr.bf16.mxu1 %v7329_v1  ;;  %v7379_v1 = vld [vmem:[%s7845_s15 + $0x3c0] sm:$0xff]  }
  0x43   : > { %6619 = vmatpush3.bf16.msra.mxu0 %v7330_v2  ;;  %v1567_v2 = vpack.c.bf16 %v1264_v60, %v1264_v60  ;;  %v7423_v60 = vld [vmem:[%s7845_s15 + $0x458] sm:$0xff]  }
  0x44   : > { %6620 = vmatprep.subr.bf16.mxu0 %v7332_v4  ;;  %6641 = vmatpush3.bf16.msra.mxu1 %v7331_v3  ;;  %v7380_v3 = vld [vmem:[%s7845_s15 + $0x300] sm:$0xff]   ;;  %v1568_v4 = vpack.c.bf16 %v1272_v63, %v1272_v63  ;;  %v7426_v63 = vld [vmem:[%s7845_s15 + $0x498] sm:$0xff]  }
  0x45   : > { %6642 = vmatprep.subr.bf16.mxu1 %v7333_v5  ;;  %v1273_v5 = vcombine.high %v1271_v0, %v1271_v0 }
  0x47   : > { %6621 = vmatpush3.bf16.msra.mxu0 %v7334_v6  ;;  %v7381_v6 = vld [vmem:[%s7845_s15 + $0x380] sm:$0xff]  }
  0x48   : > { %6622 = vmatprep.subr.bf16.mxu0 %v7336_v8  ;;  %6643 = vmatpush3.bf16.msra.mxu1 %v7335_v7  ;;  %v1569_v7 = vpack.c.bf16 %v1271_v0, %v1271_v0  ;;  %v7382_v8 = vld [vmem:[%s7845_s15 + $0x348] sm:$0xff]   ;;  %v7427_v0 = vld [vmem:[%s7845_s15 + $0x460] sm:$0xff]  }
  0x49   : > { %6644 = vmatprep.subr.bf16.mxu1 %v7337_v9  ;;  %v1570_v9 = vpack.c.bf16 %v1273_v5, %v1273_v5  ;;  %v7432_v5 = vld [vmem:[%s7845_s15 + $0x4e8] sm:$0xff]  }
  0x4b   : > { %6623 = vmatpush3.bf16.msra.mxu0 %v7338_v10  ;;  %v7383_v10 = vld [vmem:[%s7845_s15 + $0x3c8] sm:$0xff]  }
  0x4c   : > { %6624 = vmatprep.subr.bf16.mxu0 %v7340_v12  ;;  %6645 = vmatpush3.bf16.msra.mxu1 %v7339_v11  ;;  %v7384_v11 = vld [vmem:[%s7845_s15 + $0x308] sm:$0xff]  }
  0x4d   : > { %6646 = vmatprep.subr.bf16.mxu1 %v7341_v13  ;;  %v7385_v12 = vld [vmem:[%s7845_s15 + $0x388] sm:$0xff]   ;;  %v7386_v13 = vld [vmem:[%s7845_s15 + $0x350] sm:$0xff]  }
  0x4f   : > { %6625 = vmatpush3.bf16.msra.mxu0 %v7342_v14  ;;  %v7387_v14 = vld [vmem:[%s7845_s15 + $0x3d0] sm:$0xff]  }
  0x50   : > { %6654 = vmatprep.subr.bf16.mxu0 %v7345_v19  ;;  %6647 = vmatpush3.bf16.msra.mxu1 %v7343_v16  ;;  %v7389_v16 = vld [vmem:[%s7845_s15 + $0x390] sm:$0xff]   ;;  %v7392_v19 = vld [vmem:[%s7845_s15 + $0x318] sm:$0xff]  }
  0x51   : > { %6676 = vmatprep.subr.bf16.mxu1 %v7346_v22  ;;  %v7395_v22 = vld [vmem:[%s7845_s15 + $0x3e0] sm:$0xff]  }
  0x52   : > { %4808 = vmatmul.mubr.bf16.vlgmr.msra.gmra.mrb[4].mxu0 %v1563_v23  ;;  %v7396_v23 = vld [vmem:[%s7845_s15 + $0x320] sm:$0xff]  }
  0x53   : > { %6655 = vmatpush3.bf16.msra.mxu0 %v7347_v24  ;;  %4848 = vmatmul.mubr.bf16.vlgmr.msra.gmra.mrb[4].mxu1 %v1565_v28  ;;  %v7397_v24 = vld [vmem:[%s7845_s15 + $0x3a0] sm:$0xff]   ;;  %v7401_v28 = vld [vmem:[%s7845_s15 + $0x3a8] sm:$0xff]  }
  0x54   : > { %6656 = vmatprep.subr.bf16.mxu0 %v7349_v29  ;;  %6677 = vmatpush3.bf16.msra.mxu1 %v7348_v27  ;;  %v7400_v27 = vld [vmem:[%s7845_s15 + $0x328] sm:$0xff]   ;;  %v7402_v29 = vld [vmem:[%s7845_s15 + $0x370] sm:$0xff]  }
  0x55   : > { %6678 = vmatprep.subr.bf16.mxu1 %v7350_v31  ;;  %4887 = vmatprep.mubr.bf16.mxu0 %v1568_v4  ;;  %v7404_v31 = vld [vmem:[%s7845_s15 + $0x330] sm:$0xff]   ;;  %v7431_v4 = vld [vmem:[%s7845_s15 + $0x468] sm:$0xff]  }
  0x56   : > { %4927 = vmatprep.mubr.bf16.mxu1 %v1570_v9  ;;  %v7436_v9 = vld [vmem:[%s7845_s15 + $0x4f0] sm:$0xff]  }
  0x57   : > { %6657 = vmatpush3.bf16.msra.mxu0 %v7351_v32  ;;  %v7405_v32 = vld [vmem:[%s7845_s15 + $0x3b0] sm:$0xff]  }
  0x58   : > { %6658 = vmatprep.subr.bf16.mxu0 %v7353_v34  ;;  %6679 = vmatpush3.bf16.msra.mxu1 %v7352_v33  ;;  %v7406_v33 = vld [vmem:[%s7845_s15 + $0x378] sm:$0xff]  }
  0x59   : > { %6680 = vmatprep.subr.bf16.mxu1 %v7354_v36  ;;  %v7407_v34 = vld [vmem:[%s7845_s15 + $0x3f8] sm:$0xff]  }
  0x5a   : > { %v7408_v36 = vld [vmem:[%s7845_s15 + $0x338] sm:$0xff]  }
  0x5b   : > { %6659 = vmatpush3.bf16.msra.mxu0 %v7355_v37  ;;  %v1194_v37 = vld [vmem:[%s7881_s20 + $0x18] sm:$0xff] }
  0x5c   : > { %6660 = vmatprep.subr.bf16.mxu0 %v7357_v39  ;;  %6681 = vmatpush3.bf16.msra.mxu1 %v7356_v38  ;;  %v1281_v38 = vrot.slane %v1194_v37, %v7883_v35  ;;  %v1274_v39 = vcombine.high %v1194_v37, %v1194_v37  ;;  %v7454_v37 = vld [vmem:[%s7845_s15 + $0x510] sm:$0xff]  }
  0x5d   : > { %6682 = vmatprep.subr.bf16.mxu1 %v7358_v40  ;;  %v7411_v40 = vld [vmem:[%s7845_s15 + $0x440] sm:$0xff]  }
  0x5f   : > { %6661 = vmatpush3.bf16.msra.mxu0 %v7359_v41  ;;  %v7409_v41 = vld [vmem:[%s7845_s15 + $0x3b8] sm:$0xff]  }
  0x60   : > { %6662 = vmatprep.subr.bf16.mxu0 %v7361_v43  ;;  %6683 = vmatpush3.bf16.msra.mxu1 %v7360_v42  ;;  %v1289_v42 = vcombine.high %v1281_v38, %v1281_v38  ;;  %v1288_v43 = vrot.slane %v1274_v39, %v7883_v35  ;;  %v7456_v39 = vld [vmem:[%s7845_s15 + $0x558] sm:$0xff]  }
  0x61   : > { %6684 = vmatprep.subr.bf16.mxu1 %v7362_v44  ;;  %v7412_v44 = vld [vmem:[%s7845_s15 + $0x4c0] sm:$0xff]  }
  0x63   : > { %6663 = vmatpush3.bf16.msra.mxu0 %v7363_v45  ;;  %v1571_v45 = vpack.c.bf16 %v1281_v38, %v1281_v38  ;;  %v7455_v38 = vld [vmem:[%s7845_s15 + $0x590] sm:$0xff]  }
  0x64   : > { %6664 = vmatprep.subr.bf16.mxu0 %v7365_v47  ;;  %6685 = vmatpush3.bf16.msra.mxu1 %v7364_v46  ;;  %v7413_v46 = vld [vmem:[%s7845_s15 + $0x400] sm:$0xff]   ;;  %v1572_v47 = vpack.c.bf16 %v1289_v42, %v1289_v42  ;;  %v7459_v42 = vld [vmem:[%s7845_s15 + $0x598] sm:$0xff]  }
  0x65   : > { %6686 = vmatprep.subr.bf16.mxu1 %v7366_v48  ;;  %v1290_v48 = vcombine.high %v1288_v43, %v1288_v43 }
  0x67   : > { %6665 = vmatpush3.bf16.msra.mxu0 %v7367_v49  ;;  %v7414_v49 = vld [vmem:[%s7845_s15 + $0x480] sm:$0xff]  }
  0x68   : > { %6666 = vmatprep.subr.bf16.mxu0 %v7369_v51  ;;  %6687 = vmatpush3.bf16.msra.mxu1 %v7368_v50  ;;  %v1573_v50 = vpack.c.bf16 %v1288_v43, %v1288_v43  ;;  %v7415_v51 = vld [vmem:[%s7845_s15 + $0x448] sm:$0xff]   ;;  %v7460_v43 = vld [vmem:[%s7845_s15 + $0x560] sm:$0xff]  }
  0x69   : > { %6688 = vmatprep.subr.bf16.mxu1 %v7370_v52  ;;  %v1574_v52 = vpack.c.bf16 %v1290_v48, %v1290_v48  ;;  %v7465_v48 = vld [vmem:[%s7845_s15 + $0x5e8] sm:$0xff]  }
  0x6b   : > { %6667 = vmatpush3.bf16.msra.mxu0 %v7371_v53  ;;  %v7416_v53 = vld [vmem:[%s7845_s15 + $0x4c8] sm:$0xff]  }
  0x6c   : > { %6668 = vmatprep.subr.bf16.mxu0 %v7373_v55  ;;  %6689 = vmatpush3.bf16.msra.mxu1 %v7372_v54  ;;  %v7417_v54 = vld [vmem:[%s7845_s15 + $0x408] sm:$0xff]  }
  0x6d   : > { %6690 = vmatprep.subr.bf16.mxu1 %v7374_v56  ;;  %v7418_v55 = vld [vmem:[%s7845_s15 + $0x488] sm:$0xff]   ;;  %v7419_v56 = vld [vmem:[%s7845_s15 + $0x450] sm:$0xff]  }
  0x6f   : > { %6669 = vmatpush3.bf16.msra.mxu0 %v7375_v57  ;;  %v7420_v57 = vld [vmem:[%s7845_s15 + $0x4d0] sm:$0xff]  }
  0x70   : > { %6698 = vmatprep.subr.bf16.mxu0 %v7378_v62  ;;  %6691 = vmatpush3.bf16.msra.mxu1 %v7376_v59  ;;  %v7422_v59 = vld [vmem:[%s7845_s15 + $0x490] sm:$0xff]   ;;  %v7425_v62 = vld [vmem:[%s7845_s15 + $0x418] sm:$0xff]  }
  0x71   : > { %6720 = vmatprep.subr.bf16.mxu1 %v7379_v1  ;;  %v7428_v1 = vld [vmem:[%s7845_s15 + $0x4e0] sm:$0xff]  }
  0x72   : > { %4888 = vmatmul.mubr.bf16.vlgmr.msra.gmra.mrb[8].mxu0 %v1567_v2  ;;  %v7429_v2 = vld [vmem:[%s7845_s15 + $0x420] sm:$0xff]  }
  0x73   : > { %6699 = vmatpush3.bf16.msra.mxu0 %v7380_v3  ;;  %4928 = vmatmul.mubr.bf16.vlgmr.msra.gmra.mrb[8].mxu1 %v1569_v7  ;;  %v7430_v3 = vld [vmem:[%s7845_s15 + $0x4a0] sm:$0xff]   ;;  %v7434_v7 = vld [vmem:[%s7845_s15 + $0x4a8] sm:$0xff]  }
  0x74   : > { %6700 = vmatprep.subr.bf16.mxu0 %v7382_v8  ;;  %6721 = vmatpush3.bf16.msra.mxu1 %v7381_v6  ;;  %v7433_v6 = vld [vmem:[%s7845_s15 + $0x428] sm:$0xff]   ;;  %v7435_v8 = vld [vmem:[%s7845_s15 + $0x470] sm:$0xff]  }
  0x75   : > { %6722 = vmatprep.subr.bf16.mxu1 %v7383_v10  ;;  %4967 = vmatprep.mubr.bf16.mxu0 %v1572_v47  ;;  %v7437_v10 = vld [vmem:[%s7845_s15 + $0x430] sm:$0xff]   ;;  %v7464_v47 = vld [vmem:[%s7845_s15 + $0x568] sm:$0xff]  }
  0x76   : > { %5007 = vmatprep.mubr.bf16.mxu1 %v1574_v52  ;;  %v7469_v52 = vld [vmem:[%s7845_s15 + $0x5f0] sm:$0xff]  }
  0x77   : > { %6701 = vmatpush3.bf16.msra.mxu0 %v7384_v11  ;;  %v7438_v11 = vld [vmem:[%s7845_s15 + $0x4b0] sm:$0xff]  }
  0x78   : > { %6702 = vmatprep.subr.bf16.mxu0 %v7386_v13  ;;  %6723 = vmatpush3.bf16.msra.mxu1 %v7385_v12  ;;  %v7439_v12 = vld [vmem:[%s7845_s15 + $0x478] sm:$0xff]  }
  0x79   : > { %6724 = vmatprep.subr.bf16.mxu1 %v7387_v14  ;;  %v7440_v13 = vld [vmem:[%s7845_s15 + $0x4f8] sm:$0xff]  }
  0x7a   : > { %v7441_v14 = vld [vmem:[%s7845_s15 + $0x438] sm:$0xff]  }
  0x7b   : > { %6703 = vmatpush3.bf16.msra.mxu0 %v7388_v15  ;;  %v1195_v15 = vld [vmem:[%s7881_s20 + $0x20] sm:$0xff] }
  0x7c   : > { %6704 = vmatprep.subr.bf16.mxu0 %v7390_v17  ;;  %6725 = vmatpush3.bf16.msra.mxu1 %v7389_v16  ;;  %v7442_v16 = vld [vmem:[%s7845_s15 + $0x4b8] sm:$0xff]   ;;  %v1298_v17 = vrot.slane %v1195_v15, %v7883_v35 }
  0x7d   : > { %6726 = vmatprep.subr.bf16.mxu1 %v7391_v18  ;;  %v1291_v18 = vcombine.high %v1195_v15, %v1195_v15  ;;  %v7487_v15 = vld [vmem:[%s7845_s15 + $0x610] sm:$0xff]  }
  0x7f   : > { %6705 = vmatpush3.bf16.msra.mxu0 %v7392_v19  ;;  %v7444_v19 = vld [vmem:[%s7845_s15 + $0x540] sm:$0xff]  }
  0x80   : > { %6706 = vmatprep.subr.bf16.mxu0 %v7394_v21  ;;  %6727 = vmatpush3.bf16.msra.mxu1 %v7393_v20  ;;  %v1306_v20 = vcombine.high %v1298_v17, %v1298_v17  ;;  %v1305_v21 = vrot.slane %v1291_v18, %v7883_v35  ;;  %v7490_v18 = vld [vmem:[%s7845_s15 + $0x6d8] sm:$0xff]  }
  0x81   : > { %6728 = vmatprep.subr.bf16.mxu1 %v7395_v22  ;;  %v7445_v22 = vld [vmem:[%s7845_s15 + $0x5c0] sm:$0xff]  }
  0x83   : > { %6707 = vmatpush3.bf16.msra.mxu0 %v7396_v23  ;;  %v1575_v23 = vpack.c.bf16 %v1298_v17, %v1298_v17  ;;  %v7489_v17 = vld [vmem:[%s7845_s15 + $0x658] sm:$0xff]  }
  0x84   : > { %6708 = vmatprep.subr.bf16.mxu0 %v7398_v25  ;;  %6729 = vmatpush3.bf16.msra.mxu1 %v7397_v24  ;;  %v7446_v24 = vld [vmem:[%s7845_s15 + $0x500] sm:$0xff]   ;;  %v1576_v25 = vpack.c.bf16 %v1306_v20, %v1306_v20  ;;  %v7492_v20 = vld [vmem:[%s7845_s15 + $0x698] sm:$0xff]  }
  0x85   : > { %6730 = vmatprep.subr.bf16.mxu1 %v7399_v26  ;;  %v1307_v26 = vcombine.high %v1305_v21, %v1305_v21 }
  0x87   : > { %6709 = vmatpush3.bf16.msra.mxu0 %v7400_v27  ;;  %v7447_v27 = vld [vmem:[%s7845_s15 + $0x580] sm:$0xff]  }
  0x88   : > { %6710 = vmatprep.subr.bf16.mxu0 %v7402_v29  ;;  %6731 = vmatpush3.bf16.msra.mxu1 %v7401_v28  ;;  %v1577_v28 = vpack.c.bf16 %v1305_v21, %v1305_v21  ;;  %v7448_v29 = vld [vmem:[%s7845_s15 + $0x548] sm:$0xff]   ;;  %v7493_v21 = vld [vmem:[%s7845_s15 + $0x660] sm:$0xff]  }
  0x89   : > { %6732 = vmatprep.subr.bf16.mxu1 %v7403_v30  ;;  %v1578_v30 = vpack.c.bf16 %v1307_v26, %v1307_v26  ;;  %v7498_v26 = vld [vmem:[%s7845_s15 + $0x6e8] sm:$0xff]  }
  0x8b   : > { %6711 = vmatpush3.bf16.msra.mxu0 %v7404_v31  ;;  %v7449_v31 = vld [vmem:[%s7845_s15 + $0x5c8] sm:$0xff]  }
  0x8c   : > { %6712 = vmatprep.subr.bf16.mxu0 %v7406_v33  ;;  %6733 = vmatpush3.bf16.msra.mxu1 %v7405_v32  ;;  %v7450_v32 = vld [vmem:[%s7845_s15 + $0x508] sm:$0xff]  }
  0x8d   : > { %6734 = vmatprep.subr.bf16.mxu1 %v7407_v34  ;;  %v7451_v33 = vld [vmem:[%s7845_s15 + $0x588] sm:$0xff]   ;;  %v7452_v34 = vld [vmem:[%s7845_s15 + $0x550] sm:$0xff]  }
  0x8f   : > { %6713 = vmatpush3.bf16.msra.mxu0 %v7408_v36  ;;  %v7453_v36 = vld [vmem:[%s7845_s15 + $0x5d0] sm:$0xff]  }
  0x90   : > { %6742 = vmatprep.subr.bf16.mxu0 %v7411_v40  ;;  %6735 = vmatpush3.bf16.msra.mxu1 %v7409_v41  ;;  %v7457_v40 = vld [vmem:[%s7845_s15 + $0x5d8] sm:$0xff]  }
  0x91   : > { %6764 = vmatprep.subr.bf16.mxu1 %v7412_v44  ;;  %v7458_v41 = vld [vmem:[%s7845_s15 + $0x518] sm:$0xff]   ;;  %v7461_v44 = vld [vmem:[%s7845_s15 + $0x5e0] sm:$0xff]  }
  0x92   : > { %4968 = vmatmul.mubr.bf16.vlgmr.msra.gmra.mrb[12].mxu0 %v1571_v45  ;;  %v7462_v45 = vld [vmem:[%s7845_s15 + $0x520] sm:$0xff]  }
  0x93   : > { %6743 = vmatpush3.bf16.msra.mxu0 %v7413_v46  ;;  %5008 = vmatmul.mubr.bf16.vlgmr.msra.gmra.mrb[12].mxu1 %v1573_v50  ;;  %v7463_v46 = vld [vmem:[%s7845_s15 + $0x5a0] sm:$0xff]   ;;  %v7467_v50 = vld [vmem:[%s7845_s15 + $0x5a8] sm:$0xff]  }
  0x94   : > { %6744 = vmatprep.subr.bf16.mxu0 %v7415_v51  ;;  %6765 = vmatpush3.bf16.msra.mxu1 %v7414_v49  ;;  %v7466_v49 = vld [vmem:[%s7845_s15 + $0x528] sm:$0xff]   ;;  %v7468_v51 = vld [vmem:[%s7845_s15 + $0x570] sm:$0xff]  }
  0x95   : > { %6766 = vmatprep.subr.bf16.mxu1 %v7416_v53  ;;  %5047 = vmatprep.mubr.bf16.mxu0 %v1576_v25  ;;  %v7470_v53 = vld [vmem:[%s7845_s15 + $0x530] sm:$0xff]   ;;  %v7497_v25 = vld [vmem:[%s7845_s15 + $0x668] sm:$0xff]  }
  0x96   : > { %5087 = vmatprep.mubr.bf16.mxu1 %v1578_v30  ;;  %v7502_v30 = vld [vmem:[%s7845_s15 + $0x6f0] sm:$0xff]  }
  0x97   : > { %6745 = vmatpush3.bf16.msra.mxu0 %v7417_v54  ;;  %v7471_v54 = vld [vmem:[%s7845_s15 + $0x5b0] sm:$0xff]  }
  0x98   : > { %6746 = vmatprep.subr.bf16.mxu0 %v7419_v56  ;;  %6767 = vmatpush3.bf16.msra.mxu1 %v7418_v55  ;;  %v7472_v55 = vld [vmem:[%s7845_s15 + $0x578] sm:$0xff]  }
  0x99   : > { %6768 = vmatprep.subr.bf16.mxu1 %v7420_v57  ;;  %v7473_v56 = vld [vmem:[%s7845_s15 + $0x5f8] sm:$0xff]  }
  0x9a   : > { %v7474_v57 = vld [vmem:[%s7845_s15 + $0x538] sm:$0xff]  }
  0x9b   : > { %6747 = vmatpush3.bf16.msra.mxu0 %v7421_v58  ;;  %v1196_v58 = vld [vmem:[%s7881_s20 + $0x28] sm:$0xff] }
  0x9c   : > { %6748 = vmatprep.subr.bf16.mxu0 %v7423_v60  ;;  %6769 = vmatpush3.bf16.msra.mxu1 %v7422_v59  ;;  %v7475_v59 = vld [vmem:[%s7845_s15 + $0x5b8] sm:$0xff]   ;;  %v1315_v60 = vrot.slane %v1196_v58, %v7883_v35 }
  0x9d   : > { %6770 = vmatprep.subr.bf16.mxu1 %v7424_v61  ;;  %v1308_v61 = vcombine.high %v1196_v58, %v1196_v58  ;;  %v7520_v58 = vld [vmem:[%s7845_s15 + $0x710] sm:$0xff]  }
  0x9f   : > { %6749 = vmatpush3.bf16.msra.mxu0 %v7425_v62  ;;  %v7477_v62 = vld [vmem:[%s7845_s15 + $0x640] sm:$0xff]  }
  0xa0   : > { %6750 = vmatprep.subr.bf16.mxu0 %v7427_v0  ;;  %6771 = vmatpush3.bf16.msra.mxu1 %v7426_v63  ;;  %v1323_v63 = vcombine.high %v1315_v60, %v1315_v60  ;;  %v1322_v0 = vrot.slane %v1308_v61, %v7883_v35  ;;  %v7523_v61 = vld [vmem:[%s7845_s15 + $0x7d8] sm:$0xff]  }
  0xa1   : > { %6772 = vmatprep.subr.bf16.mxu1 %v7428_v1  ;;  %v7478_v1 = vld [vmem:[%s7845_s15 + $0x6c0] sm:$0xff]  }
  0xa3   : > { %6751 = vmatpush3.bf16.msra.mxu0 %v7429_v2  ;;  %v1579_v2 = vpack.c.bf16 %v1315_v60, %v1315_v60  ;;  %v7522_v60 = vld [vmem:[%s7845_s15 + $0x758] sm:$0xff]  }
  0xa4   : > { %6752 = vmatprep.subr.bf16.mxu0 %v7431_v4  ;;  %6773 = vmatpush3.bf16.msra.mxu1 %v7430_v3  ;;  %v7479_v3 = vld [vmem:[%s7845_s15 + $0x600] sm:$0xff]   ;;  %v1580_v4 = vpack.c.bf16 %v1323_v63, %v1323_v63  ;;  %v7525_v63 = vld [vmem:[%s7845_s15 + $0x798] sm:$0xff]  }
  0xa5   : > { %6774 = vmatprep.subr.bf16.mxu1 %v7432_v5  ;;  %v1324_v5 = vcombine.high %v1322_v0, %v1322_v0 }
  0xa7   : > { %6753 = vmatpush3.bf16.msra.mxu0 %v7433_v6  ;;  %v7480_v6 = vld [vmem:[%s7845_s15 + $0x680] sm:$0xff]  }
  0xa8   : > { %6754 = vmatprep.subr.bf16.mxu0 %v7435_v8  ;;  %6775 = vmatpush3.bf16.msra.mxu1 %v7434_v7  ;;  %v1581_v7 = vpack.c.bf16 %v1322_v0, %v1322_v0  ;;  %v7481_v8 = vld [vmem:[%s7845_s15 + $0x648] sm:$0xff]   ;;  %v7526_v0 = vld [vmem:[%s7845_s15 + $0x760] sm:$0xff]  }
  0xa9   : > { %6776 = vmatprep.subr.bf16.mxu1 %v7436_v9  ;;  %v1582_v9 = vpack.c.bf16 %v1324_v5, %v1324_v5  ;;  %v7531_v5 = vld [vmem:[%s7845_s15 + $0x7e8] sm:$0xff]  }
  0xab   : > { %6755 = vmatpush3.bf16.msra.mxu0 %v7437_v10  ;;  %v7482_v10 = vld [vmem:[%s7845_s15 + $0x6c8] sm:$0xff]  }
  0xac   : > { %6756 = vmatprep.subr.bf16.mxu0 %v7439_v12  ;;  %6777 = vmatpush3.bf16.msra.mxu1 %v7438_v11  ;;  %v7483_v11 = vld [vmem:[%s7845_s15 + $0x608] sm:$0xff]  }
  0xad   : > { %6778 = vmatprep.subr.bf16.mxu1 %v7440_v13  ;;  %v7484_v12 = vld [vmem:[%s7845_s15 + $0x688] sm:$0xff]   ;;  %v7485_v13 = vld [vmem:[%s7845_s15 + $0x650] sm:$0xff]  }
  0xaf   : > { %6757 = vmatpush3.bf16.msra.mxu0 %v7441_v14  ;;  %v7486_v14 = vld [vmem:[%s7845_s15 + $0x6d0] sm:$0xff]  }
  0xb0   : > { %6786 = vmatprep.subr.bf16.mxu0 %v7444_v19  ;;  %6779 = vmatpush3.bf16.msra.mxu1 %v7442_v16  ;;  %v7488_v16 = vld [vmem:[%s7845_s15 + $0x690] sm:$0xff]   ;;  %v7491_v19 = vld [vmem:[%s7845_s15 + $0x618] sm:$0xff]  }
  0xb1   : > { %6808 = vmatprep.subr.bf16.mxu1 %v7445_v22  ;;  %v7494_v22 = vld [vmem:[%s7845_s15 + $0x6e0] sm:$0xff]  }
  0xb2   : > { %5048 = vmatmul.mubr.bf16.vlgmr.msra.gmra.mrb[16].mxu0 %v1575_v23  ;;  %v7495_v23 = vld [vmem:[%s7845_s15 + $0x620] sm:$0xff]  }
  0xb3   : > { %6787 = vmatpush3.bf16.msra.mxu0 %v7446_v24  ;;  %5088 = vmatmul.mubr.bf16.vlgmr.msra.gmra.mrb[16].mxu1 %v1577_v28  ;;  %v7496_v24 = vld [vmem:[%s7845_s15 + $0x6a0] sm:$0xff]   ;;  %v7500_v28 = vld [vmem:[%s7845_s15 + $0x6a8] sm:$0xff]  }
  0xb4   : > { %6788 = vmatprep.subr.bf16.mxu0 %v7448_v29  ;;  %6809 = vmatpush3.bf16.msra.mxu1 %v7447_v27  ;;  %v7499_v27 = vld [vmem:[%s7845_s15 + $0x628] sm:$0xff]   ;;  %v7501_v29 = vld [vmem:[%s7845_s15 + $0x670] sm:$0xff]  }
  0xb5   : > { %6810 = vmatprep.subr.bf16.mxu1 %v7449_v31  ;;  %5127 = vmatprep.mubr.bf16.mxu0 %v1580_v4  ;;  %v7503_v31 = vld [vmem:[%s7845_s15 + $0x630] sm:$0xff]   ;;  %v7530_v4 = vld [vmem:[%s7845_s15 + $0x768] sm:$0xff]  }
  0xb6   : > { %5167 = vmatprep.mubr.bf16.mxu1 %v1582_v9 }
  0xb7   : > { %6789 = vmatpush3.bf16.msra.mxu0 %v7450_v32  ;;  %v7504_v32 = vld [vmem:[%s7845_s15 + $0x6b0] sm:$0xff]  }
  0xb8   : > { %6790 = vmatprep.subr.bf16.mxu0 %v7452_v34  ;;  %6811 = vmatpush3.bf16.msra.mxu1 %v7451_v33  ;;  %v7505_v33 = vld [vmem:[%s7845_s15 + $0x678] sm:$0xff]  }
  0xb9   : > { %6812 = vmatprep.subr.bf16.mxu1 %v7453_v36  ;;  %v7506_v34 = vld [vmem:[%s7845_s15 + $0x6f8] sm:$0xff]  }
  0xba   : > { %v7507_v36 = vld [vmem:[%s7845_s15 + $0x638] sm:$0xff]  }
  0xbb   : > { %6791 = vmatpush3.bf16.msra.mxu0 %v7454_v37  ;;  %v1197_v37 = vld [vmem:[%s7881_s20 + $0x30] sm:$0xff] }
  0xbc   : > { %6792 = vmatprep.subr.bf16.mxu0 %v7456_v39  ;;  %6813 = vmatpush3.bf16.msra.mxu1 %v7455_v38  ;;  %v1332_v38 = vrot.slane %v1197_v37, %v7883_v35  ;;  %v1325_v39 = vcombine.high %v1197_v37, %v1197_v37 }
  0xbd   : > { %6814 = vmatprep.subr.bf16.mxu1 %v7457_v40  ;;  %v7510_v40 = vld [vmem:[%s7845_s15 + $0x740] sm:$0xff]  }
  0xbf   : > { %6793 = vmatpush3.bf16.msra.mxu0 %v7458_v41  ;;  %v7508_v41 = vld [vmem:[%s7845_s15 + $0x6b8] sm:$0xff]  }
  0xc0   : > { %6794 = vmatprep.subr.bf16.mxu0 %v7460_v43  ;;  %6815 = vmatpush3.bf16.msra.mxu1 %v7459_v42  ;;  %v1340_v42 = vcombine.high %v1332_v38, %v1332_v38  ;;  %v1339_v43 = vrot.slane %v1325_v39, %v7883_v35  ;;  %v7546_v39 = vld [vmem:[%s7845_s15 + $0x880] sm:$0xff]  }
  0xc1   : > { %6816 = vmatprep.subr.bf16.mxu1 %v7461_v44  ;;  %v7511_v44 = vld [vmem:[%s7845_s15 + $0x7c0] sm:$0xff]  }
  0xc3   : > { %6795 = vmatpush3.bf16.msra.mxu0 %v7462_v45  ;;  %v1583_v45 = vpack.c.bf16 %v1332_v38, %v1332_v38 }
  0xc4   : > { %6796 = vmatprep.subr.bf16.mxu0 %v7464_v47  ;;  %6817 = vmatpush3.bf16.msra.mxu1 %v7463_v46  ;;  %v7512_v46 = vld [vmem:[%s7845_s15 + $0x700] sm:$0xff]   ;;  %v1584_v47 = vpack.c.bf16 %v1340_v42, %v1340_v42 }
  0xc5   : > { %6818 = vmatprep.subr.bf16.mxu1 %v7465_v48  ;;  %v1341_v48 = vcombine.high %v1339_v43, %v1339_v43 }
  0xc7   : > { %6797 = vmatpush3.bf16.msra.mxu0 %v7466_v49  ;;  %v7513_v49 = vld [vmem:[%s7845_s15 + $0x780] sm:$0xff]  }
  0xc8   : > { %6798 = vmatprep.subr.bf16.mxu0 %v7468_v51  ;;  %6819 = vmatpush3.bf16.msra.mxu1 %v7467_v50  ;;  %v1585_v50 = vpack.c.bf16 %v1339_v43, %v1339_v43  ;;  %v7514_v51 = vld [vmem:[%s7845_s15 + $0x748] sm:$0xff]  }
  0xc9   : > { %6820 = vmatprep.subr.bf16.mxu1 %v7469_v52  ;;  %v1586_v52 = vpack.c.bf16 %v1341_v48, %v1341_v48  ;;  %v7548_v43 = vld [vmem:[%s7845_s15 + $0x8c8] sm:$0xff]   ;;  %v7553_v48 = vld [vmem:[%s7845_s15 + $0x810] sm:$0xff]  }
  0xcb   : > { %6799 = vmatpush3.bf16.msra.mxu0 %v7470_v53  ;;  %v7515_v53 = vld [vmem:[%s7845_s15 + $0x7c8] sm:$0xff]  }
  0xcc   : > { %6800 = vmatprep.subr.bf16.mxu0 %v7472_v55  ;;  %6821 = vmatpush3.bf16.msra.mxu1 %v7471_v54  ;;  %v7516_v54 = vld [vmem:[%s7845_s15 + $0x708] sm:$0xff]  }
  0xcd   : > { %6822 = vmatprep.subr.bf16.mxu1 %v7473_v56  ;;  %v7517_v55 = vld [vmem:[%s7845_s15 + $0x788] sm:$0xff]   ;;  %v7518_v56 = vld [vmem:[%s7845_s15 + $0x750] sm:$0xff]  }
  0xcf   : > { %6801 = vmatpush3.bf16.msra.mxu0 %v7474_v57  ;;  %v7519_v57 = vld [vmem:[%s7845_s15 + $0x7d0] sm:$0xff]  }
  0xd0   : > { %6830 = vmatprep.subr.bf16.mxu0 %v7477_v62  ;;  %6823 = vmatpush3.bf16.msra.mxu1 %v7475_v59  ;;  %v7521_v59 = vld [vmem:[%s7845_s15 + $0x790] sm:$0xff]   ;;  %v7524_v62 = vld [vmem:[%s7845_s15 + $0x718] sm:$0xff]  }
  0xd1   : > { %6852 = vmatprep.subr.bf16.mxu1 %v7478_v1  ;;  %v7527_v1 = vld [vmem:[%s7845_s15 + $0x7e0] sm:$0xff]  }
  0xd2   : > { %5128 = vmatmul.mubr.bf16.vlgmr.msra.gmra.mrb[20].mxu0 %v1579_v2  ;;  %v7528_v2 = vld [vmem:[%s7845_s15 + $0x720] sm:$0xff]  }
  0xd3   : > { %6831 = vmatpush3.bf16.msra.mxu0 %v7479_v3  ;;  %5168 = vmatmul.mubr.bf16.vlgmr.msra.gmra.mrb[20].mxu1 %v1581_v7  ;;  %v7529_v3 = vld [vmem:[%s7845_s15 + $0x7a0] sm:$0xff]  }
  0xd4   : > { %6832 = vmatprep.subr.bf16.mxu0 %v7481_v8  ;;  %6853 = vmatpush3.bf16.msra.mxu1 %v7480_v6  ;;  %v7532_v6 = vld [vmem:[%s7845_s15 + $0x728] sm:$0xff]  }
  0xd5   : > { %6854 = vmatprep.subr.bf16.mxu1 %v7482_v10  ;;  %5207 = vmatprep.mubr.bf16.mxu0 %v1584_v47  ;;  %v7533_v8 = vld [vmem:[%s7845_s15 + $0x7a8] sm:$0xff]   ;;  %v7534_v10 = vld [vmem:[%s7845_s15 + $0x770] sm:$0xff]  }
  0xd6   : > { %5247 = vmatprep.mubr.bf16.mxu1 %v1586_v52  ;;  %v7552_v47 = vld [vmem:[%s7845_s15 + $0x8d0] sm:$0xff]   ;;  %v7557_v52 = vld [vmem:[%s7845_s15 + $0x818] sm:$0xff]  }
  0xd7   : > { %6833 = vmatpush3.bf16.msra.mxu0 %v7483_v11 }
  0xd8   : > { %6834 = vmatprep.subr.bf16.mxu0 %v7485_v13  ;;  %6855 = vmatpush3.bf16.msra.mxu1 %v7484_v12 }
  0xd9   : > { %6856 = vmatprep.subr.bf16.mxu1 %v7486_v14  ;;  %v7535_v14 = vld [vmem:[%s7845_s15 + $0x7f0] sm:$0xff]  }
  0xdb   : > { %6835 = vmatpush3.bf16.msra.mxu0 %v7487_v15  ;;  %v7536_v15 = vld [vmem:[%s7845_s15 + $0x730] sm:$0xff]  }
  0xdc   : > { %6836 = vmatprep.subr.bf16.mxu0 %v7489_v17  ;;  %6857 = vmatpush3.bf16.msra.mxu1 %v7488_v16 }
  0xdd   : > { %6858 = vmatprep.subr.bf16.mxu1 %v7490_v18 }
  0xdf   : > { %6837 = vmatpush3.bf16.msra.mxu0 %v7491_v19 }
  0xe0   : > { %6838 = vmatprep.subr.bf16.mxu0 %v7493_v21  ;;  %6859 = vmatpush3.bf16.msra.mxu1 %v7492_v20  ;;  %v7537_v20 = vld [vmem:[%s7845_s15 + $0x7b0] sm:$0xff]  }
  0xe1   : > { %6860 = vmatprep.subr.bf16.mxu1 %v7494_v22  ;;  %v7538_v22 = vld [vmem:[%s7845_s15 + $0x778] sm:$0xff]  }
  0xe3   : > { %6839 = vmatpush3.bf16.msra.mxu0 %v7495_v23 }
  0xe4   : > { %6840 = vmatprep.subr.bf16.mxu0 %v7497_v25  ;;  %6861 = vmatpush3.bf16.msra.mxu1 %v7496_v24  ;;  %v7539_v24 = vld [vmem:[%s7845_s15 + $0x7f8] sm:$0xff]  }
  0xe5   : > { %6862 = vmatprep.subr.bf16.mxu1 %v7498_v26  ;;  %v7540_v25 = vld [vmem:[%s7845_s15 + $0x738] sm:$0xff]  }
  0xe6   : > { %v1198_v26 = vld [vmem:[%s7881_s20 + $0x38] sm:$0xff] }
  0xe7   : > { %6841 = vmatpush3.bf16.msra.mxu0 %v7499_v27  ;;  %v7541_v27 = vld [vmem:[%s7845_s15 + $0x7b8] sm:$0xff]  }
  0xe8   : > { %6842 = vmatprep.subr.bf16.mxu0 %v7501_v29  ;;  %6863 = vmatpush3.bf16.msra.mxu1 %v7500_v28  ;;  %v1349_v28 = vrot.slane %v1198_v26, %v7883_v35  ;;  %v1342_v29 = vcombine.high %v1198_v26, %v1198_v26  ;;  %v7578_v26 = vld [vmem:[%s7845_s15 + $0x900] sm:$0xff]  }
  0xe9   : > { %6864 = vmatprep.subr.bf16.mxu1 %v7502_v30  ;;  %v7543_v30 = vld [vmem:[%s7845_s15 + $0x840] sm:$0xff]  }
  0xeb   : > { %6843 = vmatpush3.bf16.msra.mxu0 %v7503_v31  ;;  %v1357_v31 = vcombine.high %v1349_v28, %v1349_v28 }
  0xec   : > { %6844 = vmatprep.subr.bf16.mxu0 %v7505_v33  ;;  %6865 = vmatpush3.bf16.msra.mxu1 %v7504_v32  ;;  %v1356_v32 = vrot.slane %v1342_v29, %v7883_v35  ;;  %v7544_v33 = vld [vmem:[%s7845_s15 + $0x8c0] sm:$0xff]  }
  0xed   : > { %6866 = vmatprep.subr.bf16.mxu1 %v7506_v34  ;;  %v1587_v34 = vpack.c.bf16 %v1349_v28, %v1349_v28  ;;  %v1588_v37 = vpack.c.bf16 %v1357_v31, %v1357_v31  ;;  %v7579_v29 = vld [vmem:[%s7845_s15 + $0x980] sm:$0xff]   ;;  %v7580_v31 = vld [vmem:[%s7845_s15 + $0x948] sm:$0xff]  }
  0xee   : > { %v1358_v38 = vcombine.high %v1356_v32, %v1356_v32 }
  0xef   : > { %6845 = vmatpush3.bf16.msra.mxu0 %v7507_v36  ;;  %v7545_v36 = vld [vmem:[%s7845_s15 + $0x800] sm:$0xff]  }
  0xf0   : > { %6874 = vmatprep.subr.bf16.mxu0 %v7510_v40  ;;  %6867 = vmatpush3.bf16.msra.mxu1 %v7508_v41  ;;  %v1589_v40 = vpack.c.bf16 %v1356_v32, %v1356_v32  ;;  %v7547_v41 = vld [vmem:[%s7845_s15 + $0x848] sm:$0xff]   ;;  %v1590_v42 = vpack.c.bf16 %v1358_v38, %v1358_v38  ;;  %v7585_v38 = vld [vmem:[%s7845_s15 + $0x9d0] sm:$0xff]  }
  0xf1   : > { %6896 = vmatprep.subr.bf16.mxu1 %v7511_v44  ;;  %v7549_v44 = vld [vmem:[%s7845_s15 + $0x808] sm:$0xff]  }
  0xf2   : > { %5208 = vmatmul.mubr.bf16.vlgmr.msra.gmra.mrb[24].mxu0 %v1583_v45  ;;  %v7550_v45 = vld [vmem:[%s7845_s15 + $0x888] sm:$0xff]  }
  0xf3   : > { %6875 = vmatpush3.bf16.msra.mxu0 %v7512_v46  ;;  %5248 = vmatmul.mubr.bf16.vlgmr.msra.gmra.mrb[24].mxu1 %v1585_v50  ;;  %v7551_v46 = vld [vmem:[%s7845_s15 + $0x850] sm:$0xff]   ;;  %v7555_v50 = vld [vmem:[%s7845_s15 + $0x858] sm:$0xff]  }
  0xf4   : > { %6876 = vmatprep.subr.bf16.mxu0 %v7514_v51  ;;  %6897 = vmatpush3.bf16.msra.mxu1 %v7513_v49  ;;  %v7554_v49 = vld [vmem:[%s7845_s15 + $0x890] sm:$0xff]   ;;  %v7556_v51 = vld [vmem:[%s7845_s15 + $0x8d8] sm:$0xff]  }
  0xf5   : > { %6898 = vmatprep.subr.bf16.mxu1 %v7515_v53  ;;  %5287 = vmatprep.mubr.bf16.mxu0 %v1588_v37  ;;  %v7558_v53 = vld [vmem:[%s7845_s15 + $0x898] sm:$0xff]   ;;  %v7584_v37 = vld [vmem:[%s7845_s15 + $0x950] sm:$0xff]  }
  0xf6   : > { %5327 = vmatprep.mubr.bf16.mxu1 %v1590_v42  ;;  %v7589_v42 = vld [vmem:[%s7845_s15 + $0x9d8] sm:$0xff]  }
  0xf7   : > { %6877 = vmatpush3.bf16.msra.mxu0 %v7516_v54  ;;  %v7559_v54 = vld [vmem:[%s7845_s15 + $0x860] sm:$0xff]  }
  0xf8   : > { %6878 = vmatprep.subr.bf16.mxu0 %v7518_v56  ;;  %6899 = vmatpush3.bf16.msra.mxu1 %v7517_v55  ;;  %v7560_v55 = vld [vmem:[%s7845_s15 + $0x8e0] sm:$0xff]  }
  0xf9   : > { %6900 = vmatprep.subr.bf16.mxu1 %v7519_v57  ;;  %v7561_v56 = vld [vmem:[%s7845_s15 + $0x820] sm:$0xff]  }
  0xfa   : > { %v7562_v57 = vld [vmem:[%s7845_s15 + $0x8a0] sm:$0xff]  }
  0xfb   : > { %6879 = vmatpush3.bf16.msra.mxu0 %v7520_v58  ;;  %v7563_v58 = vld [vmem:[%s7845_s15 + $0x868] sm:$0xff]  }
  0xfc   : > { %6880 = vmatprep.subr.bf16.mxu0 %v7522_v60  ;;  %6901 = vmatpush3.bf16.msra.mxu1 %v7521_v59  ;;  %v7564_v59 = vld [vmem:[%s7845_s15 + $0x8e8] sm:$0xff]  }
  0xfd   : > { %6902 = vmatprep.subr.bf16.mxu1 %v7523_v61  ;;  %v7565_v60 = vld [vmem:[%s7845_s15 + $0x828] sm:$0xff]  }
  0xff   : > { %6881 = vmatpush3.bf16.msra.mxu0 %v7524_v62  ;;  %v7566_v62 = vld [vmem:[%s7845_s15 + $0x8a8] sm:$0xff]  }
 0x100   : > { %6882 = vmatprep.subr.bf16.mxu0 %v7526_v0  ;;  %6903 = vmatpush3.bf16.msra.mxu1 %v7525_v63  ;;  %v7567_v0 = vld [vmem:[%s7845_s15 + $0x870] sm:$0xff]  }
 0x101   : > { %6904 = vmatprep.subr.bf16.mxu1 %v7527_v1 }
 0x103   : > { %6883 = vmatpush3.bf16.msra.mxu0 %v7528_v2 }
 0x104   : > { %6884 = vmatprep.subr.bf16.mxu0 %v7530_v4  ;;  %6905 = vmatpush3.bf16.msra.mxu1 %v7529_v3 }
 0x105   : > { %v6582_v7 = vpop.f32.mrb[0].mxu0  ;;  %6906 = vmatprep.subr.bf16.mxu1 %v7531_v5 }
 0x106   : > { %v6583_v9 = vpop.f32.mrb[1].mxu0  ;;  %v6604_v11 = vpop.f32.mrb[0].mxu1 }
 0x107   : > { %v6584_v12 = vadd.f32 %v6583_v9, %v6582_v7  ;;  %v6585_v13 = vpop.f32.mrb[2].mxu0  ;;  %v6605_v16 = vpop.f32.mrb[1].mxu1  ;;  %6885 = vmatpush3.bf16.msra.mxu0 %v7532_v6  ;;  %v7568_v6 = vld [vmem:[%s7845_s15 + $0x8f0] sm:$0xff]  }
 0x108   : > { %v6586_v17 = vpop.f32.mrb[3].mxu0  ;;  %v6606_v18 = vadd.f32 %v6605_v16, %v6604_v11  ;;  %v6607_v19 = vpop.f32.mrb[2].mxu1  ;;  %6886 = vmatprep.subr.bf16.mxu0 %v7534_v10  ;;  %6907 = vmatpush3.bf16.msra.mxu1 %v7533_v8  ;;  %v7569_v7 = vld [vmem:[%s7845_s15 + $0x830] sm:$0xff]   ;;  %v7571_v13 = vld [vmem:[%s7845_s15 + $0x878] sm:$0xff]  }
 0x109   : > { %v6608_v21 = vpop.f32.mrb[3].mxu1  ;;  %6908 = vmatprep.subr.bf16.mxu1 %v7535_v14  ;;  %v7570_v11 = vld [vmem:[%s7845_s15 + $0x8b0] sm:$0xff]   ;;  %v7573_v16 = vld [vmem:[%s7845_s15 + $0x838] sm:$0xff]   ;;  %v1199_v17 = vld [vmem:[%s7881_s20 + $0x40] sm:$0xff] }
 0x10a   : > { %v8129_v23 = vadd.f32 %v6606_v18, %v6584_v12  ;;  %v1366_v18 = vrot.slane %v1199_v17, %v7883_v35  ;;  %v1359_v19 = vcombine.high %v1199_v17, %v1199_v17  ;;  %v7574_v21 = vld [vmem:[%s7845_s15 + $0x8b8] sm:$0xff]   ;;  %v7611_v17 = vld [vmem:[%s7845_s15 + $0xa00] sm:$0xff]  }
 0x10b   : > { %6887 = vmatpush3.bf16.msra.mxu0 %v7536_v15  ;;  %v7572_v15 = vld [vmem:[%s7845_s15 + $0x8f8] sm:$0xff]  }
 0x10c   : > { %6888 = vmatprep.subr.bf16.mxu0 %v7538_v22  ;;  %6909 = vmatpush3.bf16.msra.mxu1 %v7537_v20  ;;  %v7576_v20 = vld [vmem:[%s7845_s15 + $0x940] sm:$0xff]   ;;  %v1374_v22 = vcombine.high %v1366_v18, %v1366_v18 }
 0x10d   : > { %6910 = vmatprep.subr.bf16.mxu1 %v7539_v24  ;;  %v7577_v24 = vld [vmem:[%s7845_s15 + $0x9c0] sm:$0xff]  }
 0x10f   : > { %6889 = vmatpush3.bf16.msra.mxu0 %v7540_v25  ;;  %v1591_v25 = vpack.c.bf16 %v1366_v18, %v1366_v18 }
 0x110   : > { %6918 = vmatprep.subr.bf16.mxu0 %v7543_v30  ;;  %6911 = vmatpush3.bf16.msra.mxu1 %v7541_v27  ;;  %v1592_v27 = vpack.c.bf16 %v1374_v22, %v1374_v22  ;;  %v7613_v22 = vld [vmem:[%s7845_s15 + $0xa48] sm:$0xff]  }
 0x111   : > { %6940 = vmatprep.subr.bf16.mxu1 %v7544_v33  ;;  %v7581_v33 = vld [vmem:[%s7845_s15 + $0x9c8] sm:$0xff]  }
 0x112   : > { %5288 = vmatmul.mubr.bf16.vlgmr.msra.gmra.mrb[28].mxu0 %v1587_v34  ;;  %v7582_v34 = vld [vmem:[%s7845_s15 + $0x908] sm:$0xff]  }
 0x113   : > { %6919 = vmatpush3.bf16.msra.mxu0 %v7545_v36  ;;  %5328 = vmatmul.mubr.bf16.vlgmr.msra.gmra.mrb[28].mxu1 %v1589_v40  ;;  %v7583_v36 = vld [vmem:[%s7845_s15 + $0x988] sm:$0xff]   ;;  %v7587_v40 = vld [vmem:[%s7845_s15 + $0x990] sm:$0xff]  }
 0x114   : > { %6920 = vmatprep.subr.bf16.mxu0 %v7547_v41  ;;  %6941 = vmatpush3.bf16.msra.mxu1 %v7546_v39  ;;  %v7586_v39 = vld [vmem:[%s7845_s15 + $0x910] sm:$0xff]   ;;  %v7588_v41 = vld [vmem:[%s7845_s15 + $0x958] sm:$0xff]  }
 0x115   : > { %6942 = vmatprep.subr.bf16.mxu1 %v7548_v43  ;;  %5367 = vmatprep.mubr.bf16.mxu0 %v1592_v27  ;;  %v7590_v43 = vld [vmem:[%s7845_s15 + $0x918] sm:$0xff]   ;;  %v7617_v27 = vld [vmem:[%s7845_s15 + $0xa50] sm:$0xff]  }
 0x117   : > { %6921 = vmatpush3.bf16.msra.mxu0 %v7549_v44  ;;  %v7591_v44 = vld [vmem:[%s7845_s15 + $0x998] sm:$0xff]  }
 0x118   : > { %6922 = vmatprep.subr.bf16.mxu0 %v7551_v46  ;;  %6943 = vmatpush3.bf16.msra.mxu1 %v7550_v45  ;;  %v7592_v45 = vld [vmem:[%s7845_s15 + $0x960] sm:$0xff]  }
 0x119   : > { %6944 = vmatprep.subr.bf16.mxu1 %v7552_v47  ;;  %v7593_v46 = vld [vmem:[%s7845_s15 + $0x9e0] sm:$0xff]  }
 0x11a   : > { %v7594_v47 = vld [vmem:[%s7845_s15 + $0x920] sm:$0xff]  }
 0x11b   : > { %6923 = vmatpush3.bf16.msra.mxu0 %v7553_v48  ;;  %v7595_v48 = vld [vmem:[%s7845_s15 + $0x9a0] sm:$0xff]  }
 0x11c   : > { %6924 = vmatprep.subr.bf16.mxu0 %v7555_v50  ;;  %6945 = vmatpush3.bf16.msra.mxu1 %v7554_v49  ;;  %v7596_v49 = vld [vmem:[%s7845_s15 + $0x968] sm:$0xff]  }
 0x11d   : > { %6946 = vmatprep.subr.bf16.mxu1 %v7556_v51  ;;  %v7597_v50 = vld [vmem:[%s7845_s15 + $0x9e8] sm:$0xff]  }
 0x11f   : > { %6925 = vmatpush3.bf16.msra.mxu0 %v7557_v52  ;;  %v7598_v52 = vld [vmem:[%s7845_s15 + $0x928] sm:$0xff]  }
 0x120   : > { %6926 = vmatprep.subr.bf16.mxu0 %v7559_v54  ;;  %6947 = vmatpush3.bf16.msra.mxu1 %v7558_v53  ;;  %v7599_v54 = vld [vmem:[%s7845_s15 + $0x9a8] sm:$0xff]  }
 0x121   : > { %6948 = vmatprep.subr.bf16.mxu1 %v7560_v55 }
 0x123   : > { %6927 = vmatpush3.bf16.msra.mxu0 %v7561_v56 }
 0x124   : > { %6928 = vmatprep.subr.bf16.mxu0 %v7563_v58  ;;  %6949 = vmatpush3.bf16.msra.mxu1 %v7562_v57  ;;  %v7600_v58 = vld [vmem:[%s7845_s15 + $0x970] sm:$0xff]  }
 0x125   : > { %v6626_v61 = vpop.f32.mrb[4].mxu0  ;;  %6950 = vmatprep.subr.bf16.mxu1 %v7564_v59  ;;  %v7601_v59 = vld [vmem:[%s7845_s15 + $0x9f0] sm:$0xff]  }
 0x126   : > { %v6627_v63 = vpop.f32.mrb[5].mxu0  ;;  %v6648_v1 = vpop.f32.mrb[4].mxu1 }
 0x127   : > { %v6628_v2 = vadd.f32 %v6627_v63, %v6626_v61  ;;  %v6629_v3 = vpop.f32.mrb[6].mxu0  ;;  %v6649_v4 = vpop.f32.mrb[5].mxu1  ;;  %6929 = vmatpush3.bf16.msra.mxu0 %v7565_v60 }
 0x128   : > { %v6630_v5 = vpop.f32.mrb[7].mxu0  ;;  %v6650_v9 = vadd.f32 %v6649_v4, %v6648_v1  ;;  %v6651_v10 = vpop.f32.mrb[6].mxu1  ;;  %6930 = vmatprep.subr.bf16.mxu0 %v7567_v0  ;;  %6951 = vmatpush3.bf16.msra.mxu1 %v7566_v62  ;;  %v7602_v1 = vld [vmem:[%s7845_s15 + $0x930] sm:$0xff]  }
 0x129   : > { %v4810_v8 = vadd.f32 %v6628_v2, %v8129_v23  ;;  %v6652_v12 = vpop.f32.mrb[7].mxu1  ;;  %6952 = vmatprep.subr.bf16.mxu1 %v7568_v6  ;;  %v1373_v23 = vrot.slane %v1359_v19, %v7883_v35  ;;  %v7603_v3 = vld [vmem:[%s7845_s15 + $0x9b0] sm:$0xff]   ;;  %v7604_v5 = vld [vmem:[%s7845_s15 + $0x978] sm:$0xff]  }
 0x12a   : > { %v7605_v6 = vld [vmem:[%s7845_s15 + $0x9f8] sm:$0xff]  }
 0x12b   : > { %v8167_v14 = vadd.f32 %v6650_v9, %v4810_v8  ;;  %6931 = vmatpush3.bf16.msra.mxu0 %v7569_v7  ;;  %v1375_v28 = vcombine.high %v1373_v23, %v1373_v23  ;;  %v1593_v30 = vpack.c.bf16 %v1373_v23, %v1373_v23  ;;  %v7606_v7 = vld [vmem:[%s7845_s15 + $0x938] sm:$0xff]   ;;  %v1200_v8 = vld [vmem:[%s7881_s20 + $0x48] sm:$0xff] }
 0x12c   : > { %6932 = vmatprep.subr.bf16.mxu0 %v7571_v13  ;;  %6953 = vmatpush3.bf16.msra.mxu1 %v7570_v11  ;;  %v1383_v9 = vrot.slane %v1200_v8, %v7883_v35  ;;  %v1376_v10 = vcombine.high %v1200_v8, %v1200_v8  ;;  %v7609_v11 = vld [vmem:[%s7845_s15 + $0xa40] sm:$0xff]   ;;  %v7607_v12 = vld [vmem:[%s7845_s15 + $0x9b8] sm:$0xff]  }
 0x12d   : > { %6954 = vmatprep.subr.bf16.mxu1 %v7572_v15  ;;  %v1594_v32 = vpack.c.bf16 %v1375_v28, %v1375_v28  ;;  %v7610_v15 = vld [vmem:[%s7845_s15 + $0xac0] sm:$0xff]   ;;  %v7618_v28 = vld [vmem:[%s7845_s15 + $0xad0] sm:$0xff]  }
 0x12e   : > { %v1391_v13 = vcombine.high %v1383_v9, %v1383_v9  ;;  %v7644_v8 = vld [vmem:[%s7845_s15 + $0xb00] sm:$0xff]  }
 0x12f   : > { %6933 = vmatpush3.bf16.msra.mxu0 %v7573_v16  ;;  %5407 = vmatprep.mubr.bf16.mxu1 %v1594_v32  ;;  %v1595_v16 = vpack.c.bf16 %v1383_v9, %v1383_v9  ;;  %v7622_v32 = vld [vmem:[%s7845_s15 + $0xad8] sm:$0xff]  }
 0x130   : > { %6962 = vmatprep.subr.bf16.mxu0 %v7576_v20  ;;  %6955 = vmatpush3.bf16.msra.mxu1 %v7574_v21  ;;  %v1596_v18 = vpack.c.bf16 %v1391_v13, %v1391_v13  ;;  %v7612_v20 = vld [vmem:[%s7845_s15 + $0xa80] sm:$0xff]   ;;  %v7646_v13 = vld [vmem:[%s7845_s15 + $0xb48] sm:$0xff]  }
 0x131   : > { %6984 = vmatprep.subr.bf16.mxu1 %v7577_v24  ;;  %v7614_v24 = vld [vmem:[%s7845_s15 + $0xac8] sm:$0xff]  }
 0x132   : > { %5368 = vmatmul.mubr.bf16.vlgmr.msra.gmra.mrb[32].mxu0 %v1591_v25  ;;  %v7615_v25 = vld [vmem:[%s7845_s15 + $0xa08] sm:$0xff]  }
 0x133   : > { %6963 = vmatpush3.bf16.msra.mxu0 %v7578_v26  ;;  %5408 = vmatmul.mubr.bf16.vlgmr.msra.gmra.mrb[32].mxu1 %v1593_v30  ;;  %v7616_v26 = vld [vmem:[%s7845_s15 + $0xa88] sm:$0xff]   ;;  %v7620_v30 = vld [vmem:[%s7845_s15 + $0xa90] sm:$0xff]  }
 0x134   : > { %6964 = vmatprep.subr.bf16.mxu0 %v7580_v31  ;;  %6985 = vmatpush3.bf16.msra.mxu1 %v7579_v29  ;;  %v7619_v29 = vld [vmem:[%s7845_s15 + $0xa10] sm:$0xff]   ;;  %v7621_v31 = vld [vmem:[%s7845_s15 + $0xa58] sm:$0xff]  }
 0x135   : > { %6986 = vmatprep.subr.bf16.mxu1 %v7581_v33  ;;  %5447 = vmatprep.mubr.bf16.mxu0 %v1596_v18  ;;  %v7623_v33 = vld [vmem:[%s7845_s15 + $0xa18] sm:$0xff]   ;;  %v7650_v18 = vld [vmem:[%s7845_s15 + $0xb50] sm:$0xff]  }
 0x137   : > { %6965 = vmatpush3.bf16.msra.mxu0 %v7582_v34  ;;  %v7624_v34 = vld [vmem:[%s7845_s15 + $0xa98] sm:$0xff]  }
 0x138   : > { %6966 = vmatprep.subr.bf16.mxu0 %v7584_v37  ;;  %6987 = vmatpush3.bf16.msra.mxu1 %v7583_v36  ;;  %v7625_v36 = vld [vmem:[%s7845_s15 + $0xa60] sm:$0xff]  }
 0x139   : > { %6988 = vmatprep.subr.bf16.mxu1 %v7585_v38  ;;  %v7626_v37 = vld [vmem:[%s7845_s15 + $0xae0] sm:$0xff]  }
 0x13a   : > { %v7627_v38 = vld [vmem:[%s7845_s15 + $0xa20] sm:$0xff]  }
 0x13b   : > { %6967 = vmatpush3.bf16.msra.mxu0 %v7586_v39  ;;  %v7628_v39 = vld [vmem:[%s7845_s15 + $0xaa0] sm:$0xff]  }
 0x13c   : > { %6968 = vmatprep.subr.bf16.mxu0 %v7588_v41  ;;  %6989 = vmatpush3.bf16.msra.mxu1 %v7587_v40  ;;  %v7629_v40 = vld [vmem:[%s7845_s15 + $0xa68] sm:$0xff]  }
 0x13d   : > { %6990 = vmatprep.subr.bf16.mxu1 %v7589_v42  ;;  %v7630_v41 = vld [vmem:[%s7845_s15 + $0xae8] sm:$0xff]  }
 0x13f   : > { %6969 = vmatpush3.bf16.msra.mxu0 %v7590_v43  ;;  %v7631_v43 = vld [vmem:[%s7845_s15 + $0xa28] sm:$0xff]  }
 0x140   : > { %6970 = vmatprep.subr.bf16.mxu0 %v7592_v45  ;;  %6991 = vmatpush3.bf16.msra.mxu1 %v7591_v44  ;;  %v7632_v45 = vld [vmem:[%s7845_s15 + $0xaa8] sm:$0xff]  }
 0x141   : > { %6992 = vmatprep.subr.bf16.mxu1 %v7593_v46 }
 0x143   : > { %6971 = vmatpush3.bf16.msra.mxu0 %v7594_v47 }
 0x144   : > { %6972 = vmatprep.subr.bf16.mxu0 %v7596_v49  ;;  %6993 = vmatpush3.bf16.msra.mxu1 %v7595_v48  ;;  %v7633_v49 = vld [vmem:[%s7845_s15 + $0xa70] sm:$0xff]  }
 0x145   : > { %v6670_v51 = vpop.f32.mrb[8].mxu0  ;;  %6994 = vmatprep.subr.bf16.mxu1 %v7597_v50  ;;  %v7634_v50 = vld [vmem:[%s7845_s15 + $0xaf0] sm:$0xff]  }
 0x146   : > { %v6671_v53 = vpop.f32.mrb[9].mxu0  ;;  %v6692_v55 = vpop.f32.mrb[8].mxu1 }
 0x147   : > { %v6672_v56 = vadd.f32 %v6671_v53, %v6670_v51  ;;  %v6673_v57 = vpop.f32.mrb[10].mxu0  ;;  %v6693_v60 = vpop.f32.mrb[9].mxu1  ;;  %6973 = vmatpush3.bf16.msra.mxu0 %v7598_v52 }
 0x148   : > { %v6674_v61 = vpop.f32.mrb[11].mxu0  ;;  %v6694_v63 = vadd.f32 %v6693_v60, %v6692_v55  ;;  %v6695_v0 = vpop.f32.mrb[10].mxu1  ;;  %6974 = vmatprep.subr.bf16.mxu0 %v7600_v58  ;;  %6995 = vmatpush3.bf16.msra.mxu1 %v7599_v54  ;;  %v7636_v58 = vld [vmem:[%s7845_s15 + $0xab0] sm:$0xff]   ;;  %v7637_v60 = vld [vmem:[%s7845_s15 + $0xa78] sm:$0xff]  }
 0x149   : > { %v4890_v62 = vadd.f32 %v6672_v56, %v8167_v14  ;;  %v6696_v2 = vpop.f32.mrb[11].mxu1  ;;  %6996 = vmatprep.subr.bf16.mxu1 %v7601_v59  ;;  %v1390_v14 = vrot.slane %v1376_v10, %v7883_v35  ;;  %v7635_v56 = vld [vmem:[%s7845_s15 + $0xa30] sm:$0xff]   ;;  %v7638_v61 = vld [vmem:[%s7845_s15 + $0xaf8] sm:$0xff]  }
 0x14a   : > { %v7640_v0 = vld [vmem:[%s7845_s15 + $0xab8] sm:$0xff]  }
 0x14b   : > { %v8204_v4 = vadd.f32 %v6694_v63, %v4890_v62  ;;  %6975 = vmatpush3.bf16.msra.mxu0 %v7602_v1  ;;  %v1392_v19 = vcombine.high %v1390_v14, %v1390_v14  ;;  %v1597_v21 = vpack.c.bf16 %v1390_v14, %v1390_v14  ;;  %v7639_v62 = vld [vmem:[%s7845_s15 + $0xa38] sm:$0xff]   ;;  %v1201_v63 = vld [vmem:[%s7881_s20 + $0x50] sm:$0xff] }
 0x14c   : > { %6976 = vmatprep.subr.bf16.mxu0 %v7604_v5  ;;  %6997 = vmatpush3.bf16.msra.mxu1 %v7603_v3  ;;  %v1400_v1 = vrot.slane %v1201_v63, %v7883_v35  ;;  %v1393_v2 = vcombine.high %v1201_v63, %v1201_v63  ;;  %v7642_v3 = vld [vmem:[%s7845_s15 + $0xb40] sm:$0xff]  }
 0x14d   : > { %6998 = vmatprep.subr.bf16.mxu1 %v7605_v6  ;;  %v1598_v23 = vpack.c.bf16 %v1392_v19, %v1392_v19  ;;  %v7643_v6 = vld [vmem:[%s7845_s15 + $0xbc0] sm:$0xff]   ;;  %v7651_v19 = vld [vmem:[%s7845_s15 + $0xbd0] sm:$0xff]  }
 0x14e   : > { %v1407_v5 = vrot.slane %v1393_v2, %v7883_v35  ;;  %v7677_v63 = vld [vmem:[%s7845_s15 + $0xc00] sm:$0xff]  }
 0x14f   : > { %6977 = vmatpush3.bf16.msra.mxu0 %v7606_v7  ;;  %5487 = vmatprep.mubr.bf16.mxu1 %v1598_v23  ;;  %v1599_v7 = vpack.c.bf16 %v1400_v1, %v1400_v1  ;;  %v7655_v23 = vld [vmem:[%s7845_s15 + $0xbd8] sm:$0xff]   ;;  %v7678_v2 = vld [vmem:[%s7845_s15 + $0xc80] sm:$0xff]  }
 0x150   : > { %7006 = vmatprep.subr.bf16.mxu0 %v7609_v11  ;;  %6999 = vmatpush3.bf16.msra.mxu1 %v7607_v12  ;;  %v1409_v10 = vcombine.high %v1407_v5, %v1407_v5  ;;  %v7645_v11 = vld [vmem:[%s7845_s15 + $0xb80] sm:$0xff]   ;;  %v1601_v12 = vpack.c.bf16 %v1407_v5, %v1407_v5 }
 0x151   : > { %7028 = vmatprep.subr.bf16.mxu1 %v7610_v15  ;;  %v7647_v15 = vld [vmem:[%s7845_s15 + $0xbc8] sm:$0xff]  }
 0x152   : > { %5448 = vmatmul.mubr.bf16.vlgmr.msra.gmra.mrb[36].mxu0 %v1595_v16  ;;  %v1602_v14 = vpack.c.bf16 %v1409_v10, %v1409_v10  ;;  %v7648_v16 = vld [vmem:[%s7845_s15 + $0xb08] sm:$0xff]   ;;  %v7684_v10 = vld [vmem:[%s7845_s15 + $0xcd0] sm:$0xff]  }
 0x153   : > { %7007 = vmatpush3.bf16.msra.mxu0 %v7611_v17  ;;  %5488 = vmatmul.mubr.bf16.vlgmr.msra.gmra.mrb[36].mxu1 %v1597_v21  ;;  %v7649_v17 = vld [vmem:[%s7845_s15 + $0xb88] sm:$0xff]   ;;  %v7653_v21 = vld [vmem:[%s7845_s15 + $0xb90] sm:$0xff]  }
 0x154   : > { %7008 = vmatprep.subr.bf16.mxu0 %v7613_v22  ;;  %7029 = vmatpush3.bf16.msra.mxu1 %v7612_v20  ;;  %v7652_v20 = vld [vmem:[%s7845_s15 + $0xb10] sm:$0xff]   ;;  %v7654_v22 = vld [vmem:[%s7845_s15 + $0xb58] sm:$0xff]  }
 0x155   : > { %7030 = vmatprep.subr.bf16.mxu1 %v7614_v24  ;;  %5567 = vmatprep.mubr.bf16.mxu1 %v1602_v14  ;;  %v7656_v24 = vld [vmem:[%s7845_s15 + $0xb18] sm:$0xff]  }
 0x156   : > { %v7688_v14 = vld [vmem:[%s7845_s15 + $0xcd8] sm:$0xff]  }
 0x157   : > { %7009 = vmatpush3.bf16.msra.mxu0 %v7615_v25  ;;  %v7657_v25 = vld [vmem:[%s7845_s15 + $0xb98] sm:$0xff]  }
 0x158   : > { %7010 = vmatprep.subr.bf16.mxu0 %v7617_v27  ;;  %7031 = vmatpush3.bf16.msra.mxu1 %v7616_v26  ;;  %v7658_v26 = vld [vmem:[%s7845_s15 + $0xb60] sm:$0xff]  }
 0x159   : > { %7032 = vmatprep.subr.bf16.mxu1 %v7618_v28  ;;  %v7659_v27 = vld [vmem:[%s7845_s15 + $0xbe0] sm:$0xff]  }
 0x15a   : > { %v7660_v28 = vld [vmem:[%s7845_s15 + $0xb20] sm:$0xff]  }
 0x15b   : > { %7011 = vmatpush3.bf16.msra.mxu0 %v7619_v29  ;;  %v7661_v29 = vld [vmem:[%s7845_s15 + $0xba0] sm:$0xff]  }
 0x15c   : > { %7012 = vmatprep.subr.bf16.mxu0 %v7621_v31  ;;  %7033 = vmatpush3.bf16.msra.mxu1 %v7620_v30  ;;  %v7662_v30 = vld [vmem:[%s7845_s15 + $0xb68] sm:$0xff]  }
 0x15d   : > { %7034 = vmatprep.subr.bf16.mxu1 %v7622_v32  ;;  %v7663_v31 = vld [vmem:[%s7845_s15 + $0xbe8] sm:$0xff]  }
 0x15f   : > { %7013 = vmatpush3.bf16.msra.mxu0 %v7623_v33  ;;  %v7664_v33 = vld [vmem:[%s7845_s15 + $0xb28] sm:$0xff]  }
 0x160   : > { %7014 = vmatprep.subr.bf16.mxu0 %v7625_v36  ;;  %7035 = vmatpush3.bf16.msra.mxu1 %v7624_v34  ;;  %v7666_v36 = vld [vmem:[%s7845_s15 + $0xb70] sm:$0xff]  }
 0x161   : > { %7036 = vmatprep.subr.bf16.mxu1 %v7626_v37 }
 0x163   : > { %7015 = vmatpush3.bf16.msra.mxu0 %v7627_v38 }
 0x164   : > { %7016 = vmatprep.subr.bf16.mxu0 %v7629_v40  ;;  %7037 = vmatpush3.bf16.msra.mxu1 %v7628_v39 }
 0x165   : > { %v6714_v42 = vpop.f32.mrb[12].mxu0  ;;  %7038 = vmatprep.subr.bf16.mxu1 %v7630_v41  ;;  %v7665_v41 = vld [vmem:[%s7845_s15 + $0xba8] sm:$0xff]  }
 0x166   : > { %v6715_v44 = vpop.f32.mrb[13].mxu0  ;;  %v6736_v46 = vpop.f32.mrb[12].mxu1 }
 0x167   : > { %v6716_v47 = vadd.f32 %v6715_v44, %v6714_v42  ;;  %v6717_v48 = vpop.f32.mrb[14].mxu0  ;;  %v6737_v51 = vpop.f32.mrb[13].mxu1  ;;  %7017 = vmatpush3.bf16.msra.mxu0 %v7631_v43  ;;  %v7667_v43 = vld [vmem:[%s7845_s15 + $0xbf0] sm:$0xff]  }
 0x168   : > { %v6718_v52 = vpop.f32.mrb[15].mxu0  ;;  %v6738_v54 = vadd.f32 %v6737_v51, %v6736_v46  ;;  %v6739_v55 = vpop.f32.mrb[14].mxu1  ;;  %7018 = vmatprep.subr.bf16.mxu0 %v7633_v49  ;;  %7039 = vmatpush3.bf16.msra.mxu1 %v7632_v45  ;;  %v7670_v49 = vld [vmem:[%s7845_s15 + $0xb78] sm:$0xff]   ;;  %v7669_v51 = vld [vmem:[%s7845_s15 + $0xbb0] sm:$0xff]  }
 0x169   : > { %v4970_v53 = vadd.f32 %v6716_v47, %v8204_v4  ;;  %v6740_v57 = vpop.f32.mrb[15].mxu1  ;;  %7040 = vmatprep.subr.bf16.mxu1 %v7634_v50  ;;  %v1408_v4 = vcombine.high %v1400_v1, %v1400_v1  ;;  %v7668_v47 = vld [vmem:[%s7845_s15 + $0xb30] sm:$0xff]   ;;  %v7671_v52 = vld [vmem:[%s7845_s15 + $0xbf8] sm:$0xff]  }
 0x16a   : > { %v7675_v57 = vld [vmem:[%s7845_s15 + $0xc40] sm:$0xff]  }
 0x16b   : > { %v8242_v59 = vadd.f32 %v6738_v54, %v4970_v53  ;;  %7019 = vmatpush3.bf16.msra.mxu0 %v7635_v56  ;;  %v1600_v9 = vpack.c.bf16 %v1408_v4, %v1408_v4  ;;  %v7672_v53 = vld [vmem:[%s7845_s15 + $0xb38] sm:$0xff]   ;;  %v7679_v4 = vld [vmem:[%s7845_s15 + $0xc48] sm:$0xff]  }
 0x16c   : > { %7020 = vmatprep.subr.bf16.mxu0 %v7637_v60  ;;  %7041 = vmatpush3.bf16.msra.mxu1 %v7636_v58  ;;  %v1202_v54 = vld [vmem:[%s7881_s20 + $0x58] sm:$0xff] }
 0x16d   : > { %7042 = vmatprep.subr.bf16.mxu1 %v7638_v61  ;;  %5527 = vmatprep.mubr.bf16.mxu0 %v1600_v9  ;;  %v1417_v55 = vrot.slane %v1202_v54, %v7883_v35  ;;  %v1410_v56 = vcombine.high %v1202_v54, %v1202_v54  ;;  %v7673_v58 = vld [vmem:[%s7845_s15 + $0xbb8] sm:$0xff]   ;;  %v7676_v61 = vld [vmem:[%s7845_s15 + $0xcc0] sm:$0xff]   ;;  %v7683_v9 = vld [vmem:[%s7845_s15 + $0xc50] sm:$0xff]  }
 0x16e   : > { %v7710_v54 = vld [vmem:[%s7845_s15 + $0xd00] sm:$0xff]  }
 0x16f   : > { %7021 = vmatpush3.bf16.msra.mxu0 %v7639_v62  ;;  %v1424_v60 = vrot.slane %v1410_v56, %v7883_v35  ;;  %v1603_v62 = vpack.c.bf16 %v1417_v55, %v1417_v55 }
 0x170   : > { %7050 = vmatprep.subr.bf16.mxu0 %v7642_v3  ;;  %7043 = vmatpush3.bf16.msra.mxu1 %v7640_v0 }
 0x171   : > { %7072 = vmatprep.subr.bf16.mxu1 %v7643_v6  ;;  %v1426_v1 = vcombine.high %v1424_v60, %v1424_v60  ;;  %v1605_v3 = vpack.c.bf16 %v1424_v60, %v1424_v60  ;;  %v7680_v6 = vld [vmem:[%s7845_s15 + $0xcc8] sm:$0xff]  }
 0x172   : > { %5528 = vmatmul.mubr.bf16.vlgmr.msra.gmra.mrb[40].mxu0 %v1599_v7  ;;  %v7681_v7 = vld [vmem:[%s7845_s15 + $0xc08] sm:$0xff]  }
 0x173   : > { %7051 = vmatpush3.bf16.msra.mxu0 %v7644_v8  ;;  %5568 = vmatmul.mubr.bf16.vlgmr.msra.gmra.mrb[40].mxu1 %v1601_v12  ;;  %v1606_v5 = vpack.c.bf16 %v1426_v1, %v1426_v1  ;;  %v7682_v8 = vld [vmem:[%s7845_s15 + $0xc88] sm:$0xff]   ;;  %v7686_v12 = vld [vmem:[%s7845_s15 + $0xc90] sm:$0xff]  }
 0x174   : > { %7052 = vmatprep.subr.bf16.mxu0 %v7646_v13  ;;  %7073 = vmatpush3.bf16.msra.mxu1 %v7645_v11  ;;  %v7685_v11 = vld [vmem:[%s7845_s15 + $0xc10] sm:$0xff]   ;;  %v7687_v13 = vld [vmem:[%s7845_s15 + $0xc58] sm:$0xff]  }
 0x175   : > { %7074 = vmatprep.subr.bf16.mxu1 %v7647_v15  ;;  %5647 = vmatprep.mubr.bf16.mxu1 %v1606_v5  ;;  %v7689_v15 = vld [vmem:[%s7845_s15 + $0xc18] sm:$0xff]   ;;  %v7717_v1 = vld [vmem:[%s7845_s15 + $0xdd0] sm:$0xff]  }
 0x176   : > { %v7721_v5 = vld [vmem:[%s7845_s15 + $0xdd8] sm:$0xff]  }
 0x177   : > { %7053 = vmatpush3.bf16.msra.mxu0 %v7648_v16  ;;  %v7690_v16 = vld [vmem:[%s7845_s15 + $0xc98] sm:$0xff]  }
 0x178   : > { %7054 = vmatprep.subr.bf16.mxu0 %v7650_v18  ;;  %7075 = vmatpush3.bf16.msra.mxu1 %v7649_v17  ;;  %v7691_v17 = vld [vmem:[%s7845_s15 + $0xc60] sm:$0xff]  }
 0x179   : > { %7076 = vmatprep.subr.bf16.mxu1 %v7651_v19  ;;  %v7692_v18 = vld [vmem:[%s7845_s15 + $0xce0] sm:$0xff]  }
 0x17a   : > { %v7693_v19 = vld [vmem:[%s7845_s15 + $0xc20] sm:$0xff]  }
 0x17b   : > { %7055 = vmatpush3.bf16.msra.mxu0 %v7652_v20  ;;  %v7694_v20 = vld [vmem:[%s7845_s15 + $0xca0] sm:$0xff]  }
 0x17c   : > { %7056 = vmatprep.subr.bf16.mxu0 %v7654_v22  ;;  %7077 = vmatpush3.bf16.msra.mxu1 %v7653_v21  ;;  %v7695_v21 = vld [vmem:[%s7845_s15 + $0xc68] sm:$0xff]  }
 0x17d   : > { %7078 = vmatprep.subr.bf16.mxu1 %v7655_v23  ;;  %v7696_v23 = vld [vmem:[%s7845_s15 + $0xce8] sm:$0xff]  }
 0x17f   : > { %7057 = vmatpush3.bf16.msra.mxu0 %v7656_v24 }
 0x180   : > { %7058 = vmatprep.subr.bf16.mxu0 %v7658_v26  ;;  %7079 = vmatpush3.bf16.msra.mxu1 %v7657_v25  ;;  %v7697_v25 = vld [vmem:[%s7845_s15 + $0xc28] sm:$0xff]  }
 0x181   : > { %7080 = vmatprep.subr.bf16.mxu1 %v7659_v27 }
 0x183   : > { %7059 = vmatpush3.bf16.msra.mxu0 %v7660_v28 }
 0x184   : > { %7060 = vmatprep.subr.bf16.mxu0 %v7662_v30  ;;  %7081 = vmatpush3.bf16.msra.mxu1 %v7661_v29  ;;  %v7698_v29 = vld [vmem:[%s7845_s15 + $0xca8] sm:$0xff]   ;;  %v7699_v30 = vld [vmem:[%s7845_s15 + $0xc70] sm:$0xff]  }
 0x185   : > { %v6758_v32 = vpop.f32.mrb[16].mxu0  ;;  %7082 = vmatprep.subr.bf16.mxu1 %v7663_v31 }
 0x186   : > { %v6759_v34 = vpop.f32.mrb[17].mxu0  ;;  %v6780_v37 = vpop.f32.mrb[16].mxu1 }
 0x187   : > { %v6760_v38 = vadd.f32 %v6759_v34, %v6758_v32  ;;  %v6761_v39 = vpop.f32.mrb[18].mxu0  ;;  %v6781_v40 = vpop.f32.mrb[17].mxu1  ;;  %7061 = vmatpush3.bf16.msra.mxu0 %v7664_v33 }
 0x188   : > { %v6762_v42 = vpop.f32.mrb[19].mxu0  ;;  %v6782_v45 = vadd.f32 %v6781_v40, %v6780_v37  ;;  %v6783_v46 = vpop.f32.mrb[18].mxu1  ;;  %7062 = vmatprep.subr.bf16.mxu0 %v7666_v36  ;;  %7083 = vmatpush3.bf16.msra.mxu1 %v7665_v41  ;;  %v7700_v37 = vld [vmem:[%s7845_s15 + $0xcf0] sm:$0xff]  }
 0x189   : > { %v5050_v44 = vadd.f32 %v6760_v38, %v8242_v59  ;;  %v6784_v48 = vpop.f32.mrb[19].mxu1  ;;  %7084 = vmatprep.subr.bf16.mxu1 %v7667_v43  ;;  %v1425_v59 = vcombine.high %v1417_v55, %v1417_v55  ;;  %v7701_v39 = vld [vmem:[%s7845_s15 + $0xc30] sm:$0xff]   ;;  %v7703_v42 = vld [vmem:[%s7845_s15 + $0xc78] sm:$0xff]  }
 0x18a   : > { %v7702_v41 = vld [vmem:[%s7845_s15 + $0xcb0] sm:$0xff]   ;;  %v7704_v43 = vld [vmem:[%s7845_s15 + $0xcf8] sm:$0xff]   ;;  %v7708_v48 = vld [vmem:[%s7845_s15 + $0xd40] sm:$0xff]  }
 0x18b   : > { %v8280_v50 = vadd.f32 %v6782_v45, %v5050_v44  ;;  %7063 = vmatpush3.bf16.msra.mxu0 %v7668_v47  ;;  %v1604_v0 = vpack.c.bf16 %v1425_v59, %v1425_v59  ;;  %v7705_v44 = vld [vmem:[%s7845_s15 + $0xc38] sm:$0xff]   ;;  %v1203_v45 = vld [vmem:[%s7881_s20 + $0x60] sm:$0xff]  ;;  %v7712_v59 = vld [vmem:[%s7845_s15 + $0xd48] sm:$0xff]  }
 0x18c   : > { %7064 = vmatprep.subr.bf16.mxu0 %v7670_v49  ;;  %7085 = vmatpush3.bf16.msra.mxu1 %v7669_v51  ;;  %v1434_v46 = vrot.slane %v1203_v45, %v7883_v35  ;;  %v1427_v47 = vcombine.high %v1203_v45, %v1203_v45  ;;  %v7706_v49 = vld [vmem:[%s7845_s15 + $0xcb8] sm:$0xff]   ;;  %v7743_v45 = vld [vmem:[%s7845_s15 + $0xe00] sm:$0xff]  }
 0x18d   : > { %7086 = vmatprep.subr.bf16.mxu1 %v7671_v52  ;;  %5607 = vmatprep.mubr.bf16.mxu0 %v1604_v0  ;;  %v7709_v52 = vld [vmem:[%s7845_s15 + $0xdc0] sm:$0xff]   ;;  %v7716_v0 = vld [vmem:[%s7845_s15 + $0xd50] sm:$0xff]  }
 0x18e   : > { %v1441_v51 = vrot.slane %v1427_v47, %v7883_v35 }
 0x18f   : > { %7065 = vmatpush3.bf16.msra.mxu0 %v7672_v53  ;;  %v1607_v53 = vpack.c.bf16 %v1434_v46, %v1434_v46 }
 0x190   : > { %7094 = vmatprep.subr.bf16.mxu0 %v7675_v57  ;;  %7087 = vmatpush3.bf16.msra.mxu1 %v7673_v58  ;;  %v1443_v56 = vcombine.high %v1441_v51, %v1441_v51  ;;  %v7711_v57 = vld [vmem:[%s7845_s15 + $0xd80] sm:$0xff]   ;;  %v1609_v58 = vpack.c.bf16 %v1441_v51, %v1441_v51 }
 0x191   : > { %7116 = vmatprep.subr.bf16.mxu1 %v7676_v61  ;;  %v7713_v61 = vld [vmem:[%s7845_s15 + $0xdc8] sm:$0xff]  }
 0x192   : > { %5608 = vmatmul.mubr.bf16.vlgmr.msra.gmra.mrb[44].mxu0 %v1603_v62  ;;  %v1610_v60 = vpack.c.bf16 %v1443_v56, %v1443_v56  ;;  %v7714_v62 = vld [vmem:[%s7845_s15 + $0xd08] sm:$0xff]   ;;  %v7750_v56 = vld [vmem:[%s7845_s15 + $0xed0] sm:$0xff]  }
 0x193   : > { %7095 = vmatpush3.bf16.msra.mxu0 %v7677_v63  ;;  %5648 = vmatmul.mubr.bf16.vlgmr.msra.gmra.mrb[44].mxu1 %v1605_v3  ;;  %v7715_v63 = vld [vmem:[%s7845_s15 + $0xd88] sm:$0xff]   ;;  %v7719_v3 = vld [vmem:[%s7845_s15 + $0xd90] sm:$0xff]  }
 0x194   : > { %7096 = vmatprep.subr.bf16.mxu0 %v7679_v4  ;;  %7117 = vmatpush3.bf16.msra.mxu1 %v7678_v2  ;;  %v7718_v2 = vld [vmem:[%s7845_s15 + $0xd10] sm:$0xff]   ;;  %v7720_v4 = vld [vmem:[%s7845_s15 + $0xd58] sm:$0xff]  }
 0x195   : > { %7118 = vmatprep.subr.bf16.mxu1 %v7680_v6  ;;  %5727 = vmatprep.mubr.bf16.mxu1 %v1610_v60  ;;  %v7722_v6 = vld [vmem:[%s7845_s15 + $0xd18] sm:$0xff]  }
 0x196   : > { %v7754_v60 = vld [vmem:[%s7845_s15 + $0xed8] sm:$0xff]  }
 0x197   : > { %7097 = vmatpush3.bf16.msra.mxu0 %v7681_v7  ;;  %v7723_v7 = vld [vmem:[%s7845_s15 + $0xd98] sm:$0xff]  }
 0x198   : > { %7098 = vmatprep.subr.bf16.mxu0 %v7683_v9  ;;  %7119 = vmatpush3.bf16.msra.mxu1 %v7682_v8  ;;  %v7724_v8 = vld [vmem:[%s7845_s15 + $0xd60] sm:$0xff]  }
 0x199   : > { %7120 = vmatprep.subr.bf16.mxu1 %v7684_v10  ;;  %v7725_v9 = vld [vmem:[%s7845_s15 + $0xde0] sm:$0xff]  }
 0x19a   : > { %v7726_v10 = vld [vmem:[%s7845_s15 + $0xd20] sm:$0xff]  }
 0x19b   : > { %7099 = vmatpush3.bf16.msra.mxu0 %v7685_v11  ;;  %v7727_v11 = vld [vmem:[%s7845_s15 + $0xda0] sm:$0xff]  }
 0x19c   : > { %7100 = vmatprep.subr.bf16.mxu0 %v7687_v13  ;;  %7121 = vmatpush3.bf16.msra.mxu1 %v7686_v12  ;;  %v7728_v12 = vld [vmem:[%s7845_s15 + $0xd68] sm:$0xff]  }
 0x19d   : > { %7122 = vmatprep.subr.bf16.mxu1 %v7688_v14  ;;  %v7729_v14 = vld [vmem:[%s7845_s15 + $0xde8] sm:$0xff]  }
 0x19f   : > { %7101 = vmatpush3.bf16.msra.mxu0 %v7689_v15 }
 0x1a0   : > { %7102 = vmatprep.subr.bf16.mxu0 %v7691_v17  ;;  %7123 = vmatpush3.bf16.msra.mxu1 %v7690_v16  ;;  %v7730_v16 = vld [vmem:[%s7845_s15 + $0xd28] sm:$0xff]  }
 0x1a1   : > { %7124 = vmatprep.subr.bf16.mxu1 %v7692_v18 }
 0x1a3   : > { %7103 = vmatpush3.bf16.msra.mxu0 %v7693_v19 }
 0x1a4   : > { %7104 = vmatprep.subr.bf16.mxu0 %v7695_v21  ;;  %7125 = vmatpush3.bf16.msra.mxu1 %v7694_v20  ;;  %v7731_v20 = vld [vmem:[%s7845_s15 + $0xda8] sm:$0xff]   ;;  %v7732_v21 = vld [vmem:[%s7845_s15 + $0xd70] sm:$0xff]  }
 0x1a5   : > { %v6802_v22 = vpop.f32.mrb[20].mxu0  ;;  %7126 = vmatprep.subr.bf16.mxu1 %v7696_v23 }
 0x1a6   : > { %v6803_v24 = vpop.f32.mrb[21].mxu0  ;;  %v6824_v26 = vpop.f32.mrb[20].mxu1 }
 0x1a7   : > { %v6804_v27 = vadd.f32 %v6803_v24, %v6802_v22  ;;  %v6805_v28 = vpop.f32.mrb[22].mxu0  ;;  %v6825_v31 = vpop.f32.mrb[21].mxu1  ;;  %7105 = vmatpush3.bf16.msra.mxu0 %v7697_v25 }
 0x1a8   : > { %v6806_v32 = vpop.f32.mrb[23].mxu0  ;;  %v6826_v34 = vadd.f32 %v6825_v31, %v6824_v26  ;;  %v6827_v36 = vpop.f32.mrb[22].mxu1  ;;  %7106 = vmatprep.subr.bf16.mxu0 %v7699_v30  ;;  %7127 = vmatpush3.bf16.msra.mxu1 %v7698_v29  ;;  %v7734_v29 = vld [vmem:[%s7845_s15 + $0xd30] sm:$0xff]  }
 0x1a9   : > { %v5130_v33 = vadd.f32 %v6804_v27, %v8280_v50  ;;  %v6828_v38 = vpop.f32.mrb[23].mxu1  ;;  %7128 = vmatprep.subr.bf16.mxu1 %v7700_v37  ;;  %v1442_v50 = vcombine.high %v1434_v46, %v1434_v46  ;;  %v7733_v27 = vld [vmem:[%s7845_s15 + $0xdf0] sm:$0xff]   ;;  %v7736_v32 = vld [vmem:[%s7845_s15 + $0xd78] sm:$0xff]   ;;  %v1204_v36 = vld [vmem:[%s7881_s20 + $0x68] sm:$0xff] }
 0x1aa   : > { %v7735_v31 = vld [vmem:[%s7845_s15 + $0xdb0] sm:$0xff]   ;;  %v7739_v37 = vld [vmem:[%s7845_s15 + $0xdb8] sm:$0xff]   ;;  %v1451_v38 = vrot.slane %v1204_v36, %v7883_v35 }
 0x1ab   : > { %v8317_v40 = vadd.f32 %v6826_v34, %v5130_v33  ;;  %7107 = vmatpush3.bf16.msra.mxu0 %v7701_v39  ;;  %v1608_v55 = vpack.c.bf16 %v1442_v50, %v1442_v50  ;;  %v7737_v33 = vld [vmem:[%s7845_s15 + $0xdf8] sm:$0xff]   ;;  %v1444_v39 = vcombine.high %v1204_v36, %v1204_v36  ;;  %v7745_v50 = vld [vmem:[%s7845_s15 + $0xe48] sm:$0xff]  }
 0x1ac   : > { %7108 = vmatprep.subr.bf16.mxu0 %v7703_v42  ;;  %7129 = vmatpush3.bf16.msra.mxu1 %v7702_v41  ;;  %v7738_v34 = vld [vmem:[%s7845_s15 + $0xd38] sm:$0xff]   ;;  %v1459_v41 = vcombine.high %v1451_v38, %v1451_v38 }
 0x1ad   : > { %7130 = vmatprep.subr.bf16.mxu1 %v7704_v43  ;;  %5687 = vmatprep.mubr.bf16.mxu0 %v1608_v55  ;;  %v1458_v42 = vrot.slane %v1444_v39, %v7883_v35  ;;  %v7742_v43 = vld [vmem:[%s7845_s15 + $0xec0] sm:$0xff]   ;;  %v7749_v55 = vld [vmem:[%s7845_s15 + $0xe50] sm:$0xff]  }
 0x1ae   : > { %v1612_v46 = vpack.c.bf16 %v1459_v41, %v1459_v41 }
 0x1af   : > { %7109 = vmatpush3.bf16.msra.mxu0 %v7705_v44  ;;  %v1611_v44 = vpack.c.bf16 %v1451_v38, %v1451_v38  ;;  %v1460_v47 = vcombine.high %v1458_v42, %v1458_v42  ;;  %v7776_v38 = vld [vmem:[%s7845_s15 + $0xf00] sm:$0xff]  }
 0x1b0   : > { %7138 = vmatprep.subr.bf16.mxu0 %v7708_v48  ;;  %7131 = vmatpush3.bf16.msra.mxu1 %v7706_v49  ;;  %v7744_v48 = vld [vmem:[%s7845_s15 + $0xe80] sm:$0xff]   ;;  %v1613_v49 = vpack.c.bf16 %v1458_v42, %v1458_v42 }
 0x1b1   : > { %7160 = vmatprep.subr.bf16.mxu1 %v7709_v52  ;;  %v1614_v51 = vpack.c.bf16 %v1460_v47, %v1460_v47  ;;  %v7746_v52 = vld [vmem:[%s7845_s15 + $0xec8] sm:$0xff]   ;;  %v7777_v42 = vld [vmem:[%s7845_s15 + $0xf80] sm:$0xff]   ;;  %v7783_v47 = vld [vmem:[%s7845_s15 + $0xfd0] sm:$0xff]  }
 0x1b2   : > { %5688 = vmatmul.mubr.bf16.vlgmr.msra.gmra.mrb[48].mxu0 %v1607_v53  ;;  %v7747_v53 = vld [vmem:[%s7845_s15 + $0xe08] sm:$0xff]  }
 0x1b3   : > { %7139 = vmatpush3.bf16.msra.mxu0 %v7710_v54  ;;  %5728 = vmatmul.mubr.bf16.vlgmr.msra.gmra.mrb[48].mxu1 %v1609_v58  ;;  %v7748_v54 = vld [vmem:[%s7845_s15 + $0xe88] sm:$0xff]   ;;  %v7752_v58 = vld [vmem:[%s7845_s15 + $0xe90] sm:$0xff]  }
 0x1b4   : > { %7140 = vmatprep.subr.bf16.mxu0 %v7712_v59  ;;  %7161 = vmatpush3.bf16.msra.mxu1 %v7711_v57  ;;  %v7751_v57 = vld [vmem:[%s7845_s15 + $0xe10] sm:$0xff]   ;;  %v7753_v59 = vld [vmem:[%s7845_s15 + $0xe58] sm:$0xff]  }
 0x1b5   : > { %7162 = vmatprep.subr.bf16.mxu1 %v7713_v61  ;;  %5767 = vmatprep.mubr.bf16.mxu0 %v1612_v46  ;;  %v7755_v61 = vld [vmem:[%s7845_s15 + $0xe18] sm:$0xff]   ;;  %v7781_v46 = vld [vmem:[%s7845_s15 + $0xf88] sm:$0xff]  }
 0x1b6   : > { %5807 = vmatprep.mubr.bf16.mxu1 %v1614_v51  ;;  %v7787_v51 = vld [vmem:[%s7845_s15 + $0xfd8] sm:$0xff]  }
 0x1b7   : > { %7141 = vmatpush3.bf16.msra.mxu0 %v7714_v62  ;;  %v7756_v62 = vld [vmem:[%s7845_s15 + $0xe98] sm:$0xff]  }
 0x1b8   : > { %7142 = vmatprep.subr.bf16.mxu0 %v7716_v0  ;;  %7163 = vmatpush3.bf16.msra.mxu1 %v7715_v63  ;;  %v7757_v63 = vld [vmem:[%s7845_s15 + $0xe60] sm:$0xff]  }
 0x1b9   : > { %7164 = vmatprep.subr.bf16.mxu1 %v7717_v1  ;;  %v7758_v0 = vld [vmem:[%s7845_s15 + $0xee0] sm:$0xff]  }
 0x1ba   : > { %v7759_v1 = vld [vmem:[%s7845_s15 + $0xe20] sm:$0xff]  }
 0x1bb   : > { %7143 = vmatpush3.bf16.msra.mxu0 %v7718_v2  ;;  %v7760_v2 = vld [vmem:[%s7845_s15 + $0xea0] sm:$0xff]  }
 0x1bc   : > { %7144 = vmatprep.subr.bf16.mxu0 %v7720_v4  ;;  %7165 = vmatpush3.bf16.msra.mxu1 %v7719_v3  ;;  %v7761_v3 = vld [vmem:[%s7845_s15 + $0xe68] sm:$0xff]  }
 0x1bd   : > { %7166 = vmatprep.subr.bf16.mxu1 %v7721_v5  ;;  %v7762_v5 = vld [vmem:[%s7845_s15 + $0xee8] sm:$0xff]  }
 0x1bf   : > { %7145 = vmatpush3.bf16.msra.mxu0 %v7722_v6 }
 0x1c0   : > { %7146 = vmatprep.subr.bf16.mxu0 %v7724_v8  ;;  %7167 = vmatpush3.bf16.msra.mxu1 %v7723_v7  ;;  %v7763_v7 = vld [vmem:[%s7845_s15 + $0xe28] sm:$0xff]  }
 0x1c1   : > { %7168 = vmatprep.subr.bf16.mxu1 %v7725_v9 }
 0x1c3   : > { %7147 = vmatpush3.bf16.msra.mxu0 %v7726_v10 }
 0x1c4   : > { %7148 = vmatprep.subr.bf16.mxu0 %v7728_v12  ;;  %7169 = vmatpush3.bf16.msra.mxu1 %v7727_v11  ;;  %v7764_v12 = vld [vmem:[%s7845_s15 + $0xea8] sm:$0xff]  }
 0x1c5   : > { %v6846_v13 = vpop.f32.mrb[24].mxu0  ;;  %7170 = vmatprep.subr.bf16.mxu1 %v7729_v14  ;;  %v7765_v14 = vld [vmem:[%s7845_s15 + $0xe70] sm:$0xff]  }
 0x1c6   : > { %v6847_v15 = vpop.f32.mrb[25].mxu0  ;;  %v6868_v17 = vpop.f32.mrb[24].mxu1 }
 0x1c7   : > { %v6848_v18 = vadd.f32 %v6847_v15, %v6846_v13  ;;  %v6849_v19 = vpop.f32.mrb[26].mxu0  ;;  %v6869_v22 = vpop.f32.mrb[25].mxu1  ;;  %7149 = vmatpush3.bf16.msra.mxu0 %v7730_v16 }
 0x1c8   : > { %v6850_v23 = vpop.f32.mrb[27].mxu0  ;;  %v6870_v25 = vadd.f32 %v6869_v22, %v6868_v17  ;;  %v6871_v26 = vpop.f32.mrb[26].mxu1  ;;  %7150 = vmatprep.subr.bf16.mxu0 %v7732_v21  ;;  %7171 = vmatpush3.bf16.msra.mxu1 %v7731_v20  ;;  %v7767_v20 = vld [vmem:[%s7845_s15 + $0xe30] sm:$0xff]   ;;  %v7769_v22 = vld [vmem:[%s7845_s15 + $0xe78] sm:$0xff]  }
 0x1c9   : > { %v5210_v24 = vadd.f32 %v6848_v18, %v8317_v40  ;;  %v6872_v28 = vpop.f32.mrb[27].mxu1  ;;  %7172 = vmatprep.subr.bf16.mxu1 %v7733_v27  ;;  %v7741_v40 = vld [vmem:[%s7845_s15 + $0xe40] sm:$0xff]   ;;  %v7766_v18 = vld [vmem:[%s7845_s15 + $0xef0] sm:$0xff]  }
 0x1ca   : > { %v7768_v23 = vld [vmem:[%s7845_s15 + $0xeb0] sm:$0xff]  }
 0x1cb   : > { %v8355_v30 = vadd.f32 %v6870_v25, %v5210_v24  ;;  %7151 = vmatpush3.bf16.msra.mxu0 %v7734_v29  ;;  %v7770_v24 = vld [vmem:[%s7845_s15 + $0xef8] sm:$0xff]   ;;  %v1205_v26 = vld [vmem:[%s7881_s20 + $0x70] sm:$0xff]  ;;  %v7774_v29 = vld [vmem:[%s7845_s15 + $0xf40] sm:$0xff]  }
 0x1cc   : > { %7152 = vmatprep.subr.bf16.mxu0 %v7736_v32  ;;  %7173 = vmatpush3.bf16.msra.mxu1 %v7735_v31  ;;  %v7771_v25 = vld [vmem:[%s7845_s15 + $0xe38] sm:$0xff]   ;;  %v1468_v27 = vrot.slane %v1205_v26, %v7883_v35  ;;  %v1461_v28 = vcombine.high %v1205_v26, %v1205_v26 }
 0x1cd   : > { %7174 = vmatprep.subr.bf16.mxu1 %v7737_v33  ;;  %v7775_v33 = vld [vmem:[%s7845_s15 + $0xfc0] sm:$0xff]  }
 0x1ce   : > { %v1476_v31 = vcombine.high %v1468_v27, %v1468_v27  ;;  %v1475_v32 = vrot.slane %v1461_v28, %v7883_v35 }
 0x1cf   : > { %7153 = vmatpush3.bf16.msra.mxu0 %v7738_v34  ;;  %v1615_v34 = vpack.c.bf16 %v1468_v27, %v1468_v27 }
 0x1d0   : > { %7182 = vmatprep.subr.bf16.mxu0 %v7741_v40  ;;  %7175 = vmatpush3.bf16.msra.mxu1 %v7739_v37  ;;  %v1616_v36 = vpack.c.bf16 %v1476_v31, %v1476_v31  ;;  %v1477_v37 = vcombine.high %v1475_v32, %v1475_v32  ;;  %v1617_v39 = vpack.c.bf16 %v1475_v32, %v1475_v32  ;;  %v7778_v40 = vld [vmem:[%s7845_s15 + $0xf48] sm:$0xff]  }
 0x1d1   : > { %7204 = vmatprep.subr.bf16.mxu1 %v7742_v43  ;;  %v7779_v43 = vld [vmem:[%s7845_s15 + $0xfc8] sm:$0xff]  }
 0x1d2   : > { %5768 = vmatmul.mubr.bf16.vlgmr.msra.gmra.mrb[52].mxu0 %v1611_v44  ;;  %v1618_v41 = vpack.c.bf16 %v1477_v37, %v1477_v37  ;;  %v7780_v44 = vld [vmem:[%s7845_s15 + $0xf08] sm:$0xff]  }
 0x1d3   : > { %7183 = vmatpush3.bf16.msra.mxu0 %v7743_v45  ;;  %5808 = vmatmul.mubr.bf16.vlgmr.msra.gmra.mrb[52].mxu1 %v1613_v49  ;;  %v7782_v45 = vld [vmem:[%s7845_s15 + $0xf50] sm:$0xff]   ;;  %v7786_v49 = vld [vmem:[%s7845_s15 + $0xf58] sm:$0xff]  }
 0x1d4   : > { %7184 = vmatprep.subr.bf16.mxu0 %v7745_v50  ;;  %7205 = vmatpush3.bf16.msra.mxu1 %v7744_v48  ;;  %v7784_v48 = vld [vmem:[%s7845_s15 + $0xf10] sm:$0xff]  }
 0x1d5   : > { %7206 = vmatprep.subr.bf16.mxu1 %v7746_v52  ;;  %5847 = vmatprep.mubr.bf16.mxu0 %v1616_v36  ;;  %v7785_v50 = vld [vmem:[%s7845_s15 + $0xf90] sm:$0xff]   ;;  %v7788_v52 = vld [vmem:[%s7845_s15 + $0xf18] sm:$0xff]  }
 0x1d6   : > { %5887 = vmatprep.mubr.bf16.mxu1 %v1618_v41 }
 0x1d7   : > { %7185 = vmatpush3.bf16.msra.mxu0 %v7747_v53  ;;  %v7790_v53 = vld [vmem:[%s7845_s15 + $0xf60] sm:$0xff]  }
 0x1d8   : > { %7186 = vmatprep.subr.bf16.mxu0 %v7749_v55  ;;  %7207 = vmatpush3.bf16.msra.mxu1 %v7748_v54  ;;  %v7789_v54 = vld [vmem:[%s7845_s15 + $0xf98] sm:$0xff]   ;;  %v7791_v55 = vld [vmem:[%s7845_s15 + $0xfe0] sm:$0xff]  }
 0x1d9   : > { %7208 = vmatprep.subr.bf16.mxu1 %v7750_v56  ;;  %v7792_v56 = vld [vmem:[%s7845_s15 + $0xf20] sm:$0xff]  }
 0x1db   : > { %7187 = vmatpush3.bf16.msra.mxu0 %v7751_v57  ;;  %v7794_v57 = vld [vmem:[%s7845_s15 + $0xf68] sm:$0xff]  }
 0x1dc   : > { %7188 = vmatprep.subr.bf16.mxu0 %v7753_v59  ;;  %7209 = vmatpush3.bf16.msra.mxu1 %v7752_v58  ;;  %v7793_v58 = vld [vmem:[%s7845_s15 + $0xfa0] sm:$0xff]  }
 0x1dd   : > { %7210 = vmatprep.subr.bf16.mxu1 %v7754_v60 }
 0x1df   : > { %7189 = vmatpush3.bf16.msra.mxu0 %v7755_v61  ;;  %v7795_v61 = vld [vmem:[%s7845_s15 + $0xfe8] sm:$0xff]  }
 0x1e0   : > { %7190 = vmatprep.subr.bf16.mxu0 %v7757_v63  ;;  %7211 = vmatpush3.bf16.msra.mxu1 %v7756_v62 }
 0x1e1   : > { %7212 = vmatprep.subr.bf16.mxu1 %v7758_v0 }
 0x1e3   : > { %7191 = vmatpush3.bf16.msra.mxu0 %v7759_v1  ;;  %v7796_v1 = vld [vmem:[%s7845_s15 + $0xf28] sm:$0xff]  }
 0x1e4   : > { %7192 = vmatprep.subr.bf16.mxu0 %v7761_v3  ;;  %7213 = vmatpush3.bf16.msra.mxu1 %v7760_v2  ;;  %v7798_v2 = vld [vmem:[%s7845_s15 + $0xf70] sm:$0xff]  }
 0x1e5   : > { %v6890_v4 = vpop.f32.mrb[28].mxu0  ;;  %7214 = vmatprep.subr.bf16.mxu1 %v7762_v5 }
 0x1e6   : > { %v6891_v6 = vpop.f32.mrb[29].mxu0  ;;  %v6912_v8 = vpop.f32.mrb[28].mxu1 }
 0x1e7   : > { %v6892_v9 = vadd.f32 %v6891_v6, %v6890_v4  ;;  %v6893_v10 = vpop.f32.mrb[30].mxu0  ;;  %v6913_v11 = vpop.f32.mrb[29].mxu1  ;;  %7193 = vmatpush3.bf16.msra.mxu0 %v7763_v7 }
 0x1e8   : > { %v6894_v13 = vpop.f32.mrb[31].mxu0  ;;  %v6914_v16 = vadd.f32 %v6913_v11, %v6912_v8  ;;  %v6915_v17 = vpop.f32.mrb[30].mxu1  ;;  %7194 = vmatprep.subr.bf16.mxu0 %v7765_v14  ;;  %7215 = vmatpush3.bf16.msra.mxu1 %v7764_v12  ;;  %v7797_v8 = vld [vmem:[%s7845_s15 + $0xfa8] sm:$0xff]   ;;  %v7799_v10 = vld [vmem:[%s7845_s15 + $0xff0] sm:$0xff]  }
 0x1e9   : > { %v5290_v15 = vadd.f32 %v6892_v9, %v8355_v30  ;;  %v6916_v19 = vpop.f32.mrb[31].mxu1  ;;  %7216 = vmatprep.subr.bf16.mxu1 %v7766_v18  ;;  %v7772_v30 = vld [vmem:[%s7845_s15 + $0xeb8] sm:$0xff]   ;;  %v7800_v12 = vld [vmem:[%s7845_s15 + $0xf30] sm:$0xff]  }
 0x1ea   : > { %v7802_v13 = vld [vmem:[%s7845_s15 + $0xf78] sm:$0xff]   ;;  %v7801_v14 = vld [vmem:[%s7845_s15 + $0xfb0] sm:$0xff]  }
 0x1eb   : > { %v8393_v21 = vadd.f32 %v6914_v16, %v5290_v15  ;;  %7195 = vmatpush3.bf16.msra.mxu0 %v7767_v20  ;;  %v7803_v15 = vld [vmem:[%s7845_s15 + $0xff8] sm:$0xff]  }
 0x1ec   : > { %7196 = vmatprep.subr.bf16.mxu0 %v7769_v22  ;;  %7217 = vmatpush3.bf16.msra.mxu1 %v7768_v23  ;;  %v7804_v16 = vld [vmem:[%s7845_s15 + $0xf38] sm:$0xff]  }
 0x1ed   : > { %7218 = vmatprep.subr.bf16.mxu1 %v7770_v24  ;;  %v1206_v17 = vld [vmem:[%s7881_s20 + $0x78] sm:$0xff] }
 0x1ee   : > { %v1485_v18 = vrot.slane %v1206_v17, %v7883_v35  ;;  %v1478_v19 = vcombine.high %v1206_v17, %v1206_v17  ;;  %v7805_v20 = vld [vmem:[%s7845_s15 + $0xfb8] sm:$0xff]  }
 0x1ef   : > { %7197 = vmatpush3.bf16.msra.mxu0 %v7771_v25 }
 0x1f0   : > { %7226 = vmatprep.subr.bf16.mxu0 %v7774_v29  ;;  %7219 = vmatpush3.bf16.msra.mxu1 %v7772_v30  ;;  %v1492_v22 = vrot.slane %v1478_v19, %v7883_v35  ;;  %v1619_v23 = vpack.c.bf16 %v1485_v18, %v1485_v18 }
 0x1f1   : > { %7248 = vmatprep.subr.bf16.mxu1 %v7775_v33 }
 0x1f2   : > { %5848 = vmatmul.mubr.bf16.vlgmr.msra.gmra.mrb[56].mxu0 %v1615_v34  ;;  %v1494_v25 = vcombine.high %v1492_v22, %v1492_v22  ;;  %v1621_v26 = vpack.c.bf16 %v1492_v22, %v1492_v22 }
 0x1f3   : > { %7227 = vmatpush3.bf16.msra.mxu0 %v7776_v38  ;;  %5888 = vmatmul.mubr.bf16.vlgmr.msra.gmra.mrb[56].mxu1 %v1617_v39 }
 0x1f4   : > { %7228 = vmatprep.subr.bf16.mxu0 %v7778_v40  ;;  %7249 = vmatpush3.bf16.msra.mxu1 %v7777_v42  ;;  %v1622_v27 = vpack.c.bf16 %v1494_v25, %v1494_v25 }
 0x1f5   : > { %7250 = vmatprep.subr.bf16.mxu1 %v7779_v43 }
 0x1f6   : > { %5967 = vmatprep.mubr.bf16.mxu1 %v1622_v27 }
 0x1f7   : > { %7229 = vmatpush3.bf16.msra.mxu0 %v7780_v44 }
 0x1f8   : > { %7230 = vmatprep.subr.bf16.mxu0 %v7782_v45  ;;  %7251 = vmatpush3.bf16.msra.mxu1 %v7781_v46 }
 0x1f9   : > { %7252 = vmatprep.subr.bf16.mxu1 %v7783_v47 }
 0x1fb   : > { %7231 = vmatpush3.bf16.msra.mxu0 %v7784_v48 }
 0x1fc   : > { %7232 = vmatprep.subr.bf16.mxu0 %v7786_v49  ;;  %7253 = vmatpush3.bf16.msra.mxu1 %v7785_v50 }
 0x1fd   : > { %7254 = vmatprep.subr.bf16.mxu1 %v7787_v51 }
 0x1ff   : > { %7233 = vmatpush3.bf16.msra.mxu0 %v7788_v52 }
 0x200   : > { %7234 = vmatprep.subr.bf16.mxu0 %v7790_v53  ;;  %7255 = vmatpush3.bf16.msra.mxu1 %v7789_v54 }
 0x201   : > { %7256 = vmatprep.subr.bf16.mxu1 %v7791_v55 }
 0x203   : > { %7235 = vmatpush3.bf16.msra.mxu0 %v7792_v56 }
 0x204   : > { %7236 = vmatprep.subr.bf16.mxu0 %v7794_v57  ;;  %7257 = vmatpush3.bf16.msra.mxu1 %v7793_v58 }
 0x205   : > { %v6934_v59 = vpop.f32.mrb[32].mxu0  ;;  %7258 = vmatprep.subr.bf16.mxu1 %v7795_v61 }
 0x206   : > { %v6935_v60 = vpop.f32.mrb[33].mxu0  ;;  %v6956_v62 = vpop.f32.mrb[32].mxu1 }
 0x207   : > { %v6936_v63 = vadd.f32 %v6935_v60, %v6934_v59  ;;  %v6937_v0 = vpop.f32.mrb[34].mxu0  ;;  %v6957_v3 = vpop.f32.mrb[33].mxu1  ;;  %7237 = vmatpush3.bf16.msra.mxu0 %v7796_v1 }
 0x208   : > { %v6938_v4 = vpop.f32.mrb[35].mxu0  ;;  %v6958_v6 = vadd.f32 %v6957_v3, %v6956_v62  ;;  %v6959_v7 = vpop.f32.mrb[34].mxu1  ;;  %7238 = vmatprep.subr.bf16.mxu0 %v7798_v2  ;;  %7259 = vmatpush3.bf16.msra.mxu1 %v7797_v8 }
 0x209   : > { %v5370_v5 = vadd.f32 %v6936_v63, %v8393_v21  ;;  %v6960_v9 = vpop.f32.mrb[35].mxu1  ;;  %7260 = vmatprep.subr.bf16.mxu1 %v7799_v10  ;;  %v1493_v21 = vcombine.high %v1485_v18, %v1485_v18 }
 0x20b   : > { %v5410_v11 = vadd.f32 %v6958_v6, %v5370_v5  ;;  %7239 = vmatpush3.bf16.msra.mxu0 %v7800_v12  ;;  %v1620_v24 = vpack.c.bf16 %v1493_v21, %v1493_v21 }
 0x20c   : > { %7240 = vmatprep.subr.bf16.mxu0 %v7802_v13  ;;  %7261 = vmatpush3.bf16.msra.mxu1 %v7801_v14 }
 0x20d   : > { %7262 = vmatprep.subr.bf16.mxu1 %v7803_v15  ;;  %5927 = vmatprep.mubr.bf16.mxu0 %v1620_v24 }
 0x20f   : > { %7241 = vmatpush3.bf16.msra.mxu0 %v7804_v16 }
 0x210   : > { %7263 = vmatpush3.bf16.msra.mxu1 %v7805_v20 }
 0x212   : > { %5928 = vmatmul.mubr.bf16.vlgmr.msra.gmra.mrb[60].mxu0 %v1619_v23 }
 0x213   : > { %5968 = vmatmul.mubr.bf16.vlgmr.msra.gmra.mrb[60].mxu1 %v1621_v26 }
 0x225   : > { %v6978_v28 = vpop.f32.mrb[36].mxu0 }
 0x226   : > { %v6979_v29 = vpop.f32.mrb[37].mxu0  ;;  %v7000_v30 = vpop.f32.mrb[36].mxu1 }
 0x227   : > { %v6980_v31 = vadd.f32 %v6979_v29, %v6978_v28  ;;  %v6981_v32 = vpop.f32.mrb[38].mxu0  ;;  %v7001_v33 = vpop.f32.mrb[37].mxu1 }
 0x228   : > { %v6982_v34 = vpop.f32.mrb[39].mxu0  ;;  %v7002_v35 = vadd.f32 %v7001_v33, %v7000_v30  ;;  %v7003_v37 = vpop.f32.mrb[38].mxu1 }
 0x229   : > { %v5450_v36 = vadd.f32 %v6980_v31, %v5410_v11  ;;  %v7004_v38 = vpop.f32.mrb[39].mxu1 }
 0x22b   : > { %v5490_v39 = vadd.f32 %v7002_v35, %v5450_v36 }
 0x245   : > { %v7022_v40 = vpop.f32.mrb[40].mxu0 }
 0x246   : > { %v7023_v41 = vpop.f32.mrb[41].mxu0  ;;  %v7044_v42 = vpop.f32.mrb[40].mxu1 }
 0x247   : > { %v7024_v43 = vadd.f32 %v7023_v41, %v7022_v40  ;;  %v7025_v44 = vpop.f32.mrb[42].mxu0  ;;  %v7045_v45 = vpop.f32.mrb[41].mxu1 }
 0x248   : > { %v7026_v46 = vpop.f32.mrb[43].mxu0  ;;  %v7046_v48 = vadd.f32 %v7045_v45, %v7044_v42  ;;  %v7047_v49 = vpop.f32.mrb[42].mxu1 }
 0x249   : > { %v5530_v47 = vadd.f32 %v7024_v43, %v5490_v39  ;;  %v7048_v50 = vpop.f32.mrb[43].mxu1 }
 0x24b   : > { %v5570_v51 = vadd.f32 %v7046_v48, %v5530_v47 }
 0x265   : > { %v7066_v52 = vpop.f32.mrb[44].mxu0 }
 0x266   : > { %v7067_v53 = vpop.f32.mrb[45].mxu0  ;;  %v7088_v54 = vpop.f32.mrb[44].mxu1 }
 0x267   : > { %v7068_v55 = vadd.f32 %v7067_v53, %v7066_v52  ;;  %v7069_v56 = vpop.f32.mrb[46].mxu0  ;;  %v7089_v57 = vpop.f32.mrb[45].mxu1 }
 0x268   : > { %v7070_v58 = vpop.f32.mrb[47].mxu0  ;;  %v7090_v60 = vadd.f32 %v7089_v57, %v7088_v54  ;;  %v7091_v61 = vpop.f32.mrb[46].mxu1 }
 0x269   : > { %v5610_v59 = vadd.f32 %v7068_v55, %v5570_v51  ;;  %v7092_v62 = vpop.f32.mrb[47].mxu1 }
 0x26b   : > { %v5650_v63 = vadd.f32 %v7090_v60, %v5610_v59 }
 0x285   : > { %v7110_v0 = vpop.f32.mrb[48].mxu0 }
 0x286   : > { %v7111_v1 = vpop.f32.mrb[49].mxu0  ;;  %v7132_v2 = vpop.f32.mrb[48].mxu1 }
 0x287   : > { %v7112_v3 = vadd.f32 %v7111_v1, %v7110_v0  ;;  %v7113_v4 = vpop.f32.mrb[50].mxu0  ;;  %v7133_v5 = vpop.f32.mrb[49].mxu1 }
 0x288   : > { %v7114_v6 = vpop.f32.mrb[51].mxu0  ;;  %v7134_v8 = vadd.f32 %v7133_v5, %v7132_v2  ;;  %v7135_v9 = vpop.f32.mrb[50].mxu1 }
 0x289   : > { %v5690_v7 = vadd.f32 %v7112_v3, %v5650_v63  ;;  %v7136_v10 = vpop.f32.mrb[51].mxu1 }
 0x28b   : > { %v5730_v11 = vadd.f32 %v7134_v8, %v5690_v7 }
 0x2a5   : > { %v7154_v12 = vpop.f32.mrb[52].mxu0 }
 0x2a6   : > { %v7155_v13 = vpop.f32.mrb[53].mxu0  ;;  %v7176_v14 = vpop.f32.mrb[52].mxu1 }
 0x2a7   : > { %v7156_v15 = vadd.f32 %v7155_v13, %v7154_v12  ;;  %v7157_v16 = vpop.f32.mrb[54].mxu0  ;;  %v7177_v17 = vpop.f32.mrb[53].mxu1 }
 0x2a8   : > { %v7158_v18 = vpop.f32.mrb[55].mxu0  ;;  %v7178_v20 = vadd.f32 %v7177_v17, %v7176_v14  ;;  %v7179_v21 = vpop.f32.mrb[54].mxu1 }
 0x2a9   : > { %v5770_v19 = vadd.f32 %v7156_v15, %v5730_v11  ;;  %v7180_v22 = vpop.f32.mrb[55].mxu1 }
 0x2ab   : > { %v5810_v23 = vadd.f32 %v7178_v20, %v5770_v19 }
 0x2c5   : > { %v7198_v24 = vpop.f32.mrb[56].mxu0 }
 0x2c6   : > { %v7199_v25 = vpop.f32.mrb[57].mxu0  ;;  %v7220_v26 = vpop.f32.mrb[56].mxu1 }
 0x2c7   : > { %v7200_v27 = vadd.f32 %v7199_v25, %v7198_v24  ;;  %v7201_v28 = vpop.f32.mrb[58].mxu0  ;;  %v7221_v29 = vpop.f32.mrb[57].mxu1 }
 0x2c8   : > { %v7202_v30 = vpop.f32.mrb[59].mxu0  ;;  %v7222_v32 = vadd.f32 %v7221_v29, %v7220_v26  ;;  %v7223_v33 = vpop.f32.mrb[58].mxu1 }
 0x2c9   : > { %v5850_v31 = vadd.f32 %v7200_v27, %v5810_v23  ;;  %v7224_v34 = vpop.f32.mrb[59].mxu1 }
 0x2cb   : > { %v5890_v36 = vadd.f32 %v7222_v32, %v5850_v31 }
 0x2e5   : > { %v7242_v35 = vpop.f32.mrb[60].mxu0 }
 0x2e6   : > { %v7243_v37 = vpop.f32.mrb[61].mxu0  ;;  %v7264_v38 = vpop.f32.mrb[60].mxu1 }
 0x2e7   : > { %v7244_v39 = vadd.f32 %v7243_v37, %v7242_v35  ;;  %v7245_v40 = vpop.f32.mrb[62].mxu0  ;;  %v7265_v41 = vpop.f32.mrb[61].mxu1 }
 0x2e8   : > { %v7246_v42 = vpop.f32.mrb[63].mxu0  ;;  %v7266_v44 = vadd.f32 %v7265_v41, %v7264_v38  ;;  %v7267_v45 = vpop.f32.mrb[62].mxu1 }
 0x2e9   : > { %v5930_v43 = vadd.f32 %v7244_v39, %v5890_v36  ;;  %v7268_v46 = vpop.f32.mrb[63].mxu1 }
 0x2eb   : > { %v5970_v47 = vadd.f32 %v7266_v44, %v5930_v43 }
 0x2ed   : > { %5976 = vst.msk [vmem:[%s165_s24] sm:$0x3] %vm5975_vm0, %v5970_v47 }
 0x2ee PF: > { %s12_s9 = sadd.s32 1, %s7813_s9  }
 0x2ef   : > { %p9_p6 = scmp.ge.s32.totalorder %s12_s9, 4  }
 0x2f1   :  { %11 = sbr.rel (!%p9_p6) target bundleno = 1 (0x1), region = 61 }

// kernel: discriminator_forward.7
= control target key start
LH: loop header
LB: loop body
LE: loop exit
PB: predicated region body
PF: predicated region fallthrough
CT: control target
= control target key end

     0   :  { %s5679_s12 = smov 0   ;;  %s6204_s0 = inlined_call_operand.vmem [shape: bf16[2,3,288,64], index: 0, kind: input, shape index: {}]   ;;  %s6205_s1 = inlined_call_operand.vmem [shape: bf16[9,64,128], index: 1, kind: input, shape index: {}]   ;;  %s6206_s2 = inlined_call_operand.vmem [shape: f32[1,128], index: 2, kind: input, shape index: {}]   ;;  %s6207_s3 = inlined_call_operand.vmem [shape: f32[2,256,128], index: 3, kind: output, shape index: {}]  }
   0x1 LB: > { %s3902_s13 = sadd.s32 4294967295, %s5657_s12   ;;  %p3906_p0 = scmp.ge.s32.totalorder %s5657_s12, 1  ;;  %s5657_s12 = sphi %s5679_s12, %s13_s12  }
   0x2   : > { %p137_p1 = scmp.lt.s32.totalorder %s5657_s12, 3 }
   0x4   : > { %p138_p2 = pnand %p3906_p0, %p137_p1 }
   0x5   : > { %v5339_v0 = vld [vmem:[%s6205_s1 + $0x20] sm:$0xff] (!%p138_p2)   ;;  %p161_p3 = scmp.lt.s32.totalorder (!%p138_p2), %s3902_s13, 1  ;;  %v5341_v2 = vld [vmem:[%s6205_s1 + $0x28] sm:$0xff] (!%p138_p2)   ;;  %v5343_v4 = vld [vmem:[%s6205_s1 + $0x30] sm:$0xff] (!%p138_p2)   ;;  %vm358_vm0 = vcmask (!%p138_p2), 523264  }
   0x6   : > { %141 = sbr.rel (%p138_p2) target bundleno = 554 (0x22a), region = 32  ;;  %v5340_v1 = vld [vmem:[%s6205_s1 + $0x80] sm:$0xff] (!%p138_p2)   ;;  %4706 = vmatprep.subr.bf16.mxu1 (!%p138_p2), %v5339_v0  ;;  %v5342_v3 = vld [vmem:[%s6205_s1 + $0x88] sm:$0xff] (!%p138_p2)   ;;  %v5344_v5 = vld [vmem:[%s6205_s1 + $0x90] sm:$0xff] (!%p138_p2)  }
   0x7   : > { %4866 = vmatprep.subr.bf16.mxu0 (!%p138_p2), %v5340_v1  ;;  %4707 = vmatpush3.bf16.msra.mxu1 (!%p138_p2), %v5339_v0  ;;  %v5345_v6 = vld [vmem:[%s6205_s1 + $0x38] sm:$0xff] (!%p138_p2)   ;;  %v5350_v10 = vld [vmem:[%s6205_s1] sm:$0xff] (!%p138_p2)   ;;  %v5357_v16 = vld [vmem:[%s6205_s1 + $0xa8] sm:$0xff] (!%p138_p2)  }
   0x8   : > { %4867 = vmatpush3.bf16.msra.mxu0 (!%p138_p2), %v5340_v1  ;;  %4708 = vmatprep.subr.bf16.mxu1 (!%p138_p2), %v5341_v2  ;;  %v5346_v7 = vld [vmem:[%s6205_s1 + $0x98] sm:$0xff] (!%p138_p2)   ;;  %v5352_v11 = vld [vmem:[%s6205_s1 + $0xa0] sm:$0xff] (!%p138_p2)   ;;  %v5361_v20 = vld [vmem:[%s6205_s1 + $0x8] sm:$0xff] (!%p138_p2)  }
   0x9   : > { %4868 = vmatprep.subr.bf16.mxu0 (!%p138_p2), %v5342_v3  ;;  %v5363_v22 = vld [vmem:[%s6205_s1 + $0xb0] sm:$0xff] (!%p138_p2)   ;;  %v5368_v24 = vld [vmem:[%s6205_s1 + $0xb8] sm:$0xff] (!%p138_p2)   ;;  %v5374_v29 = vld [vmem:[%s6205_s1 + $0xc0] sm:$0xff] (!%p138_p2)  }
   0xa   : > { %v5372_v28 = vld [vmem:[%s6205_s1 + $0x10] sm:$0xff] (!%p138_p2)   ;;  %v5382_v34 = vld [vmem:[%s6205_s1 + $0x18] sm:$0xff] (!%p138_p2)   ;;  %v5384_v39 = vld [vmem:[%s6205_s1 + $0xc8] sm:$0xff] (!%p138_p2)  }
   0xb   : > { %4709 = vmatpush3.bf16.msra.mxu1 (!%p138_p2), %v5341_v2  ;;  %v5392_v42 = vld [vmem:[%s6205_s1 + $0x40] sm:$0xff] (!%p138_p2)   ;;  %v5394_v44 = vld [vmem:[%s6205_s1 + $0xd0] sm:$0xff] (!%p138_p2)   ;;  %v5404_v50 = vld [vmem:[%s6205_s1 + $0xd8] sm:$0xff] (!%p138_p2)  }
   0xc   : > { %4869 = vmatpush3.bf16.msra.mxu0 (!%p138_p2), %v5342_v3  ;;  %4710 = vmatprep.subr.bf16.mxu1 (!%p138_p2), %v5343_v4  ;;  %v5414_v55 = vld [vmem:[%s6205_s1 + $0xe0] sm:$0xff] (!%p138_p2)   ;;  %v5402_v60 = vld [vmem:[%s6205_s1 + $0x48] sm:$0xff] (!%p138_p2)   ;;  %v5412_v61 = vld [vmem:[%s6205_s1 + $0x50] sm:$0xff] (!%p138_p2)  }
   0xd   : > { %s6209_s13 = smov (!%p161_p3, %s3902_s13), 1  ;;  %4870 = vmatprep.subr.bf16.mxu0 %v5344_v5  ;;  %v5422_v2 = vld [vmem:[%s6205_s1 + $0x58] sm:$0xff]  }
   0xe   : > { %s5330_s24 = smul.u32 432, %s6209_s13  ;;  %s4525_s26 = sshll.u32 %s6209_s13, 8 }
   0xf   : > { %4711 = vmatpush3.bf16.msra.mxu1 %v5343_v4  ;;  %v5858_v4 = vld [vmem:[%s6205_s1 + $0x60] sm:$0xff]   ;;  %s6147_s28 = scalar_lea.vmem %s6207_s3, %s4525_s26 }
  0x10   : > { %s5714_s4 = scalar_lea.vmem %s6204_s0, %s5330_s24  ;;  %4871 = vmatpush3.bf16.msra.mxu0 %v5344_v5  ;;  %4712 = vmatprep.subr.bf16.mxu1 %v5345_v6 }
  0x11   : > { %v5347_v8 = vld [vmem:[%s5714_s4 + $0x90] sm:$0xff]   ;;  %v5348_v9 = vld [vmem:[%s5714_s4 + $0x98] sm:$0xff]   ;;  %4872 = vmatprep.subr.bf16.mxu0 %v5346_v7  ;;  %v5351_v13 = vld [vmem:[%s5714_s4 + $0xa0] sm:$0xff]  }
  0x12   : > { %4714 = vmatprep.mubr.msk.bf16.mxu1 %vm358_vm0, %v5347_v8  ;;  %4874 = vmatprep.mubr.msk.bf16.mxu0 %vm358_vm0, %v5348_v9  ;;  %v5349_v12 = vld [vmem:[%s5714_s4 + $0x98] sm:$0xff]   ;;  %v5353_v14 = vld [vmem:[%s5714_s4 + $0xa0] sm:$0xff]   ;;  %v5354_v15 = vld [vmem:[%s5714_s4 + $0xa8] sm:$0xff]  }
  0x13   : > { %4713 = vmatpush3.bf16.msra.mxu1 %v5345_v6  ;;  %v5355_v17 = vld [vmem:[%s5714_s4 + $0xa8] sm:$0xff]   ;;  %v5356_v18 = vld [vmem:[%s5714_s4 + $0xb0] sm:$0xff]   ;;  %v5359_v21 = vld [vmem:[%s5714_s4 + $0xb8] sm:$0xff]  }
  0x14   : > { %4873 = vmatpush3.bf16.msra.mxu0 %v5346_v7  ;;  %4746 = vmatprep.subr.bf16.mxu1 %v5350_v10  ;;  %v5358_v19 = vld [vmem:[%s5714_s4 + $0xb0] sm:$0xff]   ;;  %v5360_v23 = vld [vmem:[%s5714_s4 + $0xb8] sm:$0xff]   ;;  %v5362_v25 = vld [vmem:[%s5714_s4 + $0xc0] sm:$0xff]  }
  0x15   : > { %4906 = vmatprep.subr.bf16.mxu0 %v5352_v11  ;;  %v5364_v26 = vld [vmem:[%s5714_s4 + $0xc0] sm:$0xff]   ;;  %v5365_v27 = vld [vmem:[%s5714_s4 + $0xc8] sm:$0xff]   ;;  %v5367_v31 = vld [vmem:[%s5714_s4 + $0xd0] sm:$0xff]  }
  0x16   : > { %4715 = vmatmul.mubr.msk.bf16.vlgmr.msra.gmra.mrb[0].mxu1 %vm358_vm0, %v5349_v12  ;;  %v5366_v30 = vld [vmem:[%s5714_s4 + $0xc8] sm:$0xff]   ;;  %v5369_v32 = vld [vmem:[%s5714_s4 + $0xd0] sm:$0xff]   ;;  %v5371_v35 = vld [vmem:[%s5714_s4 + $0xd8] sm:$0xff]  }
  0x17   : > { %4875 = vmatmul.mubr.msk.bf16.vlgmr.msra.gmra.mrb[0].mxu0 %vm358_vm0, %v5351_v13  ;;  %4747 = vmatpush3.bf16.msra.mxu1 %v5350_v10  ;;  %v5370_v33 = vld [vmem:[%s5714_s4 + $0x128] sm:$0xff]   ;;  %v5373_v36 = vld [vmem:[%s5714_s4 + $0x130] sm:$0xff]   ;;  %v5375_v37 = vld [vmem:[%s5714_s4 + $0xe0] sm:$0xff]  }
  0x18   : > { %4907 = vmatpush3.bf16.msra.mxu0 %v5352_v11  ;;  %4718 = vmatprep.mubr.msk.bf16.mxu1 %vm358_vm0, %v5353_v14  ;;  %v5376_v38 = vld [vmem:[%s5714_s4 + $0x138] sm:$0xff]   ;;  %v5377_v40 = vld [vmem:[%s5714_s4 + $0xe8] sm:$0xff]   ;;  %v5378_v41 = vld [vmem:[%s5714_s4 + $0x140] sm:$0xff]  }
  0x19   : > { %4878 = vmatprep.mubr.msk.bf16.mxu0 %vm358_vm0, %v5354_v15  ;;  %4908 = vmatprep.subr.bf16.mxu0 %v5357_v16  ;;  %v5379_v43 = vld [vmem:[%s5714_s4 + $0xf0] sm:$0xff]   ;;  %v5380_v45 = vld [vmem:[%s5714_s4 + $0x148] sm:$0xff]   ;;  %v5381_v46 = vld [vmem:[%s5714_s4 + $0xf8] sm:$0xff]  }
  0x1a   : > { %4748 = vmatprep.subr.bf16.mxu1 %v5361_v20  ;;  %v5383_v47 = vld [vmem:[%s5714_s4 + $0x150] sm:$0xff]   ;;  %v5385_v48 = vld [vmem:[%s5714_s4 + $0x100] sm:$0xff]   ;;  %v5386_v49 = vld [vmem:[%s5714_s4 + $0x158] sm:$0xff]  }
  0x1b   : > { %4749 = vmatpush3.bf16.msra.mxu1 %v5361_v20  ;;  %v5387_v51 = vld [vmem:[%s5714_s4 + $0x108] sm:$0xff]   ;;  %v5388_v52 = vld [vmem:[%s5714_s4 + $0x160] sm:$0xff]   ;;  %v5393_v57 = vld [vmem:[%s5714_s4 + $0x170] sm:$0xff]  }
  0x1c   : > { %4909 = vmatpush3.bf16.msra.mxu0 %v5357_v16  ;;  %4750 = vmatprep.subr.bf16.mxu1 %v5372_v28  ;;  %v5389_v53 = vld [vmem:[%s5714_s4] sm:$0xff]   ;;  %v5390_v54 = vld [vmem:[%s5714_s4 + $0x168] sm:$0xff]   ;;  %v5395_v58 = vld [vmem:[%s5714_s4 + $0x10] sm:$0xff]  }
  0x1d   : > { %4910 = vmatprep.subr.bf16.mxu0 %v5363_v22  ;;  %v5391_v56 = vld [vmem:[%s5714_s4 + $0x8] sm:$0xff]   ;;  %v5396_v59 = vld [vmem:[%s5714_s4 + $0x178] sm:$0xff]   ;;  %v5398_v63 = vld [vmem:[%s5714_s4 + $0x180] sm:$0xff]  }
  0x1e   : > { %4719 = vmatmul.mubr.msk.bf16.gmra.mrb[4].mxu1 %vm358_vm0, %v5355_v17  ;;  %v5397_v62 = vld [vmem:[%s5714_s4 + $0x18] sm:$0xff]   ;;  %v5399_v0 = vld [vmem:[%s5714_s4 + $0x20] sm:$0xff]   ;;  %v5400_v1 = vld [vmem:[%s5714_s4 + $0x188] sm:$0xff]  }
  0x1f   : > { %4879 = vmatmul.mubr.msk.bf16.gmra.mrb[4].mxu0 %vm358_vm0, %v5356_v18  ;;  %4722 = vmatprep.mubr.msk.bf16.mxu1 %vm358_vm0, %v5358_v19  ;;  %v5401_v3 = vld [vmem:[%s5714_s4 + $0x28] sm:$0xff]   ;;  %v5403_v5 = vld [vmem:[%s5714_s4 + $0x190] sm:$0xff]   ;;  %v5406_v7 = vld [vmem:[%s5714_s4 + $0x198] sm:$0xff]  }
  0x20   : > { %4882 = vmatprep.mubr.msk.bf16.mxu0 %vm358_vm0, %v5359_v21  ;;  %4911 = vmatpush3.bf16.msra.mxu0 %v5363_v22  ;;  %v5405_v6 = vld [vmem:[%s5714_s4 + $0x30] sm:$0xff]   ;;  %v5407_v8 = vld [vmem:[%s5714_s4 + $0x38] sm:$0xff]   ;;  %v5408_v9 = vld [vmem:[%s5714_s4 + $0x1a0] sm:$0xff]  }
  0x21   : > { %4912 = vmatprep.subr.bf16.mxu0 %v5368_v24  ;;  %4751 = vmatpush3.bf16.msra.mxu1 %v5372_v28  ;;  %v5409_v10 = vld [vmem:[%s5714_s4 + $0x40] sm:$0xff]   ;;  %v5410_v11 = vld [vmem:[%s5714_s4 + $0x10] sm:$0xff]   ;;  %v5411_v12 = vld [vmem:[%s5714_s4 + $0x48] sm:$0xff]  }
  0x22   : > { %4752 = vmatprep.subr.bf16.mxu1 %v5382_v34  ;;  %v5413_v13 = vld [vmem:[%s5714_s4 + $0x18] sm:$0xff]   ;;  %v5415_v14 = vld [vmem:[%s5714_s4 + $0x50] sm:$0xff]   ;;  %v5416_v15 = vld [vmem:[%s5714_s4 + $0x20] sm:$0xff]  }
  0x23   : > { %v5424_v16 = vld [vmem:[%s6205_s1 + $0xe8] sm:$0xff]   ;;  %v5417_v17 = vld [vmem:[%s5714_s4 + $0x58] sm:$0xff]   ;;  %v5434_v18 = vld [vmem:[%s6205_s1 + $0xf0] sm:$0xff]  }
  0x24   : > { %4913 = vmatpush3.bf16.msra.mxu0 %v5368_v24  ;;  %v5418_v19 = vld [vmem:[%s5714_s4 + $0x28] sm:$0xff]   ;;  %v5419_v20 = vld [vmem:[%s5714_s4 + $0x60] sm:$0xff]   ;;  %v5420_v21 = vld [vmem:[%s5714_s4 + $0x30] sm:$0xff]  }
  0x25   : > { %4946 = vmatprep.subr.bf16.mxu0 %v5374_v29  ;;  %4753 = vmatpush3.bf16.msra.mxu1 %v5382_v34  ;;  %v5444_v22 = vld [vmem:[%s6205_s1 + $0xf8] sm:$0xff]   ;;  %v5905_v24 = vld [vmem:[%s6205_s1 + $0x100] sm:$0xff]   ;;  %v5435_v34 = vld [vmem:[%s5714_s4 + $0x130] sm:$0xff]  }
  0x26   : > { %4723 = vmatmul.mubr.msk.bf16.gmra.mrb[8].mxu1 %vm358_vm0, %v5360_v23  ;;  %4786 = vmatprep.subr.bf16.mxu1 %v5392_v42  ;;  %v5421_v23 = vld [vmem:[%s5714_s4 + $0x68] sm:$0xff]   ;;  %v5427_v28 = vld [vmem:[%s5714_s4 + $0x78] sm:$0xff]  }
  0x27   : > { %4883 = vmatmul.mubr.msk.bf16.gmra.mrb[8].mxu0 %vm358_vm0, %v5362_v25  ;;  %4726 = vmatprep.mubr.msk.bf16.mxu1 %vm358_vm0, %v5364_v26  ;;  %v5423_v25 = vld [vmem:[%s5714_s4 + $0x38] sm:$0xff]   ;;  %v5425_v26 = vld [vmem:[%s5714_s4 + $0x70] sm:$0xff]  }
  0x28   : > { %4886 = vmatprep.mubr.msk.bf16.mxu0 %vm358_vm0, %v5365_v27  ;;  %v5426_v27 = vld [vmem:[%s5714_s4 + $0x40] sm:$0xff]  }
  0x2e   : > { %4727 = vmatmul.mubr.msk.bf16.gmra.mrb[12].mxu1 %vm358_vm0, %v5366_v30  ;;  %v5429_v30 = vld [vmem:[%s5714_s4 + $0x120] sm:$0xff]  }
  0x2f   : > { %4887 = vmatmul.mubr.msk.bf16.gmra.mrb[12].mxu0 %vm358_vm0, %v5367_v31  ;;  %4730 = vmatprep.mubr.msk.bf16.mxu1 %vm358_vm0, %v5369_v32  ;;  %v5430_v31 = vld [vmem:[%s5714_s4 + $0x50] sm:$0xff]   ;;  %v5431_v32 = vld [vmem:[%s5714_s4 + $0x128] sm:$0xff]  }
  0x30   : > { %4914 = vmatprep.mubr.msk.bf16.mxu0 %vm358_vm0, %v5370_v33  ;;  %v5433_v33 = vld [vmem:[%s5714_s4 + $0x58] sm:$0xff]  }
  0x36   : > { %4731 = vmatmul.mubr.msk.bf16.gmra.mrb[16].mxu1 %vm358_vm0, %v5371_v35  ;;  %v5436_v35 = vld [vmem:[%s5714_s4 + $0x60] sm:$0xff]  }
  0x37   : > { %4915 = vmatmul.mubr.msk.bf16.vlgmr.msra.gmra.mrb[0].mxu0 %vm358_vm0, %v5373_v36  ;;  %4734 = vmatprep.mubr.msk.bf16.mxu1 %vm358_vm0, %v5375_v37  ;;  %v5442_v36 = vld [vmem:[%s6205_s1 + $0x68] sm:$0xff]   ;;  %v5452_v37 = vld [vmem:[%s6205_s1 + $0x70] sm:$0xff]  }
  0x38   : > { %4947 = vmatpush3.bf16.msra.mxu0 %v5374_v29  ;;  %4918 = vmatprep.mubr.msk.bf16.mxu0 %vm358_vm0, %v5376_v38  ;;  %v5428_v29 = vld [vmem:[%s5714_s4 + $0x48] sm:$0xff]   ;;  %v5437_v38 = vld [vmem:[%s5714_s4 + $0x138] sm:$0xff]  }
  0x39   : > { %4948 = vmatprep.subr.bf16.mxu0 %v5384_v39 }
  0x3c   : > { %4949 = vmatpush3.bf16.msra.mxu0 %v5384_v39  ;;  %v5438_v39 = vld [vmem:[%s5714_s4 + $0x68] sm:$0xff]  }
  0x3d   : > { %4950 = vmatprep.subr.bf16.mxu0 %v5394_v44 }
  0x3e   : > { %4735 = vmatmul.mubr.msk.bf16.gmra.mrb[20].mxu1 %vm358_vm0, %v5377_v40  ;;  %v5439_v40 = vld [vmem:[%s5714_s4 + $0x140] sm:$0xff]  }
  0x3f   : > { %4919 = vmatmul.mubr.msk.bf16.gmra.mrb[4].mxu0 %vm358_vm0, %v5378_v41  ;;  %4738 = vmatprep.mubr.msk.bf16.mxu1 %vm358_vm0, %v5379_v43  ;;  %v5440_v41 = vld [vmem:[%s5714_s4 + $0x70] sm:$0xff]   ;;  %v5441_v43 = vld [vmem:[%s5714_s4 + $0x148] sm:$0xff]  }
  0x40   : > { %4922 = vmatprep.mubr.msk.bf16.mxu0 %vm358_vm0, %v5380_v45  ;;  %4951 = vmatpush3.bf16.msra.mxu0 %v5394_v44  ;;  %v5443_v44 = vld [vmem:[%s5714_s4 + $0x78] sm:$0xff]   ;;  %v5445_v45 = vld [vmem:[%s5714_s4 + $0x150] sm:$0xff]  }
  0x41   : > { %4952 = vmatprep.subr.bf16.mxu0 %v5404_v50 }
  0x44   : > { %4953 = vmatpush3.bf16.msra.mxu0 %v5404_v50  ;;  %v5449_v50 = vld [vmem:[%s5714_s4 + $0x160] sm:$0xff]  }
  0x45   : > { %4986 = vmatprep.subr.bf16.mxu0 %v5414_v55 }
  0x46   : > { %4739 = vmatmul.mubr.msk.bf16.gmra.mrb[24].mxu1 %vm358_vm0, %v5381_v46  ;;  %v5446_v46 = vld [vmem:[%s5714_s4 + $0x80] sm:$0xff]  }
  0x47   : > { %4923 = vmatmul.mubr.msk.bf16.gmra.mrb[8].mxu0 %vm358_vm0, %v5383_v47  ;;  %4742 = vmatprep.mubr.msk.bf16.mxu1 %vm358_vm0, %v5385_v48  ;;  %v5647_v47 = vld [vmem:[%s6205_s1 + $0x80] sm:$0xff]   ;;  %v5447_v48 = vld [vmem:[%s5714_s4 + $0x158] sm:$0xff]  }
  0x48   : > { %4926 = vmatprep.mubr.msk.bf16.mxu0 %vm358_vm0, %v5386_v49  ;;  %v5448_v49 = vld [vmem:[%s5714_s4 + $0x88] sm:$0xff]  }
  0x4e   : > { %4743 = vmatmul.mubr.msk.bf16.gmra.mrb[28].mxu1 %vm358_vm0, %v5387_v51  ;;  %v5450_v51 = vld [vmem:[%s5714_s4 + $0xa0] sm:$0xff]  }
  0x4f   : > { %4927 = vmatmul.mubr.msk.bf16.gmra.mrb[12].mxu0 %vm358_vm0, %v5388_v52  ;;  %4754 = vmatprep.mubr.msk.bf16.mxu1 %vm358_vm0, %v5389_v53  ;;  %v5451_v52 = vld [vmem:[%s5714_s4 + $0x168] sm:$0xff]  }
  0x50   : > { %4930 = vmatprep.mubr.msk.bf16.mxu0 %vm358_vm0, %v5390_v54  ;;  %v5453_v53 = vld [vmem:[%s5714_s4 + $0xa8] sm:$0xff]   ;;  %v5455_v54 = vld [vmem:[%s5714_s4 + $0x170] sm:$0xff]  }
  0x56   : > { %4755 = vmatmul.mubr.msk.bf16.vlgmr.msra.gmra.mrb[0].mxu1 %vm358_vm0, %v5391_v56  ;;  %v5464_v56 = vld [vmem:[%s6205_s1 + $0x108] sm:$0xff]  }
  0x57   : > { %4931 = vmatmul.mubr.msk.bf16.gmra.mrb[16].mxu0 %vm358_vm0, %v5393_v57  ;;  %4787 = vmatpush3.bf16.msra.mxu1 %v5392_v42  ;;  %v5462_v42 = vld [vmem:[%s6205_s1 + $0x78] sm:$0xff]   ;;  %v5473_v57 = vld [vmem:[%s6205_s1 + $0x110] sm:$0xff]  }
  0x58   : > { %4758 = vmatprep.mubr.msk.bf16.mxu1 %vm358_vm0, %v5395_v58  ;;  %4934 = vmatprep.mubr.msk.bf16.mxu0 %vm358_vm0, %v5396_v59  ;;  %v5457_v58 = vld [vmem:[%s5714_s4 + $0x178] sm:$0xff]  }
  0x59   : > { %4788 = vmatprep.subr.bf16.mxu1 %v5402_v60  ;;  %v5458_v59 = vld [vmem:[%s5714_s4 + $0xb8] sm:$0xff]  }
  0x5b   : > { %4789 = vmatpush3.bf16.msra.mxu1 %v5402_v60  ;;  %v5459_v60 = vld [vmem:[%s5714_s4 + $0x180] sm:$0xff]  }
  0x5c   : > { %4790 = vmatprep.subr.bf16.mxu1 %v5412_v61 }
  0x5e   : > { %4759 = vmatmul.mubr.msk.bf16.gmra.mrb[4].mxu1 %vm358_vm0, %v5397_v62  ;;  %v5482_v62 = vld [vmem:[%s6205_s1 + $0x118] sm:$0xff]  }
  0x5f   : > { %4935 = vmatmul.mubr.msk.bf16.gmra.mrb[20].mxu0 %vm358_vm0, %v5398_v63  ;;  %4762 = vmatprep.mubr.msk.bf16.mxu1 %vm358_vm0, %v5399_v0  ;;  %v5461_v63 = vld [vmem:[%s5714_s4 + $0x188] sm:$0xff]  }
  0x60   : > { %4938 = vmatprep.mubr.msk.bf16.mxu0 %vm358_vm0, %v5400_v1  ;;  %4791 = vmatpush3.bf16.msra.mxu1 %v5412_v61  ;;  %v5460_v61 = vld [vmem:[%s5714_s4 + $0xc0] sm:$0xff]   ;;  %v5463_v0 = vld [vmem:[%s5714_s4 + $0xc8] sm:$0xff]   ;;  %v5465_v1 = vld [vmem:[%s5714_s4 + $0x190] sm:$0xff]  }
  0x61   : > { %4792 = vmatprep.subr.bf16.mxu1 %v5422_v2 }
  0x64   : > { %4793 = vmatpush3.bf16.msra.mxu1 %v5422_v2  ;;  %v5466_v2 = vld [vmem:[%s5714_s4 + $0xd0] sm:$0xff]  }
  0x65   : > { %4826 = vmatprep.subr.bf16.mxu1 %v5858_v4 }
  0x66   : > { %4763 = vmatmul.mubr.msk.bf16.gmra.mrb[8].mxu1 %vm358_vm0, %v5401_v3  ;;  %v5467_v3 = vld [vmem:[%s5714_s4 + $0x198] sm:$0xff]  }
  0x67   : > { %4939 = vmatmul.mubr.msk.bf16.gmra.mrb[24].mxu0 %vm358_vm0, %v5403_v5  ;;  %4766 = vmatprep.mubr.msk.bf16.mxu1 %vm358_vm0, %v5405_v6  ;;  %v5469_v5 = vld [vmem:[%s5714_s4 + $0x8] sm:$0xff]   ;;  %v5470_v6 = vld [vmem:[%s5714_s4 + $0xe0] sm:$0xff]  }
  0x68   : > { %4942 = vmatprep.mubr.msk.bf16.mxu0 %vm358_vm0, %v5406_v7  ;;  %v5471_v7 = vld [vmem:[%s5714_s4 + $0x10] sm:$0xff]  }
  0x6e   : > { %4767 = vmatmul.mubr.msk.bf16.gmra.mrb[12].mxu1 %vm358_vm0, %v5407_v8  ;;  %v5472_v8 = vld [vmem:[%s5714_s4 + $0xe8] sm:$0xff]  }
  0x6f   : > { %4943 = vmatmul.mubr.msk.bf16.gmra.mrb[28].mxu0 %vm358_vm0, %v5408_v9  ;;  %4770 = vmatprep.mubr.msk.bf16.mxu1 %vm358_vm0, %v5409_v10  ;;  %v5474_v9 = vld [vmem:[%s5714_s4 + $0x18] sm:$0xff]   ;;  %v5475_v10 = vld [vmem:[%s5714_s4 + $0xf0] sm:$0xff]  }
  0x70   : > { %4954 = vmatprep.mubr.msk.bf16.mxu0 %vm358_vm0, %v5410_v11  ;;  %v5648_v11 = vld [vmem:[%s6205_s1 + $0x88] sm:$0xff]  }
  0x76   : > { %4771 = vmatmul.mubr.msk.bf16.gmra.mrb[16].mxu1 %vm358_vm0, %v5411_v12  ;;  %v5476_v12 = vld [vmem:[%s5714_s4 + $0x20] sm:$0xff]  }
  0x77   : > { %4955 = vmatmul.mubr.msk.bf16.vlgmr.msra.gmra.mrb[0].mxu0 %vm358_vm0, %v5413_v13  ;;  %4774 = vmatprep.mubr.msk.bf16.mxu1 %vm358_vm0, %v5415_v14  ;;  %v5477_v13 = vld [vmem:[%s5714_s4 + $0xf8] sm:$0xff]   ;;  %v5478_v14 = vld [vmem:[%s5714_s4 + $0x28] sm:$0xff]  }
  0x78   : > { %4987 = vmatpush3.bf16.msra.mxu0 %v5414_v55  ;;  %4958 = vmatprep.mubr.msk.bf16.mxu0 %vm358_vm0, %v5416_v15  ;;  %v5456_v55 = vld [vmem:[%s5714_s4 + $0xb0] sm:$0xff]   ;;  %v5479_v15 = vld [vmem:[%s5714_s4 + $0x100] sm:$0xff]  }
  0x79   : > { %4988 = vmatprep.subr.bf16.mxu0 %v5424_v16 }
  0x7c   : > { %4989 = vmatpush3.bf16.msra.mxu0 %v5424_v16  ;;  %v5649_v16 = vld [vmem:[%s6205_s1 + $0x90] sm:$0xff]  }
  0x7d   : > { %4990 = vmatprep.subr.bf16.mxu0 %v5434_v18 }
  0x7e   : > { %4775 = vmatmul.mubr.msk.bf16.gmra.mrb[20].mxu1 %vm358_vm0, %v5417_v17  ;;  %v5650_v17 = vld [vmem:[%s6205_s1 + $0x98] sm:$0xff]  }
  0x7f   : > { %4959 = vmatmul.mubr.msk.bf16.gmra.mrb[4].mxu0 %vm358_vm0, %v5418_v19  ;;  %4778 = vmatprep.mubr.msk.bf16.mxu1 %vm358_vm0, %v5419_v20  ;;  %v5481_v19 = vld [vmem:[%s5714_s4 + $0x108] sm:$0xff]   ;;  %v5483_v20 = vld [vmem:[%s5714_s4 + $0x38] sm:$0xff]  }
  0x80   : > { %4962 = vmatprep.mubr.msk.bf16.mxu0 %vm358_vm0, %v5420_v21  ;;  %4991 = vmatpush3.bf16.msra.mxu0 %v5434_v18  ;;  %v5480_v18 = vld [vmem:[%s5714_s4 + $0x30] sm:$0xff]  }
  0x81   : > { %4992 = vmatprep.subr.bf16.mxu0 %v5444_v22  ;;  %v5484_v21 = vld [vmem:[%s5714_s4 + $0x110] sm:$0xff]  }
  0x84   : > { %4993 = vmatpush3.bf16.msra.mxu0 %v5444_v22  ;;  %v5485_v22 = vld [vmem:[%s5714_s4 + $0x40] sm:$0xff]  }
  0x85   : > { %5026 = vmatprep.subr.bf16.mxu0 %v5905_v24 }
  0x86   : > { %4779 = vmatmul.mubr.msk.bf16.gmra.mrb[24].mxu1 %vm358_vm0, %v5421_v23  ;;  %v5486_v23 = vld [vmem:[%s5714_s4 + $0x118] sm:$0xff]  }
  0x87   : > { %4963 = vmatmul.mubr.msk.bf16.gmra.mrb[8].mxu0 %vm358_vm0, %v5423_v25  ;;  %4782 = vmatprep.mubr.msk.bf16.mxu1 %vm358_vm0, %v5425_v26  ;;  %v5488_v25 = vld [vmem:[%s5714_s4 + $0x130] sm:$0xff]  }
  0x88   : > { %4966 = vmatprep.mubr.msk.bf16.mxu0 %vm358_vm0, %v5426_v27  ;;  %v5489_v26 = vld [vmem:[%s5714_s4 + $0x50] sm:$0xff]   ;;  %v5490_v27 = vld [vmem:[%s5714_s4 + $0x138] sm:$0xff]  }
  0x8e   : > { %4783 = vmatmul.mubr.msk.bf16.gmra.mrb[28].mxu1 %vm358_vm0, %v5427_v28  ;;  %v5491_v28 = vld [vmem:[%s5714_s4 + $0x58] sm:$0xff]  }
  0x8f   : > { %4967 = vmatmul.mubr.msk.bf16.gmra.mrb[12].mxu0 %vm358_vm0, %v5428_v29  ;;  %4794 = vmatprep.mubr.msk.bf16.mxu1 %vm358_vm0, %v5429_v30  ;;  %v5492_v29 = vld [vmem:[%s5714_s4 + $0x140] sm:$0xff]  }
  0x90   : > { %4970 = vmatprep.mubr.msk.bf16.mxu0 %vm358_vm0, %v5430_v31  ;;  %v5493_v30 = vld [vmem:[%s5714_s4 + $0x60] sm:$0xff]   ;;  %v5494_v31 = vld [vmem:[%s5714_s4 + $0x148] sm:$0xff]  }
  0x96   : > { %4795 = vmatmul.mubr.msk.bf16.vlgmr.msra.gmra.mrb[0].mxu1 %vm358_vm0, %v5431_v32  ;;  %v5495_v32 = vld [vmem:[%s5714_s4 + $0x68] sm:$0xff]  }
  0x97   : > { %4971 = vmatmul.mubr.msk.bf16.gmra.mrb[16].mxu0 %vm358_vm0, %v5433_v33  ;;  %4827 = vmatpush3.bf16.msra.mxu1 %v5858_v4  ;;  %v5468_v4 = vld [vmem:[%s5714_s4 + $0xd8] sm:$0xff]   ;;  %v5496_v33 = vld [vmem:[%s5714_s4 + $0x150] sm:$0xff]  }
  0x98   : > { %4798 = vmatprep.mubr.msk.bf16.mxu1 %vm358_vm0, %v5435_v34  ;;  %4974 = vmatprep.mubr.msk.bf16.mxu0 %vm358_vm0, %v5436_v35  ;;  %v5497_v34 = vld [vmem:[%s5714_s4 + $0x70] sm:$0xff]   ;;  %v5498_v35 = vld [vmem:[%s5714_s4 + $0x158] sm:$0xff]  }
  0x99   : > { %4828 = vmatprep.subr.bf16.mxu1 %v5442_v36 }
  0x9b   : > { %4829 = vmatpush3.bf16.msra.mxu1 %v5442_v36  ;;  %v5499_v36 = vld [vmem:[%s5714_s4 + $0x78] sm:$0xff]  }
  0x9c   : > { %4830 = vmatprep.subr.bf16.mxu1 %v5452_v37 }
  0x9e   : > { %4799 = vmatmul.mubr.msk.bf16.gmra.mrb[4].mxu1 %vm358_vm0, %v5437_v38  ;;  %v5501_v38 = vld [vmem:[%s5714_s4 + $0x80] sm:$0xff]  }
  0x9f   : > { %4975 = vmatmul.mubr.msk.bf16.gmra.mrb[20].mxu0 %vm358_vm0, %v5438_v39  ;;  %4802 = vmatprep.mubr.msk.bf16.mxu1 %vm358_vm0, %v5439_v40  ;;  %v5502_v39 = vld [vmem:[%s5714_s4 + $0x168] sm:$0xff]   ;;  %v5503_v40 = vld [vmem:[%s5714_s4 + $0xd8] sm:$0xff]  }
  0xa0   : > { %4978 = vmatprep.mubr.msk.bf16.mxu0 %vm358_vm0, %v5440_v41  ;;  %4831 = vmatpush3.bf16.msra.mxu1 %v5452_v37  ;;  %v5500_v37 = vld [vmem:[%s5714_s4 + $0x160] sm:$0xff]   ;;  %v5504_v41 = vld [vmem:[%s5714_s4 + $0x170] sm:$0xff]  }
  0xa1   : > { %4832 = vmatprep.subr.bf16.mxu1 %v5462_v42 }
  0xa4   : > { %4833 = vmatpush3.bf16.msra.mxu1 %v5462_v42  ;;  %v5505_v42 = vld [vmem:[%s5714_s4 + $0xe0] sm:$0xff]  }
  0xa5   : > { %5066 = vmatprep.subr.bf16.mxu1 %v5647_v47 }
  0xa6   : > { %4803 = vmatmul.mubr.msk.bf16.gmra.mrb[8].mxu1 %vm358_vm0, %v5441_v43  ;;  %v5506_v43 = vld [vmem:[%s5714_s4 + $0x178] sm:$0xff]  }
  0xa7   : > { %4979 = vmatmul.mubr.msk.bf16.gmra.mrb[24].mxu0 %vm358_vm0, %v5443_v44  ;;  %4806 = vmatprep.mubr.msk.bf16.mxu1 %vm358_vm0, %v5445_v45  ;;  %v5507_v44 = vld [vmem:[%s5714_s4 + $0xe8] sm:$0xff]   ;;  %v5508_v45 = vld [vmem:[%s5714_s4 + $0x180] sm:$0xff]  }
  0xa8   : > { %4982 = vmatprep.mubr.msk.bf16.mxu0 %vm358_vm0, %v5446_v46  ;;  %v5509_v46 = vld [vmem:[%s5714_s4 + $0xf0] sm:$0xff]  }
  0xae   : > { %4807 = vmatmul.mubr.msk.bf16.gmra.mrb[12].mxu1 %vm358_vm0, %v5447_v48  ;;  %v5511_v48 = vld [vmem:[%s5714_s4 + $0xf8] sm:$0xff]  }
  0xaf   : > { %4983 = vmatmul.mubr.msk.bf16.gmra.mrb[28].mxu0 %vm358_vm0, %v5448_v49  ;;  %4810 = vmatprep.mubr.msk.bf16.mxu1 %vm358_vm0, %v5449_v50  ;;  %v5512_v49 = vld [vmem:[%s5714_s4 + $0x190] sm:$0xff]   ;;  %v5513_v50 = vld [vmem:[%s5714_s4 + $0x100] sm:$0xff]  }
  0xb0   : > { %4994 = vmatprep.mubr.msk.bf16.mxu0 %vm358_vm0, %v5450_v51  ;;  %v5514_v51 = vld [vmem:[%s5714_s4 + $0x198] sm:$0xff]  }
  0xb6   : > { %4811 = vmatmul.mubr.msk.bf16.gmra.mrb[16].mxu1 %vm358_vm0, %v5451_v52  ;;  %v5515_v52 = vld [vmem:[%s5714_s4 + $0x108] sm:$0xff]  }
  0xb7   : > { %4995 = vmatmul.mubr.msk.bf16.vlgmr.msra.gmra.mrb[0].mxu0 %vm358_vm0, %v5453_v53  ;;  %4814 = vmatprep.mubr.msk.bf16.mxu1 %vm358_vm0, %v5455_v54  ;;  %v5516_v53 = vld [vmem:[%s5714_s4 + $0x1a0] sm:$0xff]   ;;  %v5517_v54 = vld [vmem:[%s5714_s4 + $0x110] sm:$0xff]  }
  0xb8   : > { %5027 = vmatpush3.bf16.msra.mxu0 %v5905_v24  ;;  %4998 = vmatprep.mubr.msk.bf16.mxu0 %vm358_vm0, %v5456_v55  ;;  %v5487_v24 = vld [vmem:[%s5714_s4 + $0x48] sm:$0xff]  }
  0xb9   : > { %5028 = vmatprep.subr.bf16.mxu0 %v5464_v56  ;;  %v5518_v55 = vld [vmem:[%s5714_s4 + $0x1a8] sm:$0xff]  }
  0xbc   : > { %5029 = vmatpush3.bf16.msra.mxu0 %v5464_v56 }
  0xbd   : > { %5030 = vmatprep.subr.bf16.mxu0 %v5473_v57 }
  0xbe   : > { %4815 = vmatmul.mubr.msk.bf16.gmra.mrb[20].mxu1 %vm358_vm0, %v5457_v58 }
  0xbf   : > { %4999 = vmatmul.mubr.msk.bf16.gmra.mrb[4].mxu0 %vm358_vm0, %v5458_v59  ;;  %4818 = vmatprep.mubr.msk.bf16.mxu1 %vm358_vm0, %v5459_v60 }
  0xc0   : > { %5002 = vmatprep.mubr.msk.bf16.mxu0 %vm358_vm0, %v5460_v61  ;;  %5031 = vmatpush3.bf16.msra.mxu0 %v5473_v57 }
  0xc1   : > { %5032 = vmatprep.subr.bf16.mxu0 %v5482_v62 }
  0xc4   : > { %5033 = vmatpush3.bf16.msra.mxu0 %v5482_v62 }
  0xc6   : > { %4819 = vmatmul.mubr.msk.bf16.gmra.mrb[24].mxu1 %vm358_vm0, %v5461_v63 }
  0xc7   : > { %5003 = vmatmul.mubr.msk.bf16.gmra.mrb[8].mxu0 %vm358_vm0, %v5463_v0  ;;  %4822 = vmatprep.mubr.msk.bf16.mxu1 %vm358_vm0, %v5465_v1 }
  0xc8   : > { %5006 = vmatprep.mubr.msk.bf16.mxu0 %vm358_vm0, %v5466_v2 }
  0xce   : > { %4823 = vmatmul.mubr.msk.bf16.gmra.mrb[28].mxu1 %vm358_vm0, %v5467_v3 }
  0xcf   : > { %5007 = vmatmul.mubr.msk.bf16.gmra.mrb[12].mxu0 %vm358_vm0, %v5468_v4  ;;  %4834 = vmatprep.mubr.msk.bf16.mxu1 %vm358_vm0, %v5469_v5 }
  0xd0   : > { %5010 = vmatprep.mubr.msk.bf16.mxu0 %vm358_vm0, %v5470_v6 }
  0xd6   : > { %4835 = vmatmul.mubr.msk.bf16.vlgmr.msra.gmra.mrb[0].mxu1 %vm358_vm0, %v5471_v7 }
  0xd7   : > { %5011 = vmatmul.mubr.msk.bf16.gmra.mrb[16].mxu0 %vm358_vm0, %v5472_v8  ;;  %5070 = vmatpush3.bf16.msra.mxu1 %v5647_v47  ;;  %v5510_v47 = vld [vmem:[%s5714_s4 + $0x188] sm:$0xff]  }
  0xd8   : > { %4838 = vmatprep.mubr.msk.bf16.mxu1 %vm358_vm0, %v5474_v9  ;;  %5014 = vmatprep.mubr.msk.bf16.mxu0 %vm358_vm0, %v5475_v10  ;;  %v6124_v9 = vld [vmem:[%s6206_s2] ss:$0 sm:$0xff] }
  0xd9   : > { %5067 = vmatprep.subr.bf16.mxu1 %v5648_v11 }
  0xdb   : > { %5071 = vmatpush3.bf16.msra.mxu1 %v5648_v11 }
  0xdc   : > { %5068 = vmatprep.subr.bf16.mxu1 %v5649_v16 }
  0xde   : > { %4839 = vmatmul.mubr.msk.bf16.gmra.mrb[4].mxu1 %vm358_vm0, %v5476_v12 }
  0xdf   : > { %5015 = vmatmul.mubr.msk.bf16.gmra.mrb[20].mxu0 %vm358_vm0, %v5477_v13  ;;  %4842 = vmatprep.mubr.msk.bf16.mxu1 %vm358_vm0, %v5478_v14 }
  0xe0   : > { %5018 = vmatprep.mubr.msk.bf16.mxu0 %vm358_vm0, %v5479_v15  ;;  %5072 = vmatpush3.bf16.msra.mxu1 %v5649_v16 }
  0xe1   : > { %5069 = vmatprep.subr.bf16.mxu1 %v5650_v17 }
  0xe4   : > { %5073 = vmatpush3.bf16.msra.mxu1 %v5650_v17 }
  0xe6   : > { %4843 = vmatmul.mubr.msk.bf16.gmra.mrb[8].mxu1 %vm358_vm0, %v5480_v18 }
  0xe7   : > { %5019 = vmatmul.mubr.msk.bf16.gmra.mrb[24].mxu0 %vm358_vm0, %v5481_v19  ;;  %4846 = vmatprep.mubr.msk.bf16.mxu1 %vm358_vm0, %v5483_v20 }
  0xe8   : > { %5022 = vmatprep.mubr.msk.bf16.mxu0 %vm358_vm0, %v5484_v21 }
  0xee   : > { %4847 = vmatmul.mubr.msk.bf16.gmra.mrb[12].mxu1 %vm358_vm0, %v5485_v22 }
  0xef   : > { %5023 = vmatmul.mubr.msk.bf16.gmra.mrb[28].mxu0 %vm358_vm0, %v5486_v23  ;;  %4850 = vmatprep.mubr.msk.bf16.mxu1 %vm358_vm0, %v5487_v24 }
  0xf0   : > { %5034 = vmatprep.mubr.msk.bf16.mxu0 %vm358_vm0, %v5488_v25 }
  0xf6   : > { %4851 = vmatmul.mubr.msk.bf16.gmra.mrb[16].mxu1 %vm358_vm0, %v5489_v26 }
  0xf7   : > { %5035 = vmatmul.mubr.msk.bf16.vlgmr.msra.gmra.mrb[0].mxu0 %vm358_vm0, %v5490_v27  ;;  %4854 = vmatprep.mubr.msk.bf16.mxu1 %vm358_vm0, %v5491_v28 }
  0xf8   : > { %5038 = vmatprep.mubr.msk.bf16.mxu0 %vm358_vm0, %v5492_v29 }
  0xfe   : > { %4855 = vmatmul.mubr.msk.bf16.gmra.mrb[20].mxu1 %vm358_vm0, %v5493_v30 }
  0xff   : > { %5039 = vmatmul.mubr.msk.bf16.gmra.mrb[4].mxu0 %vm358_vm0, %v5494_v31  ;;  %4858 = vmatprep.mubr.msk.bf16.mxu1 %vm358_vm0, %v5495_v32 }
 0x100   : > { %5042 = vmatprep.mubr.msk.bf16.mxu0 %vm358_vm0, %v5496_v33 }
 0x106   : > { %4859 = vmatmul.mubr.msk.bf16.gmra.mrb[24].mxu1 %vm358_vm0, %v5497_v34 }
 0x107   : > { %5043 = vmatmul.mubr.msk.bf16.gmra.mrb[8].mxu0 %vm358_vm0, %v5498_v35  ;;  %4862 = vmatprep.mubr.msk.bf16.mxu1 %vm358_vm0, %v5499_v36 }
 0x108   : > { %5046 = vmatprep.mubr.msk.bf16.mxu0 %vm358_vm0, %v5500_v37 }
 0x10e   : > { %4863 = vmatmul.mubr.msk.bf16.gmra.mrb[28].mxu1 %vm358_vm0, %v5501_v38 }
 0x10f   : > { %5047 = vmatmul.mubr.msk.bf16.gmra.mrb[12].mxu0 %vm358_vm0, %v5502_v39  ;;  %4890 = vmatprep.mubr.msk.bf16.mxu1 %vm358_vm0, %v5503_v40 }
 0x110   : > { %5050 = vmatprep.mubr.msk.bf16.mxu0 %vm358_vm0, %v5504_v41 }
 0x116   : > { %4891 = vmatmul.mubr.msk.bf16.vlgmr.msra.gmra.mrb[16].mxu1 %vm358_vm0, %v5505_v42 }
 0x117   : > { %5051 = vmatmul.mubr.msk.bf16.gmra.mrb[16].mxu0 %vm358_vm0, %v5506_v43  ;;  %4894 = vmatprep.mubr.msk.bf16.mxu1 %vm358_vm0, %v5507_v44 }
 0x118   : > { %5054 = vmatprep.mubr.msk.bf16.mxu0 %vm358_vm0, %v5508_v45 }
 0x11e   : > { %4895 = vmatmul.mubr.msk.bf16.gmra.mrb[20].mxu1 %vm358_vm0, %v5509_v46 }
 0x11f   : > { %5055 = vmatmul.mubr.msk.bf16.gmra.mrb[20].mxu0 %vm358_vm0, %v5510_v47  ;;  %4898 = vmatprep.mubr.msk.bf16.mxu1 %vm358_vm0, %v5511_v48 }
 0x120   : > { %5058 = vmatprep.mubr.msk.bf16.mxu0 %vm358_vm0, %v5512_v49 }
 0x126   : > { %4899 = vmatmul.mubr.msk.bf16.gmra.mrb[24].mxu1 %vm358_vm0, %v5513_v50 }
 0x127   : > { %5059 = vmatmul.mubr.msk.bf16.gmra.mrb[24].mxu0 %vm358_vm0, %v5514_v51  ;;  %4902 = vmatprep.mubr.msk.bf16.mxu1 %vm358_vm0, %v5515_v52 }
 0x128   : > { %5062 = vmatprep.mubr.msk.bf16.mxu0 %vm358_vm0, %v5516_v53 }
 0x12e   : > { %4903 = vmatmul.mubr.msk.bf16.gmra.mrb[28].mxu1 %vm358_vm0, %v5517_v54 }
 0x12f   : > { %5063 = vmatmul.mubr.msk.bf16.gmra.mrb[28].mxu0 %vm358_vm0, %v5518_v55 }
 0x1a9   : > { %v4836_v56 = vpop.f32.mrb[0].mxu1 }
 0x1aa   : > { %v1495_v57 = vpop.f32.mrb[1].mxu1 }
 0x1ab   : > { %v4837_v58 = vpop.f32.mrb[2].mxu1 }
 0x1ac   : > { %v1498_v59 = vpop.f32.mrb[3].mxu1 }
 0x1b1   : > { %v4840_v60 = vpop.f32.mrb[4].mxu1 }
 0x1b2   : > { %v1511_v61 = vpop.f32.mrb[5].mxu1 }
 0x1b3   : > { %v4841_v62 = vpop.f32.mrb[6].mxu1 }
 0x1b4   : > { %v1514_v63 = vpop.f32.mrb[7].mxu1 }
 0x1b9   : > { %v4844_v0 = vpop.f32.mrb[8].mxu1 }
 0x1ba   : > { %v1527_v1 = vpop.f32.mrb[9].mxu1 }
 0x1bb   : > { %v4845_v2 = vpop.f32.mrb[10].mxu1 }
 0x1bc   : > { %v6111_v3 = vpop.f32.mrb[11].mxu1 }
 0x1c1   : > { %v6113_v4 = vpop.f32.mrb[12].mxu1 }
 0x1c2   : > { %v6115_v5 = vpop.f32.mrb[13].mxu1 }
 0x1c3   : > { %v6117_v6 = vpop.f32.mrb[14].mxu1 }
 0x1c4   : > { %v6119_v7 = vpop.f32.mrb[15].mxu1 }
 0x1ca   : > { %v5036_v8 = vpop.f32.mrb[0].mxu0 }
 0x1cb   : > { %v5074_v10 = vadd.f32 %v5036_v8, %v4836_v56  ;;  %v3425_v11 = vpop.f32.mrb[1].mxu0 }
 0x1cc   : > { %v5075_v12 = vadd.f32 %v3425_v11, %v1495_v57  ;;  %v5037_v13 = vpop.f32.mrb[2].mxu0 }
 0x1cd   : > { %v3593_v14 = vadd.f32 %v5074_v10, %v6124_v9  ;;  %v5076_v15 = vadd.f32 %v5037_v13, %v4837_v58  ;;  %v3428_v16 = vpop.f32.mrb[3].mxu0 }
 0x1ce   : > { %v3591_v17 = vadd.f32 %v5075_v12, %v6124_v9  ;;  %v5077_v18 = vadd.f32 %v3428_v16, %v1498_v59 }
 0x1cf   : > { %v4493_v19 = vmul.f32 -1.442695, %v3593_v14  ;;  %v3594_v20 = vadd.f32 %v5076_v15, %v6124_v9 }
 0x1d0   : > { %v4491_v21 = vmul.f32 -1.442695, %v3591_v17  ;;  %v3592_v22 = vadd.f32 %v5077_v18, %v6124_v9 }
 0x1d1   : > { %5519 = vpow2.f32 %v4493_v19  ;;  %v4494_v23 = vmul.f32 -1.442695, %v3594_v20 }
 0x1d2   : > { %5521 = vpow2.f32 %v4491_v21  ;;  %v4492_v24 = vmul.f32 -1.442695, %v3592_v22  ;;  %v5040_v25 = vpop.f32.mrb[4].mxu0 }
 0x1d3   : > { %5523 = vpow2.f32 %v4494_v23  ;;  %v5078_v26 = vadd.f32 %v5040_v25, %v4840_v60  ;;  %v3441_v27 = vpop.f32.mrb[5].mxu0 }
 0x1d4   : > { %5525 = vpow2.f32 %v4492_v24  ;;  %v5079_v28 = vadd.f32 %v3441_v27, %v1511_v61  ;;  %v5041_v29 = vpop.f32.mrb[6].mxu0 }
 0x1d5   : > { %v3597_v30 = vadd.f32 %v5078_v26, %v6124_v9  ;;  %v5080_v31 = vadd.f32 %v5041_v29, %v4841_v62  ;;  %v3444_v32 = vpop.f32.mrb[7].mxu0 }
 0x1d6   : > { %v3595_v33 = vadd.f32 %v5079_v28, %v6124_v9  ;;  %v5081_v34 = vadd.f32 %v3444_v32, %v1514_v63 }
 0x1d7   : > { %v4497_v35 = vmul.f32 -1.442695, %v3597_v30  ;;  %v3598_v36 = vadd.f32 %v5080_v31, %v6124_v9 }
 0x1d8   : > { %v4495_v37 = vmul.f32 -1.442695, %v3595_v33  ;;  %v3596_v38 = vadd.f32 %v5081_v34, %v6124_v9 }
 0x1d9   : > { %5527 = vpow2.f32 %v4497_v35  ;;  %v4498_v39 = vmul.f32 -1.442695, %v3598_v36 }
 0x1da   : > { %5529 = vpow2.f32 %v4495_v37  ;;  %v4496_v40 = vmul.f32 -1.442695, %v3596_v38  ;;  %v5044_v41 = vpop.f32.mrb[8].mxu0 }
 0x1db   : > { %v5520_v42 = vpop.eup %5519  ;;  %5531 = vpow2.f32 %v4498_v39  ;;  %v5082_v43 = vadd.f32 %v5044_v41, %v4844_v0  ;;  %v3457_v44 = vpop.f32.mrb[9].mxu0 }
 0x1dc   : > { %v5522_v45 = vpop.eup %5521  ;;  %v3721_v46 = vadd.f32 1.0, %v5520_v42  ;;  %5533 = vpow2.f32 %v4496_v40  ;;  %v5083_v47 = vadd.f32 %v3457_v44, %v1527_v1  ;;  %v5045_v48 = vpop.f32.mrb[10].mxu0 }
 0x1dd   : > { %v5524_v49 = vpop.eup %5523  ;;  %v3719_v50 = vadd.f32 1.0, %v5522_v45  ;;  %v3601_v51 = vadd.f32 %v5082_v43, %v6124_v9  ;;  %v5084_v52 = vadd.f32 %v5045_v48, %v4845_v2  ;;  %v3460_v53 = vpop.f32.mrb[11].mxu0 }
 0x1de   : > { %v5526_v54 = vpop.eup %5525  ;;  %5535 = vrcp.f32 %v3721_v46  ;;  %v3722_v55 = vadd.f32 1.0, %v5524_v49  ;;  %v3599_v56 = vadd.f32 %v5083_v47, %v6124_v9  ;;  %v5085_v57 = vadd.f32 %v3460_v53, %v6111_v3 }
 0x1df   : > { %5537 = vrcp.f32 %v3719_v50  ;;  %v3720_v58 = vadd.f32 1.0, %v5526_v54  ;;  %v4501_v59 = vmul.f32 -1.442695, %v3601_v51  ;;  %v3602_v60 = vadd.f32 %v5084_v52, %v6124_v9 }
 0x1e0   : > { %5539 = vrcp.f32 %v3722_v55  ;;  %v4499_v61 = vmul.f32 -1.442695, %v3599_v56  ;;  %v3600_v62 = vadd.f32 %v5085_v57, %v6124_v9 }
 0x1e1   : > { %5541 = vrcp.f32 %v3720_v58  ;;  %v4502_v63 = vmul.f32 -1.442695, %v3602_v60 }
 0x1e2   : > { %5543 = vpow2.f32 %v4501_v59  ;;  %v4500_v0 = vmul.f32 -1.442695, %v3600_v62  ;;  %v5048_v1 = vpop.f32.mrb[12].mxu0 }
 0x1e3   : > { %v5528_v2 = vpop.eup %5527  ;;  %5545 = vpow2.f32 %v4499_v61  ;;  %v5086_v8 = vadd.f32 %v5048_v1, %v6113_v4  ;;  %v3473_v3 = vpop.f32.mrb[13].mxu0 }
 0x1e4   : > { %v5530_v10 = vpop.eup %5529  ;;  %v3725_v11 = vadd.f32 1.0, %v5528_v2  ;;  %5547 = vpow2.f32 %v4502_v63  ;;  %v5087_v12 = vadd.f32 %v3473_v3, %v6115_v5  ;;  %v5049_v13 = vpop.f32.mrb[14].mxu0 }
 0x1e5   : > { %v5532_v14 = vpop.eup %5531  ;;  %v3723_v15 = vadd.f32 1.0, %v5530_v10  ;;  %5549 = vpow2.f32 %v4500_v0  ;;  %v3605_v16 = vadd.f32 %v5086_v8, %v6124_v9  ;;  %v5088_v17 = vadd.f32 %v5049_v13, %v6117_v6  ;;  %v3476_v18 = vpop.f32.mrb[15].mxu0 }
 0x1e6   : > { %v5534_v19 = vpop.eup %5533  ;;  %5551 = vrcp.f32 %v3725_v11  ;;  %v3726_v4 = vadd.f32 1.0, %v5532_v14  ;;  %v3603_v5 = vadd.f32 %v5087_v12, %v6124_v9  ;;  %v5089_v20 = vadd.f32 %v3476_v18, %v6119_v7 }
 0x1e7   : > { %5553 = vrcp.f32 %v3723_v15  ;;  %v3724_v21 = vadd.f32 1.0, %v5534_v19  ;;  %v4505_v22 = vmul.f32 -1.442695, %v3605_v16  ;;  %v3606_v6 = vadd.f32 %v5088_v17, %v6124_v9 }
 0x1e8   : > { %v5536_v23 = vpop.eup %5535  ;;  %5555 = vrcp.f32 %v3726_v4  ;;  %v4503_v24 = vmul.f32 -1.442695, %v3603_v5  ;;  %v3604_v25 = vadd.f32 %v5089_v20, %v6124_v9 }
 0x1e9   : > { %v5538_v26 = vpop.eup %5537  ;;  %3817 = vst [vmem:[%s6147_s28 + $0x10] sm:$0xff] %v5536_v23  ;;  %5557 = vrcp.f32 %v3724_v21  ;;  %v4506_v27 = vmul.f32 -1.442695, %v3606_v6  ;;  %v4892_v28 = vpop.f32.mrb[16].mxu1 }
 0x1ea   : > { %v5540_v29 = vpop.eup %5539  ;;  %3815 = vst [vmem:[%s6147_s28] sm:$0xff] %v5538_v26  ;;  %5559 = vpow2.f32 %v4505_v22  ;;  %v4504_v7 = vmul.f32 -1.442695, %v3604_v25  ;;  %v5052_v30 = vpop.f32.mrb[16].mxu0 }
 0x1eb   : > { %v1945_v31 = vpop.f32.mrb[17].mxu1  ;;  %v5542_v32 = vpop.eup %5541  ;;  %3818 = vst [vmem:[%s6147_s28 + $0x18] sm:$0xff] %v5540_v29  ;;  %5561 = vpow2.f32 %v4503_v24  ;;  %v5090_v33 = vadd.f32 %v5052_v30, %v4892_v28 }
 0x1ec   : > { %v3489_v34 = vpop.f32.mrb[17].mxu0  ;;  %v4893_v35 = vpop.f32.mrb[18].mxu1  ;;  %3816 = vst [vmem:[%s6147_s28 + $0x8] sm:$0xff] %v5542_v32  ;;  %5563 = vpow2.f32 %v4506_v27 }
 0x1ed   : > { %v5544_v36 = vpop.eup %5543  ;;  %v5091_v37 = vadd.f32 %v3489_v34, %v1945_v31  ;;  %v5053_v38 = vpop.f32.mrb[18].mxu0  ;;  %5565 = vpow2.f32 %v4504_v7  ;;  %v3609_v42 = vadd.f32 %v5090_v33, %v6124_v9 }
 0x1ee   : > { %v1948_v39 = vpop.f32.mrb[19].mxu1  ;;  %v5546_v40 = vpop.eup %5545  ;;  %v3729_v41 = vadd.f32 1.0, %v5544_v36  ;;  %v5092_v43 = vadd.f32 %v5053_v38, %v4893_v35 }
 0x1ef   : > { %v3492_v44 = vpop.f32.mrb[19].mxu0  ;;  %v5548_v45 = vpop.eup %5547  ;;  %v3727_v46 = vadd.f32 1.0, %v5546_v40  ;;  %v3607_v47 = vadd.f32 %v5091_v37, %v6124_v9  ;;  %v4509_v51 = vmul.f32 -1.442695, %v3609_v42 }
 0x1f0   : > { %v5093_v48 = vadd.f32 %v3492_v44, %v1948_v39  ;;  %v5550_v49 = vpop.eup %5549  ;;  %5567 = vrcp.f32 %v3729_v41  ;;  %v3730_v50 = vadd.f32 1.0, %v5548_v45  ;;  %v3610_v52 = vadd.f32 %v5092_v43, %v6124_v9 }
 0x1f1   : > { %v5552_v53 = vpop.eup %5551  ;;  %5569 = vrcp.f32 %v3727_v46  ;;  %v3728_v54 = vadd.f32 1.0, %v5550_v49  ;;  %v4507_v55 = vmul.f32 -1.442695, %v3607_v47  ;;  %v4896_v59 = vpop.f32.mrb[20].mxu1 }
 0x1f2   : > { %v3608_v56 = vadd.f32 %v5093_v48, %v6124_v9  ;;  %v5554_v57 = vpop.eup %5553  ;;  %3821 = vst [vmem:[%s6147_s28 + $0x30] sm:$0xff] %v5552_v53  ;;  %5571 = vrcp.f32 %v3730_v50  ;;  %v4510_v58 = vmul.f32 -1.442695, %v3610_v52  ;;  %v5056_v62 = vpop.f32.mrb[20].mxu0 }
 0x1f3   : > { %v5556_v60 = vpop.eup %5555  ;;  %3819 = vst [vmem:[%s6147_s28 + $0x20] sm:$0xff] %v5554_v57  ;;  %5573 = vrcp.f32 %v3728_v54  ;;  %v1961_v63 = vpop.f32.mrb[21].mxu1  ;;  %v5094_v1 = vadd.f32 %v5056_v62, %v4896_v59 }
 0x1f4   : > { %v4508_v61 = vmul.f32 -1.442695, %v3608_v56  ;;  %v5558_v0 = vpop.eup %5557  ;;  %3822 = vst [vmem:[%s6147_s28 + $0x38] sm:$0xff] %v5556_v60  ;;  %5575 = vpow2.f32 %v4509_v51  ;;  %v3505_v2 = vpop.f32.mrb[21].mxu0 }
 0x1f5   : > { %v4897_v8 = vpop.f32.mrb[22].mxu1  ;;  %v5560_v3 = vpop.eup %5559  ;;  %3820 = vst [vmem:[%s6147_s28 + $0x28] sm:$0xff] %v5558_v0  ;;  %5577 = vpow2.f32 %v4507_v55  ;;  %v5095_v10 = vadd.f32 %v3505_v2, %v1961_v63  ;;  %v3613_v15 = vadd.f32 %v5094_v1, %v6124_v9 }
 0x1f6   : > { %v5057_v11 = vpop.f32.mrb[22].mxu0  ;;  %v1964_v12 = vpop.f32.mrb[23].mxu1  ;;  %v3733_v14 = vadd.f32 1.0, %v5560_v3  ;;  %5579 = vpow2.f32 %v4510_v58 }
 0x1f7   : > { %v5562_v13 = vpop.eup %5561  ;;  %v5096_v16 = vadd.f32 %v5057_v11, %v4897_v8  ;;  %v3508_v17 = vpop.f32.mrb[23].mxu0  ;;  %5581 = vpow2.f32 %v4508_v61  ;;  %v3611_v4 = vadd.f32 %v5095_v10, %v6124_v9  ;;  %v4513_v22 = vmul.f32 -1.442695, %v3613_v15 }
 0x1f8   : > { %v5564_v18 = vpop.eup %5563  ;;  %v3731_v19 = vadd.f32 1.0, %v5562_v13  ;;  %v5097_v5 = vadd.f32 %v3508_v17, %v1964_v12  ;;  %5583 = vrcp.f32 %v3733_v14 }
 0x1f9   : > { %v5566_v20 = vpop.eup %5565  ;;  %v3734_v21 = vadd.f32 1.0, %v5564_v18  ;;  %v3614_v6 = vadd.f32 %v5096_v16, %v6124_v9  ;;  %v4511_v24 = vmul.f32 -1.442695, %v3611_v4  ;;  %v4900_v28 = vpop.f32.mrb[24].mxu1 }
 0x1fa   : > { %5585 = vrcp.f32 %v3731_v19  ;;  %v3732_v23 = vadd.f32 1.0, %v5566_v20  ;;  %v3612_v25 = vadd.f32 %v5097_v5, %v6124_v9  ;;  %v5568_v26 = vpop.eup %5567  ;;  %v5060_v30 = vpop.f32.mrb[24].mxu0 }
 0x1fb   : > { %5587 = vrcp.f32 %v3734_v21  ;;  %v4514_v27 = vmul.f32 -1.442695, %v3614_v6  ;;  %v5570_v29 = vpop.eup %5569  ;;  %3825 = vst [vmem:[%s6147_s28 + $0x50] sm:$0xff] %v5568_v26  ;;  %v1977_v31 = vpop.f32.mrb[25].mxu1  ;;  %v5098_v33 = vadd.f32 %v5060_v30, %v4900_v28 }
 0x1fc   : > { %5589 = vrcp.f32 %v3732_v23  ;;  %v4512_v7 = vmul.f32 -1.442695, %v3612_v25  ;;  %v5572_v32 = vpop.eup %5571  ;;  %3823 = vst [vmem:[%s6147_s28 + $0x40] sm:$0xff] %v5570_v29  ;;  %v3521_v34 = vpop.f32.mrb[25].mxu0 }
 0x1fd   : > { %5591 = vpow2.f32 %v4513_v22  ;;  %v4901_v35 = vpop.f32.mrb[26].mxu1  ;;  %v5574_v36 = vpop.eup %5573  ;;  %3826 = vst [vmem:[%s6147_s28 + $0x58] sm:$0xff] %v5572_v32  ;;  %v5099_v37 = vadd.f32 %v3521_v34, %v1977_v31  ;;  %v3617_v41 = vadd.f32 %v5098_v33, %v6124_v9 }
 0x1fe   : > { %5593 = vpow2.f32 %v4511_v24  ;;  %v5061_v38 = vpop.f32.mrb[26].mxu0  ;;  %v1980_v39 = vpop.f32.mrb[27].mxu1  ;;  %3824 = vst [vmem:[%s6147_s28 + $0x48] sm:$0xff] %v5574_v36 }
 0x1ff   : > { %v5576_v40 = vpop.eup %5575  ;;  %5595 = vpow2.f32 %v4514_v27  ;;  %v5100_v42 = vadd.f32 %v5061_v38, %v4901_v35  ;;  %v3524_v43 = vpop.f32.mrb[27].mxu0  ;;  %v3615_v46 = vadd.f32 %v5099_v37, %v6124_v9  ;;  %v4517_v53 = vmul.f32 -1.442695, %v3617_v41 }
 0x200   : > { %v5578_v44 = vpop.eup %5577  ;;  %v3737_v45 = vadd.f32 1.0, %v5576_v40  ;;  %5597 = vpow2.f32 %v4512_v7  ;;  %v5101_v47 = vadd.f32 %v3524_v43, %v1980_v39 }
 0x201   : > { %v5580_v48 = vpop.eup %5579  ;;  %v3735_v49 = vadd.f32 1.0, %v5578_v44  ;;  %v3618_v50 = vadd.f32 %v5100_v42, %v6124_v9  ;;  %v4515_v57 = vmul.f32 -1.442695, %v3615_v46  ;;  %v4904_v58 = vpop.f32.mrb[28].mxu1 }
 0x202   : > { %v5582_v51 = vpop.eup %5581  ;;  %5599 = vrcp.f32 %v3737_v45  ;;  %v3738_v52 = vadd.f32 1.0, %v5580_v48  ;;  %v3616_v54 = vadd.f32 %v5101_v47, %v6124_v9  ;;  %v5064_v61 = vpop.f32.mrb[28].mxu0 }
 0x203   : > { %v5584_v55 = vpop.eup %5583  ;;  %5601 = vrcp.f32 %v3735_v49  ;;  %v3736_v56 = vadd.f32 1.0, %v5582_v51  ;;  %v4518_v60 = vmul.f32 -1.442695, %v3618_v50  ;;  %v1993_v62 = vpop.f32.mrb[29].mxu1  ;;  %v5102_v1 = vadd.f32 %v5064_v61, %v4904_v58 }
 0x204   : > { %v5586_v59 = vpop.eup %5585  ;;  %3829 = vst [vmem:[%s6147_s28 + $0x70] sm:$0xff] %v5584_v55  ;;  %5603 = vrcp.f32 %v3738_v52  ;;  %v4516_v0 = vmul.f32 -1.442695, %v3616_v54  ;;  %v3537_v2 = vpop.f32.mrb[29].mxu0 }
 0x205   : > { %v5588_v63 = vpop.eup %5587  ;;  %3827 = vst [vmem:[%s6147_s28 + $0x60] sm:$0xff] %v5586_v59  ;;  %5605 = vrcp.f32 %v3736_v56  ;;  %v4905_v8 = vpop.f32.mrb[30].mxu1  ;;  %v5103_v10 = vadd.f32 %v3537_v2, %v1993_v62  ;;  %v3621_v14 = vadd.f32 %v5102_v1, %v6124_v9 }
 0x206   : > { %v5590_v3 = vpop.eup %5589  ;;  %3830 = vst [vmem:[%s6147_s28 + $0x78] sm:$0xff] %v5588_v63  ;;  %5607 = vpow2.f32 %v4517_v53  ;;  %v5065_v11 = vpop.f32.mrb[30].mxu0 }
 0x207   : > { %v1996_v12 = vpop.f32.mrb[31].mxu1  ;;  %v5592_v13 = vpop.eup %5591  ;;  %3828 = vst [vmem:[%s6147_s28 + $0x68] sm:$0xff] %v5590_v3  ;;  %5609 = vpow2.f32 %v4515_v57  ;;  %v5104_v15 = vadd.f32 %v5065_v11, %v4905_v8  ;;  %v3619_v19 = vadd.f32 %v5103_v10, %v6124_v9  ;;  %v4521_v23 = vmul.f32 -1.442695, %v3621_v14 }
 0x208   : > { %v3540_v16 = vpop.f32.mrb[31].mxu0  ;;  %v5594_v17 = vpop.eup %5593  ;;  %v3741_v18 = vadd.f32 1.0, %v5592_v13  ;;  %5611 = vpow2.f32 %v4518_v60 }
 0x209   : > { %v5105_v4 = vadd.f32 %v3540_v16, %v1996_v12  ;;  %v5596_v5 = vpop.eup %5595  ;;  %v3739_v20 = vadd.f32 1.0, %v5594_v17  ;;  %5613 = vpow2.f32 %v4516_v0  ;;  %v3622_v21 = vadd.f32 %v5104_v15, %v6124_v9 }
 0x20a   : > { %v5598_v22 = vpop.eup %5597  ;;  %5615 = vrcp.f32 %v3741_v18  ;;  %v3742_v6 = vadd.f32 1.0, %v5596_v5  ;;  %v4519_v26 = vmul.f32 -1.442695, %v3619_v19 }
 0x20b   : > { %v3620_v24 = vadd.f32 %v5105_v4, %v6124_v9  ;;  %5617 = vrcp.f32 %v3739_v20  ;;  %v3740_v25 = vadd.f32 1.0, %v5598_v22  ;;  %v4522_v28 = vmul.f32 -1.442695, %v3622_v21 }
 0x20c   : > { %v5600_v27 = vpop.eup %5599  ;;  %5619 = vrcp.f32 %v3742_v6 }
 0x20d   : > { %v5602_v29 = vpop.eup %5601  ;;  %3833 = vst [vmem:[%s6147_s28 + $0x90] sm:$0xff] %v5600_v27  ;;  %5621 = vrcp.f32 %v3740_v25  ;;  %v4520_v7 = vmul.f32 -1.442695, %v3620_v24 }
 0x20e   : > { %v5604_v30 = vpop.eup %5603  ;;  %3831 = vst [vmem:[%s6147_s28 + $0x80] sm:$0xff] %v5602_v29  ;;  %5623 = vpow2.f32 %v4521_v23 }
 0x20f   : > { %v5606_v31 = vpop.eup %5605  ;;  %3834 = vst [vmem:[%s6147_s28 + $0x98] sm:$0xff] %v5604_v30  ;;  %5625 = vpow2.f32 %v4519_v26 }
 0x210   : > { %v5608_v32 = vpop.eup %5607  ;;  %3832 = vst [vmem:[%s6147_s28 + $0x88] sm:$0xff] %v5606_v31  ;;  %5627 = vpow2.f32 %v4522_v28 }
 0x211   : > { %v5610_v9 = vpop.eup %5609  ;;  %v3745_v33 = vadd.f32 1.0, %v5608_v32  ;;  %5629 = vpow2.f32 %v4520_v7 }
 0x212   : > { %v5612_v34 = vpop.eup %5611  ;;  %v3743_v35 = vadd.f32 1.0, %v5610_v9 }
 0x213   : > { %v5614_v36 = vpop.eup %5613  ;;  %5631 = vrcp.f32 %v3745_v33  ;;  %v3746_v37 = vadd.f32 1.0, %v5612_v34 }
 0x214   : > { %v5616_v38 = vpop.eup %5615  ;;  %5633 = vrcp.f32 %v3743_v35  ;;  %v3744_v39 = vadd.f32 1.0, %v5614_v36 }
 0x215   : > { %v5618_v40 = vpop.eup %5617  ;;  %3837 = vst [vmem:[%s6147_s28 + $0xb0] sm:$0xff] %v5616_v38  ;;  %5635 = vrcp.f32 %v3746_v37 }
 0x216   : > { %v5620_v41 = vpop.eup %5619  ;;  %3835 = vst [vmem:[%s6147_s28 + $0xa0] sm:$0xff] %v5618_v40  ;;  %5637 = vrcp.f32 %v3744_v39 }
 0x217   : > { %v5622_v42 = vpop.eup %5621  ;;  %3838 = vst [vmem:[%s6147_s28 + $0xb8] sm:$0xff] %v5620_v41 }
 0x218   : > { %v5624_v43 = vpop.eup %5623  ;;  %3836 = vst [vmem:[%s6147_s28 + $0xa8] sm:$0xff] %v5622_v42 }
 0x219   : > { %v5626_v44 = vpop.eup %5625  ;;  %v3749_v45 = vadd.f32 1.0, %v5624_v43 }
 0x21a   : > { %v5628_v46 = vpop.eup %5627  ;;  %v3747_v47 = vadd.f32 1.0, %v5626_v44 }
 0x21b   : > { %v5630_v48 = vpop.eup %5629  ;;  %5639 = vrcp.f32 %v3749_v45  ;;  %v3750_v49 = vadd.f32 1.0, %v5628_v46 }
 0x21c   : > { %5641 = vrcp.f32 %v3747_v47  ;;  %v3748_v50 = vadd.f32 1.0, %v5630_v48 }
 0x21d   : > { %v5632_v51 = vpop.eup %5631  ;;  %5643 = vrcp.f32 %v3750_v49 }
 0x21e   : > { %v5634_v52 = vpop.eup %5633  ;;  %3841 = vst [vmem:[%s6147_s28 + $0xd0] sm:$0xff] %v5632_v51  ;;  %5645 = vrcp.f32 %v3748_v50 }
 0x21f   : > { %v5636_v53 = vpop.eup %5635  ;;  %3839 = vst [vmem:[%s6147_s28 + $0xc0] sm:$0xff] %v5634_v52 }
 0x220   : > { %v5638_v54 = vpop.eup %5637  ;;  %3842 = vst [vmem:[%s6147_s28 + $0xd8] sm:$0xff] %v5636_v53 }
 0x221   : > { %3840 = vst [vmem:[%s6147_s28 + $0xc8] sm:$0xff] %v5638_v54 }
 0x225   : > { %v5640_v55 = vpop.eup %5639 }
 0x226   : > { %v5642_v56 = vpop.eup %5641  ;;  %3845 = vst [vmem:[%s6147_s28 + $0xf0] sm:$0xff] %v5640_v55 }
 0x227   : > { %v5644_v57 = vpop.eup %5643  ;;  %3843 = vst [vmem:[%s6147_s28 + $0xe0] sm:$0xff] %v5642_v56 }
 0x228   : > { %v5646_v58 = vpop.eup %5645  ;;  %3846 = vst [vmem:[%s6147_s28 + $0xf8] sm:$0xff] %v5644_v57 }
 0x229   : > { %3844 = vst [vmem:[%s6147_s28 + $0xe8] sm:$0xff] %v5646_v58 }
 0x22a PF: > { %s13_s12 = sadd.s32 1, %s5657_s12  }
 0x22b   : > { %p10_p4 = scmp.ge.s32.totalorder %s13_s12, 4  }
 0x22d   :  { %12 = sbr.rel (!%p10_p4) target bundleno = 1 (0x1), region = 72 }

</bundles_post_ra>
